<compile_context>
chip_gen: v6e
topology: v6e:2x2x1
jax: 0.10.0
libtpu: 0.0.40
codegen_flags: <defaults>
</compile_context>

<pallas_src>
import functools

import jax
import jax.numpy as jnp
from jax.experimental import pallas as pl
from jax.experimental.pallas import tpu as pltpu


# ---------------------------------------------------------------------------
# Kernel: one grid step per batch element; the whole decoder layer is fused.
# ---------------------------------------------------------------------------
def _decoder_layer_kernel(
    # inputs
    x_ref, enc_ref, trgb_ref, srcb_ref,
    ln1w_ref, ln1b_ref, ln2w_ref, ln2b_ref, ln3w_ref, ln3b_ref,
    wq1_ref, wk1_ref, wv1_ref, wo1_ref,
    wq2_ref, wk2_ref, wv2_ref, wo2_ref,
    ffw1_ref, ffb1_ref, ffw2_ref, ffb2_ref,
    # outputs
    xo_ref, sa_ref, ca_ref,
    *, num_heads, d_k_per_head, eps,
):
    x = x_ref[0].astype(jnp.float32)        # (T, D)
    enc = enc_ref[0].astype(jnp.float32)    # (S, D)
    trg_bias = trgb_ref[...]                # (1, 1, T) additive bias (0 / -1e30)
    src_bias = srcb_ref[...]                # (1, 1, S)

    H = num_heads
    scale = d_k_per_head ** (-0.5)

    def layer_norm(v, w_ref, b_ref):
        mu = jnp.mean(v, axis=-1, keepdims=True)
        var = jnp.mean(jnp.square(v - mu), axis=-1, keepdims=True)
        return (v - mu) * jax.lax.rsqrt(var + eps) * w_ref[...] + b_ref[...]

    def mha(q_in, kv_in, bias, wq_ref, wk_ref, wv_ref, wo_ref, attn_ref):
        # q_in: (T, D); kv_in: (S, D); bias: (1, 1, S)
        T_, D_ = q_in.shape
        S_ = kv_in.shape[0]
        # Heads as a leading batch axis -> all contractions are canonical batched
        # matmuls on the MXU (no per-head slicing / concat / transposes).
        qb = jnp.broadcast_to(q_in[None], (H, T_, D_))
        kvb = jnp.broadcast_to(kv_in[None], (H, S_, D_))
        Q = jnp.einsum('htd,hdk->htk', qb, wq_ref[...],
                       preferred_element_type=jnp.float32)          # (H, T, dkh)
        K = jnp.einsum('hsd,hdk->hsk', kvb, wk_ref[...],
                       preferred_element_type=jnp.float32)          # (H, S, dkh)
        V = jnp.einsum('hsd,hdv->hsv', kvb, wv_ref[...],
                       preferred_element_type=jnp.float32)          # (H, S, dvh)

        energy = jnp.einsum('htk,hsk->hts', Q, K,
                            preferred_element_type=jnp.float32) * scale
        energy = energy + bias                                      # broadcast (1,1,S)

        m = jnp.max(energy, axis=-1, keepdims=True)
        p = jnp.exp(energy - m)
        s = jnp.sum(p, axis=-1, keepdims=True)
        r = pl.reciprocal(s, approx=True)        # EUP vrcp (otherwise idle slot)
        r = r * (2.0 - s * r)                    # one Newton step -> f32 accuracy
        a = p * r                                # (H, T, S)

        attn_ref[0] = a.astype(attn_ref.dtype)

        ctx = jnp.einsum('hts,hsv->htv', a, V,
                         preferred_element_type=jnp.float32)        # (H, T, dvh)
        y_h = jnp.einsum('htv,hvd->htd', ctx, wo_ref[...],
                         preferred_element_type=jnp.float32)        # (H, T, D)
        return jnp.sum(y_h, axis=0)                                 # (T, D)

    # ---- sublayer 1: masked self attention (Pre-LN) ----
    xn = layer_norm(x, ln1w_ref, ln1b_ref)
    x = x + mha(xn, xn, trg_bias, wq1_ref, wk1_ref, wv1_ref, wo1_ref, sa_ref)

    # ---- sublayer 2: cross attention with encoder outputs ----
    xn = layer_norm(x, ln2w_ref, ln2b_ref)
    x = x + mha(xn, enc, src_bias, wq2_ref, wk2_ref, wv2_ref, wo2_ref, ca_ref)

    # ---- sublayer 3: feed-forward ----
    xn = layer_norm(x, ln3w_ref, ln3b_ref)
    hidden = jnp.maximum(
        jnp.dot(xn, ffw1_ref[...], preferred_element_type=jnp.float32) + ffb1_ref[...],
        0.0,
    )
    x = x + jnp.dot(hidden, ffw2_ref[...], preferred_element_type=jnp.float32) + ffb2_ref[...]

    xo_ref[0] = x.astype(xo_ref.dtype)


# ---------------------------------------------------------------------------
# Wrapper
# ---------------------------------------------------------------------------
def decoder_layer(x, enc, trg_mask, src_mask, params, *, num_heads):
    """x: (B,T,D), enc: (B,S,D), trg_mask: (B,T), src_mask: (B,S) (1=keep, 0=masked)."""
    B, T, D = x.shape
    S = enc.shape[1]
    d_k = params["wq1"].shape[1]
    d_v = params["wv1"].shape[1]
    d_ff = params["ffw1"].shape[1]
    dkh = d_k // num_heads
    dvh = d_v // num_heads

    # Precompute additive attention bias once (no per-head compare/select, no -inf NaN).
    neg = jnp.float32(-1e30)
    zero = jnp.float32(0.0)
    trg_bias = jnp.where(trg_mask == 0, neg, zero).astype(jnp.float32).reshape(B, 1, T)
    src_bias = jnp.where(src_mask == 0, neg, zero).astype(jnp.float32).reshape(B, 1, S)

    # Split heads on the host (free): projections become head-batched matmuls.
    def split_qkv(w):   # (D, H*dh) -> (H, D, dh)
        return w.reshape(D, num_heads, -1).transpose(1, 0, 2)

    def split_out(w):   # (H*dvh, D) -> (H, dvh, D)
        return w.reshape(num_heads, dvh, D)

    wq1 = split_qkv(params["wq1"]); wk1 = split_qkv(params["wk1"])
    wv1 = split_qkv(params["wv1"]); wo1 = split_out(params["wo1"])
    wq2 = split_qkv(params["wq2"]); wk2 = split_qkv(params["wk2"])
    wv2 = split_qkv(params["wv2"]); wo2 = split_out(params["wo2"])

    weight_args = (
        params["ln1w"], params["ln1b"], params["ln2w"], params["ln2b"],
        params["ln3w"], params["ln3b"],
        wq1, wk1, wv1, wo1,
        wq2, wk2, wv2, wo2,
        params["ffw1"], params["ffb1"], params["ffw2"], params["ffb2"],
    )

    def full_spec(arr):
        nd = arr.ndim
        return pl.BlockSpec(arr.shape, lambda b, _n=nd: (0,) * _n)

    in_specs = [
        pl.BlockSpec((1, T, D), lambda b: (b, 0, 0)),   # x
        pl.BlockSpec((1, S, D), lambda b: (b, 0, 0)),   # enc
        pl.BlockSpec((1, 1, T), lambda b: (b, 0, 0)),   # trg additive bias
        pl.BlockSpec((1, 1, S), lambda b: (b, 0, 0)),   # src additive bias
    ] + [full_spec(w) for w in weight_args]

    out_specs = [
        pl.BlockSpec((1, T, D), lambda b: (b, 0, 0)),
        pl.BlockSpec((1, num_heads, T, T), lambda b: (b, 0, 0, 0)),
        pl.BlockSpec((1, num_heads, T, S), lambda b: (b, 0, 0, 0)),
    ]

    out_shape = (
        jax.ShapeDtypeStruct((B, T, D), jnp.float32),
        jax.ShapeDtypeStruct((B, num_heads, T, T), jnp.float32),
        jax.ShapeDtypeStruct((B, num_heads, T, S), jnp.float32),
    )

    # Explicit scoped-VMEM budget: derive from block sizes, cap at 56 MiB so it
    # leaves headroom on v7x (64 MiB physical) while using v5e/v6e (128 MiB) freely.
    fsz = 4

    def _sz(shape):
        n = 1
        for d in shape:
            n *= int(d)
        return n * fsz

    io_bytes = (_sz((T, D)) + _sz((S, D)) + _sz((1, T)) + _sz((1, S))
                + _sz((T, D)) + _sz((num_heads, T, T)) + _sz((num_heads, T, S)))
    weight_bytes = sum(_sz(w.shape) for w in weight_args)
    scratch_bytes = 6 * (_sz((num_heads, T, max(T, S)))
                         + _sz((num_heads, max(T, S), max(D, d_ff))))
    vmem_limit = int(min(56 * 1024 * 1024,
                         max(2 * io_bytes + 2 * weight_bytes + scratch_bytes,
                             16 * 1024 * 1024)))

    kernel = functools.partial(
        _decoder_layer_kernel,
        num_heads=num_heads, d_k_per_head=dkh, eps=1e-5,
    )

    return pl.pallas_call(
        kernel,
        out_shape=out_shape,
        grid_spec=pltpu.PrefetchScalarGridSpec(
            num_scalar_prefetch=0,
            grid=(B,),
            in_specs=in_specs,
            out_specs=out_specs,
        ),
        compiler_params=pltpu.CompilerParams(
            dimension_semantics=("parallel",),
            vmem_limit_bytes=vmem_limit,
        ),
    )(
        x, enc, trg_bias, src_bias, *weight_args,
    )


# ---------------------------------------------------------------------------
# Pure-JAX reference (mirrors the PyTorch semantics) for a sanity check.
# ---------------------------------------------------------------------------
def _ref_layer_norm(v, w, b, eps=1e-5):
    mu = jnp.mean(v, axis=-1, keepdims=True)
    var = jnp.mean((v - mu) ** 2, axis=-1, keepdims=True)
    return (v - mu) / jnp.sqrt(var + eps) * w + b


def _ref_mha(q, kv, mask, wq, wk, wv, wo, num_heads):
    B, T, _ = q.shape
    S = kv.shape[1]
    Q = q @ wq
    K = kv @ wk
    V = kv @ wv
    dkh = Q.shape[-1] // num_heads
    dvh = V.shape[-1] // num_heads
    Qh = Q.reshape(B, T, num_heads, dkh).transpose(0, 2, 1, 3)
    Kh = K.reshape(B, S, num_heads, dkh).transpose(0, 2, 1, 3)
    Vh = V.reshape(B, S, num_heads, dvh).transpose(0, 2, 1, 3)
    energy = (Qh @ Kh.transpose(0, 1, 3, 2)) * (dkh ** -0.5)
    energy = jnp.where(mask[:, None, None, :] == 0, -jnp.inf, energy)
    a = jax.nn.softmax(energy, axis=-1)
    o = (a @ Vh).transpose(0, 2, 1, 3).reshape(B, T, -1) @ wo
    return o, a


def _ref_decoder_layer(x, enc, trg_mask, src_mask, p, num_heads):
    xn = _ref_layer_norm(x, p["ln1w"][0], p["ln1b"][0])
    sa, sa_w = _ref_mha(xn, xn, trg_mask, p["wq1"], p["wk1"], p["wv1"], p["wo1"], num_heads)
    x = x + sa
    xn = _ref_layer_norm(x, p["ln2w"][0], p["ln2b"][0])
    ca, ca_w = _ref_mha(xn, enc, src_mask, p["wq2"], p["wk2"], p["wv2"], p["wo2"], num_heads)
    x = x + ca
    xn = _ref_layer_norm(x, p["ln3w"][0], p["ln3b"][0])
    h = jnp.maximum(xn @ p["ffw1"] + p["ffb1"][0], 0.0)
    x = x + h @ p["ffw2"] + p["ffb2"][0]
    return x, sa_w, ca_w


# ---------------------------------------------------------------------------
if __name__ == "__main__":
    # Full-f32 reference matmuls so the parity check isn't polluted by XLA's
    # default reduced-precision dots.
    jax.config.update("jax_default_matmul_precision", "highest")

    B, T, S = 2, 8, 8
    d_model, num_heads, d_ff = 32, 4, 64
    d_k = d_v = d_model

    key = jax.random.PRNGKey(0)
    keys = jax.random.split(key, 20)

    def w(k, shape, scale=0.05):
        return jax.random.normal(k, shape, dtype=jnp.float32) * scale

    params = {
        # LayerNorm affine params, kept 2D (1, d_model) for clean VMEM layout
        "ln1w": w(keys[0], (1, d_model)) + 1.0, "ln1b": w(keys[1], (1, d_model)),
        "ln2w": w(keys[2], (1, d_model)) + 1.0, "ln2b": w(keys[3], (1, d_model)),
        "ln3w": w(keys[4], (1, d_model)) + 1.0, "ln3b": w(keys[5], (1, d_model)),
        # attention projections, stored transposed: (in, out), y = x @ W
        "wq1": w(keys[6], (d_model, d_k)), "wk1": w(keys[7], (d_model, d_k)),
        "wv1": w(keys[8], (d_model, d_v)), "wo1": w(keys[9], (d_v, d_model)),
        "wq2": w(keys[10], (d_model, d_k)), "wk2": w(keys[11], (d_model, d_k)),
        "wv2": w(keys[12], (d_model, d_v)), "wo2": w(keys[13], (d_v, d_model)),
        # feed-forward
        "ffw1": w(keys[14], (d_model, d_ff)), "ffb1": w(keys[15], (1, d_ff)),
        "ffw2": w(keys[16], (d_ff, d_model)), "ffb2": w(keys[17], (1, d_model)),
    }

    x = jax.random.normal(keys[18], (B, T, d_model), dtype=jnp.float32)
    enc = jax.random.normal(keys[19], (B, S, d_model), dtype=jnp.float32)

    # padding masks (1 = keep, 0 = masked key position), never fully masked
    trg_mask = jnp.array(
        [[1.0] * T, [1.0] * (T - 2) + [0.0, 0.0]], dtype=jnp.float32)
    src_mask = jnp.array(
        [[1.0] * (S - 1) + [0.0], [1.0] * S], dtype=jnp.float32)

    out, self_w, cross_w = decoder_layer(
        x, enc, trg_mask, src_mask, params, num_heads=num_heads)
    jax.block_until_ready((out, self_w, cross_w))

    ref_out, ref_sw, ref_cw = _ref_decoder_layer(
        x, enc, trg_mask, src_mask, params, num_heads)
    assert jnp.allclose(out, ref_out, atol=2e-4, rtol=2e-4)
    assert jnp.allclose(self_w, ref_sw, atol=2e-4, rtol=2e-4)
    assert jnp.allclose(cross_w, ref_cw, atol=2e-4, rtol=2e-4)

    print("KERNEL_OK")
</pallas_src>

<mosaic_0001>
module attributes {stable_mosaic.version = 11 : i64} {
  func.func @_decoder_layer_kernel(%arg0: i32, %arg1: memref<1x8x32xf32, #tpu.memory_space<vmem>>, %arg2: memref<1x8x32xf32, #tpu.memory_space<vmem>>, %arg3: memref<1x1x8xf32, #tpu.memory_space<vmem>>, %arg4: memref<1x1x8xf32, #tpu.memory_space<vmem>>, %arg5: memref<1x32xf32, #tpu.memory_space<vmem>>, %arg6: memref<1x32xf32, #tpu.memory_space<vmem>>, %arg7: memref<1x32xf32, #tpu.memory_space<vmem>>, %arg8: memref<1x32xf32, #tpu.memory_space<vmem>>, %arg9: memref<1x32xf32, #tpu.memory_space<vmem>>, %arg10: memref<1x32xf32, #tpu.memory_space<vmem>>, %arg11: memref<4x32x8xf32, #tpu.memory_space<vmem>>, %arg12: memref<4x32x8xf32, #tpu.memory_space<vmem>>, %arg13: memref<4x32x8xf32, #tpu.memory_space<vmem>>, %arg14: memref<4x8x32xf32, #tpu.memory_space<vmem>>, %arg15: memref<4x32x8xf32, #tpu.memory_space<vmem>>, %arg16: memref<4x32x8xf32, #tpu.memory_space<vmem>>, %arg17: memref<4x32x8xf32, #tpu.memory_space<vmem>>, %arg18: memref<4x8x32xf32, #tpu.memory_space<vmem>>, %arg19: memref<32x64xf32, #tpu.memory_space<vmem>>, %arg20: memref<1x64xf32, #tpu.memory_space<vmem>>, %arg21: memref<64x32xf32, #tpu.memory_space<vmem>>, %arg22: memref<1x32xf32, #tpu.memory_space<vmem>>, %arg23: memref<1x8x32xf32, #tpu.memory_space<vmem>>, %arg24: memref<1x4x8x8xf32, #tpu.memory_space<vmem>>, %arg25: memref<1x4x8x8xf32, #tpu.memory_space<vmem>>) attributes {dimension_semantics = [#tpu.dimension_semantics<parallel>], iteration_bounds = array<i64: 2>, scalar_prefetch = 0 : i64, scratch_operands = 0 : i64, tpu.core_type = #tpu.core_type<tc>, window_params = [{transform_indices = @transform_0, window_bounds = array<i64: 1, 8, 32>}, {transform_indices = @transform_1, window_bounds = array<i64: 1, 8, 32>}, {transform_indices = @transform_2, window_bounds = array<i64: 1, 1, 8>}, {transform_indices = @transform_3, window_bounds = array<i64: 1, 1, 8>}, {pipeline_mode = #tpu.pipeline_mode<synchronous>, transform_indices = @transform_4, window_bounds = array<i64: 1, 32>}, {pipeline_mode = #tpu.pipeline_mode<synchronous>, transform_indices = @transform_5, window_bounds = array<i64: 1, 32>}, {pipeline_mode = #tpu.pipeline_mode<synchronous>, transform_indices = @transform_6, window_bounds = array<i64: 1, 32>}, {pipeline_mode = #tpu.pipeline_mode<synchronous>, transform_indices = @transform_7, window_bounds = array<i64: 1, 32>}, {pipeline_mode = #tpu.pipeline_mode<synchronous>, transform_indices = @transform_8, window_bounds = array<i64: 1, 32>}, {pipeline_mode = #tpu.pipeline_mode<synchronous>, transform_indices = @transform_9, window_bounds = array<i64: 1, 32>}, {pipeline_mode = #tpu.pipeline_mode<synchronous>, transform_indices = @transform_10, window_bounds = array<i64: 4, 32, 8>}, {pipeline_mode = #tpu.pipeline_mode<synchronous>, transform_indices = @transform_11, window_bounds = array<i64: 4, 32, 8>}, {pipeline_mode = #tpu.pipeline_mode<synchronous>, transform_indices = @transform_12, window_bounds = array<i64: 4, 32, 8>}, {pipeline_mode = #tpu.pipeline_mode<synchronous>, transform_indices = @transform_13, window_bounds = array<i64: 4, 8, 32>}, {pipeline_mode = #tpu.pipeline_mode<synchronous>, transform_indices = @transform_14, window_bounds = array<i64: 4, 32, 8>}, {pipeline_mode = #tpu.pipeline_mode<synchronous>, transform_indices = @transform_15, window_bounds = array<i64: 4, 32, 8>}, {pipeline_mode = #tpu.pipeline_mode<synchronous>, transform_indices = @transform_16, window_bounds = array<i64: 4, 32, 8>}, {pipeline_mode = #tpu.pipeline_mode<synchronous>, transform_indices = @transform_17, window_bounds = array<i64: 4, 8, 32>}, {pipeline_mode = #tpu.pipeline_mode<synchronous>, transform_indices = @transform_18, window_bounds = array<i64: 32, 64>}, {pipeline_mode = #tpu.pipeline_mode<synchronous>, transform_indices = @transform_19, window_bounds = array<i64: 1, 64>}, {pipeline_mode = #tpu.pipeline_mode<synchronous>, transform_indices = @transform_20, window_bounds = array<i64: 64, 32>}, {pipeline_mode = #tpu.pipeline_mode<synchronous>, transform_indices = @transform_21, window_bounds = array<i64: 1, 32>}, {transform_indices = @transform_22, window_bounds = array<i64: 1, 8, 32>}, {transform_indices = @transform_23, window_bounds = array<i64: 1, 4, 8, 8>}, {transform_indices = @transform_24, window_bounds = array<i64: 1, 4, 8, 8>}]} {
    %c0 = arith.constant 0 : index
    %c0_0 = arith.constant 0 : index
    %c0_1 = arith.constant 0 : index
    %0 = vector.load %arg1[%c0, %c0_0, %c0_1] : memref<1x8x32xf32, #tpu.memory_space<vmem>>, vector<1x8x32xf32>
    %1 = vector.shape_cast %0 : vector<1x8x32xf32> to vector<8x32xf32>
    %c0_2 = arith.constant 0 : index
    %c0_3 = arith.constant 0 : index
    %c0_4 = arith.constant 0 : index
    %2 = vector.load %arg2[%c0_2, %c0_3, %c0_4] : memref<1x8x32xf32, #tpu.memory_space<vmem>>, vector<1x8x32xf32>
    %3 = vector.shape_cast %2 : vector<1x8x32xf32> to vector<8x32xf32>
    %c0_5 = arith.constant 0 : index
    %c0_6 = arith.constant 0 : index
    %c0_7 = arith.constant 0 : index
    %4 = vector.load %arg3[%c0_5, %c0_6, %c0_7] : memref<1x1x8xf32, #tpu.memory_space<vmem>>, vector<1x1x8xf32>
    %c0_8 = arith.constant 0 : index
    %c0_9 = arith.constant 0 : index
    %c0_10 = arith.constant 0 : index
    %5 = vector.load %arg4[%c0_8, %c0_9, %c0_10] : memref<1x1x8xf32, #tpu.memory_space<vmem>>, vector<1x1x8xf32>
    %cst = arith.constant dense<0.000000e+00> : vector<8xf32>
    %6 = vector.multi_reduction <add>, %1, %cst [1] : vector<8x32xf32> to vector<8xf32>
    %7 = vector.shape_cast %6 : vector<8xf32> to vector<8x1xf32>
    %cst_11 = arith.constant 3.200000e+01 : f32
    %8 = vector.broadcast %cst_11 : f32 to vector<8x1xf32>
    %9 = arith.divf %7, %8 : vector<8x1xf32>
    %10 = vector.broadcast %9 : vector<8x1xf32> to vector<8x32xf32>
    %11 = arith.subf %1, %10 : vector<8x32xf32>
    %12 = arith.mulf %11, %11 : vector<8x32xf32>
    %cst_12 = arith.constant dense<0.000000e+00> : vector<8xf32>
    %13 = vector.multi_reduction <add>, %12, %cst_12 [1] : vector<8x32xf32> to vector<8xf32>
    %14 = vector.shape_cast %13 : vector<8xf32> to vector<8x1xf32>
    %cst_13 = arith.constant 3.200000e+01 : f32
    %15 = vector.broadcast %cst_13 : f32 to vector<8x1xf32>
    %16 = arith.divf %14, %15 : vector<8x1xf32>
    %17 = vector.broadcast %9 : vector<8x1xf32> to vector<8x32xf32>
    %18 = arith.subf %1, %17 : vector<8x32xf32>
    %cst_14 = arith.constant 9.99999974E-6 : f32
    %19 = vector.broadcast %cst_14 : f32 to vector<8x1xf32>
    %20 = arith.addf %16, %19 : vector<8x1xf32>
    %21 = math.rsqrt %20 : vector<8x1xf32>
    %22 = vector.broadcast %21 : vector<8x1xf32> to vector<8x32xf32>
    %23 = arith.mulf %18, %22 : vector<8x32xf32>
    %c0_15 = arith.constant 0 : index
    %c0_16 = arith.constant 0 : index
    %24 = vector.load %arg5[%c0_15, %c0_16] : memref<1x32xf32, #tpu.memory_space<vmem>>, vector<1x32xf32>
    %25 = vector.broadcast %24 : vector<1x32xf32> to vector<8x32xf32>
    %26 = arith.mulf %23, %25 : vector<8x32xf32>
    %c0_17 = arith.constant 0 : index
    %c0_18 = arith.constant 0 : index
    %27 = vector.load %arg6[%c0_17, %c0_18] : memref<1x32xf32, #tpu.memory_space<vmem>>, vector<1x32xf32>
    %28 = vector.broadcast %27 : vector<1x32xf32> to vector<8x32xf32>
    %29 = arith.addf %26, %28 : vector<8x32xf32>
    %30 = vector.shape_cast %29 : vector<8x32xf32> to vector<1x8x32xf32>
    %31 = vector.shape_cast %30 : vector<1x8x32xf32> to vector<1x8x32xf32>
    %32 = vector.broadcast %31 : vector<1x8x32xf32> to vector<4x8x32xf32>
    %33 = vector.shape_cast %29 : vector<8x32xf32> to vector<1x8x32xf32>
    %34 = vector.shape_cast %33 : vector<1x8x32xf32> to vector<1x8x32xf32>
    %35 = vector.broadcast %34 : vector<1x8x32xf32> to vector<4x8x32xf32>
    %c0_19 = arith.constant 0 : index
    %c0_20 = arith.constant 0 : index
    %c0_21 = arith.constant 0 : index
    %36 = vector.load %arg11[%c0_19, %c0_20, %c0_21] : memref<4x32x8xf32, #tpu.memory_space<vmem>>, vector<4x32x8xf32>
    "tpu.trace_start"() <{level = 10 : i32, message = "htd,hdk->htk"}> : () -> ()
    %cst_22 = arith.constant dense<0.000000e+00> : vector<4x8x8xf32>
    %37 = tpu.matmul %32, %36, %cst_22 {dimension_numbers = #tpu.dot_dimension_numbers<[2], [1], [1], [2], [0, 0, 0, 1, 1, 2], [0], [0]>, precision = #tpu.contract_precision<fp32>} : vector<4x8x32xf32>, vector<4x32x8xf32>, vector<4x8x8xf32> -> vector<4x8x8xf32>
    "tpu.trace_stop"() : () -> ()
    %c0_23 = arith.constant 0 : index
    %c0_24 = arith.constant 0 : index
    %c0_25 = arith.constant 0 : index
    %38 = vector.load %arg12[%c0_23, %c0_24, %c0_25] : memref<4x32x8xf32, #tpu.memory_space<vmem>>, vector<4x32x8xf32>
    "tpu.trace_start"() <{level = 10 : i32, message = "hsd,hdk->hsk"}> : () -> ()
    %cst_26 = arith.constant dense<0.000000e+00> : vector<4x8x8xf32>
    %39 = tpu.matmul %35, %38, %cst_26 {dimension_numbers = #tpu.dot_dimension_numbers<[2], [1], [1], [2], [0, 0, 0, 1, 1, 2], [0], [0]>, precision = #tpu.contract_precision<fp32>} : vector<4x8x32xf32>, vector<4x32x8xf32>, vector<4x8x8xf32> -> vector<4x8x8xf32>
    "tpu.trace_stop"() : () -> ()
    %c0_27 = arith.constant 0 : index
    %c0_28 = arith.constant 0 : index
    %c0_29 = arith.constant 0 : index
    %40 = vector.load %arg13[%c0_27, %c0_28, %c0_29] : memref<4x32x8xf32, #tpu.memory_space<vmem>>, vector<4x32x8xf32>
    "tpu.trace_start"() <{level = 10 : i32, message = "hsd,hdv->hsv"}> : () -> ()
    %cst_30 = arith.constant dense<0.000000e+00> : vector<4x8x8xf32>
    %41 = tpu.matmul %35, %40, %cst_30 {dimension_numbers = #tpu.dot_dimension_numbers<[2], [1], [1], [2], [0, 0, 0, 1, 1, 2], [0], [0]>, precision = #tpu.contract_precision<fp32>} : vector<4x8x32xf32>, vector<4x32x8xf32>, vector<4x8x8xf32> -> vector<4x8x8xf32>
    "tpu.trace_stop"() : () -> ()
    "tpu.trace_start"() <{level = 10 : i32, message = "htk,hsk->hts"}> : () -> ()
    %cst_31 = arith.constant dense<0.000000e+00> : vector<4x8x8xf32>
    %42 = tpu.matmul %37, %39, %cst_31 {dimension_numbers = #tpu.dot_dimension_numbers<[2], [2], [1], [1], [0, 0, 0, 1, 1, 1], [0], [0]>, precision = #tpu.contract_precision<fp32>} : vector<4x8x8xf32>, vector<4x8x8xf32>, vector<4x8x8xf32> -> vector<4x8x8xf32>
    "tpu.trace_stop"() : () -> ()
    %cst_32 = arith.constant 0.353553385 : f32
    %43 = vector.broadcast %cst_32 : f32 to vector<4x8x8xf32>
    %44 = arith.mulf %42, %43 : vector<4x8x8xf32>
    %45 = vector.broadcast %4 : vector<1x1x8xf32> to vector<4x8x8xf32>
    %46 = arith.addf %44, %45 : vector<4x8x8xf32>
    %cst_33 = arith.constant dense<0xFF800000> : vector<4x8xf32>
    %47 = vector.multi_reduction <maximumf>, %46, %cst_33 [2] : vector<4x8x8xf32> to vector<4x8xf32>
    %48 = vector.shape_cast %47 : vector<4x8xf32> to vector<4x8x1xf32>
    %49 = vector.broadcast %48 : vector<4x8x1xf32> to vector<4x8x8xf32>
    %50 = arith.subf %46, %49 : vector<4x8x8xf32>
    %51 = math.exp %50 : vector<4x8x8xf32>
    %cst_34 = arith.constant dense<0.000000e+00> : vector<4x8xf32>
    %52 = vector.multi_reduction <add>, %51, %cst_34 [2] : vector<4x8x8xf32> to vector<4x8xf32>
    %53 = vector.shape_cast %52 : vector<4x8xf32> to vector<4x8x1xf32>
    %54 = tpu.reciprocal %53 {approx = true} : vector<4x8x1xf32> -> vector<4x8x1xf32>
    %55 = arith.mulf %53, %54 : vector<4x8x1xf32>
    %cst_35 = arith.constant 2.000000e+00 : f32
    %56 = vector.broadcast %cst_35 : f32 to vector<4x8x1xf32>
    %57 = arith.subf %56, %55 : vector<4x8x1xf32>
    %58 = arith.mulf %54, %57 : vector<4x8x1xf32>
    %59 = vector.broadcast %58 : vector<4x8x1xf32> to vector<4x8x8xf32>
    %60 = arith.mulf %51, %59 : vector<4x8x8xf32>
    %c0_36 = arith.constant 0 : index
    %c0_37 = arith.constant 0 : index
    %c0_38 = arith.constant 0 : index
    %c0_39 = arith.constant 0 : index
    %61 = vector.load %arg24[%c0_36, %c0_37, %c0_38, %c0_39] : memref<1x4x8x8xf32, #tpu.memory_space<vmem>>, vector<1x4x8x8xf32>
    %62 = vector.shape_cast %61 : vector<1x4x8x8xf32> to vector<4x8x8xf32>
    %63 = vector.shape_cast %60 : vector<4x8x8xf32> to vector<1x4x8x8xf32>
    tpu.vector_store %arg24[%c0_36, %c0_37, %c0_38, %c0_39], %63 {strides = array<i32>} : memref<1x4x8x8xf32, #tpu.memory_space<vmem>>, vector<1x4x8x8xf32>,
    "tpu.trace_start"() <{level = 10 : i32, message = "hts,hsv->htv"}> : () -> ()
    %cst_40 = arith.constant dense<0.000000e+00> : vector<4x8x8xf32>
    %64 = tpu.matmul %60, %41, %cst_40 {dimension_numbers = #tpu.dot_dimension_numbers<[2], [1], [1], [2], [0, 0, 0, 1, 1, 2], [0], [0]>, precision = #tpu.contract_precision<fp32>} : vector<4x8x8xf32>, vector<4x8x8xf32>, vector<4x8x8xf32> -> vector<4x8x8xf32>
    "tpu.trace_stop"() : () -> ()
    %c0_41 = arith.constant 0 : index
    %c0_42 = arith.constant 0 : index
    %c0_43 = arith.constant 0 : index
    %65 = vector.load %arg14[%c0_41, %c0_42, %c0_43] : memref<4x8x32xf32, #tpu.memory_space<vmem>>, vector<4x8x32xf32>
    "tpu.trace_start"() <{level = 10 : i32, message = "htv,hvd->htd"}> : () -> ()
    %cst_44 = arith.constant dense<0.000000e+00> : vector<4x8x32xf32>
    %66 = tpu.matmul %64, %65, %cst_44 {dimension_numbers = #tpu.dot_dimension_numbers<[2], [1], [1], [2], [0, 0, 0, 1, 1, 2], [0], [0]>, precision = #tpu.contract_precision<fp32>} : vector<4x8x8xf32>, vector<4x8x32xf32>, vector<4x8x32xf32> -> vector<4x8x32xf32>
    "tpu.trace_stop"() : () -> ()
    %cst_45 = arith.constant dense<0.000000e+00> : vector<8x32xf32>
    %67 = vector.multi_reduction <add>, %66, %cst_45 [0] : vector<4x8x32xf32> to vector<8x32xf32>
    %68 = arith.addf %1, %67 : vector<8x32xf32>
    %cst_46 = arith.constant dense<0.000000e+00> : vector<8xf32>
    %69 = vector.multi_reduction <add>, %68, %cst_46 [1] : vector<8x32xf32> to vector<8xf32>
    %70 = vector.shape_cast %69 : vector<8xf32> to vector<8x1xf32>
    %cst_47 = arith.constant 3.200000e+01 : f32
    %71 = vector.broadcast %cst_47 : f32 to vector<8x1xf32>
    %72 = arith.divf %70, %71 : vector<8x1xf32>
    %73 = vector.broadcast %72 : vector<8x1xf32> to vector<8x32xf32>
    %74 = arith.subf %68, %73 : vector<8x32xf32>
    %75 = arith.mulf %74, %74 : vector<8x32xf32>
    %cst_48 = arith.constant dense<0.000000e+00> : vector<8xf32>
    %76 = vector.multi_reduction <add>, %75, %cst_48 [1] : vector<8x32xf32> to vector<8xf32>
    %77 = vector.shape_cast %76 : vector<8xf32> to vector<8x1xf32>
    %cst_49 = arith.constant 3.200000e+01 : f32
    %78 = vector.broadcast %cst_49 : f32 to vector<8x1xf32>
    %79 = arith.divf %77, %78 : vector<8x1xf32>
    %80 = vector.broadcast %72 : vector<8x1xf32> to vector<8x32xf32>
    %81 = arith.subf %68, %80 : vector<8x32xf32>
    %cst_50 = arith.constant 9.99999974E-6 : f32
    %82 = vector.broadcast %cst_50 : f32 to vector<8x1xf32>
    %83 = arith.addf %79, %82 : vector<8x1xf32>
    %84 = math.rsqrt %83 : vector<8x1xf32>
    %85 = vector.broadcast %84 : vector<8x1xf32> to vector<8x32xf32>
    %86 = arith.mulf %81, %85 : vector<8x32xf32>
    %c0_51 = arith.constant 0 : index
    %c0_52 = arith.constant 0 : index
    %87 = vector.load %arg7[%c0_51, %c0_52] : memref<1x32xf32, #tpu.memory_space<vmem>>, vector<1x32xf32>
    %88 = vector.broadcast %87 : vector<1x32xf32> to vector<8x32xf32>
    %89 = arith.mulf %86, %88 : vector<8x32xf32>
    %c0_53 = arith.constant 0 : index
    %c0_54 = arith.constant 0 : index
    %90 = vector.load %arg8[%c0_53, %c0_54] : memref<1x32xf32, #tpu.memory_space<vmem>>, vector<1x32xf32>
    %91 = vector.broadcast %90 : vector<1x32xf32> to vector<8x32xf32>
    %92 = arith.addf %89, %91 : vector<8x32xf32>
    %93 = vector.shape_cast %92 : vector<8x32xf32> to vector<1x8x32xf32>
    %94 = vector.shape_cast %93 : vector<1x8x32xf32> to vector<1x8x32xf32>
    %95 = vector.broadcast %94 : vector<1x8x32xf32> to vector<4x8x32xf32>
    %96 = vector.shape_cast %3 : vector<8x32xf32> to vector<1x8x32xf32>
    %97 = vector.shape_cast %96 : vector<1x8x32xf32> to vector<1x8x32xf32>
    %98 = vector.broadcast %97 : vector<1x8x32xf32> to vector<4x8x32xf32>
    %c0_55 = arith.constant 0 : index
    %c0_56 = arith.constant 0 : index
    %c0_57 = arith.constant 0 : index
    %99 = vector.load %arg15[%c0_55, %c0_56, %c0_57] : memref<4x32x8xf32, #tpu.memory_space<vmem>>, vector<4x32x8xf32>
    "tpu.trace_start"() <{level = 10 : i32, message = "htd,hdk->htk"}> : () -> ()
    %cst_58 = arith.constant dense<0.000000e+00> : vector<4x8x8xf32>
    %100 = tpu.matmul %95, %99, %cst_58 {dimension_numbers = #tpu.dot_dimension_numbers<[2], [1], [1], [2], [0, 0, 0, 1, 1, 2], [0], [0]>, precision = #tpu.contract_precision<fp32>} : vector<4x8x32xf32>, vector<4x32x8xf32>, vector<4x8x8xf32> -> vector<4x8x8xf32>
    "tpu.trace_stop"() : () -> ()
    %c0_59 = arith.constant 0 : index
    %c0_60 = arith.constant 0 : index
    %c0_61 = arith.constant 0 : index
    %101 = vector.load %arg16[%c0_59, %c0_60, %c0_61] : memref<4x32x8xf32, #tpu.memory_space<vmem>>, vector<4x32x8xf32>
    "tpu.trace_start"() <{level = 10 : i32, message = "hsd,hdk->hsk"}> : () -> ()
    %cst_62 = arith.constant dense<0.000000e+00> : vector<4x8x8xf32>
    %102 = tpu.matmul %98, %101, %cst_62 {dimension_numbers = #tpu.dot_dimension_numbers<[2], [1], [1], [2], [0, 0, 0, 1, 1, 2], [0], [0]>, precision = #tpu.contract_precision<fp32>} : vector<4x8x32xf32>, vector<4x32x8xf32>, vector<4x8x8xf32> -> vector<4x8x8xf32>
    "tpu.trace_stop"() : () -> ()
    %c0_63 = arith.constant 0 : index
    %c0_64 = arith.constant 0 : index
    %c0_65 = arith.constant 0 : index
    %103 = vector.load %arg17[%c0_63, %c0_64, %c0_65] : memref<4x32x8xf32, #tpu.memory_space<vmem>>, vector<4x32x8xf32>
    "tpu.trace_start"() <{level = 10 : i32, message = "hsd,hdv->hsv"}> : () -> ()
    %cst_66 = arith.constant dense<0.000000e+00> : vector<4x8x8xf32>
    %104 = tpu.matmul %98, %103, %cst_66 {dimension_numbers = #tpu.dot_dimension_numbers<[2], [1], [1], [2], [0, 0, 0, 1, 1, 2], [0], [0]>, precision = #tpu.contract_precision<fp32>} : vector<4x8x32xf32>, vector<4x32x8xf32>, vector<4x8x8xf32> -> vector<4x8x8xf32>
    "tpu.trace_stop"() : () -> ()
    "tpu.trace_start"() <{level = 10 : i32, message = "htk,hsk->hts"}> : () -> ()
    %cst_67 = arith.constant dense<0.000000e+00> : vector<4x8x8xf32>
    %105 = tpu.matmul %100, %102, %cst_67 {dimension_numbers = #tpu.dot_dimension_numbers<[2], [2], [1], [1], [0, 0, 0, 1, 1, 1], [0], [0]>, precision = #tpu.contract_precision<fp32>} : vector<4x8x8xf32>, vector<4x8x8xf32>, vector<4x8x8xf32> -> vector<4x8x8xf32>
    "tpu.trace_stop"() : () -> ()
    %cst_68 = arith.constant 0.353553385 : f32
    %106 = vector.broadcast %cst_68 : f32 to vector<4x8x8xf32>
    %107 = arith.mulf %105, %106 : vector<4x8x8xf32>
    %108 = vector.broadcast %5 : vector<1x1x8xf32> to vector<4x8x8xf32>
    %109 = arith.addf %107, %108 : vector<4x8x8xf32>
    %cst_69 = arith.constant dense<0xFF800000> : vector<4x8xf32>
    %110 = vector.multi_reduction <maximumf>, %109, %cst_69 [2] : vector<4x8x8xf32> to vector<4x8xf32>
    %111 = vector.shape_cast %110 : vector<4x8xf32> to vector<4x8x1xf32>
    %112 = vector.broadcast %111 : vector<4x8x1xf32> to vector<4x8x8xf32>
    %113 = arith.subf %109, %112 : vector<4x8x8xf32>
    %114 = math.exp %113 : vector<4x8x8xf32>
    %cst_70 = arith.constant dense<0.000000e+00> : vector<4x8xf32>
    %115 = vector.multi_reduction <add>, %114, %cst_70 [2] : vector<4x8x8xf32> to vector<4x8xf32>
    %116 = vector.shape_cast %115 : vector<4x8xf32> to vector<4x8x1xf32>
    %117 = tpu.reciprocal %116 {approx = true} : vector<4x8x1xf32> -> vector<4x8x1xf32>
    %118 = arith.mulf %116, %117 : vector<4x8x1xf32>
    %cst_71 = arith.constant 2.000000e+00 : f32
    %119 = vector.broadcast %cst_71 : f32 to vector<4x8x1xf32>
    %120 = arith.subf %119, %118 : vector<4x8x1xf32>
    %121 = arith.mulf %117, %120 : vector<4x8x1xf32>
    %122 = vector.broadcast %121 : vector<4x8x1xf32> to vector<4x8x8xf32>
    %123 = arith.mulf %114, %122 : vector<4x8x8xf32>
    %c0_72 = arith.constant 0 : index
    %c0_73 = arith.constant 0 : index
    %c0_74 = arith.constant 0 : index
    %c0_75 = arith.constant 0 : index
    %124 = vector.load %arg25[%c0_72, %c0_73, %c0_74, %c0_75] : memref<1x4x8x8xf32, #tpu.memory_space<vmem>>, vector<1x4x8x8xf32>
    %125 = vector.shape_cast %124 : vector<1x4x8x8xf32> to vector<4x8x8xf32>
    %126 = vector.shape_cast %123 : vector<4x8x8xf32> to vector<1x4x8x8xf32>
    tpu.vector_store %arg25[%c0_72, %c0_73, %c0_74, %c0_75], %126 {strides = array<i32>} : memref<1x4x8x8xf32, #tpu.memory_space<vmem>>, vector<1x4x8x8xf32>,
    "tpu.trace_start"() <{level = 10 : i32, message = "hts,hsv->htv"}> : () -> ()
    %cst_76 = arith.constant dense<0.000000e+00> : vector<4x8x8xf32>
    %127 = tpu.matmul %123, %104, %cst_76 {dimension_numbers = #tpu.dot_dimension_numbers<[2], [1], [1], [2], [0, 0, 0, 1, 1, 2], [0], [0]>, precision = #tpu.contract_precision<fp32>} : vector<4x8x8xf32>, vector<4x8x8xf32>, vector<4x8x8xf32> -> vector<4x8x8xf32>
    "tpu.trace_stop"() : () -> ()
    %c0_77 = arith.constant 0 : index
    %c0_78 = arith.constant 0 : index
    %c0_79 = arith.constant 0 : index
    %128 = vector.load %arg18[%c0_77, %c0_78, %c0_79] : memref<4x8x32xf32, #tpu.memory_space<vmem>>, vector<4x8x32xf32>
    "tpu.trace_start"() <{level = 10 : i32, message = "htv,hvd->htd"}> : () -> ()
    %cst_80 = arith.constant dense<0.000000e+00> : vector<4x8x32xf32>
    %129 = tpu.matmul %127, %128, %cst_80 {dimension_numbers = #tpu.dot_dimension_numbers<[2], [1], [1], [2], [0, 0, 0, 1, 1, 2], [0], [0]>, precision = #tpu.contract_precision<fp32>} : vector<4x8x8xf32>, vector<4x8x32xf32>, vector<4x8x32xf32> -> vector<4x8x32xf32>
    "tpu.trace_stop"() : () -> ()
    %cst_81 = arith.constant dense<0.000000e+00> : vector<8x32xf32>
    %130 = vector.multi_reduction <add>, %129, %cst_81 [0] : vector<4x8x32xf32> to vector<8x32xf32>
    %131 = arith.addf %68, %130 : vector<8x32xf32>
    %cst_82 = arith.constant dense<0.000000e+00> : vector<8xf32>
    %132 = vector.multi_reduction <add>, %131, %cst_82 [1] : vector<8x32xf32> to vector<8xf32>
    %133 = vector.shape_cast %132 : vector<8xf32> to vector<8x1xf32>
    %cst_83 = arith.constant 3.200000e+01 : f32
    %134 = vector.broadcast %cst_83 : f32 to vector<8x1xf32>
    %135 = arith.divf %133, %134 : vector<8x1xf32>
    %136 = vector.broadcast %135 : vector<8x1xf32> to vector<8x32xf32>
    %137 = arith.subf %131, %136 : vector<8x32xf32>
    %138 = arith.mulf %137, %137 : vector<8x32xf32>
    %cst_84 = arith.constant dense<0.000000e+00> : vector<8xf32>
    %139 = vector.multi_reduction <add>, %138, %cst_84 [1] : vector<8x32xf32> to vector<8xf32>
    %140 = vector.shape_cast %139 : vector<8xf32> to vector<8x1xf32>
    %cst_85 = arith.constant 3.200000e+01 : f32
    %141 = vector.broadcast %cst_85 : f32 to vector<8x1xf32>
    %142 = arith.divf %140, %141 : vector<8x1xf32>
    %143 = vector.broadcast %135 : vector<8x1xf32> to vector<8x32xf32>
    %144 = arith.subf %131, %143 : vector<8x32xf32>
    %cst_86 = arith.constant 9.99999974E-6 : f32
    %145 = vector.broadcast %cst_86 : f32 to vector<8x1xf32>
    %146 = arith.addf %142, %145 : vector<8x1xf32>
    %147 = math.rsqrt %146 : vector<8x1xf32>
    %148 = vector.broadcast %147 : vector<8x1xf32> to vector<8x32xf32>
    %149 = arith.mulf %144, %148 : vector<8x32xf32>
    %c0_87 = arith.constant 0 : index
    %c0_88 = arith.constant 0 : index
    %150 = vector.load %arg9[%c0_87, %c0_88] : memref<1x32xf32, #tpu.memory_space<vmem>>, vector<1x32xf32>
    %151 = vector.broadcast %150 : vector<1x32xf32> to vector<8x32xf32>
    %152 = arith.mulf %149, %151 : vector<8x32xf32>
    %c0_89 = arith.constant 0 : index
    %c0_90 = arith.constant 0 : index
    %153 = vector.load %arg10[%c0_89, %c0_90] : memref<1x32xf32, #tpu.memory_space<vmem>>, vector<1x32xf32>
    %154 = vector.broadcast %153 : vector<1x32xf32> to vector<8x32xf32>
    %155 = arith.addf %152, %154 : vector<8x32xf32>
    %c0_91 = arith.constant 0 : index
    %c0_92 = arith.constant 0 : index
    %156 = vector.load %arg19[%c0_91, %c0_92] : memref<32x64xf32, #tpu.memory_space<vmem>>, vector<32x64xf32>
    %cst_93 = arith.constant dense<0.000000e+00> : vector<8x64xf32>
    %157 = tpu.matmul %155, %156, %cst_93 {dimension_numbers = #tpu.dot_dimension_numbers<[1], [0], [0], [1], [0, 0, 1, 1], [], []>, precision = #tpu.contract_precision<fp32>} : vector<8x32xf32>, vector<32x64xf32>, vector<8x64xf32> -> vector<8x64xf32>
    %c0_94 = arith.constant 0 : index
    %c0_95 = arith.constant 0 : index
    %158 = vector.load %arg20[%c0_94, %c0_95] : memref<1x64xf32, #tpu.memory_space<vmem>>, vector<1x64xf32>
    %159 = vector.broadcast %158 : vector<1x64xf32> to vector<8x64xf32>
    %160 = arith.addf %157, %159 : vector<8x64xf32>
    %cst_96 = arith.constant 0.000000e+00 : f32
    %161 = vector.broadcast %cst_96 : f32 to vector<8x64xf32>
    %162 = arith.maximumf %160, %161 : vector<8x64xf32>
    %c0_97 = arith.constant 0 : index
    %c0_98 = arith.constant 0 : index
    %163 = vector.load %arg21[%c0_97, %c0_98] : memref<64x32xf32, #tpu.memory_space<vmem>>, vector<64x32xf32>
    %cst_99 = arith.constant dense<0.000000e+00> : vector<8x32xf32>
    %164 = tpu.matmul %162, %163, %cst_99 {dimension_numbers = #tpu.dot_dimension_numbers<[1], [0], [0], [1], [0, 0, 1, 1], [], []>, precision = #tpu.contract_precision<fp32>} : vector<8x64xf32>, vector<64x32xf32>, vector<8x32xf32> -> vector<8x32xf32>
    %165 = arith.addf %131, %164 : vector<8x32xf32>
    %c0_100 = arith.constant 0 : index
    %c0_101 = arith.constant 0 : index
    %166 = vector.load %arg22[%c0_100, %c0_101] : memref<1x32xf32, #tpu.memory_space<vmem>>, vector<1x32xf32>
    %167 = vector.broadcast %166 : vector<1x32xf32> to vector<8x32xf32>
    %168 = arith.addf %165, %167 : vector<8x32xf32>
    %c0_102 = arith.constant 0 : index
    %c0_103 = arith.constant 0 : index
    %c0_104 = arith.constant 0 : index
    %169 = vector.load %arg23[%c0_102, %c0_103, %c0_104] : memref<1x8x32xf32, #tpu.memory_space<vmem>>, vector<1x8x32xf32>
    %170 = vector.shape_cast %169 : vector<1x8x32xf32> to vector<8x32xf32>
    %171 = vector.shape_cast %168 : vector<8x32xf32> to vector<1x8x32xf32>
    tpu.vector_store %arg23[%c0_102, %c0_103, %c0_104], %171 {strides = array<i32>} : memref<1x8x32xf32, #tpu.memory_space<vmem>>, vector<1x8x32xf32>,
    return
  }
  func.func @transform_0(%arg0: i32) -> (i32, i32, i32) {
    %c0_i32 = arith.constant 0 : i32
    %c0_i32_0 = arith.constant 0 : i32
    %c0_i32_1 = arith.constant 0 : i32
    return %arg0, %c0_i32, %c0_i32_0 : i32, i32, i32
  }
  func.func @transform_1(%arg0: i32) -> (i32, i32, i32) {
    %c0_i32 = arith.constant 0 : i32
    %c0_i32_0 = arith.constant 0 : i32
    %c0_i32_1 = arith.constant 0 : i32
    return %arg0, %c0_i32, %c0_i32_0 : i32, i32, i32
  }
  func.func @transform_2(%arg0: i32) -> (i32, i32, i32) {
    %c0_i32 = arith.constant 0 : i32
    %c0_i32_0 = arith.constant 0 : i32
    %c0_i32_1 = arith.constant 0 : i32
    return %arg0, %c0_i32, %c0_i32_0 : i32, i32, i32
  }
  func.func @transform_3(%arg0: i32) -> (i32, i32, i32) {
    %c0_i32 = arith.constant 0 : i32
    %c0_i32_0 = arith.constant 0 : i32
    %c0_i32_1 = arith.constant 0 : i32
    return %arg0, %c0_i32, %c0_i32_0 : i32, i32, i32
  }
  func.func @transform_4(%arg0: i32) -> (i32, i32) {
    %c0_i32 = arith.constant 0 : i32
    %c0_i32_0 = arith.constant 0 : i32
    %c0_i32_1 = arith.constant 0 : i32
    return %c0_i32, %c0_i32_0 : i32, i32
  }
  func.func @transform_5(%arg0: i32) -> (i32, i32) {
    %c0_i32 = arith.constant 0 : i32
    %c0_i32_0 = arith.constant 0 : i32
    %c0_i32_1 = arith.constant 0 : i32
    return %c0_i32, %c0_i32_0 : i32, i32
  }
  func.func @transform_6(%arg0: i32) -> (i32, i32) {
    %c0_i32 = arith.constant 0 : i32
    %c0_i32_0 = arith.constant 0 : i32
    %c0_i32_1 = arith.constant 0 : i32
    return %c0_i32, %c0_i32_0 : i32, i32
  }
  func.func @transform_7(%arg0: i32) -> (i32, i32) {
    %c0_i32 = arith.constant 0 : i32
    %c0_i32_0 = arith.constant 0 : i32
    %c0_i32_1 = arith.constant 0 : i32
    return %c0_i32, %c0_i32_0 : i32, i32
  }
  func.func @transform_8(%arg0: i32) -> (i32, i32) {
    %c0_i32 = arith.constant 0 : i32
    %c0_i32_0 = arith.constant 0 : i32
    %c0_i32_1 = arith.constant 0 : i32
    return %c0_i32, %c0_i32_0 : i32, i32
  }
  func.func @transform_9(%arg0: i32) -> (i32, i32) {
    %c0_i32 = arith.constant 0 : i32
    %c0_i32_0 = arith.constant 0 : i32
    %c0_i32_1 = arith.constant 0 : i32
    return %c0_i32, %c0_i32_0 : i32, i32
  }
  func.func @transform_10(%arg0: i32) -> (i32, i32, i32) {
    %c0_i32 = arith.constant 0 : i32
    %c0_i32_0 = arith.constant 0 : i32
    %c0_i32_1 = arith.constant 0 : i32
    %c0_i32_2 = arith.constant 0 : i32
    return %c0_i32, %c0_i32_0, %c0_i32_1 : i32, i32, i32
  }
  func.func @transform_11(%arg0: i32) -> (i32, i32, i32) {
    %c0_i32 = arith.constant 0 : i32
    %c0_i32_0 = arith.constant 0 : i32
    %c0_i32_1 = arith.constant 0 : i32
    %c0_i32_2 = arith.constant 0 : i32
    return %c0_i32, %c0_i32_0, %c0_i32_1 : i32, i32, i32
  }
  func.func @transform_12(%arg0: i32) -> (i32, i32, i32) {
    %c0_i32 = arith.constant 0 : i32
    %c0_i32_0 = arith.constant 0 : i32
    %c0_i32_1 = arith.constant 0 : i32
    %c0_i32_2 = arith.constant 0 : i32
    return %c0_i32, %c0_i32_0, %c0_i32_1 : i32, i32, i32
  }
  func.func @transform_13(%arg0: i32) -> (i32, i32, i32) {
    %c0_i32 = arith.constant 0 : i32
    %c0_i32_0 = arith.constant 0 : i32
    %c0_i32_1 = arith.constant 0 : i32
    %c0_i32_2 = arith.constant 0 : i32
    return %c0_i32, %c0_i32_0, %c0_i32_1 : i32, i32, i32
  }
  func.func @transform_14(%arg0: i32) -> (i32, i32, i32) {
    %c0_i32 = arith.constant 0 : i32
    %c0_i32_0 = arith.constant 0 : i32
    %c0_i32_1 = arith.constant 0 : i32
    %c0_i32_2 = arith.constant 0 : i32
    return %c0_i32, %c0_i32_0, %c0_i32_1 : i32, i32, i32
  }
  func.func @transform_15(%arg0: i32) -> (i32, i32, i32) {
    %c0_i32 = arith.constant 0 : i32
    %c0_i32_0 = arith.constant 0 : i32
    %c0_i32_1 = arith.constant 0 : i32
    %c0_i32_2 = arith.constant 0 : i32
    return %c0_i32, %c0_i32_0, %c0_i32_1 : i32, i32, i32
  }
  func.func @transform_16(%arg0: i32) -> (i32, i32, i32) {
    %c0_i32 = arith.constant 0 : i32
    %c0_i32_0 = arith.constant 0 : i32
    %c0_i32_1 = arith.constant 0 : i32
    %c0_i32_2 = arith.constant 0 : i32
    return %c0_i32, %c0_i32_0, %c0_i32_1 : i32, i32, i32
  }
  func.func @transform_17(%arg0: i32) -> (i32, i32, i32) {
    %c0_i32 = arith.constant 0 : i32
    %c0_i32_0 = arith.constant 0 : i32
    %c0_i32_1 = arith.constant 0 : i32
    %c0_i32_2 = arith.constant 0 : i32
    return %c0_i32, %c0_i32_0, %c0_i32_1 : i32, i32, i32
  }
  func.func @transform_18(%arg0: i32) -> (i32, i32) {
    %c0_i32 = arith.constant 0 : i32
    %c0_i32_0 = arith.constant 0 : i32
    %c0_i32_1 = arith.constant 0 : i32
    return %c0_i32, %c0_i32_0 : i32, i32
  }
  func.func @transform_19(%arg0: i32) -> (i32, i32) {
    %c0_i32 = arith.constant 0 : i32
    %c0_i32_0 = arith.constant 0 : i32
    %c0_i32_1 = arith.constant 0 : i32
    return %c0_i32, %c0_i32_0 : i32, i32
  }
  func.func @transform_20(%arg0: i32) -> (i32, i32) {
    %c0_i32 = arith.constant 0 : i32
    %c0_i32_0 = arith.constant 0 : i32
    %c0_i32_1 = arith.constant 0 : i32
    return %c0_i32, %c0_i32_0 : i32, i32
  }
  func.func @transform_21(%arg0: i32) -> (i32, i32) {
    %c0_i32 = arith.constant 0 : i32
    %c0_i32_0 = arith.constant 0 : i32
    %c0_i32_1 = arith.constant 0 : i32
    return %c0_i32, %c0_i32_0 : i32, i32
  }
  func.func @transform_22(%arg0: i32) -> (i32, i32, i32) {
    %c0_i32 = arith.constant 0 : i32
    %c0_i32_0 = arith.constant 0 : i32
    %c0_i32_1 = arith.constant 0 : i32
    return %arg0, %c0_i32, %c0_i32_0 : i32, i32, i32
  }
  func.func @transform_23(%arg0: i32) -> (i32, i32, i32, i32) {
    %c0_i32 = arith.constant 0 : i32
    %c0_i32_0 = arith.constant 0 : i32
    %c0_i32_1 = arith.constant 0 : i32
    %c0_i32_2 = arith.constant 0 : i32
    return %arg0, %c0_i32, %c0_i32_0, %c0_i32_1 : i32, i32, i32, i32
  }
  func.func @transform_24(%arg0: i32) -> (i32, i32, i32, i32) {
    %c0_i32 = arith.constant 0 : i32
    %c0_i32_0 = arith.constant 0 : i32
    %c0_i32_1 = arith.constant 0 : i32
    %c0_i32_2 = arith.constant 0 : i32
    return %arg0, %c0_i32, %c0_i32_0, %c0_i32_1 : i32, i32, i32, i32
  }
}

</mosaic_0001>

<bundles_post_ra>
// kernel: tpu_custom_call.1
= control target key start
LH: loop header
LB: loop body
LE: loop exit
PB: predicated region body
PF: predicated region fallthrough
CT: control target
= control target key end

     0   :  { %s33027_s0 = inlined_call_operand.vmem [shape: f32[2,8,32], index: 0, kind: input, shape index: {}]   ;;  %s33028_s1 = inlined_call_operand.vmem [shape: f32[2,8,32], index: 1, kind: input, shape index: {}]   ;;  %s33029_s2 = inlined_call_operand.vmem [shape: f32[2,1,8], index: 2, kind: input, shape index: {}]   ;;  %s33030_s3 = inlined_call_operand.vmem [shape: f32[2,1,8], index: 3, kind: input, shape index: {}]   ;;  %s33031_s4 = inlined_call_operand.vmem [shape: f32[1,32], index: 4, kind: input, shape index: {}]   ;;  %s33032_s5 = inlined_call_operand.vmem [shape: f32[1,32], index: 5, kind: input, shape index: {}]   ;;  %s33033_s6 = inlined_call_operand.vmem [shape: f32[1,32], index: 6, kind: input, shape index: {}]   ;;  %s33034_s7 = inlined_call_operand.vmem [shape: f32[1,32], index: 7, kind: input, shape index: {}]   ;;  %s33035_s8 = inlined_call_operand.vmem [shape: f32[1,32], index: 8, kind: input, shape index: {}]   ;;  %s33036_s9 = inlined_call_operand.vmem [shape: f32[1,32], index: 9, kind: input, shape index: {}]   ;;  %s33037_s10 = inlined_call_operand.vmem [shape: f32[4,32,8], index: 10, kind: input, shape index: {}]   ;;  %s33038_s11 = inlined_call_operand.vmem [shape: f32[4,32,8], index: 11, kind: input, shape index: {}]   ;;  %s33039_s12 = inlined_call_operand.vmem [shape: f32[4,32,8], index: 12, kind: input, shape index: {}]   ;;  %s33040_s13 = inlined_call_operand.vmem [shape: f32[4,8,32], index: 13, kind: input, shape index: {}]   ;;  %s33041_s14 = inlined_call_operand.vmem [shape: f32[4,32,8], index: 14, kind: input, shape index: {}]   ;;  %s33042_s15 = inlined_call_operand.vmem [shape: f32[4,32,8], index: 15, kind: input, shape index: {}]   ;;  %s33043_s16 = inlined_call_operand.vmem [shape: f32[4,32,8], index: 16, kind: input, shape index: {}]   ;;  %s33044_s17 = inlined_call_operand.vmem [shape: f32[4,8,32], index: 17, kind: input, shape index: {}]   ;;  %s33045_s18 = inlined_call_operand.vmem [shape: f32[32,64], index: 18, kind: input, shape index: {}]   ;;  %s33046_s19 = inlined_call_operand.vmem [shape: f32[1,64], index: 19, kind: input, shape index: {}]   ;;  %s33047_s20 = inlined_call_operand.vmem [shape: f32[64,32], index: 20, kind: input, shape index: {}]   ;;  %s33048_s21 = inlined_call_operand.vmem [shape: f32[1,32], index: 21, kind: input, shape index: {}]   ;;  %s33049_s22 = inlined_call_operand.hbm [shape: f32[2,8,32], index: 22, kind: output, shape index: {0}]   ;;  %s33050_s23 = inlined_call_operand.hbm [shape: f32[2,4,8,8], index: 23, kind: output, shape index: {1}]   ;;  %s33051_s24 = inlined_call_operand.hbm [shape: f32[2,4,8,8], index: 24, kind: output, shape index: {2}]  }
   0x1   :  { %33064 = sst [smem:[#allocation15_spill]] %s33027_s0 }
   0x2   :  { %33065 = sst [smem:[#allocation16_spill]] %s33028_s1 }
   0x3   :  { %33066 = sst [smem:[#allocation17_spill]] %s33029_s2 }
   0x4   :  { %33067 = sst [smem:[#allocation18_spill]] %s33030_s3 }
   0x5   :  { %33068 = sst [smem:[#allocation19_spill]] %s33031_s4 }
   0x6   :  { %33069 = sst [smem:[#allocation20_spill]] %s33032_s5 }
   0x7   :  { %33070 = sst [smem:[#allocation21_spill]] %s33033_s6 }
   0x8   :  { %33071 = sst [smem:[#allocation22_spill]] %s33034_s7 }
   0x9   :  { %33072 = sst [smem:[#allocation23_spill]] %s33035_s8 }
   0xa   :  { %33073 = sst [smem:[#allocation24_spill]] %s33036_s9 }
   0xb   :  { %33074 = sst [smem:[#allocation25_spill]] %s33037_s10 }
   0xc   :  { %33075 = sst [smem:[#allocation26_spill]] %s33038_s11 }
   0xd   :  { %30 = vsyncpa [#allocation3], 0 }
   0xe   :  { %32 = vsyncpa [#allocation3 + $0x1], 0 }
   0xf   :  { %33 = vsyncpa [#allocation5], 0 }
  0x10   :  { %35 = vsyncpa [#allocation5 + $0x1], 0  ;;  %s28821_s5 = smov 0   ;;  %s28823_s26 = smov 0  }
  0x11   :  { %s28825_s27 = smov 0   ;;  %s28827_s28 = smov 0  }
  0x12 LB: > { %33076 = sst [smem:[#allocation9_spill]] %s28675_s5  ;;  %s28842_s6 = sadd.s32 4294967295, %s28687_s28   ;;  %s28687_s28 = sphi %s28827_s28, %s33105_s28   ;;  %s28683_s27 = sphi %s28825_s27, %s33107_s27   ;;  %s28679_s26 = sphi %s28823_s26, %s33109_s26   ;;  %s28675_s5 = sphi %s28821_s5, %s33108_s5  }
  0x13   : > { %33077 = sst [smem:[#allocation10_spill]] %s28683_s27  ;;  %s33052_s2 = sadd.s32 4294967294, %s28687_s28  }
  0x14   : > { %33078 = sst [smem:[#allocation11_spill]] %s28687_s28  ;;  %s28846_s29 = sadd.s32 1, %s28687_s28  }
  0x15   : > { %33079 = sst [smem:[#allocation12_spill]] %s28846_s29  ;;  %s530_s0 = sadd.s32 1, %s28683_s27 }
  0x16   : > { %s527_s7 = ssub.s32 %s28687_s28, %s28846_s29  ;;  %p540_p0 = scmp.ne.s32.totalorder %s28683_s27, %s28679_s26 }
  0x17   : > { %p528_p1 = scmp.eq.s32.totalorder %s527_s7, 0  ;;  %p541_p2 = scmp.eq.s32.totalorder %s28842_s6, 1 }
  0x18   : > { %p546_p3 = scmp.ne.s32.totalorder %s28679_s26, %s28675_s5  ;;  %p547_p4 = scmp.eq.s32.totalorder %s33052_s2, 1 }
  0x19   : > { %s28859_s30 = scalar_select %p528_p1, %s28683_s27, %s530_s0  }
  0x1a   : > { %p28861_p5 = por %p541_p2, %p540_p0  ;;  %p28865_p6 = por %p547_p4, %p546_p3 }
  0x1b   : > { %33080 = sst [smem:[#allocation13_spill]] %s28859_s30  ;;  %p24875_p7 = scmp.ge.s32.totalorder %s28687_s28, 1 }
  0x1c   : > { %s33082_s25 = scalar_select %p28865_p6, 1, 0 }
  0x1d   : > { %p697_p8 = scmp.lt.s32.totalorder %s28687_s28, 3 }
  0x1e   : > { %33083 = sst [smem:[#allocation14_spill]] %s33082_s25 }
  0x1f   : > { %p698_p9 = pnand %p24875_p7, %p697_p8 }
  0x20   : > { %p782_p10 = scmp.lt.s32.totalorder (!%p698_p9), %s28842_s6, 1  ;;  %s33084_s7 = sld [smem:[#allocation15_spill]] (!%p698_p9) }
  0x21   : > { %701 = sbr.rel (%p698_p9) target bundleno = 4275 (0x10b3), region = 108  ;;  %s33085_s10 = sld [smem:[#allocation25_spill]] (!%p698_p9) }
  0x22   : > { %s33086_s0 = sld [smem:[#allocation19_spill]] (!%p698_p9)  ;;  %s30439_s27 = sand.u32 (!%p698_p9), 1, %s28679_s26  }
  0x23   : > { %s33087_s30 = sld [smem:[#allocation20_spill]] (!%p698_p9) }
  0x24   : > { %s33088_s11 = sld [smem:[#allocation26_spill]] (!%p698_p9) }
  0x25   : > { %s33093_s25 = sld [smem:[#allocation16_spill]] (!%p698_p9) }
  0x26   : > { %s28873_s8 = scalar_select %p782_p10, %s28842_s6, 1  ;;  %vm800_vm0 = vcmask 261120   ;;  %v28689_v24 = vmov 0.0   ;;  %vm28690_vm1 = vmmov 0   ;;  %vm6702_vm2 = vcmask 64512  }
  0x27   : > { %v834_v7 = vld [vmem:[%s33085_s10 + $0x18] sm:$0xff]  ;;  %v833_v9 = vld [vmem:[%s33085_s10 + $0x10] sm:$0xff]  ;;  %v832_v12 = vld [vmem:[%s33085_s10 + $0x8] sm:$0xff]  ;;  %26006 = vmatprep.subr.mxu1 %v28689_v24  ;;  %25995 = vmatprep.subr.mxu0 %v28689_v24  ;;  %s33094_s28 = sld [smem:[#allocation18_spill]]  ;;  %vm24115_vm3 = vcmask 523264  }
  0x28   : > { %s33054_s4 = sshll.u32 %s28873_s8, 3  ;;  %v28889_v8 = vand.u32 4294901760, %v834_v7  ;;  %v28897_v11 = vand.u32 4294901760, %v833_v9  ;;  %v28906_v15 = vand.u32 4294901760, %v832_v12  ;;  %v831_v16 = vld [vmem:[%s33085_s10] sm:$0xff]  ;;  %26014 = vmatprep.mubr.msk.f32.mxu1 %vm28690_vm1, %v28689_v24  ;;  %26003 = vmatprep.mubr.msk.f32.mxu0 %vm28690_vm1, %v28689_v24  ;;  %v838_v42 = vld [vmem:[%s33085_s10 + $0x38] sm:$0xff] }
  0x29   : > { %s28881_s2 = scalar_lea.vmem %s33084_s7, %s33054_s4  ;;  %v28918_v20 = vand.u32 4294901760, %v831_v16  ;;  %v24881_v36 = vld [vmem:[%s33086_s0] ss:$0 sm:$0xff]  ;;  %v837_v44 = vld [vmem:[%s33085_s10 + $0x30] sm:$0xff]  ;;  %v28971_v46 = vand.u32 4294901760, %v838_v42  ;;  %v836_v47 = vld [vmem:[%s33085_s10 + $0x28] sm:$0xff] }
  0x2a   : > { %v796_v0 = vld [vmem:[%s28881_s2] sm:$0xff]  ;;  %v28895_v10 = vsub.f32 %v834_v7, %v28889_v8  ;;  %v28904_v14 = vsub.f32 %v833_v9, %v28897_v11  ;;  %v28916_v19 = vsub.f32 %v832_v12, %v28906_v15  ;;  %25996 = vmatpush3.msra.mxu0 %v28889_v8  ;;  %v28983_v49 = vand.u32 4294901760, %v837_v44  ;;  %v842_v7 = vld [vmem:[%s33085_s10 + $0x58] sm:$0xff]  ;;  %s33089_s0 = sld [smem:[#allocation17_spill]]  ;;  %s33092_s1 = sshll.u32 %s28873_s8, 3 }
  0x2b   : > { %v801_v1 = vsel %vm800_vm0, %v796_v0, 0.0  ;;  %v28926_v25 = vsub.f32 %v831_v16, %v28918_v20  ;;  %25997 = vmatprep.subr.mxu0 %v28689_v24  ;;  %v24882_v38 = vld [vmem:[%s33087_s30] ss:$0 sm:$0xff]  ;;  %v28993_v52 = vsub.f32 %v838_v42, %v28971_v46  ;;  %v28995_v53 = vand.u32 4294901760, %v836_v47  ;;  %s33061_s30 = sshll.u32 %s30439_s27, 5  ;;  %s33090_s4 = sld [smem:[#allocation21_spill]] }
  0x2c   : > { %802 = vadd.xlane.f32.xlu0 %v801_v1  ;;  %v956_v13 = vand.u32 4294901760, %v28895_v10  ;;  %v963_v18 = vand.u32 4294901760, %v28904_v14  ;;  %v970_v23 = vand.u32 4294901760, %v28916_v19  ;;  %25998 = vmatpush3.msra.mxu0 %v28897_v11  ;;  %v835_v50 = vld [vmem:[%s33085_s10 + $0x20] sm:$0xff]  ;;  %v29002_v55 = vsub.f32 %v837_v44, %v28983_v49  ;;  %s30451_s29 = scalar_lea.vmem [#allocation4], %s33061_s30  ;;  %s789_s5 = scalar_lea.vmem %s33093_s25, %s33092_s1 }
  0x2d   : > { %v977_v28 = vand.u32 4294901760, %v28926_v25  ;;  %25999 = vmatprep.subr.mxu0 %v28689_v24  ;;  %v29004_v56 = vand.u32 4294901760, %v835_v50  ;;  %v1441_v57 = vand.u32 4294901760, %v28993_v52  ;;  %v29011_v58 = vsub.f32 %v836_v47, %v28995_v53  ;;  %v839_v12 = vld [vmem:[%s33085_s10 + $0x40] sm:$0xff]  ;;  %s33097_s9 = sld [smem:[#allocation24_spill]]  ;;  %s24703_s25 = sshll.u32 %s30451_s29, 4  ;;  %s32928_s25 = int_to_ptr.vmem [resolvable:$true] %s24703_s25 }
  0x2e   : > { %v957_v17 = vsub.f32 %v28895_v10, %v956_v13  ;;  %v964_v22 = vsub.f32 %v28904_v14, %v963_v18  ;;  %v971_v27 = vsub.f32 %v28916_v19, %v970_v23  ;;  %26000 = vmatpush3.msra.mxu0 %v28906_v15  ;;  %v1448_v59 = vand.u32 4294901760, %v29002_v55 }
  0x2f   : > { %v978_v30 = vsub.f32 %v28926_v25, %v977_v28  ;;  %26001 = vmatprep.subr.mxu0 %v28689_v24  ;;  %v29019_v60 = vsub.f32 %v835_v50, %v29004_v56  ;;  %v1442_v61 = vsub.f32 %v28993_v52, %v1441_v57  ;;  %v1455_v62 = vand.u32 4294901760, %v29011_v58 }
  0x30   : > { %v958_v21 = vand.u32 4294901760, %v957_v17  ;;  %v965_v26 = vand.u32 4294901760, %v964_v22  ;;  %v972_v29 = vand.u32 4294901760, %v971_v27  ;;  %26002 = vmatpush3.msra.mxu0 %v28918_v20  ;;  %v1449_v63 = vsub.f32 %v29002_v55, %v1448_v59  ;;  %s792_s7 = scalar_lea.vmem %s33089_s0, %s28873_s8  ;;  %s33091_s0 = sld [smem:[#allocation22_spill]] }
  0x31   : > { %v979_v31 = vand.u32 4294901760, %v978_v30  ;;  %26017 = vmatprep.subr.mxu0 %v28689_v24  ;;  %v1443_v1 = vand.u32 4294901760, %v1442_v61  ;;  %v29085_v9 = vand.u32 4294901760, %v842_v7  ;;  %v29116_v16 = vand.u32 4294901760, %v839_v12  ;;  %v2792_v61 = vld [vmem:[%s33088_s11 + $0x10] sm:$0xff] }
  0x32   : > { %26007 = vmatpush3.msra.mxu1 %v958_v21 }
  0x33   : > { %26008 = vmatprep.subr.mxu1 %v28689_v24 }
  0x34   : > { %26009 = vmatpush3.msra.mxu1 %v965_v26 }
  0x35   : > { %26010 = vmatprep.subr.mxu1 %v28689_v24 }
  0x36   : > { %26011 = vmatpush3.msra.mxu1 %v972_v29 }
  0x37   : > { %26012 = vmatprep.subr.mxu1 %v28689_v24 }
  0x38   : > { %26013 = vmatpush3.msra.mxu1 %v979_v31 }
  0x39   : > { %26028 = vmatprep.subr.mxu1 %v28689_v24 }
  0xb5   : > { %v803_v2 = vpop.xlane.xlu0 %802 }
  0xb6   : > { %v805_v3 = vmul.f32 0.03125, %v803_v2  ;;  %v1456_v2 = vsub.f32 %v29011_v58, %v1455_v62 }
  0xb8   : > { %v806_v4 = vsub.f32 %v796_v0, %v805_v3  ;;  %v1462_v0 = vand.u32 4294901760, %v29019_v60  ;;  %v1450_v3 = vand.u32 4294901760, %v1449_v63  ;;  %v2791_v63 = vld [vmem:[%s33088_s11 + $0x8] sm:$0xff] }
  0xba   : > { %v807_v5 = vmul.f32 %v806_v4, %v806_v4 }
  0xbc   : > { %v808_v6 = vsel %vm800_vm0, %v807_v5, 0.0  ;;  %v1457_v5 = vand.u32 4294901760, %v1456_v2 }
  0xbd   : > { %809 = vadd.xlane.f32.xlu0 %v808_v6 }
 0x146   : > { %v810_v32 = vpop.xlane.xlu0 %809 }
 0x147   : > { %v811_v33 = vmul.f32 0.03125, %v810_v32  ;;  %v846_v32 = vld [vmem:[%s33085_s10 + $0x78] sm:$0xff] }
 0x149   : > { %v812_v34 = vadd.f32 1e-05, %v811_v33  ;;  %v845_v33 = vld [vmem:[%s33085_s10 + $0x70] sm:$0xff] }
 0x14b   : > { %28532 = vrsqrt.f32 %v812_v34  ;;  %v29199_v34 = vand.u32 4294901760, %v846_v32 }
 0x158   : > { %v28533_v35 = vpop.eup %28532 }
 0x159   : > { %v814_v37 = vmul.f32 %v28533_v35, %v806_v4  ;;  %v1463_v4 = vsub.f32 %v29019_v60, %v1462_v0  ;;  %v844_v35 = vld [vmem:[%s33085_s10 + $0x68] sm:$0xff] }
 0x15b   : > { %v822_v39 = vmul.f32 %v24881_v36, %v814_v37  ;;  %v1464_v6 = vand.u32 4294901760, %v1463_v4  ;;  %v29208_v36 = vand.u32 4294901760, %v845_v33  ;;  %v843_v37 = vld [vmem:[%s33085_s10 + $0x60] sm:$0xff] }
 0x15d   : > { %v830_v40 = vadd.f32 %v24882_v38, %v822_v39  ;;  %v29218_v38 = vsub.f32 %v846_v32, %v29199_v34  ;;  %v29220_v39 = vand.u32 4294901760, %v844_v35 }
 0x15f   : > { %v848_v41 = vsel %vm800_vm0, %v830_v40, 0  ;;  %v29228_v40 = vsub.f32 %v845_v33, %v29208_v36  ;;  %v2411_v42 = vand.u32 4294901760, %v29218_v38  ;;  %v29239_v44 = vsub.f32 %v844_v35, %v29220_v39 }
 0x160   : > { %v28962_v43 = vand.u32 4294901760, %v848_v41 }
 0x161   : > { %v2425_v50 = vand.u32 4294901760, %v29239_v44 }
 0x162   : > { %v28968_v45 = vsub.f32 %v848_v41, %v28962_v43  ;;  %26015 = vmatmul.mubr.f32.vlgmr.msra.gmra.mxu1 %v28962_v43  ;;  %v29230_v41 = vand.u32 4294901760, %v843_v37 }
 0x163   : > { %26029 = vmatpush3.msra.mxu1 %v28889_v8  ;;  %26036 = vmatprep.mubr.msk.f32.mxu1 %vm28690_vm1, %v28689_v24 }
 0x164   : > { %26030 = vmatprep.subr.mxu1 %v28689_v24  ;;  %v28981_v48 = vand.u32 4294901760, %v28968_v45  ;;  %v29247_v47 = vsub.f32 %v843_v37, %v29230_v41 }
 0x165   : > { %26031 = vmatpush3.msra.mxu1 %v28897_v11 }
 0x166   : > { %26032 = vmatprep.subr.mxu1 %v28689_v24  ;;  %v922_v51 = vsub.f32 %v28968_v45, %v28981_v48 }
 0x167   : > { %26033 = vmatpush3.msra.mxu1 %v28906_v15 }
 0x168   : > { %26034 = vmatprep.subr.mxu1 %v28689_v24  ;;  %v28999_v54 = vand.u32 4294901760, %v922_v51 }
 0x169   : > { %26035 = vmatpush3.msra.mxu1 %v28918_v20 }
 0x16a   : > { %26037 = vmatmul.mubr.f32.vlgmr.msra.gmra.mxu1 %v28981_v48  ;;  %26050 = vmatprep.subr.mxu1 %v28689_v24 }
 0x16b   : > { %26004 = vmatmul.mubr.f32.vlgmr.msra.gmra.mxu0 %v28999_v54  ;;  %26051 = vmatpush3.msra.mxu1 %v28889_v8  ;;  %v841_v8 = vld [vmem:[%s33085_s10 + $0x50] sm:$0xff] }
 0x16c   : > { %26018 = vmatpush3.msra.mxu0 %v28895_v10  ;;  %26052 = vmatprep.subr.mxu1 %v28689_v24  ;;  %v840_v10 = vld [vmem:[%s33085_s10 + $0x48] sm:$0xff]  ;;  %s795_s10 = scalar_lea.vmem %s33094_s28, %s28873_s8  ;;  %s33095_s8 = sshll.u32 %s30439_s27, 5 }
 0x16d   : > { %26019 = vmatprep.subr.mxu0 %v28689_v24  ;;  %26053 = vmatpush3.msra.mxu1 %v28897_v11  ;;  %v29094_v11 = vand.u32 4294901760, %v841_v8  ;;  %s32312_s30 = scalar_lea.vmem [#allocation6], %s33095_s8  ;;  %s28571_s28 = scalar_lea.vmem %s32928_s25, 512 }
 0x16e   : > { %26020 = vmatpush3.msra.mxu0 %v28904_v14  ;;  %26054 = vmatprep.subr.mxu1 %v28689_v24  ;;  %v29106_v14 = vand.u32 4294901760, %v840_v10  ;;  %p28572_p11 = scmp.ne.s32.totalorder %s32928_s25, %s28571_s28 }
 0x16f   : > { %26021 = vmatprep.subr.mxu0 %v28689_v24  ;;  %26055 = vmatpush3.msra.mxu1 %v28906_v15  ;;  %v29114_v15 = vsub.f32 %v841_v8, %v29094_v11 }
 0x170   : > { %26022 = vmatpush3.msra.mxu0 %v28916_v19  ;;  %26056 = vmatprep.subr.mxu1 %v28689_v24  ;;  %p28573_p12 = pnand %p28572_p11, %p28861_p5 }
 0x171   : > { %26023 = vmatprep.subr.mxu0 %v28689_v24  ;;  %26025 = vmatprep.mubr.msk.f32.mxu0 %vm28690_vm1, %v28689_v24  ;;  %v1933_v19 = vand.u32 4294901760, %v29114_v15 }
 0x172   : > { %26024 = vmatpush3.msra.mxu0 %v28926_v25  ;;  %26057 = vmatpush3.msra.mxu1 %v28918_v20  ;;  %v29133_v20 = vsub.f32 %v839_v12, %v29116_v16  ;;  %p28574_p13 = pneg %p28573_p12 }
 0x173   : > { %26058 = vmatprep.mubr.msk.f32.mxu1 %vm28690_vm1, %v28689_v24  ;;  %26026 = vmatmul.mubr.f32.vlgmr.msra.gmra.mxu0 %v28968_v45 }
 0x174   : > { %26039 = vmatprep.subr.mxu0 %v28689_v24  ;;  %26059 = vmatmul.mubr.f32.vlgmr.msra.gmra.mxu1 %v28962_v43  ;;  %v1947_v25 = vand.u32 4294901760, %v29133_v20 }
 0x175   : > { %26072 = vmatprep.subr.mxu1 %v28689_v24  ;;  %26040 = vmatpush3.msra.mxu0 %v956_v13  ;;  %v29104_v13 = vsub.f32 %v842_v7, %v29085_v9 }
 0x176   : > { %26073 = vmatpush3.msra.mxu1 %v1443_v1  ;;  %26041 = vmatprep.subr.mxu0 %v28689_v24  ;;  %v1948_v29 = vsub.f32 %v29133_v20, %v1947_v25  ;;  %v2790_v1 = vld [vmem:[%s33088_s11] sm:$0xff] }
 0x177   : > { %26074 = vmatprep.subr.mxu1 %v28689_v24  ;;  %26042 = vmatpush3.msra.mxu0 %v963_v18  ;;  %v1926_v17 = vand.u32 4294901760, %v29104_v13  ;;  %v29125_v18 = vsub.f32 %v840_v10, %v29106_v14 }
 0x178   : > { %26075 = vmatpush3.msra.mxu1 %v1450_v3  ;;  %26043 = vmatprep.subr.mxu0 %v28689_v24  ;;  %v1949_v31 = vand.u32 4294901760, %v1948_v29  ;;  %v29334_v3 = vand.u32 4294901760, %v2791_v63 }
 0x179   : > { %26076 = vmatprep.subr.mxu1 %v28689_v24  ;;  %26044 = vmatpush3.msra.mxu0 %v970_v23  ;;  %v1927_v21 = vsub.f32 %v29104_v13, %v1926_v17  ;;  %v1940_v22 = vand.u32 4294901760, %v29125_v18  ;;  %v1934_v23 = vsub.f32 %v29114_v15, %v1933_v19 }
 0x17a   : > { %26077 = vmatpush3.msra.mxu1 %v1457_v5  ;;  %26045 = vmatprep.subr.mxu0 %v28689_v24  ;;  %v29344_v5 = vand.u32 4294901760, %v2790_v1  ;;  %v29353_v7 = vsub.f32 %v2791_v63, %v29334_v3 }
 0x17b   : > { %26078 = vmatprep.subr.mxu1 %v28689_v24  ;;  %26046 = vmatpush3.msra.mxu0 %v977_v28  ;;  %v1928_v26 = vand.u32 4294901760, %v1927_v21  ;;  %v1941_v27 = vsub.f32 %v29125_v18, %v1940_v22  ;;  %v1935_v28 = vand.u32 4294901760, %v1934_v23  ;;  %v2796_v21 = vld [vmem:[%s33088_s11 + $0x30] sm:$0xff]  ;;  %v2795_v23 = vld [vmem:[%s33088_s11 + $0x28] sm:$0xff] }
 0x17c   : > { %26047 = vmatprep.mubr.msk.f32.mxu0 %vm28690_vm1, %v28689_v24  ;;  %26079 = vmatpush3.msra.mxu1 %v1464_v6 }
 0x17d   : > { %26080 = vmatprep.mubr.msk.f32.mxu1 %vm28690_vm1, %v28689_v24  ;;  %26048 = vmatmul.mubr.f32.vlgmr.msra.gmra.mxu0 %v28962_v43  ;;  %v1942_v30 = vand.u32 4294901760, %v1941_v27 }
 0x17e   : > { %26061 = vmatprep.subr.mxu0 %v28689_v24  ;;  %26081 = vmatmul.mubr.f32.vlgmr.msra.gmra.mxu1 %v28962_v43 }
 0x17f   : > { %26094 = vmatprep.subr.mxu1 %v28689_v24  ;;  %26062 = vmatpush3.msra.mxu0 %v28971_v46 }
 0x180   : > { %26095 = vmatpush3.msra.mxu1 %v28971_v46  ;;  %26063 = vmatprep.subr.mxu0 %v28689_v24 }
 0x181   : > { %26096 = vmatprep.subr.mxu1 %v28689_v24  ;;  %26064 = vmatpush3.msra.mxu0 %v28983_v49 }
 0x182   : > { %26097 = vmatpush3.msra.mxu1 %v28983_v49  ;;  %26065 = vmatprep.subr.mxu0 %v28689_v24 }
 0x183   : > { %26098 = vmatprep.subr.mxu1 %v28689_v24  ;;  %26066 = vmatpush3.msra.mxu0 %v28995_v53 }
 0x184   : > { %26099 = vmatpush3.msra.mxu1 %v28995_v53  ;;  %26067 = vmatprep.subr.mxu0 %v28689_v24 }
 0x185   : > { %26100 = vmatprep.subr.mxu1 %v28689_v24  ;;  %26068 = vmatpush3.msra.mxu0 %v29004_v56 }
 0x186   : > { %26069 = vmatprep.mubr.msk.f32.mxu0 %vm28690_vm1, %v28689_v24  ;;  %26101 = vmatpush3.msra.mxu1 %v29004_v56 }
 0x187   : > { %26102 = vmatprep.mubr.msk.f32.mxu1 %vm28690_vm1, %v28689_v24  ;;  %26070 = vmatmul.mubr.f32.vlgmr.msra.gmra.mxu0 %v28999_v54 }
 0x188   : > { %26083 = vmatprep.subr.mxu0 %v28689_v24  ;;  %26103 = vmatmul.mubr.f32.vlgmr.msra.gmra.mxu1 %v28981_v48 }
 0x189   : > { %26116 = vmatprep.subr.mxu1 %v28689_v24  ;;  %26084 = vmatpush3.msra.mxu0 %v28993_v52  ;;  %v2432_v52 = vand.u32 4294901760, %v29247_v47 }
 0x18a   : > { %26117 = vmatpush3.msra.mxu1 %v28971_v46  ;;  %26085 = vmatprep.subr.mxu0 %v28689_v24  ;;  %v2418_v46 = vand.u32 4294901760, %v29228_v40 }
 0x18b   : > { %26118 = vmatprep.subr.mxu1 %v28689_v24  ;;  %26086 = vmatpush3.msra.mxu0 %v29002_v55  ;;  %v2426_v55 = vsub.f32 %v29239_v44, %v2425_v50 }
 0x18c   : > { %26119 = vmatpush3.msra.mxu1 %v28983_v49  ;;  %26087 = vmatprep.subr.mxu0 %v28689_v24  ;;  %v2412_v49 = vsub.f32 %v29218_v38, %v2411_v42  ;;  %v2419_v51 = vsub.f32 %v29228_v40, %v2418_v46 }
 0x18d   : > { %26120 = vmatprep.subr.mxu1 %v28689_v24  ;;  %26088 = vmatpush3.msra.mxu0 %v29011_v58  ;;  %v2427_v58 = vand.u32 4294901760, %v2426_v55 }
 0x18e   : > { %26121 = vmatpush3.msra.mxu1 %v28995_v53  ;;  %26089 = vmatprep.subr.mxu0 %v28689_v24  ;;  %v2413_v53 = vand.u32 4294901760, %v2412_v49  ;;  %v2800_v49 = vld [vmem:[%s33088_s11 + $0x50] sm:$0xff] }
 0x18f   : > { %26122 = vmatprep.subr.mxu1 %v28689_v24  ;;  %26090 = vmatpush3.msra.mxu0 %v29019_v60  ;;  %v2793_v60 = vld [vmem:[%s33088_s11 + $0x18] sm:$0xff] }
 0x190   : > { %26091 = vmatprep.mubr.msk.f32.mxu0 %vm28690_vm1, %v28689_v24  ;;  %26123 = vmatpush3.msra.mxu1 %v29004_v56  ;;  %v2420_v56 = vand.u32 4294901760, %v2419_v51  ;;  %v2799_v51 = vld [vmem:[%s33088_s11 + $0x48] sm:$0xff] }
 0x191   : > { %26124 = vmatprep.mubr.msk.f32.mxu1 %vm28690_vm1, %v28689_v24  ;;  %26092 = vmatmul.mubr.f32.vlgmr.msra.gmra.mxu0 %v28968_v45 }
 0x192   : > { %26105 = vmatprep.subr.mxu0 %v28689_v24  ;;  %26125 = vmatmul.mubr.f32.vlgmr.msra.gmra.mxu1 %v28962_v43 }
 0x193   : > { %26138 = vmatprep.subr.mxu1 %v28689_v24  ;;  %26106 = vmatpush3.msra.mxu0 %v1441_v57  ;;  %v2433_v57 = vsub.f32 %v29247_v47, %v2432_v52 }
 0x194   : > { %26139 = vmatpush3.msra.mxu1 %v1928_v26  ;;  %26107 = vmatprep.subr.mxu0 %v28689_v24  ;;  %v2794_v26 = vld [vmem:[%s33088_s11 + $0x20] sm:$0xff] }
 0x195   : > { %26140 = vmatprep.subr.mxu1 %v28689_v24  ;;  %26108 = vmatpush3.msra.mxu0 %v1448_v59  ;;  %v2434_v59 = vand.u32 4294901760, %v2433_v57 }
 0x196   : > { %26141 = vmatpush3.msra.mxu1 %v1935_v28  ;;  %26109 = vmatprep.subr.mxu0 %v28689_v24  ;;  %v29448_v28 = vand.u32 4294901760, %v2795_v23 }
 0x197   : > { %26142 = vmatprep.subr.mxu1 %v28689_v24  ;;  %26110 = vmatpush3.msra.mxu0 %v1455_v62  ;;  %v29313_v62 = vand.u32 4294901760, %v2793_v60 }
 0x198   : > { %26143 = vmatpush3.msra.mxu1 %v1942_v30  ;;  %26111 = vmatprep.subr.mxu0 %v28689_v24  ;;  %v29458_v30 = vand.u32 4294901760, %v2794_v26  ;;  %v29467_v32 = vsub.f32 %v2795_v23, %v29448_v28 }
 0x199   : > { %26144 = vmatprep.subr.mxu1 %v28689_v24  ;;  %26112 = vmatpush3.msra.mxu0 %v1462_v0  ;;  %v29322_v0 = vand.u32 4294901760, %v2792_v61  ;;  %v29332_v2 = vsub.f32 %v2793_v60, %v29313_v62 }
 0x19a   : > { %26113 = vmatprep.mubr.msk.f32.mxu0 %vm28690_vm1, %v28689_v24  ;;  %26145 = vmatpush3.msra.mxu1 %v1949_v31 }
 0x19b   : > { %26146 = vmatprep.mubr.msk.f32.mxu1 %vm28690_vm1, %v28689_v24  ;;  %26114 = vmatmul.mubr.f32.vlgmr.msra.gmra.mxu0 %v28962_v43  ;;  %v29342_v4 = vsub.f32 %v2792_v61, %v29322_v0  ;;  %v2912_v6 = vand.u32 4294901760, %v29332_v2 }
 0x19c   : > { %26127 = vmatprep.subr.mxu0 %v28689_v24  ;;  %26147 = vmatmul.mubr.f32.vlgmr.msra.gmra.mxu1 %v28962_v43 }
 0x19d   : > { %26160 = vmatprep.subr.mxu1 %v28689_v24  ;;  %26128 = vmatpush3.msra.mxu0 %v29085_v9  ;;  %v2919_v8 = vand.u32 4294901760, %v29342_v4  ;;  %v2913_v10 = vsub.f32 %v29332_v2, %v2912_v6 }
 0x19e   : > { %26161 = vmatpush3.msra.mxu1 %v29085_v9  ;;  %26129 = vmatprep.subr.mxu0 %v28689_v24 }
 0x19f   : > { %26162 = vmatprep.subr.mxu1 %v28689_v24  ;;  %26130 = vmatpush3.msra.mxu0 %v29094_v11  ;;  %v2920_v12 = vsub.f32 %v29342_v4, %v2919_v8 }
 0x1a0   : > { %26163 = vmatpush3.msra.mxu1 %v29094_v11  ;;  %26131 = vmatprep.subr.mxu0 %v28689_v24 }
 0x1a1   : > { %26164 = vmatprep.subr.mxu1 %v28689_v24  ;;  %26132 = vmatpush3.msra.mxu0 %v29106_v14 }
 0x1a2   : > { %26165 = vmatpush3.msra.mxu1 %v29106_v14  ;;  %26133 = vmatprep.subr.mxu0 %v28689_v24 }
 0x1a3   : > { %26166 = vmatprep.subr.mxu1 %v28689_v24  ;;  %26134 = vmatpush3.msra.mxu0 %v29116_v16 }
 0x1a4   : > { %26135 = vmatprep.mubr.msk.f32.mxu0 %vm28690_vm1, %v28689_v24  ;;  %26167 = vmatpush3.msra.mxu1 %v29116_v16 }
 0x1a5   : > { %26168 = vmatprep.mubr.msk.f32.mxu1 %vm28690_vm1, %v28689_v24  ;;  %26136 = vmatmul.mubr.f32.vlgmr.msra.gmra.mxu0 %v28999_v54 }
 0x1a6   : > { %26149 = vmatprep.subr.mxu0 %v28689_v24  ;;  %26169 = vmatmul.mubr.f32.vlgmr.msra.gmra.mxu1 %v28981_v48 }
 0x1a7   : > { %26182 = vmatprep.subr.mxu1 %v28689_v24  ;;  %26150 = vmatpush3.msra.mxu0 %v29104_v13 }
 0x1a8   : > { %26183 = vmatpush3.msra.mxu1 %v29085_v9  ;;  %26151 = vmatprep.subr.mxu0 %v28689_v24  ;;  %v29361_v9 = vsub.f32 %v2790_v1, %v29344_v5 }
 0x1a9   : > { %26184 = vmatprep.subr.mxu1 %v28689_v24  ;;  %26152 = vmatpush3.msra.mxu0 %v29114_v15 }
 0x1aa   : > { %26185 = vmatpush3.msra.mxu1 %v29094_v11  ;;  %26153 = vmatprep.subr.mxu0 %v28689_v24  ;;  %v2926_v11 = vand.u32 4294901760, %v29353_v7  ;;  %v2933_v13 = vand.u32 4294901760, %v29361_v9 }
 0x1ab   : > { %26186 = vmatprep.subr.mxu1 %v28689_v24  ;;  %26154 = vmatpush3.msra.mxu0 %v29125_v18 }
 0x1ac   : > { %26187 = vmatpush3.msra.mxu1 %v29106_v14  ;;  %26155 = vmatprep.subr.mxu0 %v28689_v24  ;;  %v2914_v14 = vand.u32 4294901760, %v2913_v10  ;;  %v2927_v15 = vsub.f32 %v29353_v7, %v2926_v11  ;;  %v2804_v10 = vld [vmem:[%s33088_s11 + $0x70] sm:$0xff] }
 0x1ad   : > { %26188 = vmatprep.subr.mxu1 %v28689_v24  ;;  %26156 = vmatpush3.msra.mxu0 %v29133_v20  ;;  %v2797_v20 = vld [vmem:[%s33088_s11 + $0x38] sm:$0xff] }
 0x1ae   : > { %26157 = vmatprep.mubr.msk.f32.mxu0 %vm28690_vm1, %v28689_v24  ;;  %26189 = vmatpush3.msra.mxu1 %v29116_v16  ;;  %v2921_v16 = vand.u32 4294901760, %v2920_v12  ;;  %v2928_v18 = vand.u32 4294901760, %v2927_v15  ;;  %v2803_v12 = vld [vmem:[%s33088_s11 + $0x68] sm:$0xff] }
 0x1af   : > { %26190 = vmatprep.mubr.msk.f32.mxu1 %vm28690_vm1, %v28689_v24  ;;  %26158 = vmatmul.mubr.f32.vlgmr.msra.gmra.mxu0 %v28968_v45 }
 0x1b0   : > { %26171 = vmatprep.subr.mxu0 %v28689_v24  ;;  %26191 = vmatmul.mubr.f32.vlgmr.msra.gmra.mxu1 %v28962_v43 }
 0x1b1   : > { %26204 = vmatprep.subr.mxu1 %v28689_v24  ;;  %26172 = vmatpush3.msra.mxu0 %v1926_v17  ;;  %v2934_v17 = vsub.f32 %v29361_v9, %v2933_v13 }
 0x1b2   : > { %26205 = vmatpush3.msra.mxu1 %v2413_v53  ;;  %26173 = vmatprep.subr.mxu0 %v28689_v24  ;;  %v2798_v53 = vld [vmem:[%s33088_s11 + $0x40] sm:$0xff] }
 0x1b3   : > { %26206 = vmatprep.subr.mxu1 %v28689_v24  ;;  %26174 = vmatpush3.msra.mxu0 %v1933_v19  ;;  %v2935_v19 = vand.u32 4294901760, %v2934_v17 }
 0x1b4   : > { %26207 = vmatpush3.msra.mxu1 %v2420_v56  ;;  %26175 = vmatprep.subr.mxu0 %v28689_v24  ;;  %v29562_v56 = vand.u32 4294901760, %v2799_v51 }
 0x1b5   : > { %26208 = vmatprep.subr.mxu1 %v28689_v24  ;;  %26176 = vmatpush3.msra.mxu0 %v1940_v22  ;;  %v29427_v22 = vand.u32 4294901760, %v2797_v20 }
 0x1b6   : > { %26209 = vmatpush3.msra.mxu1 %v2427_v58  ;;  %26177 = vmatprep.subr.mxu0 %v28689_v24  ;;  %v29572_v58 = vand.u32 4294901760, %v2798_v53  ;;  %v29581_v60 = vsub.f32 %v2799_v51, %v29562_v56 }
 0x1b7   : > { %26210 = vmatprep.subr.mxu1 %v28689_v24  ;;  %26178 = vmatpush3.msra.mxu0 %v1947_v25  ;;  %v29436_v25 = vand.u32 4294901760, %v2796_v21  ;;  %v29446_v27 = vsub.f32 %v2797_v20, %v29427_v22 }
 0x1b8   : > { %26179 = vmatprep.mubr.msk.f32.mxu0 %vm28690_vm1, %v28689_v24  ;;  %26211 = vmatpush3.msra.mxu1 %v2434_v59 }
 0x1b9   : > { %26212 = vmatprep.mubr.msk.f32.mxu1 %vm28690_vm1, %v28689_v24  ;;  %26180 = vmatmul.mubr.f32.vlgmr.msra.gmra.mxu0 %v28962_v43  ;;  %v29456_v29 = vsub.f32 %v2796_v21, %v29436_v25  ;;  %v3397_v31 = vand.u32 4294901760, %v29446_v27 }
 0x1ba   : > { %26193 = vmatprep.subr.mxu0 %v28689_v24  ;;  %26213 = vmatmul.mubr.f32.vlgmr.msra.gmra.mxu1 %v28962_v43 }
 0x1bb   : > { %26226 = vmatprep.subr.mxu1 %v28689_v24  ;;  %26194 = vmatpush3.msra.mxu0 %v29199_v34  ;;  %v3404_v33 = vand.u32 4294901760, %v29456_v29  ;;  %v3398_v35 = vsub.f32 %v29446_v27, %v3397_v31 }
 0x1bc   : > { %26227 = vmatpush3.msra.mxu1 %v29199_v34  ;;  %26195 = vmatprep.subr.mxu0 %v28689_v24 }
 0x1bd   : > { %26228 = vmatprep.subr.mxu1 %v28689_v24  ;;  %26196 = vmatpush3.msra.mxu0 %v29208_v36  ;;  %v3405_v37 = vsub.f32 %v29456_v29, %v3404_v33 }
 0x1be   : > { %26229 = vmatpush3.msra.mxu1 %v29208_v36  ;;  %26197 = vmatprep.subr.mxu0 %v28689_v24 }
 0x1bf   : > { %26230 = vmatprep.subr.mxu1 %v28689_v24  ;;  %26198 = vmatpush3.msra.mxu0 %v29220_v39 }
 0x1c0   : > { %26231 = vmatpush3.msra.mxu1 %v29220_v39  ;;  %26199 = vmatprep.subr.mxu0 %v28689_v24 }
 0x1c1   : > { %26232 = vmatprep.subr.mxu1 %v28689_v24  ;;  %26200 = vmatpush3.msra.mxu0 %v29230_v41 }
 0x1c2   : > { %26201 = vmatprep.mubr.msk.f32.mxu0 %vm28690_vm1, %v28689_v24  ;;  %26233 = vmatpush3.msra.mxu1 %v29230_v41 }
 0x1c3   : > { %26234 = vmatprep.mubr.msk.f32.mxu1 %vm28690_vm1, %v28689_v24  ;;  %26202 = vmatmul.mubr.f32.vlgmr.msra.gmra.mxu0 %v28999_v54 }
 0x1c4   : > { %26215 = vmatprep.subr.mxu0 %v28689_v24  ;;  %26235 = vmatmul.mubr.f32.vlgmr.msra.gmra.mxu1 %v28981_v48 }
 0x1c5   : > { %26248 = vmatprep.subr.mxu1 %v28689_v24  ;;  %26216 = vmatpush3.msra.mxu0 %v29218_v38 }
 0x1c6   : > { %26249 = vmatpush3.msra.mxu1 %v29199_v34  ;;  %26217 = vmatprep.subr.mxu0 %v28689_v24  ;;  %v29475_v34 = vsub.f32 %v2794_v26, %v29458_v30 }
 0x1c7   : > { %26250 = vmatprep.subr.mxu1 %v28689_v24  ;;  %26218 = vmatpush3.msra.mxu0 %v29228_v40 }
 0x1c8   : > { %26251 = vmatpush3.msra.mxu1 %v29208_v36  ;;  %26219 = vmatprep.subr.mxu0 %v28689_v24  ;;  %v3411_v36 = vand.u32 4294901760, %v29467_v32  ;;  %v3418_v38 = vand.u32 4294901760, %v29475_v34 }
 0x1c9   : > { %26252 = vmatprep.subr.mxu1 %v28689_v24  ;;  %26220 = vmatpush3.msra.mxu0 %v29239_v44 }
 0x1ca   : > { %26253 = vmatpush3.msra.mxu1 %v29220_v39  ;;  %26221 = vmatprep.subr.mxu0 %v28689_v24  ;;  %v3399_v39 = vand.u32 4294901760, %v3398_v35  ;;  %v3412_v40 = vsub.f32 %v29467_v32, %v3411_v36 }
 0x1cb   : > { %26254 = vmatprep.subr.mxu1 %v28689_v24  ;;  %26222 = vmatpush3.msra.mxu0 %v29247_v47  ;;  %v2801_v47 = vld [vmem:[%s33088_s11 + $0x58] sm:$0xff] }
 0x1cc   : > { %26223 = vmatprep.mubr.msk.f32.mxu0 %vm28690_vm1, %v28689_v24  ;;  %26255 = vmatpush3.msra.mxu1 %v29230_v41  ;;  %v3406_v41 = vand.u32 4294901760, %v3405_v37  ;;  %v3413_v44 = vand.u32 4294901760, %v3412_v40 }
 0x1cd   : > { %26256 = vmatprep.mubr.msk.f32.mxu1 %vm28690_vm1, %v28689_v24  ;;  %26224 = vmatmul.mubr.f32.vlgmr.msra.gmra.mxu0 %v28968_v45 }
 0x1ce   : > { %26237 = vmatprep.subr.mxu0 %v28689_v24  ;;  %26257 = vmatmul.mubr.f32.vlgmr.msra.gmra.mxu1 %v28962_v43 }
 0x1cf   : > { %26270 = vmatprep.subr.mxu1 %v28689_v24  ;;  %26238 = vmatpush3.msra.mxu0 %v2411_v42  ;;  %v3419_v42 = vsub.f32 %v29475_v34, %v3418_v38 }
 0x1d0   : > { %26271 = vmatpush3.msra.mxu1 %v2914_v14  ;;  %26239 = vmatprep.subr.mxu0 %v28689_v24  ;;  %v2802_v14 = vld [vmem:[%s33088_s11 + $0x60] sm:$0xff] }
 0x1d1   : > { %26272 = vmatprep.subr.mxu1 %v28689_v24  ;;  %26240 = vmatpush3.msra.mxu0 %v2418_v46  ;;  %v3420_v46 = vand.u32 4294901760, %v3419_v42  ;;  %v4748_v42 = vld [vmem:[%s33039_s12 + $0x10] sm:$0xff] }
 0x1d2   : > { %26273 = vmatpush3.msra.mxu1 %v2921_v16  ;;  %26241 = vmatprep.subr.mxu0 %v28689_v24  ;;  %v29676_v16 = vand.u32 4294901760, %v2803_v12 }
 0x1d3   : > { %26274 = vmatprep.subr.mxu1 %v28689_v24  ;;  %26242 = vmatpush3.msra.mxu0 %v2425_v50  ;;  %v29541_v50 = vand.u32 4294901760, %v2801_v47 }
 0x1d4   : > { %26275 = vmatpush3.msra.mxu1 %v2928_v18  ;;  %26243 = vmatprep.subr.mxu0 %v28689_v24  ;;  %v29686_v18 = vand.u32 4294901760, %v2802_v14  ;;  %v29695_v20 = vsub.f32 %v2803_v12, %v29676_v16 }
 0x1d5   : > { %26276 = vmatprep.subr.mxu1 %v28689_v24  ;;  %26244 = vmatpush3.msra.mxu0 %v2432_v52  ;;  %v29550_v52 = vand.u32 4294901760, %v2800_v49  ;;  %v29560_v55 = vsub.f32 %v2801_v47, %v29541_v50 }
 0x1d6   : > { %26245 = vmatprep.mubr.msk.f32.mxu0 %vm28690_vm1, %v28689_v24  ;;  %26277 = vmatpush3.msra.mxu1 %v2935_v19 }
 0x1d7   : > { %26278 = vmatprep.mubr.msk.f32.mxu1 %vm28690_vm1, %v28689_v24  ;;  %26246 = vmatmul.mubr.f32.vlgmr.msra.gmra.mxu0 %v28962_v43  ;;  %v29570_v57 = vsub.f32 %v2800_v49, %v29550_v52  ;;  %v3882_v59 = vand.u32 4294901760, %v29560_v55 }
 0x1d8   : > { %26259 = vmatprep.subr.mxu0 %v28689_v24  ;;  %26279 = vmatmul.mubr.f32.vlgmr.msra.gmra.mxu1 %v28962_v43 }
 0x1d9   : > { %26292 = vmatprep.subr.mxu1 %v28689_v24  ;;  %26260 = vmatpush3.msra.mxu0 %v29313_v62  ;;  %v3889_v61 = vand.u32 4294901760, %v29570_v57  ;;  %v3883_v63 = vsub.f32 %v29560_v55, %v3882_v59 }
 0x1da   : > { %26293 = vmatpush3.msra.mxu1 %v29313_v62  ;;  %26261 = vmatprep.subr.mxu0 %v28689_v24 }
 0x1db   : > { %26294 = vmatprep.subr.mxu1 %v28689_v24  ;;  %26262 = vmatpush3.msra.mxu0 %v29322_v0  ;;  %v3890_v1 = vsub.f32 %v29570_v57, %v3889_v61 }
 0x1dc   : > { %26295 = vmatpush3.msra.mxu1 %v29322_v0  ;;  %26263 = vmatprep.subr.mxu0 %v28689_v24 }
 0x1dd   : > { %26296 = vmatprep.subr.mxu1 %v28689_v24  ;;  %26264 = vmatpush3.msra.mxu0 %v29334_v3 }
 0x1de   : > { %26297 = vmatpush3.msra.mxu1 %v29334_v3  ;;  %26265 = vmatprep.subr.mxu0 %v28689_v24 }
 0x1df   : > { %26298 = vmatprep.subr.mxu1 %v28689_v24  ;;  %26266 = vmatpush3.msra.mxu0 %v29344_v5 }
 0x1e0   : > { %26267 = vmatprep.mubr.msk.f32.mxu0 %vm28690_vm1, %v28689_v24  ;;  %26299 = vmatpush3.msra.mxu1 %v29344_v5 }
 0x1e1   : > { %26300 = vmatprep.mubr.msk.f32.mxu1 %vm28690_vm1, %v28689_v24  ;;  %26268 = vmatmul.mubr.f32.vlgmr.msra.gmra.mxu0 %v28999_v54 }
 0x1e2   : > { %26281 = vmatprep.subr.mxu0 %v28689_v24  ;;  %26301 = vmatmul.mubr.f32.vlgmr.msra.gmra.mxu1 %v28981_v48 }
 0x1e3   : > { %26314 = vmatprep.subr.mxu1 %v28689_v24  ;;  %26282 = vmatpush3.msra.mxu0 %v29332_v2 }
 0x1e4   : > { %26315 = vmatpush3.msra.mxu1 %v29313_v62  ;;  %26283 = vmatprep.subr.mxu0 %v28689_v24  ;;  %v29589_v62 = vsub.f32 %v2798_v53, %v29572_v58 }
 0x1e5   : > { %26316 = vmatprep.subr.mxu1 %v28689_v24  ;;  %26284 = vmatpush3.msra.mxu0 %v29342_v4 }
 0x1e6   : > { %26317 = vmatpush3.msra.mxu1 %v29322_v0  ;;  %26285 = vmatprep.subr.mxu0 %v28689_v24  ;;  %v3896_v0 = vand.u32 4294901760, %v29581_v60  ;;  %v3903_v2 = vand.u32 4294901760, %v29589_v62 }
 0x1e7   : > { %26318 = vmatprep.subr.mxu1 %v28689_v24  ;;  %26286 = vmatpush3.msra.mxu0 %v29353_v7 }
 0x1e8   : > { %26319 = vmatpush3.msra.mxu1 %v29334_v3  ;;  %26287 = vmatprep.subr.mxu0 %v28689_v24  ;;  %v3884_v3 = vand.u32 4294901760, %v3883_v63  ;;  %v3897_v4 = vsub.f32 %v29581_v60, %v3896_v0 }
 0x1e9   : > { %26320 = vmatprep.subr.mxu1 %v28689_v24  ;;  %26288 = vmatpush3.msra.mxu0 %v29361_v9  ;;  %v2805_v9 = vld [vmem:[%s33088_s11 + $0x78] sm:$0xff] }
 0x1ea   : > { %26289 = vmatprep.mubr.msk.f32.mxu0 %vm28690_vm1, %v28689_v24  ;;  %26321 = vmatpush3.msra.mxu1 %v29344_v5  ;;  %v3891_v5 = vand.u32 4294901760, %v3890_v1  ;;  %v3898_v7 = vand.u32 4294901760, %v3897_v4 }
 0x1eb   : > { %26322 = vmatprep.mubr.msk.f32.mxu1 %vm28690_vm1, %v28689_v24  ;;  %26290 = vmatmul.mubr.f32.vlgmr.msra.gmra.mxu0 %v28968_v45 }
 0x1ec   : > { %26303 = vmatprep.subr.mxu0 %v28689_v24  ;;  %26323 = vmatmul.mubr.f32.vlgmr.msra.gmra.mxu1 %v28962_v43 }
 0x1ed   : > { %26336 = vmatprep.subr.mxu1 %v28689_v24  ;;  %26304 = vmatpush3.msra.mxu0 %v2912_v6  ;;  %v3904_v6 = vsub.f32 %v29589_v62, %v3903_v2 }
 0x1ee   : > { %26337 = vmatpush3.msra.mxu1 %v3399_v39  ;;  %26305 = vmatprep.subr.mxu0 %v28689_v24 }
 0x1ef   : > { %26338 = vmatprep.subr.mxu1 %v28689_v24  ;;  %26306 = vmatpush3.msra.mxu0 %v2919_v8  ;;  %v3905_v8 = vand.u32 4294901760, %v3904_v6 }
 0x1f0   : > { %26339 = vmatpush3.msra.mxu1 %v3406_v41  ;;  %26307 = vmatprep.subr.mxu0 %v28689_v24  ;;  %v4749_v41 = vld [vmem:[%s33039_s12 + $0x18] sm:$0xff] }
 0x1f1   : > { %26340 = vmatprep.subr.mxu1 %v28689_v24  ;;  %26308 = vmatpush3.msra.mxu0 %v2926_v11  ;;  %v29655_v11 = vand.u32 4294901760, %v2805_v9 }
 0x1f2   : > { %26341 = vmatpush3.msra.mxu1 %v3413_v44  ;;  %26309 = vmatprep.subr.mxu0 %v28689_v24 }
 0x1f3   : > { %26342 = vmatprep.subr.mxu1 %v28689_v24  ;;  %26310 = vmatpush3.msra.mxu0 %v2933_v13  ;;  %v29664_v13 = vand.u32 4294901760, %v2804_v10  ;;  %v29674_v15 = vsub.f32 %v2805_v9, %v29655_v11 }
 0x1f4   : > { %26311 = vmatprep.mubr.msk.f32.mxu0 %vm28690_vm1, %v28689_v24  ;;  %26343 = vmatpush3.msra.mxu1 %v3420_v46  ;;  %v29769_v46 = vand.u32 4294901760, %v4749_v41 }
 0x1f5   : > { %26344 = vmatprep.mubr.msk.f32.mxu1 %vm28690_vm1, %v28689_v24  ;;  %26312 = vmatmul.mubr.f32.vlgmr.msra.gmra.mxu0 %v28962_v43  ;;  %v29684_v17 = vsub.f32 %v2804_v10, %v29664_v13  ;;  %v4367_v19 = vand.u32 4294901760, %v29674_v15 }
 0x1f6   : > { %26325 = vmatprep.subr.mxu0 %v28689_v24  ;;  %26345 = vmatmul.mubr.f32.vlgmr.msra.gmra.mxu1 %v28962_v43 }
 0x1f7   : > { %26358 = vmatprep.subr.mxu1 %v28689_v24  ;;  %26326 = vmatpush3.msra.mxu0 %v29427_v22  ;;  %v4374_v21 = vand.u32 4294901760, %v29684_v17  ;;  %v4368_v23 = vsub.f32 %v29674_v15, %v4367_v19 }
 0x1f8   : > { %26359 = vmatpush3.msra.mxu1 %v29427_v22  ;;  %26327 = vmatprep.subr.mxu0 %v28689_v24 }
 0x1f9   : > { %26360 = vmatprep.subr.mxu1 %v28689_v24  ;;  %26328 = vmatpush3.msra.mxu0 %v29436_v25 }
 0x1fa   : > { %26361 = vmatpush3.msra.mxu1 %v29436_v25  ;;  %26329 = vmatprep.subr.mxu0 %v28689_v24 }
 0x1fb   : > { %26362 = vmatprep.subr.mxu1 %v28689_v24  ;;  %26330 = vmatpush3.msra.mxu0 %v29448_v28 }
 0x1fc   : > { %26363 = vmatpush3.msra.mxu1 %v29448_v28  ;;  %26331 = vmatprep.subr.mxu0 %v28689_v24 }
 0x1fd   : > { %26364 = vmatprep.subr.mxu1 %v28689_v24  ;;  %26332 = vmatpush3.msra.mxu0 %v29458_v30 }
 0x1fe   : > { %26333 = vmatprep.mubr.msk.f32.mxu0 %vm28690_vm1, %v28689_v24  ;;  %26365 = vmatpush3.msra.mxu1 %v29458_v30 }
 0x1ff   : > { %26366 = vmatprep.mubr.msk.f32.mxu1 %vm28690_vm1, %v28689_v24  ;;  %26334 = vmatmul.mubr.f32.vlgmr.msra.gmra.mxu0 %v28999_v54 }
 0x200   : > { %26347 = vmatprep.subr.mxu0 %v28689_v24  ;;  %26367 = vmatmul.mubr.f32.vlgmr.msra.gmra.mxu1 %v28981_v48 }
 0x201   : > { %26380 = vmatprep.subr.mxu1 %v28689_v24  ;;  %26348 = vmatpush3.msra.mxu0 %v29446_v27  ;;  %v4375_v27 = vsub.f32 %v29684_v17, %v4374_v21 }
 0x202   : > { %26381 = vmatpush3.msra.mxu1 %v29427_v22  ;;  %26349 = vmatprep.subr.mxu0 %v28689_v24  ;;  %v29703_v22 = vsub.f32 %v2802_v14, %v29686_v18 }
 0x203   : > { %26382 = vmatprep.subr.mxu1 %v28689_v24  ;;  %26350 = vmatpush3.msra.mxu0 %v29456_v29 }
 0x204   : > { %26383 = vmatpush3.msra.mxu1 %v29436_v25  ;;  %26351 = vmatprep.subr.mxu0 %v28689_v24  ;;  %v4381_v25 = vand.u32 4294901760, %v29695_v20 }
 0x205   : > { %26384 = vmatprep.subr.mxu1 %v28689_v24  ;;  %26352 = vmatpush3.msra.mxu0 %v29467_v32  ;;  %v4376_v32 = vand.u32 4294901760, %v4375_v27 }
 0x206   : > { %26385 = vmatpush3.msra.mxu1 %v29448_v28  ;;  %26353 = vmatprep.subr.mxu0 %v28689_v24  ;;  %v4388_v28 = vand.u32 4294901760, %v29703_v22 }
 0x207   : > { %26386 = vmatprep.subr.mxu1 %v28689_v24  ;;  %26354 = vmatpush3.msra.mxu0 %v29475_v34 }
 0x208   : > { %26355 = vmatprep.mubr.msk.f32.mxu0 %vm28690_vm1, %v28689_v24  ;;  %26387 = vmatpush3.msra.mxu1 %v29458_v30  ;;  %v4369_v30 = vand.u32 4294901760, %v4368_v23 }
 0x209   : > { %26388 = vmatprep.mubr.msk.f32.mxu1 %vm28690_vm1, %v28689_v24  ;;  %26356 = vmatmul.mubr.f32.vlgmr.msra.gmra.mxu0 %v28968_v45 }
 0x20a   : > { %26369 = vmatprep.subr.mxu0 %v28689_v24  ;;  %26389 = vmatmul.mubr.f32.vlgmr.msra.gmra.mxu1 %v28962_v43 }
 0x20b   : > { %26402 = vmatprep.subr.mxu1 %v28689_v24  ;;  %26370 = vmatpush3.msra.mxu0 %v3397_v31  ;;  %v4382_v31 = vsub.f32 %v29695_v20, %v4381_v25 }
 0x20c   : > { %26403 = vmatpush3.msra.mxu1 %v3884_v3  ;;  %26371 = vmatprep.subr.mxu0 %v28689_v24 }
 0x20d   : > { %26404 = vmatprep.subr.mxu1 %v28689_v24  ;;  %26372 = vmatpush3.msra.mxu0 %v3404_v33  ;;  %v4389_v33 = vsub.f32 %v29703_v22, %v4388_v28  ;;  %v4383_v34 = vand.u32 4294901760, %v4382_v31 }
 0x20e   : > { %26405 = vmatpush3.msra.mxu1 %v3891_v5  ;;  %26373 = vmatprep.subr.mxu0 %v28689_v24 }
 0x20f   : > { %26406 = vmatprep.subr.mxu1 %v28689_v24  ;;  %26374 = vmatpush3.msra.mxu0 %v3411_v36  ;;  %v4390_v37 = vand.u32 4294901760, %v4389_v33 }
 0x210   : > { %26407 = vmatpush3.msra.mxu1 %v3898_v7  ;;  %26375 = vmatprep.subr.mxu0 %v28689_v24 }
 0x211   : > { %26408 = vmatprep.subr.mxu1 %v28689_v24  ;;  %26376 = vmatpush3.msra.mxu0 %v3418_v38 }
 0x212   : > { %26377 = vmatprep.mubr.msk.f32.mxu0 %vm28690_vm1, %v28689_v24  ;;  %26409 = vmatpush3.msra.mxu1 %v3905_v8 }
 0x213   : > { %26410 = vmatprep.mubr.msk.f32.mxu1 %vm28690_vm1, %v28689_v24  ;;  %26378 = vmatmul.mubr.f32.vlgmr.msra.gmra.mxu0 %v28962_v43 }
 0x214   : > { %26391 = vmatprep.subr.mxu0 %v28689_v24  ;;  %26411 = vmatmul.mubr.f32.vlgmr.msra.gmra.mxu1 %v28962_v43 }
 0x215   : > { %26424 = vmatprep.subr.mxu1 %v28689_v24  ;;  %26392 = vmatpush3.msra.mxu0 %v29541_v50 }
 0x216   : > { %26425 = vmatpush3.msra.mxu1 %v29541_v50  ;;  %26393 = vmatprep.subr.mxu0 %v28689_v24 }
 0x217   : > { %26426 = vmatprep.subr.mxu1 %v28689_v24  ;;  %26394 = vmatpush3.msra.mxu0 %v29550_v52 }
 0x218   : > { %26427 = vmatpush3.msra.mxu1 %v29550_v52  ;;  %26395 = vmatprep.subr.mxu0 %v28689_v24 }
 0x219   : > { %26428 = vmatprep.subr.mxu1 %v28689_v24  ;;  %26396 = vmatpush3.msra.mxu0 %v29562_v56 }
 0x21a   : > { %26429 = vmatpush3.msra.mxu1 %v29562_v56  ;;  %26397 = vmatprep.subr.mxu0 %v28689_v24 }
 0x21b   : > { %26430 = vmatprep.subr.mxu1 %v28689_v24  ;;  %26398 = vmatpush3.msra.mxu0 %v29572_v58 }
 0x21c   : > { %26399 = vmatprep.mubr.msk.f32.mxu0 %vm28690_vm1, %v28689_v24  ;;  %26431 = vmatpush3.msra.mxu1 %v29572_v58 }
 0x21d   : > { %26432 = vmatprep.mubr.msk.f32.mxu1 %vm28690_vm1, %v28689_v24  ;;  %26400 = vmatmul.mubr.f32.vlgmr.msra.gmra.mxu0 %v28999_v54 }
 0x21e   : > { %26413 = vmatprep.subr.mxu0 %v28689_v24  ;;  %26433 = vmatmul.mubr.f32.vlgmr.msra.gmra.mxu1 %v28981_v48 }
 0x21f   : > { %26446 = vmatprep.subr.mxu1 %v28689_v24  ;;  %26414 = vmatpush3.msra.mxu0 %v29560_v55 }
 0x220   : > { %26447 = vmatpush3.msra.mxu1 %v29541_v50  ;;  %26415 = vmatprep.subr.mxu0 %v28689_v24  ;;  %v4747_v50 = vld [vmem:[%s33039_s12 + $0x8] sm:$0xff] }
 0x221   : > { %26448 = vmatprep.subr.mxu1 %v28689_v24  ;;  %26416 = vmatpush3.msra.mxu0 %v29570_v57  ;;  %v29788_v57 = vsub.f32 %v4749_v41, %v29769_v46 }
 0x222   : > { %26449 = vmatpush3.msra.mxu1 %v29550_v52  ;;  %26417 = vmatprep.subr.mxu0 %v28689_v24  ;;  %v1016_v26 = vpop.f32.mrf.mxu1  ;;  %v29778_v52 = vand.u32 4294901760, %v4748_v42 }
 0x223   : > { %26450 = vmatprep.subr.mxu1 %v28689_v24  ;;  %26418 = vmatpush3.msra.mxu0 %v29581_v60 }
 0x224   : > { %26451 = vmatpush3.msra.mxu1 %v29562_v56  ;;  %26419 = vmatprep.subr.mxu0 %v28689_v24  ;;  %v26016_v29 = vpop.f32.mrf.mxu1  ;;  %v4746_v56 = vld [vmem:[%s33039_s12] sm:$0xff] }
 0x225   : > { %26452 = vmatprep.subr.mxu1 %v28689_v24  ;;  %26420 = vmatpush3.msra.mxu0 %v29589_v62  ;;  %v29800_v60 = vand.u32 4294901760, %v4746_v56 }
 0x226   : > { %26421 = vmatprep.mubr.msk.f32.mxu0 %vm28690_vm1, %v28689_v24  ;;  %26453 = vmatpush3.msra.mxu1 %v29572_v58  ;;  %v29790_v58 = vand.u32 4294901760, %v4747_v50 }
 0x227   : > { %26454 = vmatprep.mubr.msk.f32.mxu1 %vm28690_vm1, %v28689_v24  ;;  %26422 = vmatmul.mubr.f32.vlgmr.msra.gmra.mxu0 %v28968_v45  ;;  %v29817_v1 = vsub.f32 %v4746_v56, %v29800_v60 }
 0x228   : > { %26435 = vmatprep.subr.mxu0 %v28689_v24  ;;  %26455 = vmatmul.mubr.f32.vlgmr.msra.gmra.mxu1 %v28962_v43  ;;  %v29809_v62 = vsub.f32 %v4747_v50, %v29790_v58 }
 0x229   : > { %26468 = vmatprep.subr.mxu1 %v28689_v24  ;;  %26436 = vmatpush3.msra.mxu0 %v3882_v59  ;;  %v29798_v59 = vsub.f32 %v4748_v42, %v29778_v52  ;;  %v4889_v10 = vand.u32 4294901760, %v29817_v1 }
 0x22a   : > { %26469 = vmatpush3.msra.mxu1 %v4369_v30  ;;  %26437 = vmatprep.subr.mxu0 %v28689_v24  ;;  %v1173_v35 = vpop.f32.mrf.mxu1  ;;  %v4882_v6 = vand.u32 4294901760, %v29809_v62 }
 0x22b   : > { %26470 = vmatprep.subr.mxu1 %v28689_v24  ;;  %26438 = vmatpush3.msra.mxu0 %v3889_v61  ;;  %v925_v36 = vpop.f32.mrf.mxu0  ;;  %v4868_v61 = vand.u32 4294901760, %v29788_v57  ;;  %v4890_v14 = vsub.f32 %v29817_v1, %v4889_v10 }
 0x22c   : > { %26471 = vmatpush3.msra.mxu1 %v4376_v32  ;;  %26439 = vmatprep.subr.mxu0 %v28689_v24  ;;  %v1017_v38 = vadd.f32 %v1016_v26, %v925_v36  ;;  %v26038_v39 = vpop.f32.mrf.mxu1  ;;  %v4883_v12 = vsub.f32 %v29809_v62, %v4882_v6 }
 0x22d   : > { %26472 = vmatprep.subr.mxu1 %v28689_v24  ;;  %26440 = vmatpush3.msra.mxu0 %v3896_v0  ;;  %v26005_v40 = vpop.f32.mrf.mxu0  ;;  %v4875_v0 = vand.u32 4294901760, %v29798_v59  ;;  %v4869_v5 = vsub.f32 %v29788_v57, %v4868_v61  ;;  %v4891_v29 = vand.u32 4294901760, %v4890_v14 }
 0x22e   : > { %26473 = vmatpush3.msra.mxu1 %v4383_v34  ;;  %26441 = vmatprep.subr.mxu0 %v28689_v24  ;;  %v4750_v34 = vld [vmem:[%s33039_s12 + $0x20] sm:$0xff] }
 0x22f   : > { %26474 = vmatprep.subr.mxu1 %v28689_v24  ;;  %26442 = vmatpush3.msra.mxu0 %v3903_v2  ;;  %v4876_v9 = vsub.f32 %v29798_v59, %v4875_v0 }
 0x230   : > { %26443 = vmatprep.mubr.msk.f32.mxu0 %vm28690_vm1, %v28689_v24  ;;  %26475 = vmatpush3.msra.mxu1 %v4390_v37 }
 0x231   : > { %26476 = vmatprep.mubr.msk.f32.mxu1 %vm28690_vm1, %v28689_v24  ;;  %26444 = vmatmul.mubr.f32.vlgmr.msra.gmra.mxu0 %v28962_v43 }
 0x232   : > { %26457 = vmatprep.subr.mxu0 %v28689_v24  ;;  %26477 = vmatmul.mubr.f32.vlgmr.msra.gmra.mxu1 %v28962_v43 }
 0x233   : > { %26490 = vmatprep.subr.mxu1 %v28689_v24  ;;  %26458 = vmatpush3.msra.mxu0 %v29655_v11  ;;  %v1096_v44 = vpop.f32.mrf.mxu0 }
 0x234   : > { %26491 = vmatpush3.msra.mxu1 %v29655_v11  ;;  %26459 = vmatprep.subr.mxu0 %v28689_v24  ;;  %v1097_v47 = vadd.f32 %v1096_v44, %v1017_v38  ;;  %v1331_v49 = vpop.f32.mrf.mxu1  ;;  %v29916_v38 = vand.u32 4294901760, %v4750_v34 }
 0x235   : > { %26492 = vmatprep.subr.mxu1 %v28689_v24  ;;  %26460 = vmatpush3.msra.mxu0 %v29664_v13  ;;  %v26027_v51 = vpop.f32.mrf.mxu0 }
 0x236   : > { %26493 = vmatpush3.msra.mxu1 %v29664_v13  ;;  %26461 = vmatprep.subr.mxu0 %v28689_v24  ;;  %v26060_v53 = vpop.f32.mrf.mxu1  ;;  %v1174_v55 = vadd.f32 %v1173_v35, %v1097_v47  ;;  %v29933_v44 = vsub.f32 %v4750_v34, %v29916_v38 }
 0x237   : > { %26494 = vmatprep.subr.mxu1 %v28689_v24  ;;  %26462 = vmatpush3.msra.mxu0 %v29676_v16 }
 0x238   : > { %26495 = vmatpush3.msra.mxu1 %v29676_v16  ;;  %26463 = vmatprep.subr.mxu0 %v28689_v24  ;;  %v5374_v56 = vand.u32 4294901760, %v29933_v44 }
 0x239   : > { %26496 = vmatprep.subr.mxu1 %v28689_v24  ;;  %26464 = vmatpush3.msra.mxu0 %v29686_v18 }
 0x23a   : > { %26465 = vmatprep.mubr.msk.f32.mxu0 %vm28690_vm1, %v28689_v24  ;;  %26497 = vmatpush3.msra.mxu1 %v29686_v18 }
 0x23b   : > { %26498 = vmatprep.mubr.msk.f32.mxu1 %vm28690_vm1, %v28689_v24  ;;  %26466 = vmatmul.mubr.f32.vlgmr.msra.gmra.mxu0 %v28999_v54 }
 0x23c   : > { %26479 = vmatprep.subr.mxu0 %v28689_v24  ;;  %26499 = vmatmul.mubr.f32.vlgmr.msra.gmra.mxu1 %v28981_v48 }
 0x23d   : > { %26512 = vmatprep.subr.mxu1 %v28689_v24  ;;  %26480 = vmatpush3.msra.mxu0 %v29674_v15  ;;  %v1256_v63 = vpop.f32.mrf.mxu0  ;;  %v4753_v15 = vld [vmem:[%s33039_s12 + $0x38] sm:$0xff] }
 0x23e   : > { %26513 = vmatpush3.msra.mxu1 %v29655_v11  ;;  %26481 = vmatprep.subr.mxu0 %v28689_v24  ;;  %v1257_v2 = vadd.f32 %v1256_v63, %v1174_v55  ;;  %v1501_v3 = vpop.f32.mrf.mxu1  ;;  %v4870_v11 = vand.u32 4294901760, %v4869_v5 }
 0x23f   : > { %26514 = vmatprep.subr.mxu1 %v28689_v24  ;;  %26482 = vmatpush3.msra.mxu0 %v29684_v17  ;;  %v26049_v4 = vpop.f32.mrf.mxu0  ;;  %v4752_v17 = vld [vmem:[%s33039_s12 + $0x30] sm:$0xff] }
 0x240   : > { %26515 = vmatpush3.msra.mxu1 %v29664_v13  ;;  %26483 = vmatprep.subr.mxu0 %v28689_v24  ;;  %v29827_v7 = vadd.f32 %v1331_v49, %v1257_v2  ;;  %v26082_v8 = vpop.f32.mrf.mxu1  ;;  %v4877_v13 = vand.u32 4294901760, %v4876_v9  ;;  %v29894_v31 = vand.u32 4294901760, %v4752_v17 }
 0x241   : > { %26516 = vmatprep.subr.mxu1 %v28689_v24  ;;  %26484 = vmatpush3.msra.mxu0 %v29695_v20  ;;  %v29885_v20 = vand.u32 4294901760, %v4753_v15 }
 0x242   : > { %26517 = vmatpush3.msra.mxu1 %v29676_v16  ;;  %26485 = vmatprep.subr.mxu0 %v28689_v24  ;;  %v29914_v37 = vsub.f32 %v4752_v17, %v29894_v31 }
 0x243   : > { %26518 = vmatprep.subr.mxu1 %v28689_v24  ;;  %26486 = vmatpush3.msra.mxu0 %v29703_v22  ;;  %v29904_v35 = vsub.f32 %v4753_v15, %v29885_v20 }
 0x244   : > { %26487 = vmatprep.mubr.msk.f32.mxu0 %vm28690_vm1, %v28689_v24  ;;  %26519 = vmatpush3.msra.mxu1 %v29686_v18  ;;  %v4884_v18 = vand.u32 4294901760, %v4883_v12  ;;  %v5360_v42 = vand.u32 4294901760, %v29914_v37 }
 0x245   : > { %26520 = vmatprep.mubr.msk.f32.mxu1 %vm28690_vm1, %v28689_v24  ;;  %26488 = vmatmul.mubr.f32.vlgmr.msra.gmra.mxu0 %v28968_v45  ;;  %v5353_v39 = vand.u32 4294901760, %v29904_v35 }
 0x246   : > { %26501 = vmatprep.subr.mxu0 %v28689_v24  ;;  %26521 = vmatmul.mubr.f32.vlgmr.msra.gmra.mxu1 %v28962_v43 }
 0x247   : > { %26534 = vmatprep.subr.mxu1 %v28689_v24  ;;  %26502 = vmatpush3.msra.mxu0 %v4367_v19  ;;  %v1410_v16 = vpop.f32.mrf.mxu0 }
 0x248   : > { %26535 = vmatpush3.msra.mxu1 %v4870_v11  ;;  %26503 = vmatprep.subr.mxu0 %v28689_v24  ;;  %v1502_v23 = vadd.f32 %v1501_v3, %v1410_v16  ;;  %v1658_v26 = vpop.f32.mrf.mxu1  ;;  %v5375_v3 = vsub.f32 %v29933_v44, %v5374_v56 }
 0x249   : > { %26536 = vmatprep.subr.mxu1 %v28689_v24  ;;  %26504 = vmatpush3.msra.mxu0 %v4374_v21  ;;  %v26071_v27 = vpop.f32.mrf.mxu0 }
 0x24a   : > { %26537 = vmatpush3.msra.mxu1 %v4877_v13  ;;  %26505 = vmatprep.subr.mxu0 %v28689_v24  ;;  %v26104_v30 = vpop.f32.mrf.mxu1  ;;  %v5376_v11 = vand.u32 4294901760, %v5375_v3 }
 0x24b   : > { %26538 = vmatprep.subr.mxu1 %v28689_v24  ;;  %26506 = vmatpush3.msra.mxu0 %v4381_v25  ;;  %v4751_v25 = vld [vmem:[%s33039_s12 + $0x28] sm:$0xff] }
 0x24c   : > { %26539 = vmatpush3.msra.mxu1 %v4884_v18  ;;  %26507 = vmatprep.subr.mxu0 %v28689_v24  ;;  %v29906_v36 = vand.u32 4294901760, %v4751_v25  ;;  %v4754_v18 = vld [vmem:[%s33039_s12 + $0x40] sm:$0xff] }
 0x24d   : > { %26540 = vmatprep.subr.mxu1 %v28689_v24  ;;  %26508 = vmatpush3.msra.mxu0 %v4388_v28 }
 0x24e   : > { %26509 = vmatprep.mubr.msk.f32.mxu0 %vm28690_vm1, %v28689_v24  ;;  %26541 = vmatpush3.msra.mxu1 %v4891_v29  ;;  %v29925_v40 = vsub.f32 %v4751_v25, %v29906_v36  ;;  %v30032_v29 = vand.u32 4294901760, %v4754_v18 }
 0x24f   : > { %26542 = vmatprep.mubr.msk.f32.mxu1 %vm28690_vm1, %v28689_v24  ;;  %26510 = vmatmul.mubr.f32.vlgmr.msra.gmra.mxu0 %v28962_v43 }
 0x250   : > { %26523 = vmatprep.subr.mxu0 %v28689_v24  ;;  %26543 = vmatmul.mubr.f32.vlgmr.msra.gmra.mxu1 %v28962_v43  ;;  %v5367_v51 = vand.u32 4294901760, %v29925_v40 }
 0x251   : > { %26556 = vmatprep.subr.mxu1 %v28689_v24  ;;  %26524 = vmatpush3.msra.mxu0 %v29769_v46  ;;  %v1581_v19 = vpop.f32.mrf.mxu0 }
 0x252   : > { %26557 = vmatpush3.msra.mxu1 %v29769_v46  ;;  %26525 = vmatprep.subr.mxu0 %v28689_v24  ;;  %v1582_v21 = vadd.f32 %v1581_v19, %v1502_v23  ;;  %v1816_v22 = vpop.f32.mrf.mxu1 }
 0x253   : > { %26558 = vmatprep.subr.mxu1 %v28689_v24  ;;  %26526 = vmatpush3.msra.mxu0 %v29778_v52  ;;  %v26093_v28 = vpop.f32.mrf.mxu0 }
 0x254   : > { %26559 = vmatpush3.msra.mxu1 %v29778_v52  ;;  %26527 = vmatprep.subr.mxu0 %v28689_v24  ;;  %v26126_v32 = vpop.f32.mrf.mxu1  ;;  %v1659_v33 = vadd.f32 %v1658_v26, %v1582_v21  ;;  %v30049_v21 = vsub.f32 %v4754_v18, %v30032_v29 }
 0x255   : > { %26560 = vmatprep.subr.mxu1 %v28689_v24  ;;  %26528 = vmatpush3.msra.mxu0 %v29790_v58 }
 0x256   : > { %26561 = vmatpush3.msra.mxu1 %v29790_v58  ;;  %26529 = vmatprep.subr.mxu0 %v28689_v24 }
 0x257   : > { %26562 = vmatprep.subr.mxu1 %v28689_v24  ;;  %26530 = vmatpush3.msra.mxu0 %v29800_v60 }
 0x258   : > { %26531 = vmatprep.mubr.msk.f32.mxu0 %vm28690_vm1, %v28689_v24  ;;  %26563 = vmatpush3.msra.mxu1 %v29800_v60 }
 0x259   : > { %26564 = vmatprep.mubr.msk.f32.mxu1 %vm28690_vm1, %v28689_v24  ;;  %26532 = vmatmul.mubr.f32.vlgmr.msra.gmra.mxu0 %v28999_v54 }
 0x25a   : > { %26545 = vmatprep.subr.mxu0 %v28689_v24  ;;  %26565 = vmatmul.mubr.f32.vlgmr.msra.gmra.mxu1 %v28981_v48 }
 0x25b   : > { %26578 = vmatprep.subr.mxu1 %v28689_v24  ;;  %26546 = vmatpush3.msra.mxu0 %v29788_v57  ;;  %v1741_v41 = vpop.f32.mrf.mxu0  ;;  %v4757_v57 = vld [vmem:[%s33039_s12 + $0x58] sm:$0xff] }
 0x25c   : > { %26579 = vmatpush3.msra.mxu1 %v29769_v46  ;;  %26547 = vmatprep.subr.mxu0 %v28689_v24  ;;  %v1742_v47 = vadd.f32 %v1741_v41, %v1659_v33  ;;  %v1986_v49 = vpop.f32.mrf.mxu1  ;;  %v5354_v46 = vsub.f32 %v29904_v35, %v5353_v39  ;;  %v5859_v41 = vand.u32 4294901760, %v30049_v21 }
 0x25d   : > { %26580 = vmatprep.subr.mxu1 %v28689_v24  ;;  %26548 = vmatpush3.msra.mxu0 %v29798_v59  ;;  %v26115_v50 = vpop.f32.mrf.mxu0  ;;  %v4756_v59 = vld [vmem:[%s33039_s12 + $0x50] sm:$0xff] }
 0x25e   : > { %26581 = vmatpush3.msra.mxu1 %v29778_v52  ;;  %26549 = vmatprep.subr.mxu0 %v28689_v24  ;;  %v29943_v53 = vadd.f32 %v1816_v22, %v1742_v47  ;;  %v26148_v55 = vpop.f32.mrf.mxu1  ;;  %v5361_v52 = vsub.f32 %v29914_v37, %v5360_v42  ;;  %v5355_v63 = vand.u32 4294901760, %v5354_v46  ;;  %v30010_v13 = vand.u32 4294901760, %v4756_v59 }
 0x25f   : > { %26582 = vmatprep.subr.mxu1 %v28689_v24  ;;  %26550 = vmatpush3.msra.mxu0 %v29809_v62  ;;  %v30001_v62 = vand.u32 4294901760, %v4757_v57  ;;  %v5860_v50 = vsub.f32 %v30049_v21, %v5859_v41 }
 0x260   : > { %26583 = vmatpush3.msra.mxu1 %v29790_v58  ;;  %26551 = vmatprep.subr.mxu0 %v28689_v24  ;;  %v5368_v58 = vsub.f32 %v29925_v40, %v5367_v51  ;;  %v5362_v2 = vand.u32 4294901760, %v5361_v52  ;;  %v30030_v27 = vsub.f32 %v4756_v59, %v30010_v13 }
 0x261   : > { %26584 = vmatprep.subr.mxu1 %v28689_v24  ;;  %26552 = vmatpush3.msra.mxu0 %v29817_v1  ;;  %v30020_v23 = vsub.f32 %v4757_v57, %v30001_v62 }
 0x262   : > { %26553 = vmatprep.mubr.msk.f32.mxu0 %vm28690_vm1, %v28689_v24  ;;  %26585 = vmatpush3.msra.mxu1 %v29800_v60  ;;  %v5369_v4 = vand.u32 4294901760, %v5368_v58  ;;  %v5845_v19 = vand.u32 4294901760, %v30030_v27  ;;  %v5861_v58 = vand.u32 4294901760, %v5860_v50 }
 0x263   : > { %26586 = vmatprep.mubr.msk.f32.mxu1 %vm28690_vm1, %v28689_v24  ;;  %26554 = vmatmul.mubr.f32.vlgmr.msra.gmra.mxu0 %v28968_v45  ;;  %v5838_v30 = vand.u32 4294901760, %v30020_v23 }
 0x264   : > { %26567 = vmatprep.subr.mxu0 %v28689_v24  ;;  %26587 = vmatmul.mubr.f32.vlgmr.msra.gmra.mxu1 %v28962_v43 }
 0x265   : > { %26600 = vmatprep.subr.mxu1 %v28689_v24  ;;  %26568 = vmatpush3.msra.mxu0 %v4868_v61  ;;  %v1895_v60 = vpop.f32.mrf.mxu0 }
 0x266   : > { %26601 = vmatpush3.msra.mxu1 %v5355_v63  ;;  %26569 = vmatprep.subr.mxu0 %v28689_v24  ;;  %v1987_v5 = vadd.f32 %v1986_v49, %v1895_v60  ;;  %v2143_v8 = vpop.f32.mrf.mxu1 }
 0x267   : > { %26602 = vmatprep.subr.mxu1 %v28689_v24  ;;  %26570 = vmatpush3.msra.mxu0 %v4875_v0  ;;  %v26137_v9 = vpop.f32.mrf.mxu0 }
 0x268   : > { %26603 = vmatpush3.msra.mxu1 %v5362_v2  ;;  %26571 = vmatprep.subr.mxu0 %v28689_v24  ;;  %v26170_v12 = vpop.f32.mrf.mxu1 }
 0x269   : > { %26604 = vmatprep.subr.mxu1 %v28689_v24  ;;  %26572 = vmatpush3.msra.mxu0 %v4882_v6  ;;  %v4755_v6 = vld [vmem:[%s33039_s12 + $0x48] sm:$0xff] }
 0x26a   : > { %26605 = vmatpush3.msra.mxu1 %v5369_v4  ;;  %26573 = vmatprep.subr.mxu0 %v28689_v24  ;;  %v30022_v26 = vand.u32 4294901760, %v4755_v6 }
 0x26b   : > { %26606 = vmatprep.subr.mxu1 %v28689_v24  ;;  %26574 = vmatpush3.msra.mxu0 %v4889_v10 }
 0x26c   : > { %26575 = vmatprep.mubr.msk.f32.mxu0 %vm28690_vm1, %v28689_v24  ;;  %26607 = vmatpush3.msra.mxu1 %v5376_v11  ;;  %v30041_v15 = vsub.f32 %v4755_v6, %v30022_v26 }
 0x26d   : > { %26608 = vmatprep.mubr.msk.f32.mxu1 %vm28690_vm1, %v28689_v24  ;;  %26576 = vmatmul.mubr.f32.vlgmr.msra.gmra.mxu0 %v28962_v43 }
 0x26e   : > { %26589 = vmatprep.subr.mxu0 %v28689_v24  ;;  %26609 = vmatmul.mubr.f32.vlgmr.msra.gmra.mxu1 %v28962_v43  ;;  %v5852_v32 = vand.u32 4294901760, %v30041_v15 }
 0x26f   : > { %26622 = vmatprep.subr.mxu1 %v28689_v24  ;;  %26590 = vmatpush3.msra.mxu0 %v29885_v20  ;;  %v2066_v61 = vpop.f32.mrf.mxu0 }
 0x270   : > { %26623 = vmatpush3.msra.mxu1 %v29885_v20  ;;  %26591 = vmatprep.subr.mxu0 %v28689_v24  ;;  %v2067_v0 = vadd.f32 %v2066_v61, %v1987_v5  ;;  %v2301_v1 = vpop.f32.mrf.mxu1  ;;  %v4758_v5 = vld [vmem:[%s33039_s12 + $0x60] sm:$0xff] }
 0x271   : > { %26624 = vmatprep.subr.mxu1 %v28689_v24  ;;  %26592 = vmatpush3.msra.mxu0 %v29894_v31  ;;  %v26159_v10 = vpop.f32.mrf.mxu0  ;;  %v30148_v12 = vand.u32 4294901760, %v4758_v5 }
 0x272   : > { %26625 = vmatpush3.msra.mxu1 %v29894_v31  ;;  %26593 = vmatprep.subr.mxu0 %v28689_v24  ;;  %v26192_v14 = vpop.f32.mrf.mxu1  ;;  %v2144_v16 = vadd.f32 %v2143_v8, %v2067_v0 }
 0x273   : > { %26626 = vmatprep.subr.mxu1 %v28689_v24  ;;  %26594 = vmatpush3.msra.mxu0 %v29906_v36 }
 0x274   : > { %26627 = vmatpush3.msra.mxu1 %v29906_v36  ;;  %26595 = vmatprep.subr.mxu0 %v28689_v24 }
 0x275   : > { %26628 = vmatprep.subr.mxu1 %v28689_v24  ;;  %26596 = vmatpush3.msra.mxu0 %v29916_v38 }
 0x276   : > { %26597 = vmatprep.mubr.msk.f32.mxu0 %vm28690_vm1, %v28689_v24  ;;  %26629 = vmatpush3.msra.mxu1 %v29916_v38 }
 0x277   : > { %26630 = vmatprep.mubr.msk.f32.mxu1 %vm28690_vm1, %v28689_v24  ;;  %26598 = vmatmul.mubr.f32.vlgmr.msra.gmra.mxu0 %v28999_v54 }
 0x278   : > { %26611 = vmatprep.subr.mxu0 %v28689_v24  ;;  %26631 = vmatmul.mubr.f32.vlgmr.msra.gmra.mxu1 %v28981_v48 }
 0x279   : > { %26644 = vmatprep.subr.mxu1 %v28689_v24  ;;  %26612 = vmatpush3.msra.mxu0 %v29904_v35  ;;  %v2226_v17 = vpop.f32.mrf.mxu0  ;;  %v4761_v35 = vld [vmem:[%s33039_s12 + $0x78] sm:$0xff] }
 0x27a   : > { %26645 = vmatpush3.msra.mxu1 %v29885_v20  ;;  %26613 = vmatprep.subr.mxu0 %v28689_v24  ;;  %v2227_v22 = vadd.f32 %v2226_v17, %v2144_v16  ;;  %v2471_v25 = vpop.f32.mrf.mxu1  ;;  %v5839_v20 = vsub.f32 %v30020_v23, %v5838_v30 }
 0x27b   : > { %26646 = vmatprep.subr.mxu1 %v28689_v24  ;;  %26614 = vmatpush3.msra.mxu0 %v29914_v37  ;;  %v26181_v28 = vpop.f32.mrf.mxu0  ;;  %v4760_v37 = vld [vmem:[%s33039_s12 + $0x70] sm:$0xff] }
 0x27c   : > { %26647 = vmatpush3.msra.mxu1 %v29894_v31  ;;  %26615 = vmatprep.subr.mxu0 %v28689_v24  ;;  %v30059_v33 = vadd.f32 %v2301_v1, %v2227_v22  ;;  %v26214_v34 = vpop.f32.mrf.mxu1  ;;  %v5846_v31 = vsub.f32 %v30030_v27, %v5845_v19  ;;  %v5840_v47 = vand.u32 4294901760, %v5839_v20  ;;  %v30126_v3 = vand.u32 4294901760, %v4760_v37 }
 0x27d   : > { %26648 = vmatprep.subr.mxu1 %v28689_v24  ;;  %26616 = vmatpush3.msra.mxu0 %v29925_v40  ;;  %v30117_v40 = vand.u32 4294901760, %v4761_v35  ;;  %v30165_v1 = vsub.f32 %v4758_v5, %v30148_v12 }
 0x27e   : > { %26649 = vmatpush3.msra.mxu1 %v29906_v36  ;;  %26617 = vmatprep.subr.mxu0 %v28689_v24  ;;  %v5853_v36 = vsub.f32 %v30041_v15, %v5852_v32  ;;  %v5847_v49 = vand.u32 4294901760, %v5846_v31  ;;  %v30146_v11 = vsub.f32 %v4760_v37, %v30126_v3 }
 0x27f   : > { %26650 = vmatprep.subr.mxu1 %v28689_v24  ;;  %26618 = vmatpush3.msra.mxu0 %v29933_v44  ;;  %v30136_v8 = vsub.f32 %v4761_v35, %v30117_v40  ;;  %v6344_v22 = vand.u32 4294901760, %v30165_v1 }
 0x280   : > { %26619 = vmatprep.mubr.msk.f32.mxu0 %vm28690_vm1, %v28689_v24  ;;  %26651 = vmatpush3.msra.mxu1 %v29916_v38  ;;  %v5854_v46 = vand.u32 4294901760, %v5853_v36  ;;  %v6330_v0 = vand.u32 4294901760, %v30146_v11 }
 0x281   : > { %26652 = vmatprep.mubr.msk.f32.mxu1 %vm28690_vm1, %v28689_v24  ;;  %26620 = vmatmul.mubr.f32.vlgmr.msra.gmra.mxu0 %v28968_v45  ;;  %v6323_v57 = vand.u32 4294901760, %v30136_v8  ;;  %v6345_v20 = vsub.f32 %v30165_v1, %v6344_v22 }
 0x282   : > { %26633 = vmatprep.subr.mxu0 %v28689_v24  ;;  %26653 = vmatmul.mubr.f32.vlgmr.msra.gmra.mxu1 %v28962_v43 }
 0x283   : > { %26666 = vmatprep.subr.mxu1 %v28689_v24  ;;  %26634 = vmatpush3.msra.mxu0 %v5353_v39  ;;  %v2380_v38 = vpop.f32.mrf.mxu0  ;;  %v6346_v36 = vand.u32 4294901760, %v6345_v20 }
 0x284   : > { %26667 = vmatpush3.msra.mxu1 %v5840_v47  ;;  %26635 = vmatprep.subr.mxu0 %v28689_v24  ;;  %v2472_v55 = vadd.f32 %v2471_v25, %v2380_v38  ;;  %v2628_v52 = vpop.f32.mrf.mxu1 }
 0x285   : > { %26668 = vmatprep.subr.mxu1 %v28689_v24  ;;  %26636 = vmatpush3.msra.mxu0 %v5360_v42  ;;  %v26203_v63 = vpop.f32.mrf.mxu0 }
 0x286   : > { %26669 = vmatpush3.msra.mxu1 %v5847_v49  ;;  %26637 = vmatprep.subr.mxu0 %v28689_v24  ;;  %v26236_v2 = vpop.f32.mrf.mxu1 }
 0x287   : > { %26670 = vmatprep.subr.mxu1 %v28689_v24  ;;  %26638 = vmatpush3.msra.mxu0 %v5367_v51  ;;  %v4759_v51 = vld [vmem:[%s33039_s12 + $0x68] sm:$0xff] }
 0x288   : > { %26671 = vmatpush3.msra.mxu1 %v5854_v46  ;;  %26639 = vmatprep.subr.mxu0 %v28689_v24  ;;  %v30138_v9 = vand.u32 4294901760, %v4759_v51 }
 0x289   : > { %26672 = vmatprep.subr.mxu1 %v28689_v24  ;;  %26640 = vmatpush3.msra.mxu0 %v5374_v56 }
 0x28a   : > { %26641 = vmatprep.mubr.msk.f32.mxu0 %vm28690_vm1, %v28689_v24  ;;  %26673 = vmatpush3.msra.mxu1 %v5861_v58  ;;  %v30157_v59 = vsub.f32 %v4759_v51, %v30138_v9 }
 0x28b   : > { %26674 = vmatprep.mubr.msk.f32.mxu1 %vm28690_vm1, %v28689_v24  ;;  %26642 = vmatmul.mubr.f32.vlgmr.msra.gmra.mxu0 %v28962_v43 }
 0x28c   : > { %26655 = vmatprep.subr.mxu0 %v28689_v24  ;;  %26675 = vmatmul.mubr.f32.vlgmr.msra.gmra.mxu1 %v28962_v43  ;;  %v6337_v16 = vand.u32 4294901760, %v30157_v59 }
 0x28d   : > { %26688 = vmatprep.subr.mxu1 %v28689_v24  ;;  %26656 = vmatpush3.msra.mxu0 %v30001_v62  ;;  %v2551_v39 = vpop.f32.mrf.mxu0 }
 0x28e   : > { %26689 = vmatpush3.msra.mxu1 %v30001_v62  ;;  %26657 = vmatprep.subr.mxu0 %v28689_v24  ;;  %v2552_v42 = vadd.f32 %v2551_v39, %v2472_v55  ;;  %v2786_v44 = vpop.f32.mrf.mxu1 }
 0x28f   : > { %26690 = vmatprep.subr.mxu1 %v28689_v24  ;;  %26658 = vmatpush3.msra.mxu0 %v30010_v13  ;;  %v26225_v56 = vpop.f32.mrf.mxu0 }
 0x290   : > { %26691 = vmatpush3.msra.mxu1 %v30010_v13  ;;  %26659 = vmatprep.subr.mxu0 %v28689_v24  ;;  %v26258_v60 = vpop.f32.mrf.mxu1  ;;  %v2629_v4 = vadd.f32 %v2628_v52, %v2552_v42 }
 0x291   : > { %26692 = vmatprep.subr.mxu1 %v28689_v24  ;;  %26660 = vmatpush3.msra.mxu0 %v30022_v26  ;;  %v7156_v60 = vsel %vm6702_vm2, %v29943_v53, 0 }
 0x292   : > { %26693 = vmatpush3.msra.mxu1 %v30022_v26  ;;  %26661 = vmatprep.subr.mxu0 %v28689_v24 }
 0x293   : > { %26694 = vmatprep.subr.mxu1 %v28689_v24  ;;  %26662 = vmatpush3.msra.mxu0 %v30032_v29 }
 0x294   : > { %26663 = vmatprep.mubr.msk.f32.mxu0 %vm28690_vm1, %v28689_v24  ;;  %26695 = vmatpush3.msra.mxu1 %v30032_v29 }
 0x295   : > { %26696 = vmatprep.mubr.msk.f32.mxu1 %vm28690_vm1, %v28689_v24  ;;  %26664 = vmatmul.mubr.f32.vlgmr.msra.gmra.mxu0 %v28999_v54 }
 0x296   : > { %26677 = vmatprep.subr.mxu0 %v28689_v24  ;;  %26697 = vmatmul.mubr.f32.vlgmr.msra.gmra.mxu1 %v28981_v48 }
 0x297   : > { %26710 = vmatprep.subr.mxu1 %v28689_v24  ;;  %26678 = vmatpush3.msra.mxu0 %v30020_v23  ;;  %v2711_v61 = vpop.f32.mrf.mxu0 }
 0x298   : > { %26711 = vmatpush3.msra.mxu1 %v30001_v62  ;;  %26679 = vmatprep.subr.mxu0 %v28689_v24  ;;  %v2712_v6 = vadd.f32 %v2711_v61, %v2629_v4  ;;  %v30167_v10 = vpop.f32.mrf.mxu1  ;;  %v6324_v62 = vsub.f32 %v30136_v8, %v6323_v57 }
 0x299   : > { %26712 = vmatprep.subr.mxu1 %v28689_v24  ;;  %26680 = vmatpush3.msra.mxu0 %v30030_v27  ;;  %v26247_v14 = vpop.f32.mrf.mxu0 }
 0x29a   : > { %26713 = vmatpush3.msra.mxu1 %v30010_v13  ;;  %26681 = vmatprep.subr.mxu0 %v28689_v24  ;;  %v30177_v18 = vadd.f32 %v2786_v44, %v2712_v6  ;;  %v26280_v17 = vpop.f32.mrf.mxu1  ;;  %v6331_v13 = vsub.f32 %v30146_v11, %v6330_v0  ;;  %v6325_v25 = vand.u32 4294901760, %v6324_v62 }
 0x29b   : > { %26714 = vmatprep.subr.mxu1 %v28689_v24  ;;  %26682 = vmatpush3.msra.mxu0 %v30041_v15 }
 0x29c   : > { %26715 = vmatpush3.msra.mxu1 %v30022_v26  ;;  %26683 = vmatprep.subr.mxu0 %v28689_v24  ;;  %v6338_v26 = vsub.f32 %v30157_v59, %v6337_v16  ;;  %v6332_v28 = vand.u32 4294901760, %v6331_v13 }
 0x29d   : > { %26716 = vmatprep.subr.mxu1 %v28689_v24  ;;  %26684 = vmatpush3.msra.mxu0 %v30049_v21 }
 0x29e   : > { %26685 = vmatprep.mubr.msk.f32.mxu0 %vm28690_vm1, %v28689_v24  ;;  %26717 = vmatpush3.msra.mxu1 %v30032_v29  ;;  %v6339_v34 = vand.u32 4294901760, %v6338_v26 }
 0x29f   : > { %26718 = vmatprep.mubr.msk.f32.mxu1 %vm28690_vm1, %v28689_v24  ;;  %26686 = vmatmul.mubr.f32.vlgmr.msra.gmra.mxu0 %v28968_v45 }
 0x2a0   : > { %26699 = vmatprep.subr.mxu0 %v28689_v24  ;;  %26719 = vmatmul.mubr.f32.vlgmr.msra.gmra.mxu1 %v28962_v43 }
 0x2a1   : > { %26732 = vmatprep.subr.mxu1 %v28689_v24  ;;  %26700 = vmatpush3.msra.mxu0 %v5838_v30  ;;  %v2881_v29 = vpop.f32.mrf.mxu0 }
 0x2a2   : > { %26733 = vmatpush3.msra.mxu1 %v6325_v25  ;;  %26701 = vmatprep.subr.mxu0 %v28689_v24  ;;  %v3129_v31 = vpop.f32.mrf.mxu1  ;;  %v2973_v15 = vadd.f32 %v30167_v10, %v2881_v29 }
 0x2a3   : > { %26734 = vmatprep.subr.mxu1 %v28689_v24  ;;  %26702 = vmatpush3.msra.mxu0 %v5845_v19  ;;  %v26269_v47 = vpop.f32.mrf.mxu0 }
 0x2a4   : > { %26735 = vmatpush3.msra.mxu1 %v6332_v28  ;;  %26703 = vmatprep.subr.mxu0 %v28689_v24  ;;  %v26302_v49 = vpop.f32.mrf.mxu1  ;;  %v7608_v47 = vsel %vm6702_vm2, %v30059_v33, 0 }
 0x2a5   : > { %26736 = vmatprep.subr.mxu1 %v28689_v24  ;;  %26704 = vmatpush3.msra.mxu0 %v5852_v32 }
 0x2a6   : > { %26737 = vmatpush3.msra.mxu1 %v6339_v34  ;;  %26705 = vmatprep.subr.mxu0 %v28689_v24 }
 0x2a7   : > { %26738 = vmatprep.subr.mxu1 %v28689_v24  ;;  %26706 = vmatpush3.msra.mxu0 %v5859_v41  ;;  %v6704_v41 = vsel %vm6702_vm2, %v29827_v7, 0 }
 0x2a8   : > { %26707 = vmatprep.mubr.msk.f32.mxu0 %vm28690_vm1, %v28689_v24  ;;  %26739 = vmatpush3.msra.mxu1 %v6346_v36 }
 0x2a9   : > { %26740 = vmatprep.mubr.msk.f32.mxu1 %vm28690_vm1, %v28689_v24  ;;  %26708 = vmatmul.mubr.f32.vlgmr.msra.gmra.mxu0 %v28962_v43 }
 0x2aa   : > { %26721 = vmatprep.subr.mxu0 %v28689_v24  ;;  %26741 = vmatmul.mubr.f32.vlgmr.msra.gmra.mxu1 %v28962_v43 }
 0x2ab   : > { %26754 = vmatprep.subr.mxu1 %v28689_v24  ;;  %26722 = vmatpush3.msra.mxu0 %v30117_v40  ;;  %v3052_v23 = vpop.f32.mrf.mxu0 }
 0x2ac   : > { %26755 = vmatpush3.msra.mxu1 %v30117_v40  ;;  %26723 = vmatprep.subr.mxu0 %v28689_v24  ;;  %v3287_v27 = vpop.f32.mrf.mxu1  ;;  %v3053_v21 = vadd.f32 %v3052_v23, %v2973_v15 }
 0x2ad   : > { %26756 = vmatprep.subr.mxu1 %v28689_v24  ;;  %26724 = vmatpush3.msra.mxu0 %v30126_v3  ;;  %v26291_v30 = vpop.f32.mrf.mxu0 }
 0x2ae   : > { %26757 = vmatpush3.msra.mxu1 %v30126_v3  ;;  %26725 = vmatprep.subr.mxu0 %v28689_v24  ;;  %v26324_v19 = vpop.f32.mrf.mxu1  ;;  %v3130_v32 = vadd.f32 %v3129_v31, %v3053_v21 }
 0x2af   : > { %26758 = vmatprep.subr.mxu1 %v28689_v24  ;;  %26726 = vmatpush3.msra.mxu0 %v30138_v9 }
 0x2b0   : > { %26759 = vmatpush3.msra.mxu1 %v30138_v9  ;;  %26727 = vmatprep.subr.mxu0 %v28689_v24 }
 0x2b1   : > { %26760 = vmatprep.subr.mxu1 %v28689_v24  ;;  %26728 = vmatpush3.msra.mxu0 %v30148_v12 }
 0x2b2   : > { %26729 = vmatprep.mubr.msk.f32.mxu0 %vm28690_vm1, %v28689_v24  ;;  %26761 = vmatpush3.msra.mxu1 %v30148_v12 }
 0x2b3   : > { %26762 = vmatprep.mubr.msk.f32.mxu1 %vm28690_vm1, %v28689_v24  ;;  %26730 = vmatmul.mubr.f32.vlgmr.msra.gmra.mxu0 %v28999_v54  ;;  %v30258_v54 = vand.u32 4294901760, %v6704_v41 }
 0x2b4   : > { %26743 = vmatprep.subr.mxu0 %v28689_v24  ;;  %26763 = vmatmul.mubr.f32.vlgmr.msra.gmra.mxu1 %v28981_v48 }
 0x2b5   : > { %26776 = vmatprep.subr.mxu1 %v28689_v24  ;;  %26744 = vmatpush3.msra.mxu0 %v30136_v8  ;;  %v3212_v50 = vpop.f32.mrf.mxu0  ;;  %v6776_v58 = vsub.f32 %v6704_v41, %v30258_v54  ;;  %v30307_v8 = vand.u32 4294901760, %v7156_v60 }
 0x2b6   : > { %26777 = vmatpush3.msra.mxu1 %v30117_v40  ;;  %26745 = vmatprep.subr.mxu0 %v28689_v24  ;;  %v3213_v38 = vadd.f32 %v3212_v50, %v3130_v32  ;;  %v30254_v46 = vpop.f32.mrf.mxu1 }
 0x2b7   : > { %26778 = vmatprep.subr.mxu1 %v28689_v24  ;;  %26746 = vmatpush3.msra.mxu0 %v30146_v11  ;;  %v26313_v48 = vpop.f32.mrf.mxu0  ;;  %v6777_v40 = vand.u32 4294901760, %v6776_v58 }
 0x2b8   : > { %26779 = vmatpush3.msra.mxu1 %v30126_v3  ;;  %26747 = vmatprep.subr.mxu0 %v28689_v24  ;;  %v3288_v7 = vadd.f32 %v3287_v27, %v3213_v38  ;;  %v26346_v55 = vpop.f32.mrf.mxu1  ;;  %v7679_v27 = vand.u32 4294901760, %v7608_v47 }
 0x2b9   : > { %26780 = vmatprep.subr.mxu1 %v28689_v24  ;;  %26748 = vmatpush3.msra.mxu0 %v30157_v59  ;;  %v6778_v56 = vsub.f32 %v6776_v58, %v6777_v40 }
 0x2ba   : > { %26781 = vmatpush3.msra.mxu1 %v30138_v9  ;;  %26749 = vmatprep.subr.mxu0 %v28689_v24  ;;  %v6707_v52 = vsel %vm6702_vm2, %v3288_v7, 0  ;;  %v7680_v19 = vsub.f32 %v7608_v47, %v7679_v27 }
 0x2bb   : > { %26782 = vmatprep.subr.mxu1 %v28689_v24  ;;  %26750 = vmatpush3.msra.mxu0 %v30165_v1  ;;  %v6740_v63 = vand.u32 4294901760, %v6707_v52  ;;  %v6779_v3 = vand.u32 4294901760, %v6778_v56 }
 0x2bc   : > { %26751 = vmatprep.mubr.msk.f32.mxu0 %vm28690_vm1, %v28689_v24  ;;  %26783 = vmatpush3.msra.mxu1 %v30148_v12  ;;  %v7228_v12 = vsub.f32 %v7156_v60, %v30307_v8  ;;  %v7681_v38 = vand.u32 4294901760, %v7680_v19 }
 0x2bd   : > { %26784 = vmatprep.mubr.msk.f32.mxu1 %vm28690_vm1, %v28689_v24  ;;  %26752 = vmatmul.mubr.f32.vlgmr.msra.gmra.mxu0 %v28968_v45  ;;  %v6817_v2 = vsub.f32 %v6707_v52, %v6740_v63 }
 0x2be   : > { %26765 = vmatprep.subr.mxu0 %v28689_v24  ;;  %26785 = vmatmul.mubr.f32.vlgmr.msra.gmra.mxu1 %v28962_v43  ;;  %v7229_v1 = vand.u32 4294901760, %v7228_v12  ;;  %v7682_v55 = vsub.f32 %v7680_v19, %v7681_v38 }
 0x2bf   : > { %26766 = vmatpush3.msra.mxu0 %v6323_v57  ;;  %26773 = vmatprep.mubr.msk.f32.mxu0 %vm28690_vm1, %v28689_v24  ;;  %v3366_v35 = vpop.f32.mrf.mxu0  ;;  %v6818_v37 = vand.u32 4294901760, %v6817_v2 }
 0x2c0   : > { %26767 = vmatprep.subr.mxu0 %v28689_v24  ;;  %v3614_v39 = vpop.f32.mrf.mxu1  ;;  %26792 = vmatprep.subr.mxu1 %v28689_v24  ;;  %v3458_v9 = vadd.f32 %v30254_v46, %v3366_v35 }
 0x2c1   : > { %26768 = vmatpush3.msra.mxu0 %v6330_v0  ;;  %v26335_v45 = vpop.f32.mrf.mxu0  ;;  %v6819_v42 = vsub.f32 %v6817_v2, %v6818_v37  ;;  %26794 = vmatprep.mubr.msk.f32.mxu1 %vm28690_vm1, %v28689_v24 }
 0x2c2   : > { %26769 = vmatprep.subr.mxu0 %v28689_v24  ;;  %v26368_v44 = vpop.f32.mrf.mxu1 }
 0x2c3   : > { %26770 = vmatpush3.msra.mxu0 %v6337_v16  ;;  %v6820_v51 = vand.u32 4294901760, %v6819_v42  ;;  %v7230_v16 = vsub.f32 %v7228_v12, %v7229_v1  ;;  %v8060_v44 = vsel %vm6702_vm2, %v30177_v18, 0 }
 0x2c4   : > { %26771 = vmatprep.subr.mxu0 %v28689_v24  ;;  %v8131_v60 = vand.u32 4294901760, %v8060_v44 }
 0x2c5   : > { %26772 = vmatpush3.msra.mxu0 %v6344_v22  ;;  %26793 = vmatpush3.xpose.msra.mxu1 %v6820_v51  ;;  %v7231_v22 = vand.u32 4294901760, %v7230_v16 }
 0x2c6   : > { %26774 = vmatmul.mubr.f32.vlgmr.msra.gmra.mxu0 %v28962_v43  ;;  %26787 = vmatprep.subr.mxu0 %v28689_v24 }
 0x2c7   : > { %26788 = vmatpush3.xpose.msra.mxu0 %v6740_v63  ;;  %26789 = vmatprep.mubr.msk.f32.mxu0 %vm28690_vm1, %v28689_v24 }
 0x2c8   : > { %26797 = vmatprep.subr.mxu0 %v28689_v24  ;;  %26795 = vmatmul.mubr.f32.vlgmr.msra.gmra.mxu1 %v30258_v54 }
 0x2c9   : > { %v3537_v4 = vpop.f32.mrf.mxu0  ;;  %26802 = vmatprep.subr.mxu1 %v28689_v24  ;;  %26804 = vmatprep.mubr.msk.f32.mxu1 %vm28690_vm1, %v28689_v24 }
 0x2ca   : > { %26790 = vmatmul.mubr.f32.vlgmr.msra.gmra.mxu0 %v6779_v3  ;;  %v3772_v43 = vpop.f32.mrf.mxu1  ;;  %26803 = vmatpush3.xpose.msra.mxu1 %v6740_v63  ;;  %v3538_v11 = vadd.f32 %v3537_v4, %v3458_v9 }
 0x2cb   : > { %26798 = vmatpush3.xpose.msra.mxu0 %v6817_v2  ;;  %26799 = vmatprep.mubr.msk.f32.mxu0 %vm28690_vm1, %v28689_v24  ;;  %v26357_v5 = vpop.f32.mrf.mxu0 }
 0x2cc   : > { %26807 = vmatprep.subr.mxu0 %v28689_v24  ;;  %v26390_v53 = vpop.f32.mrf.mxu1  ;;  %26812 = vmatprep.subr.mxu1 %v28689_v24  ;;  %v3615_v57 = vadd.f32 %v3614_v39, %v3538_v11  ;;  %v8132_v5 = vsub.f32 %v8060_v44, %v8131_v60 }
 0x2cd   : > { %26805 = vmatmul.mubr.f32.vlgmr.msra.gmra.mxu1 %v6777_v40 }
 0x2ce   : > { %26800 = vmatmul.mubr.f32.vlgmr.msra.gmra.mxu0 %v6776_v58  ;;  %26813 = vmatpush3.xpose.msra.mxu1 %v6740_v63  ;;  %v7683_v58 = vand.u32 4294901760, %v7682_v55 }
 0x2cf   : > { %26808 = vmatpush3.xpose.msra.mxu0 %v6818_v37  ;;  %26809 = vmatprep.mubr.msk.f32.mxu0 %vm28690_vm1, %v28689_v24 }
 0x2d0   : > { %26814 = vmatprep.mubr.msk.f32.mxu1 %vm28690_vm1, %v28689_v24  ;;  %26817 = vmatprep.subr.mxu0 %v28689_v24 }
 0x2d1   : > { %26815 = vmatmul.mubr.f32.vlgmr.msra.gmra.mxu1 %v30258_v54  ;;  %26822 = vmatprep.subr.mxu1 %v28689_v24 }
 0x2d2   : > { %26810 = vmatmul.mubr.f32.vlgmr.msra.gmra.mxu0 %v30258_v54  ;;  %26824 = vmatprep.mubr.msk.f32.mxu1 %vm28690_vm1, %v28689_v24 }
 0x2d3   : > { %v3697_v59 = vpop.f32.mrf.mxu0  ;;  %26819 = vmatprep.mubr.msk.f32.mxu0 %vm28690_vm1, %v28689_v24 }
 0x2d4   : > { %v3698_v61 = vadd.f32 %v3697_v59, %v3615_v57  ;;  %v3942_v0 = vpop.f32.mrf.mxu1 }
 0x2d5   : > { %v26379_v6 = vpop.f32.mrf.mxu0 }
 0x2d6   : > { %v3773_v10 = vadd.f32 %v3772_v43, %v3698_v61  ;;  %v26412_v14 = vpop.f32.mrf.mxu1 }
 0x2d8   : > { %v7159_v62 = vsel %vm6702_vm2, %v3773_v10, 0 }
 0x2d9   : > { %v7192_v17 = vand.u32 4294901760, %v7159_v62 }
 0x2db   : > { %v7269_v13 = vsub.f32 %v7159_v62, %v7192_v17  ;;  %26818 = vmatpush3.xpose.msra.mxu0 %v7192_v17 }
 0x2dc   : > { %26827 = vmatprep.subr.mxu0 %v28689_v24 }
 0x2dd   : > { %v3851_v25 = vpop.f32.mrf.mxu0  ;;  %v7270_v26 = vand.u32 4294901760, %v7269_v13 }
 0x2de   : > { %v4099_v28 = vpop.f32.mrf.mxu1  ;;  %26820 = vmatmul.mubr.f32.vlgmr.msra.gmra.mxu0 %v7231_v22  ;;  %v3943_v30 = vadd.f32 %v3942_v0, %v3851_v25 }
 0x2df   : > { %v26401_v20 = vpop.f32.mrf.mxu0  ;;  %26828 = vmatpush3.xpose.msra.mxu0 %v7269_v13  ;;  %26829 = vmatprep.mubr.msk.f32.mxu0 %vm28690_vm1, %v28689_v24  ;;  %v7271_v29 = vsub.f32 %v7269_v13, %v7270_v26 }
 0x2e0   : > { %v26434_v34 = vpop.f32.mrf.mxu1  ;;  %26837 = vmatprep.subr.mxu0 %v28689_v24 }
 0x2e1   : > { %v7272_v31 = vand.u32 4294901760, %v7271_v29 }
 0x2e2   : > { %26830 = vmatmul.mubr.f32.vlgmr.msra.gmra.mxu0 %v7228_v12  ;;  %v8133_v12 = vand.u32 4294901760, %v8132_v5 }
 0x2e3   : > { %26823 = vmatpush3.xpose.msra.mxu1 %v7272_v31  ;;  %26838 = vmatpush3.xpose.msra.mxu0 %v7270_v26 }
 0x2e4   : > { %26839 = vmatprep.mubr.msk.f32.mxu0 %vm28690_vm1, %v28689_v24  ;;  %26832 = vmatprep.subr.mxu1 %v28689_v24 }
 0x2e5   : > { %26847 = vmatprep.subr.mxu0 %v28689_v24 }
 0x2e6   : > { %26825 = vmatmul.mubr.f32.vlgmr.msra.gmra.mxu1 %v30307_v8  ;;  %26840 = vmatmul.mubr.f32.vlgmr.msra.gmra.mxu0 %v30307_v8 }
 0x2e7   : > { %v4022_v36 = vpop.f32.mrf.mxu0  ;;  %26833 = vmatpush3.xpose.msra.mxu1 %v7192_v17  ;;  %26834 = vmatprep.mubr.msk.f32.mxu1 %vm28690_vm1, %v28689_v24 }
 0x2e8   : > { %v4257_v49 = vpop.f32.mrf.mxu1  ;;  %26842 = vmatprep.subr.mxu1 %v28689_v24  ;;  %26849 = vmatprep.mubr.msk.f32.mxu0 %vm28690_vm1, %v28689_v24  ;;  %v4023_v33 = vadd.f32 %v4022_v36, %v3943_v30 }
 0x2e9   : > { %v26423_v23 = vpop.f32.mrf.mxu0 }
 0x2ea   : > { %v26456_v15 = vpop.f32.mrf.mxu1  ;;  %26835 = vmatmul.mubr.f32.vlgmr.msra.gmra.mxu1 %v7229_v1  ;;  %v4100_v21 = vadd.f32 %v4099_v28, %v4023_v33  ;;  %v8134_v1 = vsub.f32 %v8132_v5, %v8133_v12 }
 0x2eb   : > { %26843 = vmatpush3.xpose.msra.mxu1 %v7192_v17  ;;  %26844 = vmatprep.mubr.msk.f32.mxu1 %vm28690_vm1, %v28689_v24 }
 0x2ec   : > { %26852 = vmatprep.subr.mxu1 %v28689_v24  ;;  %v8135_v14 = vand.u32 4294901760, %v8134_v1 }
 0x2ee   : > { %26845 = vmatmul.mubr.f32.vlgmr.msra.gmra.mxu1 %v30307_v8 }
 0x2ef   : > { %26854 = vmatprep.mubr.msk.f32.mxu1 %vm28690_vm1, %v28689_v24 }
 0x2f1   : > { %v4182_v32 = vpop.f32.mrf.mxu0 }
 0x2f2   : > { %v4183_v41 = vadd.f32 %v4182_v32, %v4100_v21  ;;  %v4427_v50 = vpop.f32.mrf.mxu1 }
 0x2f3   : > { %v26445_v46 = vpop.f32.mrf.mxu0 }
 0x2f4   : > { %v4258_v48 = vadd.f32 %v4257_v49, %v4183_v41  ;;  %v26478_v54 = vpop.f32.mrf.mxu1 }
 0x2f6   : > { %v7611_v7 = vsel %vm6702_vm2, %v4258_v48, 0 }
 0x2f7   : > { %v7644_v52 = vand.u32 4294901760, %v7611_v7 }
 0x2f9   : > { %v7721_v63 = vsub.f32 %v7611_v7, %v7644_v52  ;;  %26848 = vmatpush3.xpose.msra.mxu0 %v7644_v52 }
 0x2fa   : > { %26857 = vmatprep.subr.mxu0 %v28689_v24 }
 0x2fb   : > { %v4336_v2 = vpop.f32.mrf.mxu0  ;;  %v7722_v35 = vand.u32 4294901760, %v7721_v63 }
 0x2fc   : > { %v4584_v37 = vpop.f32.mrf.mxu1  ;;  %26850 = vmatmul.mubr.f32.vlgmr.msra.gmra.mxu0 %v7683_v58  ;;  %v4428_v4 = vadd.f32 %v4427_v50, %v4336_v2 }
 0x2fd   : > { %v26467_v39 = vpop.f32.mrf.mxu0  ;;  %26858 = vmatpush3.xpose.msra.mxu0 %v7721_v63  ;;  %26859 = vmatprep.mubr.msk.f32.mxu0 %vm28690_vm1, %v28689_v24  ;;  %v7723_v40 = vsub.f32 %v7721_v63, %v7722_v35 }
 0x2fe   : > { %v26500_v45 = vpop.f32.mrf.mxu1  ;;  %26867 = vmatprep.subr.mxu0 %v28689_v24 }
 0x2ff   : > { %v7724_v42 = vand.u32 4294901760, %v7723_v40 }
 0x300   : > { %26860 = vmatmul.mubr.f32.vlgmr.msra.gmra.mxu0 %v7680_v19 }
 0x301   : > { %26853 = vmatpush3.xpose.msra.mxu1 %v7724_v42  ;;  %26868 = vmatpush3.xpose.msra.mxu0 %v7722_v35 }
 0x302   : > { %26869 = vmatprep.mubr.msk.f32.mxu0 %vm28690_vm1, %v28689_v24  ;;  %26862 = vmatprep.subr.mxu1 %v28689_v24 }
 0x303   : > { %26877 = vmatprep.subr.mxu0 %v28689_v24 }
 0x304   : > { %26855 = vmatmul.mubr.f32.vlgmr.msra.gmra.mxu1 %v7679_v27  ;;  %26870 = vmatmul.mubr.f32.vlgmr.msra.gmra.mxu0 %v7679_v27 }
 0x305   : > { %v4507_v51 = vpop.f32.mrf.mxu0  ;;  %26863 = vmatpush3.xpose.msra.mxu1 %v7644_v52  ;;  %26864 = vmatprep.mubr.msk.f32.mxu1 %vm28690_vm1, %v28689_v24 }
 0x306   : > { %v4742_v56 = vpop.f32.mrf.mxu1  ;;  %26872 = vmatprep.subr.mxu1 %v28689_v24  ;;  %26879 = vmatprep.mubr.msk.f32.mxu0 %vm28690_vm1, %v28689_v24  ;;  %v4508_v18 = vadd.f32 %v4507_v51, %v4428_v4 }
 0x307   : > { %v26489_v3 = vpop.f32.mrf.mxu0 }
 0x308   : > { %v26522_v43 = vpop.f32.mrf.mxu1  ;;  %26865 = vmatmul.mubr.f32.vlgmr.msra.gmra.mxu1 %v7681_v38  ;;  %v4585_v8 = vadd.f32 %v4584_v37, %v4508_v18 }
 0x309   : > { %26873 = vmatpush3.xpose.msra.mxu1 %v7644_v52  ;;  %26874 = vmatprep.mubr.msk.f32.mxu1 %vm28690_vm1, %v28689_v24 }
 0x30a   : > { %26882 = vmatprep.subr.mxu1 %v28689_v24 }
 0x30c   : > { %26875 = vmatmul.mubr.f32.vlgmr.msra.gmra.mxu1 %v7679_v27 }
 0x30d   : > { %26884 = vmatprep.mubr.msk.f32.mxu1 %vm28690_vm1, %v28689_v24 }
 0x30f   : > { %v4667_v9 = vpop.f32.mrf.mxu0 }
 0x310   : > { %v4668_v53 = vadd.f32 %v4667_v9, %v4585_v8  ;;  %v4928_v11 = vpop.f32.mrf.mxu1 }
 0x311   : > { %v26511_v57 = vpop.f32.mrf.mxu0 }
 0x312   : > { %v4743_v59 = vadd.f32 %v4742_v56, %v4668_v53  ;;  %v26544_v61 = vpop.f32.mrf.mxu1 }
 0x314   : > { %v8063_v0 = vsel %vm6702_vm2, %v4743_v59, 0 }
 0x315   : > { %v8096_v6 = vand.u32 4294901760, %v8063_v0 }
 0x317   : > { %v8173_v10 = vsub.f32 %v8063_v0, %v8096_v6  ;;  %26878 = vmatpush3.xpose.msra.mxu0 %v8096_v6 }
 0x318   : > { %26887 = vmatprep.subr.mxu0 %v28689_v24 }
 0x319   : > { %v4837_v62 = vpop.f32.mrf.mxu0  ;;  %v8174_v16 = vand.u32 4294901760, %v8173_v10 }
 0x31a   : > { %v5085_v17 = vpop.f32.mrf.mxu1  ;;  %26880 = vmatmul.mubr.f32.vlgmr.msra.gmra.mxu0 %v8135_v14  ;;  %v4929_v34 = vadd.f32 %v4928_v11, %v4837_v62 }
 0x31b   : > { %v26533_v13 = vpop.f32.mrf.mxu0  ;;  %26888 = vmatpush3.xpose.msra.mxu0 %v8173_v10  ;;  %26889 = vmatprep.mubr.msk.f32.mxu0 %vm28690_vm1, %v28689_v24  ;;  %v8175_v22 = vsub.f32 %v8173_v10, %v8174_v16 }
 0x31c   : > { %v26566_v25 = vpop.f32.mrf.mxu1  ;;  %26897 = vmatprep.subr.mxu0 %v28689_v24 }
 0x31d   : > { %v8176_v26 = vand.u32 4294901760, %v8175_v22 }
 0x31e   : > { %26890 = vmatmul.mubr.f32.vlgmr.msra.gmra.mxu0 %v8132_v5 }
 0x31f   : > { %26883 = vmatpush3.xpose.msra.mxu1 %v8176_v26  ;;  %26898 = vmatpush3.xpose.msra.mxu0 %v8174_v16 }
 0x320   : > { %26899 = vmatprep.mubr.msk.f32.mxu0 %vm28690_vm1, %v28689_v24  ;;  %26892 = vmatprep.subr.mxu1 %v28689_v24 }
 0x321   : > { %26907 = vmatprep.subr.mxu0 %v28689_v24 }
 0x322   : > { %26885 = vmatmul.mubr.f32.vlgmr.msra.gmra.mxu1 %v8131_v60  ;;  %26900 = vmatmul.mubr.f32.vlgmr.msra.gmra.mxu0 %v8131_v60 }
 0x323   : > { %v5008_v28 = vpop.f32.mrf.mxu0  ;;  %26893 = vmatpush3.xpose.msra.mxu1 %v8096_v6  ;;  %26894 = vmatprep.mubr.msk.f32.mxu1 %vm28690_vm1, %v28689_v24 }
 0x324   : > { %v5243_v20 = vpop.f32.mrf.mxu1  ;;  %26902 = vmatprep.subr.mxu1 %v28689_v24  ;;  %26909 = vmatprep.mubr.msk.f32.mxu0 %vm28690_vm1, %v28689_v24  ;;  %v5009_v47 = vadd.f32 %v5008_v28, %v4929_v34 }
 0x325   : > { %v26555_v29 = vpop.f32.mrf.mxu0 }
 0x326   : > { %v26588_v31 = vpop.f32.mrf.mxu1  ;;  %26895 = vmatmul.mubr.f32.vlgmr.msra.gmra.mxu1 %v8133_v12  ;;  %v5086_v36 = vadd.f32 %v5085_v17, %v5009_v47 }
 0x327   : > { %26903 = vmatpush3.xpose.msra.mxu1 %v8096_v6  ;;  %26904 = vmatprep.mubr.msk.f32.mxu1 %vm28690_vm1, %v28689_v24 }
 0x328   : > { %26912 = vmatprep.subr.mxu1 %v28689_v24 }
 0x32a   : > { %26905 = vmatmul.mubr.f32.vlgmr.msra.gmra.mxu1 %v8131_v60 }
 0x32b   : > { %26914 = vmatprep.mubr.msk.f32.mxu1 %vm28690_vm1, %v28689_v24 }
 0x32d   : > { %v5168_v49 = vpop.f32.mrf.mxu0 }
 0x32e   : > { %v5169_v23 = vadd.f32 %v5168_v49, %v5086_v36  ;;  %v5413_v27 = vpop.f32.mrf.mxu1 }
 0x32f   : > { %v26577_v30 = vpop.f32.mrf.mxu0 }
 0x330   : > { %v5244_v15 = vadd.f32 %v5243_v20, %v5169_v23  ;;  %v26610_v33 = vpop.f32.mrf.mxu1 }
 0x332   : > { %v30389_v19 = vand.u32 4294901760, %v5244_v15 }
 0x334   : > { %v30392_v21 = vsub.f32 %v5244_v15, %v30389_v19  ;;  %26908 = vmatpush3.msra.mxu0 %v30389_v19 }
 0x335   : > { %26917 = vmatprep.subr.mxu0 %v28689_v24 }
 0x336   : > { %v8697_v32 = vand.u32 4294901760, %v30392_v21 }
 0x337   : > { %v5322_v41 = vpop.f32.mrf.mxu0 }
 0x338   : > { %v5414_v50 = vadd.f32 %v5413_v27, %v5322_v41  ;;  %v5570_v38 = vpop.f32.mrf.mxu1  ;;  %v8698_v46 = vsub.f32 %v30392_v21, %v8697_v32 }
 0x339   : > { %v26599_v48 = vpop.f32.mrf.mxu0 }
 0x33a   : > { %v26632_v54 = vpop.f32.mrf.mxu1  ;;  %v8699_v7 = vand.u32 4294901760, %v8698_v46 }
 0x33c   : > { %26913 = vmatpush3.msra.mxu1 %v8699_v7 }
 0x33d   : > { %26922 = vmatprep.subr.mxu1 %v28689_v24 }
 0x341   : > { %v5493_v55 = vpop.f32.mrf.mxu0 }
 0x342   : > { %v5494_v52 = vadd.f32 %v5493_v55, %v5414_v50  ;;  %v5728_v63 = vpop.f32.mrf.mxu1 }
 0x343   : > { %v26621_v58 = vpop.f32.mrf.mxu0 }
 0x344   : > { %v26654_v2 = vpop.f32.mrf.mxu1  ;;  %v5571_v35 = vadd.f32 %v5570_v38, %v5494_v52  ;;  %v30411_v52 = vld [vmem:[%s792_s7] ss:$0 sm:$0xff] }
 0x34b   : > { %v5653_v37 = vpop.f32.mrf.mxu0 }
 0x34c   : > { %v5654_v39 = vadd.f32 %v5653_v37, %v5571_v35  ;;  %v5898_v40 = vpop.f32.mrf.mxu1 }
 0x34d   : > { %v26643_v45 = vpop.f32.mrf.mxu0 }
 0x34e   : > { %v30401_v42 = vadd.f32 %v5728_v63, %v5654_v39  ;;  %v26676_v44 = vpop.f32.mrf.mxu1 }
 0x355   : > { %v5807_v51 = vpop.f32.mrf.mxu0 }
 0x356   : > { %v5899_v56 = vadd.f32 %v5898_v40, %v5807_v51  ;;  %v6055_v3 = vpop.f32.mrf.mxu1 }
 0x357   : > { %v26665_v60 = vpop.f32.mrf.mxu0 }
 0x358   : > { %v26698_v4 = vpop.f32.mrf.mxu1 }
 0x35f   : > { %v5978_v43 = vpop.f32.mrf.mxu0 }
 0x360   : > { %v5979_v18 = vadd.f32 %v5978_v43, %v5899_v56  ;;  %v6213_v5 = vpop.f32.mrf.mxu1 }
 0x361   : > { %v26687_v8 = vpop.f32.mrf.mxu0 }
 0x362   : > { %v26720_v9 = vpop.f32.mrf.mxu1  ;;  %v6056_v53 = vadd.f32 %v6055_v3, %v5979_v18 }
 0x369   : > { %v6138_v11 = vpop.f32.mrf.mxu0 }
 0x36a   : > { %v6139_v12 = vadd.f32 %v6138_v11, %v6056_v53  ;;  %v6383_v57 = vpop.f32.mrf.mxu1 }
 0x36b   : > { %v26709_v59 = vpop.f32.mrf.mxu0 }
 0x36c   : > { %v30403_v61 = vadd.f32 %v6213_v5, %v6139_v12  ;;  %v26742_v0 = vpop.f32.mrf.mxu1 }
 0x373   : > { %v6292_v1 = vpop.f32.mrf.mxu0 }
 0x374   : > { %v6384_v6 = vadd.f32 %v6383_v57, %v6292_v1  ;;  %v6540_v10 = vpop.f32.mrf.mxu1 }
 0x375   : > { %v26731_v14 = vpop.f32.mrf.mxu0 }
 0x376   : > { %v26764_v62 = vpop.f32.mrf.mxu1 }
 0x37d   : > { %v6463_v16 = vpop.f32.mrf.mxu0 }
 0x37e   : > { %v6464_v17 = vadd.f32 %v6463_v16, %v6384_v6  ;;  %v6698_v13 = vpop.f32.mrf.mxu1 }
 0x37f   : > { %v26753_v22 = vpop.f32.mrf.mxu0 }
 0x380   : > { %v26786_v25 = vpop.f32.mrf.mxu1  ;;  %v6541_v26 = vadd.f32 %v6540_v10, %v6464_v17 }
 0x386   : > { %v6623_v28 = vpop.f32.mrf.mxu0 }
 0x387   : > { %v6624_v20 = vadd.f32 %v6623_v28, %v6541_v26 }
 0x388   : > { %v26775_v29 = vpop.f32.mrf.mxu0  ;;  %v6857_v34 = vpop.f32.mrf.mxu1 }
 0x389   : > { %v30405_v31 = vadd.f32 %v6698_v13, %v6624_v20 }
 0x38a   : > { %v6781_v47 = vpop.f32.mrf.mxu0  ;;  %v26796_v36 = vpop.f32.mrf.mxu1 }
 0x38b   : > { %v6858_v49 = vadd.f32 %v6857_v34, %v6781_v47 }
 0x38c   : > { %v26791_v23 = vpop.f32.mrf.mxu0 }
 0x38d   : > { %v7005_v27 = vpop.f32.mrf.mxu1 }
 0x38e   : > { %v6931_v30 = vpop.f32.mrf.mxu0 }
 0x38f   : > { %v6932_v15 = vadd.f32 %v6931_v30, %v6858_v49  ;;  %v26806_v33 = vpop.f32.mrf.mxu1 }
 0x390   : > { %v26801_v41 = vpop.f32.mrf.mxu0 }
 0x391   : > { %v7006_v50 = vadd.f32 %v7005_v27, %v6932_v15  ;;  %v7151_v38 = vpop.f32.mrf.mxu1 }
 0x392   : > { %v7079_v46 = vpop.f32.mrf.mxu0 }
 0x393   : > { %v7080_v48 = vadd.f32 %v7079_v46, %v7006_v50  ;;  %v26816_v54 = vpop.f32.mrf.mxu1 }
 0x394   : > { %v26811_v7 = vpop.f32.mrf.mxu0 }
 0x395   : > { %v7152_v55 = vadd.f32 %v7151_v38, %v7080_v48 }
 0x397   : > { %v8511_v63 = vmul.f32 0.35355338, %v7152_v55 }
 0x399   : > { %v30414_v58 = vadd.f32 %v30411_v52, %v8511_v63 }
 0x39b   : > { %v8525_v2 = vsel %vm6702_vm2, %v30414_v58, -inf }
 0x39c   : > { %8526 = vmax.xlane.f32.xlu1 %v8525_v2 }
 0x39e   : > { %v7233_v35 = vpop.f32.mrf.mxu0 }
 0x3a0   : > { %v26821_v37 = vpop.f32.mrf.mxu0 }
 0x3a2   : > { %v7383_v39 = vpop.f32.mrf.mxu0 }
 0x3a4   : > { %v26831_v40 = vpop.f32.mrf.mxu0 }
 0x3a6   : > { %v7309_v45 = vpop.f32.mrf.mxu1  ;;  %v7531_v44 = vpop.f32.mrf.mxu0 }
 0x3a7   : > { %v7310_v51 = vadd.f32 %v7309_v45, %v7233_v35 }
 0x3a8   : > { %v26826_v56 = vpop.f32.mrf.mxu1  ;;  %v26841_v3 = vpop.f32.mrf.mxu0 }
 0x3a9   : > { %v7384_v60 = vadd.f32 %v7383_v39, %v7310_v51 }
 0x3aa   : > { %v7457_v4 = vpop.f32.mrf.mxu1 }
 0x3ab   : > { %v7458_v43 = vadd.f32 %v7457_v4, %v7384_v60 }
 0x3ac   : > { %v26836_v18 = vpop.f32.mrf.mxu1 }
 0x3ad   : > { %v7532_v5 = vadd.f32 %v7531_v44, %v7458_v43 }
 0x3ae   : > { %v7603_v8 = vpop.f32.mrf.mxu1 }
 0x3af   : > { %v7604_v9 = vadd.f32 %v7603_v8, %v7532_v5 }
 0x3b0   : > { %v26846_v53 = vpop.f32.mrf.mxu1 }
 0x3b1   : > { %v8512_v11 = vmul.f32 0.35355338, %v7604_v9 }
 0x3b3   : > { %v8522_v12 = vadd.f32 %v30411_v52, %v8512_v11 }
 0x3b5   : > { %v8528_v57 = vsel %vm6702_vm2, %v8522_v12, -inf }
 0x3b6   : > { %8529 = vmax.xlane.f32.xlu1 %v8528_v57 }
 0x3bc   : > { %v7685_v59 = vpop.f32.mrf.mxu0 }
 0x3be   : > { %v26851_v0 = vpop.f32.mrf.mxu0 }
 0x3c0   : > { %v7835_v1 = vpop.f32.mrf.mxu0 }
 0x3c2   : > { %v26861_v6 = vpop.f32.mrf.mxu0 }
 0x3c4   : > { %v7761_v10 = vpop.f32.mrf.mxu1  ;;  %v7983_v14 = vpop.f32.mrf.mxu0 }
 0x3c5   : > { %v7762_v62 = vadd.f32 %v7761_v10, %v7685_v59 }
 0x3c6   : > { %v26856_v16 = vpop.f32.mrf.mxu1  ;;  %v26871_v17 = vpop.f32.mrf.mxu0 }
 0x3c7   : > { %v7836_v13 = vadd.f32 %v7835_v1, %v7762_v62  ;;  %v30442_v62 = vand.u32 4294901760, %v30401_v42 }
 0x3c8   : > { %v7909_v22 = vpop.f32.mrf.mxu1 }
 0x3c9   : > { %v7910_v25 = vadd.f32 %v7909_v22, %v7836_v13  ;;  %v30447_v13 = vsub.f32 %v30401_v42, %v30442_v62 }
 0x3ca   : > { %v26866_v26 = vpop.f32.mrf.mxu1 }
 0x3cb   : > { %v7984_v28 = vadd.f32 %v7983_v14, %v7910_v25 }
 0x3cc   : > { %v8055_v20 = vpop.f32.mrf.mxu1 }
 0x3cd   : > { %v8056_v29 = vadd.f32 %v8055_v20, %v7984_v28  ;;  %v9146_v28 = vand.u32 4294901760, %v30447_v13 }
 0x3ce   : > { %v26876_v34 = vpop.f32.mrf.mxu1 }
 0x3cf   : > { %v8513_v47 = vmul.f32 0.35355338, %v8056_v29  ;;  %v9147_v34 = vsub.f32 %v30447_v13, %v9146_v28 }
 0x3d1   : > { %v8523_v36 = vadd.f32 %v30411_v52, %v8513_v47 }
 0x3d3   : > { %v8531_v49 = vsel %vm6702_vm2, %v8523_v36, -inf }
 0x3d4   : > { %8532 = vmax.xlane.f32.xlu0 %v8531_v49  ;;  %v9148_v49 = vand.u32 4294901760, %v9147_v34 }
 0x3da   : > { %v8137_v23 = vpop.f32.mrf.mxu0 }
 0x3dc   : > { %v26881_v27 = vpop.f32.mrf.mxu0 }
 0x3dd   : > { %v30481_v27 = vand.u32 4294901760, %v30403_v61 }
 0x3de   : > { %v8287_v30 = vpop.f32.mrf.mxu0 }
 0x3e0   : > { %v26891_v15 = vpop.f32.mrf.mxu0 }
 0x3e2   : > { %v8213_v33 = vpop.f32.mrf.mxu1  ;;  %v8435_v41 = vpop.f32.mrf.mxu0 }
 0x3e3   : > { %v8214_v50 = vadd.f32 %v8213_v33, %v8137_v23 }
 0x3e4   : > { %v26886_v38 = vpop.f32.mrf.mxu1  ;;  %v26901_v46 = vpop.f32.mrf.mxu0 }
 0x3e5   : > { %v8288_v48 = vadd.f32 %v8287_v30, %v8214_v50 }
 0x3e6   : > { %v8361_v54 = vpop.f32.mrf.mxu1 }
 0x3e7   : > { %v8362_v7 = vadd.f32 %v8361_v54, %v8288_v48 }
 0x3e8   : > { %v26896_v55 = vpop.f32.mrf.mxu1 }
 0x3e9   : > { %v8436_v63 = vadd.f32 %v8435_v41, %v8362_v7 }
 0x3ea   : > { %v8507_v2 = vpop.f32.mrf.mxu1 }
 0x3eb   : > { %v8508_v35 = vadd.f32 %v8507_v2, %v8436_v63 }
 0x3ec   : > { %v26906_v37 = vpop.f32.mrf.mxu1 }
 0x3ed   : > { %v8514_v39 = vmul.f32 0.35355338, %v8508_v35  ;;  %v9966_v35 = vand.u32 4294901760, %v30405_v31 }
 0x3ef   : > { %v8524_v40 = vadd.f32 %v30411_v52, %v8514_v39 }
 0x3f1   : > { %v8534_v45 = vsel %vm6702_vm2, %v8524_v40, -inf }
 0x3f2   : > { %8535 = vmax.xlane.f32.xlu1 %v8534_v45 }
 0x425   : > { %v8527_v44 = vpop.xlane.xlu1 %8526 }
 0x426   : > { %v8537_v51 = vsub.f32 %v30414_v58, %v8527_v44 }
 0x428   : > { %v8541_v56 = vmul.f32 1.442695, %v8537_v51 }
 0x42a   : > { %28534 = vpow2.f32 %v8541_v56 }
 0x437   : > { %v28535_v3 = vpop.eup %28534 }
 0x438   : > { %v8549_v60 = vsel %vm6702_vm2, %v28535_v3, 0.0 }
 0x439   : > { %8550 = vadd.xlane.f32.xlu0 %v8549_v60 }
 0x43f   : > { %v8530_v4 = vpop.xlane.xlu1 %8529 }
 0x440   : > { %v8538_v43 = vsub.f32 %v8522_v12, %v8530_v4 }
 0x442   : > { %v8543_v18 = vmul.f32 1.442695, %v8538_v43 }
 0x444   : > { %28536 = vpow2.f32 %v8543_v18 }
 0x451   : > { %v30426_v5 = vpop.eup %28536 }
 0x452   : > { %v8552_v52 = vsel %vm6702_vm2, %v30426_v5, 0.0 }
 0x453   : > { %8553 = vadd.xlane.f32.xlu1 %v8552_v52 }
 0x45d   : > { %v8533_v8 = vpop.xlane.xlu0 %8532 }
 0x45e   : > { %v8539_v9 = vsub.f32 %v8523_v36, %v8533_v8 }
 0x460   : > { %v8545_v58 = vmul.f32 1.442695, %v8539_v9 }
 0x462   : > { %28538 = vpow2.f32 %v8545_v58 }
 0x46f   : > { %v30430_v53 = vpop.eup %28538 }
 0x470   : > { %v8555_v11 = vsel %vm6702_vm2, %v30430_v53, 0.0 }
 0x471   : > { %8556 = vadd.xlane.f32.xlu0 %v8555_v11 }
 0x47b   : > { %v8536_v12 = vpop.xlane.xlu1 %8535 }
 0x47c   : > { %v8540_v57 = vsub.f32 %v8524_v40, %v8536_v12  ;;  %v30525_v40 = vsub.f32 %v30405_v31, %v9966_v35 }
 0x47e   : > { %v8547_v59 = vmul.f32 1.442695, %v8540_v57  ;;  %v10044_v56 = vand.u32 4294901760, %v30525_v40 }
 0x480   : > { %28540 = vpow2.f32 %v8547_v59  ;;  %v10045_v60 = vsub.f32 %v30525_v40, %v10044_v56 }
 0x48d   : > { %v30434_v0 = vpop.eup %28540 }
 0x48e   : > { %v8558_v1 = vsel %vm6702_vm2, %v30434_v0, 0.0 }
 0x48f   : > { %8559 = vadd.xlane.f32.xlu1 %v8558_v1 }
 0x4c2   : > { %v8551_v6 = vpop.xlane.xlu0 %8550 }
 0x4c3   : > { %28542 = vrcp.f32 %v8551_v6 }
 0x4d0   : > { %v28543_v10 = vpop.eup %28542 }
 0x4d1   : > { %v8565_v14 = vmul.f32 %v28543_v10, %v8551_v6  ;;  %v10381_v6 = vld [vmem:[%s33040_s13] sm:$0xff] }
 0x4d3   : > { %v8569_v16 = vsub.f32 2.0, %v8565_v14 }
 0x4d5   : > { %v8573_v17 = vmul.f32 %v28543_v10, %v8569_v16  ;;  %v10419_v10 = vand.u32 4294901760, %v10381_v6 }
 0x4d7   : > { %v8577_v22 = vmul.f32 %v28535_v3, %v8573_v17  ;;  %v30575_v14 = vsub.f32 %v10381_v6, %v10419_v10 }
 0x4d9   : > { %8581 = vst.msk [vmem:[%s30451_s29] sm:$0xff] %vm6702_vm2, %v8577_v22  ;;  %v8586_v25 = vsel %vm6702_vm2, %v8577_v22, 0 }
 0x4da   : > { %v8654_v26 = vand.u32 4294901760, %v8586_v25 }
 0x4dc   : > { %v8554_v20 = vpop.xlane.xlu1 %8553  ;;  %26915 = vmatmul.mubr.f32.vlgmr.msra.gmra.mxu1 %v8654_v26  ;;  %v8655_v29 = vsub.f32 %v8586_v25, %v8654_v26 }
 0x4dd   : > { %28544 = vrcp.f32 %v8554_v20  ;;  %26923 = vmatpush3.msra.mxu1 %v30389_v19  ;;  %26924 = vmatprep.mubr.msk.f32.mxu1 %vm28690_vm1, %v28689_v24 }
 0x4de   : > { %26932 = vmatprep.subr.mxu1 %v28689_v24  ;;  %v8656_v42 = vand.u32 4294901760, %v8655_v29 }
 0x4e0   : > { %26925 = vmatmul.mubr.f32.vlgmr.msra.gmra.mxu1 %v8656_v42  ;;  %v8657_v47 = vsub.f32 %v8655_v29, %v8656_v42 }
 0x4e1   : > { %26933 = vmatpush3.msra.mxu1 %v30389_v19  ;;  %26934 = vmatprep.mubr.msk.f32.mxu1 %vm28690_vm1, %v28689_v24 }
 0x4e2   : > { %26942 = vmatprep.subr.mxu1 %v28689_v24  ;;  %v8658_v36 = vand.u32 4294901760, %v8657_v47  ;;  %v10382_v47 = vld [vmem:[%s33040_s13 + $0x8] sm:$0xff] }
 0x4e4   : > { %26910 = vmatmul.mubr.f32.vlgmr.msra.gmra.mxu0 %v8658_v36  ;;  %26935 = vmatmul.mubr.f32.vlgmr.msra.gmra.mxu1 %v8654_v26 }
 0x4e5   : > { %26918 = vmatpush3.msra.mxu0 %v30392_v21  ;;  %26943 = vmatpush3.msra.mxu1 %v9148_v49 }
 0x4e6   : > { %26919 = vmatprep.mubr.msk.f32.mxu0 %vm28690_vm1, %v28689_v24  ;;  %26927 = vmatprep.subr.mxu0 %v28689_v24 }
 0x4e7   : > { %26944 = vmatprep.mubr.msk.f32.mxu1 %vm28690_vm1, %v28689_v24  ;;  %26952 = vmatprep.subr.mxu1 %v28689_v24 }
 0x4e8   : > { %26920 = vmatmul.mubr.f32.vlgmr.msra.gmra.mxu0 %v8655_v29 }
 0x4e9   : > { %26928 = vmatpush3.msra.mxu0 %v8697_v32  ;;  %26929 = vmatprep.mubr.msk.f32.mxu0 %vm28690_vm1, %v28689_v24  ;;  %v30489_v32 = vsub.f32 %v30403_v61, %v30481_v27 }
 0x4ea   : > { %v28545_v19 = vpop.eup %28544  ;;  %26937 = vmatprep.subr.mxu0 %v28689_v24 }
 0x4eb   : > { %v8566_v23 = vmul.f32 %v28545_v19, %v8554_v20  ;;  %v9595_v50 = vand.u32 4294901760, %v30489_v32 }
 0x4ec   : > { %26930 = vmatmul.mubr.f32.vlgmr.msra.gmra.mxu0 %v8654_v26 }
 0x4ed   : > { %v8570_v30 = vsub.f32 2.0, %v8566_v23  ;;  %26938 = vmatpush3.msra.mxu0 %v30442_v62  ;;  %26939 = vmatprep.mubr.msk.f32.mxu0 %vm28690_vm1, %v28689_v24  ;;  %v9596_v46 = vsub.f32 %v30489_v32, %v9595_v50  ;;  %v30591_v23 = vand.u32 4294901760, %v10382_v47 }
 0x4ee   : > { %26947 = vmatprep.subr.mxu0 %v28689_v24 }
 0x4ef   : > { %v8574_v21 = vmul.f32 %v28545_v19, %v8570_v30  ;;  %v9597_v55 = vand.u32 4294901760, %v9596_v46 }
 0x4f1   : > { %v8578_v15 = vmul.f32 %v30426_v5, %v8574_v21  ;;  %v10046_v5 = vand.u32 4294901760, %v10045_v60 }
 0x4f3   : > { %8582 = vst.msk [vmem:[%s30451_s29 + $0x8] sm:$0xff] %vm6702_vm2, %v8578_v15  ;;  %v9035_v33 = vsel %vm6702_vm2, %v8578_v15, 0  ;;  %v30594_v15 = vsub.f32 %v10382_v47, %v30591_v23 }
 0x4f4   : > { %v9103_v41 = vand.u32 4294901760, %v9035_v33 }
 0x4f6   : > { %26945 = vmatmul.mubr.f32.vlgmr.msra.gmra.mxu1 %v9103_v41  ;;  %v9104_v38 = vsub.f32 %v9035_v33, %v9103_v41 }
 0x4f7   : > { %26953 = vmatpush3.msra.mxu1 %v30442_v62  ;;  %26954 = vmatprep.mubr.msk.f32.mxu1 %vm28690_vm1, %v28689_v24 }
 0x4f8   : > { %26962 = vmatprep.subr.mxu1 %v28689_v24  ;;  %v9105_v61 = vand.u32 4294901760, %v9104_v38 }
 0x4fa   : > { %v8557_v48 = vpop.xlane.xlu0 %8556  ;;  %26955 = vmatmul.mubr.f32.vlgmr.msra.gmra.mxu1 %v9105_v61  ;;  %v9106_v54 = vsub.f32 %v9104_v38, %v9105_v61 }
 0x4fb   : > { %28546 = vrcp.f32 %v8557_v48  ;;  %26963 = vmatpush3.msra.mxu1 %v30442_v62  ;;  %26964 = vmatprep.mubr.msk.f32.mxu1 %vm28690_vm1, %v28689_v24  ;;  %v10497_v62 = vand.u32 4294901760, %v30575_v14 }
 0x4fc   : > { %26972 = vmatprep.subr.mxu1 %v28689_v24  ;;  %v9107_v7 = vand.u32 4294901760, %v9106_v54 }
 0x4fd   : > { %v10498_v16 = vsub.f32 %v30575_v14, %v10497_v62 }
 0x4fe   : > { %26940 = vmatmul.mubr.f32.vlgmr.msra.gmra.mxu0 %v9107_v7  ;;  %26965 = vmatmul.mubr.f32.vlgmr.msra.gmra.mxu1 %v9103_v41 }
 0x4ff   : > { %26948 = vmatpush3.msra.mxu0 %v30447_v13  ;;  %26973 = vmatpush3.msra.mxu1 %v9597_v55  ;;  %v10499_v17 = vand.u32 4294901760, %v10498_v16 }
 0x500   : > { %26949 = vmatprep.mubr.msk.f32.mxu0 %vm28690_vm1, %v28689_v24  ;;  %26957 = vmatprep.subr.mxu0 %v28689_v24 }
 0x501   : > { %26974 = vmatprep.mubr.msk.f32.mxu1 %vm28690_vm1, %v28689_v24  ;;  %26982 = vmatprep.subr.mxu1 %v28689_v24 }
 0x502   : > { %26950 = vmatmul.mubr.f32.vlgmr.msra.gmra.mxu0 %v9104_v38  ;;  %v10946_v38 = vand.u32 4294901760, %v30594_v15 }
 0x503   : > { %26958 = vmatpush3.msra.mxu0 %v9146_v28  ;;  %26959 = vmatprep.mubr.msk.f32.mxu0 %vm28690_vm1, %v28689_v24 }
 0x504   : > { %26967 = vmatprep.subr.mxu0 %v28689_v24  ;;  %v10947_v54 = vsub.f32 %v30594_v15, %v10946_v38 }
 0x506   : > { %26960 = vmatmul.mubr.f32.vlgmr.msra.gmra.mxu0 %v9103_v41 }
 0x507   : > { %26968 = vmatpush3.msra.mxu0 %v30481_v27  ;;  %26969 = vmatprep.mubr.msk.f32.mxu0 %vm28690_vm1, %v28689_v24 }
 0x508   : > { %v28547_v63 = vpop.eup %28546  ;;  %26977 = vmatprep.subr.mxu0 %v28689_v24 }
 0x509   : > { %v8567_v2 = vmul.f32 %v28547_v63, %v8557_v48 }
 0x50b   : > { %v8571_v37 = vsub.f32 2.0, %v8567_v2 }
 0x50d   : > { %v8575_v39 = vmul.f32 %v28547_v63, %v8571_v37 }
 0x50f   : > { %v8579_v45 = vmul.f32 %v30430_v53, %v8575_v39 }
 0x511   : > { %8583 = vst.msk [vmem:[%s30451_s29 + $0x10] sm:$0xff] %vm6702_vm2, %v8579_v45  ;;  %v9484_v44 = vsel %vm6702_vm2, %v8579_v45, 0 }
 0x512   : > { %v9552_v51 = vand.u32 4294901760, %v9484_v44 }
 0x514   : > { %26975 = vmatmul.mubr.f32.vlgmr.msra.gmra.mxu1 %v9552_v51  ;;  %v9553_v3 = vsub.f32 %v9484_v44, %v9552_v51 }
 0x515   : > { %26983 = vmatpush3.msra.mxu1 %v30481_v27  ;;  %26984 = vmatprep.mubr.msk.f32.mxu1 %vm28690_vm1, %v28689_v24 }
 0x516   : > { %26992 = vmatprep.subr.mxu1 %v28689_v24  ;;  %v9554_v31 = vand.u32 4294901760, %v9553_v3 }
 0x518   : > { %v8560_v4 = vpop.xlane.xlu1 %8559  ;;  %26985 = vmatmul.mubr.f32.vlgmr.msra.gmra.mxu1 %v9554_v31  ;;  %v9555_v43 = vsub.f32 %v9553_v3, %v9554_v31 }
 0x519   : > { %28548 = vrcp.f32 %v8560_v4  ;;  %26993 = vmatpush3.msra.mxu1 %v30481_v27  ;;  %26994 = vmatprep.mubr.msk.f32.mxu1 %vm28690_vm1, %v28689_v24 }
 0x51a   : > { %27002 = vmatprep.subr.mxu1 %v28689_v24  ;;  %v9556_v18 = vand.u32 4294901760, %v9555_v43 }
 0x51c   : > { %26970 = vmatmul.mubr.f32.vlgmr.msra.gmra.mxu0 %v9556_v18  ;;  %26995 = vmatmul.mubr.f32.vlgmr.msra.gmra.mxu1 %v9552_v51 }
 0x51d   : > { %26978 = vmatpush3.msra.mxu0 %v30489_v32  ;;  %27003 = vmatpush3.msra.mxu1 %v10046_v5 }
 0x51e   : > { %26979 = vmatprep.mubr.msk.f32.mxu0 %vm28690_vm1, %v28689_v24  ;;  %26987 = vmatprep.subr.mxu0 %v28689_v24 }
 0x51f   : > { %27004 = vmatprep.mubr.msk.f32.mxu1 %vm28690_vm1, %v28689_v24  ;;  %27012 = vmatprep.subr.mxu1 %v28689_v24 }
 0x520   : > { %26980 = vmatmul.mubr.f32.vlgmr.msra.gmra.mxu0 %v9553_v3 }
 0x521   : > { %26988 = vmatpush3.msra.mxu0 %v9595_v50  ;;  %26989 = vmatprep.mubr.msk.f32.mxu0 %vm28690_vm1, %v28689_v24 }
 0x522   : > { %26997 = vmatprep.subr.mxu0 %v28689_v24 }
 0x524   : > { %26990 = vmatmul.mubr.f32.vlgmr.msra.gmra.mxu0 %v9552_v51 }
 0x525   : > { %26998 = vmatpush3.msra.mxu0 %v9966_v35  ;;  %26999 = vmatprep.mubr.msk.f32.mxu0 %vm28690_vm1, %v28689_v24 }
 0x526   : > { %v28549_v52 = vpop.eup %28548  ;;  %27007 = vmatprep.subr.mxu0 %v28689_v24 }
 0x527   : > { %v8568_v8 = vmul.f32 %v28549_v52, %v8560_v4 }
 0x529   : > { %v8572_v9 = vsub.f32 2.0, %v8568_v8 }
 0x52b   : > { %v8576_v58 = vmul.f32 %v28549_v52, %v8572_v9 }
 0x52d   : > { %v8580_v53 = vmul.f32 %v30434_v0, %v8576_v58 }
 0x52f   : > { %8584 = vst.msk [vmem:[%s30451_s29 + $0x18] sm:$0xff] %vm6702_vm2, %v8580_v53  ;;  %v9933_v11 = vsel %vm6702_vm2, %v8580_v53, 0 }
 0x530   : > { %v10001_v12 = vand.u32 4294901760, %v9933_v11 }
 0x532   : > { %v10002_v57 = vsub.f32 %v9933_v11, %v10001_v12  ;;  %27005 = vmatmul.mubr.f32.vlgmr.msra.gmra.mxu1 %v10001_v12 }
 0x533   : > { %27013 = vmatpush3.msra.mxu1 %v9966_v35  ;;  %27014 = vmatprep.mubr.msk.f32.mxu1 %vm28690_vm1, %v28689_v24 }
 0x534   : > { %27022 = vmatprep.subr.mxu1 %v28689_v24  ;;  %v10003_v59 = vand.u32 4294901760, %v10002_v57 }
 0x536   : > { %27015 = vmatmul.mubr.f32.vlgmr.msra.gmra.mxu1 %v10003_v59  ;;  %v10004_v1 = vsub.f32 %v10002_v57, %v10003_v59 }
 0x537   : > { %27023 = vmatpush3.msra.mxu1 %v9966_v35  ;;  %27024 = vmatprep.mubr.msk.f32.mxu1 %vm28690_vm1, %v28689_v24  ;;  %v10948_v35 = vand.u32 4294901760, %v10947_v54 }
 0x538   : > { %v10005_v0 = vand.u32 4294901760, %v10004_v1  ;;  %27032 = vmatprep.subr.mxu1 %v28689_v24 }
 0x53a   : > { %27000 = vmatmul.mubr.f32.vlgmr.msra.gmra.mxu0 %v10005_v0  ;;  %27025 = vmatmul.mubr.f32.vlgmr.msra.gmra.mxu1 %v10001_v12 }
 0x53b   : > { %27008 = vmatpush3.msra.mxu0 %v30525_v40  ;;  %27009 = vmatprep.mubr.msk.f32.mxu0 %vm28690_vm1, %v28689_v24 }
 0x53c   : > { %27017 = vmatprep.subr.mxu0 %v28689_v24  ;;  %27034 = vmatprep.mubr.msk.f32.mxu1 %vm28690_vm1, %v28689_v24 }
 0x53d   : > { %27033 = vmatpush3.msra.mxu1 %v10499_v17 }
 0x53e   : > { %27010 = vmatmul.mubr.f32.vlgmr.msra.gmra.mxu0 %v10002_v57  ;;  %27042 = vmatprep.subr.mxu1 %v28689_v24 }
 0x53f   : > { %27018 = vmatpush3.msra.mxu0 %v10044_v56  ;;  %27019 = vmatprep.mubr.msk.f32.mxu0 %vm28690_vm1, %v28689_v24  ;;  %v10383_v56 = vld [vmem:[%s33040_s13 + $0x10] sm:$0xff] }
 0x540   : > { %27027 = vmatprep.subr.mxu0 %v28689_v24  ;;  %v30622_v4 = vand.u32 4294901760, %v10383_v56 }
 0x542   : > { %27020 = vmatmul.mubr.f32.vlgmr.msra.gmra.mxu0 %v10001_v12  ;;  %v30629_v8 = vsub.f32 %v10383_v56, %v30622_v4 }
 0x543   : > { %27028 = vmatpush3.msra.mxu0 %v10419_v10  ;;  %27029 = vmatprep.mubr.msk.f32.mxu0 %vm28690_vm1, %v28689_v24 }
 0x544   : > { %27037 = vmatprep.subr.mxu0 %v28689_v24  ;;  %v11395_v11 = vand.u32 4294901760, %v30629_v8 }
 0x546   : > { %v11396_v59 = vsub.f32 %v30629_v8, %v11395_v11 }
 0x59c   : > { %v8736_v13 = vpop.f32.mrf.mxu1 }
 0x59e   : > { %v26916_v22 = vpop.f32.mrf.mxu1 }
 0x5a0   : > { %v8884_v25 = vpop.f32.mrf.mxu1 }
 0x5a2   : > { %v26926_v26 = vpop.f32.mrf.mxu1 }
 0x5a4   : > { %v8660_v28 = vpop.f32.mrf.mxu0  ;;  %v9030_v20 = vpop.f32.mrf.mxu1 }
 0x5a5   : > { %v8737_v34 = vadd.f32 %v8736_v13, %v8660_v28  ;;  %v10384_v28 = vld [vmem:[%s33040_s13 + $0x18] sm:$0xff] }
 0x5a6   : > { %v26911_v29 = vpop.f32.mrf.mxu0  ;;  %v26936_v42 = vpop.f32.mrf.mxu1 }
 0x5a8   : > { %v8810_v36 = vpop.f32.mrf.mxu0 }
 0x5a9   : > { %v8811_v49 = vadd.f32 %v8810_v36, %v8737_v34  ;;  %v30663_v34 = vand.u32 4294901760, %v10384_v28 }
 0x5aa   : > { %v26921_v19 = vpop.f32.mrf.mxu0 }
 0x5ab   : > { %v8885_v27 = vadd.f32 %v8884_v25, %v8811_v49 }
 0x5ac   : > { %v8958_v30 = vpop.f32.mrf.mxu0 }
 0x5ad   : > { %v8959_v21 = vadd.f32 %v8958_v30, %v8885_v27 }
 0x5ae   : > { %v26931_v32 = vpop.f32.mrf.mxu0 }
 0x5af   : > { %v9031_v33 = vadd.f32 %v9030_v20, %v8959_v21 }
 0x5b1   : > { %v10386_v41 = vsel %vm6702_vm2, %v9031_v33, 0 }
 0x5b2   : > { %v10454_v50 = vand.u32 4294901760, %v10386_v41 }
 0x5b4   : > { %v10455_v61 = vsub.f32 %v10386_v41, %v10454_v50  ;;  %27035 = vmatmul.mubr.f32.vlgmr.msra.gmra.mxu1 %v10454_v50 }
 0x5b5   : > { %27043 = vmatpush3.msra.mxu1 %v10419_v10  ;;  %27044 = vmatprep.mubr.msk.f32.mxu1 %vm28690_vm1, %v28689_v24 }
 0x5b6   : > { %v10456_v46 = vand.u32 4294901760, %v10455_v61  ;;  %v9185_v48 = vpop.f32.mrf.mxu1  ;;  %27052 = vmatprep.subr.mxu1 %v28689_v24 }
 0x5b8   : > { %v10457_v7 = vsub.f32 %v10455_v61, %v10456_v46  ;;  %v26946_v55 = vpop.f32.mrf.mxu1  ;;  %27045 = vmatmul.mubr.f32.vlgmr.msra.gmra.mxu1 %v10456_v46 }
 0x5b9   : > { %27053 = vmatpush3.msra.mxu1 %v10419_v10  ;;  %27054 = vmatprep.mubr.msk.f32.mxu1 %vm28690_vm1, %v28689_v24  ;;  %v11397_v10 = vand.u32 4294901760, %v11396_v59 }
 0x5ba   : > { %v10458_v63 = vand.u32 4294901760, %v10457_v7  ;;  %v9333_v2 = vpop.f32.mrf.mxu1  ;;  %27062 = vmatprep.subr.mxu1 %v28689_v24 }
 0x5bc   : > { %v26956_v37 = vpop.f32.mrf.mxu1  ;;  %27030 = vmatmul.mubr.f32.vlgmr.msra.gmra.mxu0 %v10458_v63  ;;  %27055 = vmatmul.mubr.f32.vlgmr.msra.gmra.mxu1 %v10454_v50 }
 0x5bd   : > { %27038 = vmatpush3.msra.mxu0 %v30575_v14  ;;  %27039 = vmatprep.mubr.msk.f32.mxu0 %vm28690_vm1, %v28689_v24 }
 0x5be   : > { %v9109_v39 = vpop.f32.mrf.mxu0  ;;  %v9479_v40 = vpop.f32.mrf.mxu1  ;;  %27047 = vmatprep.subr.mxu0 %v28689_v24  ;;  %27063 = vmatpush3.msra.mxu1 %v10948_v35 }
 0x5bf   : > { %27064 = vmatprep.mubr.msk.f32.mxu1 %vm28690_vm1, %v28689_v24  ;;  %27072 = vmatprep.subr.mxu1 %v28689_v24  ;;  %v9186_v51 = vadd.f32 %v9185_v48, %v9109_v39 }
 0x5c0   : > { %v26941_v45 = vpop.f32.mrf.mxu0  ;;  %v26966_v44 = vpop.f32.mrf.mxu1  ;;  %27040 = vmatmul.mubr.f32.vlgmr.msra.gmra.mxu0 %v10455_v61 }
 0x5c1   : > { %27048 = vmatpush3.msra.mxu0 %v10497_v62  ;;  %27049 = vmatprep.mubr.msk.f32.mxu0 %vm28690_vm1, %v28689_v24 }
 0x5c2   : > { %v9259_v3 = vpop.f32.mrf.mxu0  ;;  %27057 = vmatprep.subr.mxu0 %v28689_v24 }
 0x5c3   : > { %v9260_v31 = vadd.f32 %v9259_v3, %v9186_v51 }
 0x5c4   : > { %v26951_v60 = vpop.f32.mrf.mxu0  ;;  %27050 = vmatmul.mubr.f32.vlgmr.msra.gmra.mxu0 %v10454_v50 }
 0x5c5   : > { %v9334_v43 = vadd.f32 %v9333_v2, %v9260_v31  ;;  %27058 = vmatpush3.msra.mxu0 %v30591_v23  ;;  %27059 = vmatprep.mubr.msk.f32.mxu0 %vm28690_vm1, %v28689_v24 }
 0x5c6   : > { %v9407_v18 = vpop.f32.mrf.mxu0  ;;  %27067 = vmatprep.subr.mxu0 %v28689_v24 }
 0x5c7   : > { %v9408_v5 = vadd.f32 %v9407_v18, %v9334_v43 }
 0x5c8   : > { %v26961_v52 = vpop.f32.mrf.mxu0 }
 0x5c9   : > { %v9480_v9 = vadd.f32 %v9479_v40, %v9408_v5 }
 0x5cb   : > { %v10835_v58 = vsel %vm6702_vm2, %v9480_v9, 0 }
 0x5cc   : > { %v10903_v53 = vand.u32 4294901760, %v10835_v58 }
 0x5ce   : > { %v10904_v12 = vsub.f32 %v10835_v58, %v10903_v53  ;;  %27065 = vmatmul.mubr.f32.vlgmr.msra.gmra.mxu1 %v10903_v53 }
 0x5cf   : > { %27073 = vmatpush3.msra.mxu1 %v30591_v23  ;;  %27074 = vmatprep.mubr.msk.f32.mxu1 %vm28690_vm1, %v28689_v24 }
 0x5d0   : > { %v10905_v57 = vand.u32 4294901760, %v10904_v12  ;;  %27082 = vmatprep.subr.mxu1 %v28689_v24 }
 0x5d2   : > { %v10906_v1 = vsub.f32 %v10904_v12, %v10905_v57  ;;  %27075 = vmatmul.mubr.f32.vlgmr.msra.gmra.mxu1 %v10905_v57 }
 0x5d3   : > { %27083 = vmatpush3.msra.mxu1 %v30591_v23  ;;  %27084 = vmatprep.mubr.msk.f32.mxu1 %vm28690_vm1, %v28689_v24  ;;  %v30666_v23 = vsub.f32 %v10384_v28, %v30663_v34 }
 0x5d4   : > { %v10907_v0 = vand.u32 4294901760, %v10906_v1  ;;  %v9634_v6 = vpop.f32.mrf.mxu1  ;;  %27092 = vmatprep.subr.mxu1 %v28689_v24 }
 0x5d5   : > { %v11844_v32 = vand.u32 4294901760, %v30666_v23 }
 0x5d6   : > { %v26976_v14 = vpop.f32.mrf.mxu1  ;;  %27060 = vmatmul.mubr.f32.vlgmr.msra.gmra.mxu0 %v10907_v0  ;;  %27085 = vmatmul.mubr.f32.vlgmr.msra.gmra.mxu1 %v10903_v53 }
 0x5d7   : > { %27068 = vmatpush3.msra.mxu0 %v30594_v15  ;;  %27069 = vmatprep.mubr.msk.f32.mxu0 %vm28690_vm1, %v28689_v24  ;;  %v11845_v41 = vsub.f32 %v30666_v23, %v11844_v32 }
 0x5d8   : > { %v9782_v62 = vpop.f32.mrf.mxu1  ;;  %27077 = vmatprep.subr.mxu0 %v28689_v24  ;;  %27093 = vmatpush3.msra.mxu1 %v11397_v10 }
 0x5d9   : > { %27094 = vmatprep.mubr.msk.f32.mxu1 %vm28690_vm1, %v28689_v24  ;;  %27102 = vmatprep.subr.mxu1 %v28689_v24  ;;  %v11846_v46 = vand.u32 4294901760, %v11845_v41 }
 0x5da   : > { %v26986_v16 = vpop.f32.mrf.mxu1  ;;  %27070 = vmatmul.mubr.f32.vlgmr.msra.gmra.mxu0 %v10904_v12 }
 0x5db   : > { %27078 = vmatpush3.msra.mxu0 %v10946_v38  ;;  %27079 = vmatprep.mubr.msk.f32.mxu0 %vm28690_vm1, %v28689_v24 }
 0x5dc   : > { %v9558_v17 = vpop.f32.mrf.mxu0  ;;  %v9928_v13 = vpop.f32.mrf.mxu1  ;;  %27087 = vmatprep.subr.mxu0 %v28689_v24 }
 0x5dd   : > { %v9635_v26 = vadd.f32 %v9634_v6, %v9558_v17 }
 0x5de   : > { %v26971_v22 = vpop.f32.mrf.mxu0  ;;  %v26996_v25 = vpop.f32.mrf.mxu1  ;;  %27080 = vmatmul.mubr.f32.vlgmr.msra.gmra.mxu0 %v10903_v53 }
 0x5df   : > { %27088 = vmatpush3.msra.mxu0 %v30622_v4  ;;  %27089 = vmatprep.mubr.msk.f32.mxu0 %vm28690_vm1, %v28689_v24 }
 0x5e0   : > { %v9708_v20 = vpop.f32.mrf.mxu0  ;;  %27097 = vmatprep.subr.mxu0 %v28689_v24 }
 0x5e1   : > { %v9709_v29 = vadd.f32 %v9708_v20, %v9635_v26 }
 0x5e2   : > { %v26981_v42 = vpop.f32.mrf.mxu0 }
 0x5e3   : > { %v9783_v47 = vadd.f32 %v9782_v62, %v9709_v29 }
 0x5e4   : > { %v9856_v36 = vpop.f32.mrf.mxu0 }
 0x5e5   : > { %v9857_v49 = vadd.f32 %v9856_v36, %v9783_v47 }
 0x5e6   : > { %v26991_v19 = vpop.f32.mrf.mxu0 }
 0x5e7   : > { %v9929_v27 = vadd.f32 %v9928_v13, %v9857_v49 }
 0x5e9   : > { %v11284_v30 = vsel %vm6702_vm2, %v9929_v27, 0 }
 0x5ea   : > { %v11352_v21 = vand.u32 4294901760, %v11284_v30 }
 0x5ec   : > { %v11353_v15 = vsub.f32 %v11284_v30, %v11352_v21  ;;  %27095 = vmatmul.mubr.f32.vlgmr.msra.gmra.mxu1 %v11352_v21 }
 0x5ed   : > { %27103 = vmatpush3.msra.mxu1 %v30622_v4  ;;  %27104 = vmatprep.mubr.msk.f32.mxu1 %vm28690_vm1, %v28689_v24 }
 0x5ee   : > { %v11354_v33 = vand.u32 4294901760, %v11353_v15  ;;  %27112 = vmatprep.subr.mxu1 %v28689_v24 }
 0x5f0   : > { %v11355_v50 = vsub.f32 %v11353_v15, %v11354_v33  ;;  %27105 = vmatmul.mubr.f32.vlgmr.msra.gmra.mxu1 %v11354_v33 }
 0x5f1   : > { %27113 = vmatpush3.msra.mxu1 %v30622_v4  ;;  %27114 = vmatprep.mubr.msk.f32.mxu1 %vm28690_vm1, %v28689_v24 }
 0x5f2   : > { %v11356_v38 = vand.u32 4294901760, %v11355_v50  ;;  %v10083_v61 = vpop.f32.mrf.mxu1  ;;  %27122 = vmatprep.subr.mxu1 %v28689_v24 }
 0x5f4   : > { %v27006_v48 = vpop.f32.mrf.mxu1  ;;  %27090 = vmatmul.mubr.f32.vlgmr.msra.gmra.mxu0 %v11356_v38  ;;  %27115 = vmatmul.mubr.f32.vlgmr.msra.gmra.mxu1 %v11352_v21 }
 0x5f5   : > { %27098 = vmatpush3.msra.mxu0 %v30629_v8  ;;  %27099 = vmatprep.mubr.msk.f32.mxu0 %vm28690_vm1, %v28689_v24 }
 0x5f6   : > { %v10231_v54 = vpop.f32.mrf.mxu1  ;;  %27107 = vmatprep.subr.mxu0 %v28689_v24  ;;  %27123 = vmatpush3.msra.mxu1 %v11846_v46 }
 0x5f7   : > { %27124 = vmatprep.mubr.msk.f32.mxu1 %vm28690_vm1, %v28689_v24  ;;  %27132 = vmatprep.subr.mxu1 %v28689_v24 }
 0x5f8   : > { %v27016_v7 = vpop.f32.mrf.mxu1  ;;  %27100 = vmatmul.mubr.f32.vlgmr.msra.gmra.mxu0 %v11353_v15 }
 0x5f9   : > { %27108 = vmatpush3.msra.mxu0 %v11395_v11  ;;  %27109 = vmatprep.mubr.msk.f32.mxu0 %vm28690_vm1, %v28689_v24 }
 0x5fa   : > { %v10007_v55 = vpop.f32.mrf.mxu0  ;;  %v10377_v63 = vpop.f32.mrf.mxu1  ;;  %27117 = vmatprep.subr.mxu0 %v28689_v24 }
 0x5fb   : > { %v10084_v37 = vadd.f32 %v10083_v61, %v10007_v55 }
 0x5fc   : > { %v27001_v2 = vpop.f32.mrf.mxu0  ;;  %v27026_v35 = vpop.f32.mrf.mxu1  ;;  %27110 = vmatmul.mubr.f32.vlgmr.msra.gmra.mxu0 %v11352_v21 }
 0x5fd   : > { %27118 = vmatpush3.msra.mxu0 %v30663_v34  ;;  %27119 = vmatprep.mubr.msk.f32.mxu0 %vm28690_vm1, %v28689_v24 }
 0x5fe   : > { %v10157_v39 = vpop.f32.mrf.mxu0  ;;  %27127 = vmatprep.subr.mxu0 %v28689_v24 }
 0x5ff   : > { %v10158_v40 = vadd.f32 %v10157_v39, %v10084_v37 }
 0x600   : > { %v27011_v45 = vpop.f32.mrf.mxu0 }
 0x601   : > { %v10232_v44 = vadd.f32 %v10231_v54, %v10158_v40 }
 0x602   : > { %v10305_v51 = vpop.f32.mrf.mxu0 }
 0x603   : > { %v10306_v56 = vadd.f32 %v10305_v51, %v10232_v44 }
 0x604   : > { %v27021_v3 = vpop.f32.mrf.mxu0 }
 0x605   : > { %v10378_v31 = vadd.f32 %v10377_v63, %v10306_v56 }
 0x607   : > { %v11733_v60 = vsel %vm6702_vm2, %v10378_v31, 0 }
 0x608   : > { %v11801_v4 = vand.u32 4294901760, %v11733_v60 }
 0x60a   : > { %v11802_v43 = vsub.f32 %v11733_v60, %v11801_v4  ;;  %27125 = vmatmul.mubr.f32.vlgmr.msra.gmra.mxu1 %v11801_v4 }
 0x60b   : > { %27133 = vmatpush3.msra.mxu1 %v30663_v34  ;;  %27134 = vmatprep.mubr.msk.f32.mxu1 %vm28690_vm1, %v28689_v24 }
 0x60c   : > { %v11803_v18 = vand.u32 4294901760, %v11802_v43  ;;  %27142 = vmatprep.subr.mxu1 %v28689_v24 }
 0x60e   : > { %v11804_v5 = vsub.f32 %v11802_v43, %v11803_v18  ;;  %27135 = vmatmul.mubr.f32.vlgmr.msra.gmra.mxu1 %v11803_v18 }
 0x60f   : > { %27143 = vmatpush3.msra.mxu1 %v30663_v34  ;;  %27144 = vmatprep.mubr.msk.f32.mxu1 %vm28690_vm1, %v28689_v24 }
 0x610   : > { %v11805_v52 = vand.u32 4294901760, %v11804_v5  ;;  %27158 = vmatprep.subr.mxu1 %v28689_v24 }
 0x612   : > { %27120 = vmatmul.mubr.f32.vlgmr.msra.gmra.mxu0 %v11805_v52  ;;  %27145 = vmatmul.mubr.f32.vlgmr.msra.gmra.mxu1 %v11801_v4 }
 0x613   : > { %27128 = vmatpush3.msra.mxu0 %v30666_v23  ;;  %27129 = vmatprep.mubr.msk.f32.mxu0 %vm28690_vm1, %v28689_v24 }
 0x614   : > { %27137 = vmatprep.subr.mxu0 %v28689_v24  ;;  %27166 = vmatprep.mubr.msk.f32.mxu1 %vm28690_vm1, %v28689_v24 }
 0x616   : > { %27130 = vmatmul.mubr.f32.vlgmr.msra.gmra.mxu0 %v11802_v43 }
 0x617   : > { %27138 = vmatpush3.msra.mxu0 %v11844_v32  ;;  %27139 = vmatprep.mubr.msk.f32.mxu0 %vm28690_vm1, %v28689_v24 }
 0x618   : > { %27147 = vmatprep.subr.mxu0 %v28689_v24 }
 0x61a   : > { %27140 = vmatmul.mubr.f32.vlgmr.msra.gmra.mxu0 %v11801_v4 }
 0x61b   : > { %27155 = vmatprep.mubr.msk.f32.mxu0 %vm28690_vm1, %v28689_v24 }
 0x674   : > { %v10536_v8 = vpop.f32.mrf.mxu1 }
 0x676   : > { %v27036_v9 = vpop.f32.mrf.mxu1 }
 0x678   : > { %v10684_v58 = vpop.f32.mrf.mxu1 }
 0x67a   : > { %v27046_v53 = vpop.f32.mrf.mxu1 }
 0x67c   : > { %v10460_v11 = vpop.f32.mrf.mxu0  ;;  %v10830_v12 = vpop.f32.mrf.mxu1 }
 0x67d   : > { %v10537_v57 = vadd.f32 %v10536_v8, %v10460_v11 }
 0x67e   : > { %v27031_v59 = vpop.f32.mrf.mxu0  ;;  %v27056_v1 = vpop.f32.mrf.mxu1 }
 0x680   : > { %v10610_v0 = vpop.f32.mrf.mxu0 }
 0x681   : > { %v10611_v6 = vadd.f32 %v10610_v0, %v10537_v57 }
 0x682   : > { %v27041_v10 = vpop.f32.mrf.mxu0 }
 0x683   : > { %v10685_v14 = vadd.f32 %v10684_v58, %v10611_v6 }
 0x684   : > { %v10758_v62 = vpop.f32.mrf.mxu0 }
 0x685   : > { %v10759_v16 = vadd.f32 %v10758_v62, %v10685_v14  ;;  %v28570_v14 = vld [vmem:[%s28881_s2] sm:$0xff]  ;;  %s33062_s2 = sshll.u32 %s28842_s6, 9 }
 0x686   : > { %v27051_v17 = vpop.f32.mrf.mxu0  ;;  %s32925_s7 = scalar_lea.hbm %s33050_s23, %s33062_s2 }
 0x687   : > { %v10831_v13 = vadd.f32 %v10830_v12, %v10759_v16 }
 0x689   : > { %v12181_v15 = vsel %vm800_vm0, %v10831_v13, 0.0 }
 0x68e   : > { %v10985_v22 = vpop.f32.mrf.mxu1 }
 0x690   : > { %v27066_v25 = vpop.f32.mrf.mxu1 }
 0x692   : > { %v11133_v26 = vpop.f32.mrf.mxu1 }
 0x694   : > { %v27076_v28 = vpop.f32.mrf.mxu1 }
 0x695   : > { %v12221_v28 = vld [vmem:[%s33041_s14 + $0x18] sm:$0xff] }
 0x696   : > { %v10909_v20 = vpop.f32.mrf.mxu0  ;;  %v11279_v29 = vpop.f32.mrf.mxu1 }
 0x697   : > { %v10986_v47 = vadd.f32 %v10985_v22, %v10909_v20  ;;  %v12220_v20 = vld [vmem:[%s33041_s14 + $0x10] sm:$0xff] }
 0x698   : > { %v27061_v42 = vpop.f32.mrf.mxu0  ;;  %v27086_v34 = vpop.f32.mrf.mxu1 }
 0x699   : > { %v30739_v42 = vand.u32 4294901760, %v12221_v28  ;;  %v30741_v34 = vand.u32 4294901760, %v12220_v20 }
 0x69a   : > { %v11059_v36 = vpop.f32.mrf.mxu0 }
 0x69b   : > { %v11060_v49 = vadd.f32 %v11059_v36, %v10986_v47  ;;  %v12218_v36 = vld [vmem:[%s33041_s14] sm:$0xff]  ;;  %27148 = vmatpush3.msra.mxu0 %v30739_v42 }
 0x69c   : > { %v27071_v19 = vpop.f32.mrf.mxu0  ;;  %27149 = vmatprep.subr.mxu0 %v28689_v24 }
 0x69d   : > { %v11134_v23 = vadd.f32 %v11133_v26, %v11060_v49  ;;  %v30748_v49 = vand.u32 4294901760, %v12218_v36  ;;  %v30751_v19 = vsub.f32 %v12221_v28, %v30739_v42  ;;  %27150 = vmatpush3.msra.mxu0 %v30741_v34 }
 0x69e   : > { %v11207_v27 = vpop.f32.mrf.mxu0  ;;  %27151 = vmatprep.subr.mxu0 %v28689_v24 }
 0x69f   : > { %v11208_v30 = vadd.f32 %v11207_v27, %v11134_v23  ;;  %v30754_v23 = vsub.f32 %v12220_v20, %v30741_v34  ;;  %v12229_v20 = vld [vmem:[%s33041_s14 + $0x58] sm:$0xff] }
 0x6a0   : > { %v27081_v21 = vpop.f32.mrf.mxu0 }
 0x6a1   : > { %v11280_v32 = vadd.f32 %v11279_v29, %v11208_v30  ;;  %v12219_v29 = vld [vmem:[%s33041_s14 + $0x8] sm:$0xff]  ;;  %v30761_v30 = vsub.f32 %v12218_v36, %v30748_v49  ;;  %v12343_v21 = vand.u32 4294901760, %v30751_v19  ;;  %v12226_v36 = vld [vmem:[%s33041_s14 + $0x40] sm:$0xff] }
 0x6a2   : > { %v30743_v47 = vand.u32 4294901760, %v12219_v29 }
 0x6a3   : > { %v12182_v33 = vsel %vm800_vm0, %v11280_v32, 0.0  ;;  %v12350_v32 = vand.u32 4294901760, %v30754_v23 }
 0x6a4   : > { %v12183_v41 = vadd.f32 %v12182_v33, %v12181_v15  ;;  %v30757_v27 = vsub.f32 %v12219_v29, %v30743_v47  ;;  %v12364_v33 = vand.u32 4294901760, %v30761_v30  ;;  %27152 = vmatpush3.msra.mxu0 %v30743_v47  ;;  %v12228_v29 = vld [vmem:[%s33041_s14 + $0x50] sm:$0xff] }
 0x6a5   : > { %27153 = vmatprep.subr.mxu0 %v28689_v24 }
 0x6a6   : > { %v12357_v15 = vand.u32 4294901760, %v30757_v27  ;;  %27154 = vmatpush3.msra.mxu0 %v30748_v49 }
 0x6a7   : > { %27169 = vmatprep.subr.mxu0 %v28689_v24 }
 0x6ac   : > { %v11434_v50 = vpop.f32.mrf.mxu1 }
 0x6ae   : > { %v27096_v38 = vpop.f32.mrf.mxu1 }
 0x6af   : > { %v12358_v38 = vsub.f32 %v30757_v27, %v12357_v15 }
 0x6b0   : > { %v11582_v61 = vpop.f32.mrf.mxu1 }
 0x6b2   : > { %v27106_v46 = vpop.f32.mrf.mxu1 }
 0x6b4   : > { %v11358_v48 = vpop.f32.mrf.mxu0  ;;  %v11728_v54 = vpop.f32.mrf.mxu1 }
 0x6b5   : > { %v11435_v39 = vadd.f32 %v11434_v50, %v11358_v48  ;;  %v12351_v50 = vsub.f32 %v30754_v23, %v12350_v32  ;;  %v12365_v48 = vsub.f32 %v30761_v30, %v12364_v33 }
 0x6b6   : > { %v27091_v7 = vpop.f32.mrf.mxu0  ;;  %v27116_v55 = vpop.f32.mrf.mxu1 }
 0x6b7   : > { %v12352_v46 = vand.u32 4294901760, %v12351_v50  ;;  %v12366_v7 = vand.u32 4294901760, %v12365_v48 }
 0x6b8   : > { %v11508_v63 = vpop.f32.mrf.mxu0 }
 0x6b9   : > { %v11509_v45 = vadd.f32 %v11508_v63, %v11435_v39 }
 0x6ba   : > { %v27101_v2 = vpop.f32.mrf.mxu0 }
 0x6bb   : > { %v11583_v56 = vadd.f32 %v11582_v61, %v11509_v45 }
 0x6bc   : > { %v11656_v35 = vpop.f32.mrf.mxu0 }
 0x6bd   : > { %v11657_v4 = vadd.f32 %v11656_v35, %v11583_v56  ;;  %v12225_v56 = vld [vmem:[%s33041_s14 + $0x38] sm:$0xff] }
 0x6be   : > { %v27111_v37 = vpop.f32.mrf.mxu0 }
 0x6bf   : > { %v11729_v8 = vadd.f32 %v11728_v54, %v11657_v4  ;;  %v12359_v54 = vand.u32 4294901760, %v12358_v38  ;;  %v24884_v37 = vld [vmem:[%s33090_s4] ss:$0 sm:$0xff]  ;;  %v30809_v4 = vand.u32 4294901760, %v12225_v56  ;;  %s24671_s4 = sand.u32 1, %s28842_s6  }
 0x6c1   : > { %v12184_v12 = vsel %vm800_vm0, %v11729_v8, 0.0 }
 0x6c2   : > { %v12185_v0 = vadd.f32 %v12184_v12, %v12183_v41  ;;  %v12344_v41 = vsub.f32 %v30751_v19, %v12343_v21 }
 0x6c4   : > { %v12345_v61 = vand.u32 4294901760, %v12344_v41 }
 0x6c6   : > { %27159 = vmatpush3.msra.mxu1 %v12345_v61 }
 0x6c7   : > { %27160 = vmatprep.subr.mxu1 %v28689_v24 }
 0x6c8   : > { %27161 = vmatpush3.msra.mxu1 %v12352_v46 }
 0x6c9   : > { %27162 = vmatprep.subr.mxu1 %v28689_v24 }
 0x6ca   : > { %v11883_v40 = vpop.f32.mrf.mxu1  ;;  %27163 = vmatpush3.msra.mxu1 %v12359_v54 }
 0x6cb   : > { %27164 = vmatprep.subr.mxu1 %v28689_v24 }
 0x6cc   : > { %v27126_v44 = vpop.f32.mrf.mxu1  ;;  %27165 = vmatpush3.msra.mxu1 %v12366_v7 }
 0x6cd   : > { %27180 = vmatprep.subr.mxu1 %v28689_v24 }
 0x6ce   : > { %v12031_v51 = vpop.f32.mrf.mxu1 }
 0x6d0   : > { %v27136_v3 = vpop.f32.mrf.mxu1 }
 0x6d2   : > { %v11807_v31 = vpop.f32.mrf.mxu0  ;;  %v12177_v60 = vpop.f32.mrf.mxu1 }
 0x6d3   : > { %v11884_v5 = vadd.f32 %v11883_v40, %v11807_v31  ;;  %v24885_v40 = vld [vmem:[%s33091_s0] ss:$0 sm:$0xff]  ;;  %v12224_v31 = vld [vmem:[%s33041_s14 + $0x30] sm:$0xff] }
 0x6d4   : > { %v27121_v43 = vpop.f32.mrf.mxu0  ;;  %v27146_v18 = vpop.f32.mrf.mxu1 }
 0x6d5   : > { %v12223_v43 = vld [vmem:[%s33041_s14 + $0x28] sm:$0xff] }
 0x6d6   : > { %v11957_v52 = vpop.f32.mrf.mxu0 }
 0x6d7   : > { %v11958_v9 = vadd.f32 %v11957_v52, %v11884_v5  ;;  %v30821_v5 = vand.u32 4294901760, %v12224_v31  ;;  %v12222_v52 = vld [vmem:[%s33041_s14 + $0x20] sm:$0xff] }
 0x6d8   : > { %v27131_v58 = vpop.f32.mrf.mxu0  ;;  %v30842_v12 = vand.u32 4294901760, %v12222_v52 }
 0x6d9   : > { %v12032_v53 = vadd.f32 %v12031_v51, %v11958_v9  ;;  %v30831_v9 = vsub.f32 %v12225_v56, %v30809_v4  ;;  %v30833_v58 = vand.u32 4294901760, %v12223_v43 }
 0x6da   : > { %v12105_v11 = vpop.f32.mrf.mxu0 }
 0x6db   : > { %v12106_v57 = vadd.f32 %v12105_v11, %v12032_v53  ;;  %v30840_v11 = vsub.f32 %v12224_v31, %v30821_v5 }
 0x6dc   : > { %v27141_v59 = vpop.f32.mrf.mxu0 }
 0x6dd   : > { %v12178_v1 = vadd.f32 %v12177_v60, %v12106_v57  ;;  %v12828_v57 = vand.u32 4294901760, %v30831_v9  ;;  %v30849_v59 = vsub.f32 %v12223_v43, %v30833_v58 }
 0x6df   : > { %v12186_v6 = vsel %vm800_vm0, %v12178_v1, 0.0  ;;  %v12835_v1 = vand.u32 4294901760, %v30840_v11 }
 0x6e0   : > { %v12187_v10 = vadd.f32 %v12186_v6, %v12185_v0  ;;  %v30857_v0 = vsub.f32 %v12222_v52, %v30842_v12  ;;  %v12829_v6 = vsub.f32 %v30831_v9, %v12828_v57 }
 0x6e2   : > { %v30724_v62 = vadd.f32 %v28570_v14, %v12187_v10  ;;  %v12842_v10 = vand.u32 4294901760, %v30849_v59  ;;  %v12836_v14 = vsub.f32 %v30840_v11, %v12835_v1 }
 0x6e4   : > { %v12189_v16 = vsel %vm800_vm0, %v30724_v62, 0.0 }
 0x6e5   : > { %12190 = vadd.xlane.f32.xlu0 %v12189_v16  ;;  %v12849_v16 = vand.u32 4294901760, %v30857_v0 }
 0x76e   : > { %v12191_v17 = vpop.xlane.xlu0 %12190 }
 0x76f   : > { %v12192_v13 = vmul.f32 0.03125, %v12191_v17  ;;  %v12830_v17 = vand.u32 4294901760, %v12829_v6  ;;  %v14180_v6 = vld [vmem:[%s33042_s15 + $0x18] sm:$0xff] }
 0x771   : > { %v12193_v22 = vsub.f32 %v30724_v62, %v12192_v13  ;;  %v12843_v13 = vsub.f32 %v30849_v59, %v12842_v10 }
 0x773   : > { %v12194_v25 = vmul.f32 %v12193_v22, %v12193_v22 }
 0x775   : > { %v12195_v26 = vsel %vm800_vm0, %v12194_v25, 0.0  ;;  %v12850_v25 = vsub.f32 %v30857_v0, %v12849_v16 }
 0x776   : > { %12196 = vadd.xlane.f32.xlu1 %v12195_v26  ;;  %v12844_v26 = vand.u32 4294901760, %v12843_v13 }
 0x777   : > { %v12851_v28 = vand.u32 4294901760, %v12850_v25  ;;  %v14177_v25 = vld [vmem:[%s33042_s15] sm:$0xff] }
 0x7ff   : > { %v12197_v55 = vpop.xlane.xlu1 %12196 }
 0x800   : > { %v12198_v63 = vmul.f32 0.03125, %v12197_v55 }
 0x802   : > { %v12199_v2 = vadd.f32 1e-05, %v12198_v63  ;;  %v12233_v63 = vld [vmem:[%s33041_s14 + $0x78] sm:$0xff] }
 0x804   : > { %28550 = vrsqrt.f32 %v12199_v2  ;;  %v12232_v2 = vld [vmem:[%s33041_s14 + $0x70] sm:$0xff] }
 0x811   : > { %v28551_v35 = vpop.eup %28550 }
 0x812   : > { %v12201_v39 = vmul.f32 %v28551_v35, %v12193_v22  ;;  %v12837_v22 = vand.u32 4294901760, %v12836_v14  ;;  %v31037_v35 = vand.u32 4294901760, %v12233_v63  ;;  %v31153_v14 = vand.u32 4294901760, %v14180_v6 }
 0x814   : > { %v12209_v45 = vmul.f32 %v24884_v37, %v12201_v39  ;;  %v12231_v37 = vld [vmem:[%s33041_s14 + $0x68] sm:$0xff]  ;;  %v31046_v39 = vand.u32 4294901760, %v12232_v2  ;;  %v31174_v13 = vsub.f32 %v14180_v6, %v31153_v14 }
 0x816   : > { %v12217_v44 = vadd.f32 %v24885_v40, %v12209_v45  ;;  %v12230_v40 = vld [vmem:[%s33041_s14 + $0x60] sm:$0xff]  ;;  %v31056_v45 = vsub.f32 %v12233_v63, %v31037_v35 }
 0x817   : > { %v31068_v56 = vand.u32 4294901760, %v12230_v40 }
 0x818   : > { %v12235_v51 = vsel %vm800_vm0, %v12217_v44, 0  ;;  %v31058_v44 = vand.u32 4294901760, %v12231_v37  ;;  %v13798_v31 = vand.u32 4294901760, %v31056_v45 }
 0x819   : > { %v30800_v3 = vand.u32 4294901760, %v12235_v51 }
 0x81a   : > { %v13799_v52 = vsub.f32 %v31056_v45, %v13798_v31 }
 0x81b   : > { %v30806_v60 = vsub.f32 %v12235_v51, %v30800_v3  ;;  %27167 = vmatmul.mubr.f32.vlgmr.msra.gmra.mxu1 %v30800_v3  ;;  %v31066_v51 = vsub.f32 %v12232_v2, %v31046_v39 }
 0x81c   : > { %27181 = vmatpush3.msra.mxu1 %v30739_v42  ;;  %27188 = vmatprep.mubr.msk.f32.mxu1 %vm28690_vm1, %v28689_v24 }
 0x81d   : > { %27182 = vmatprep.subr.mxu1 %v28689_v24  ;;  %v30819_v18 = vand.u32 4294901760, %v30806_v60  ;;  %v13805_v43 = vand.u32 4294901760, %v31066_v51 }
 0x81e   : > { %27183 = vmatpush3.msra.mxu1 %v30741_v34 }
 0x81f   : > { %27184 = vmatprep.subr.mxu1 %v28689_v24  ;;  %v12309_v8 = vsub.f32 %v30806_v60, %v30819_v18 }
 0x820   : > { %27185 = vmatpush3.msra.mxu1 %v30743_v47 }
 0x821   : > { %27186 = vmatprep.subr.mxu1 %v28689_v24  ;;  %v30837_v53 = vand.u32 4294901760, %v12309_v8 }
 0x822   : > { %27187 = vmatpush3.msra.mxu1 %v30748_v49 }
 0x823   : > { %27189 = vmatmul.mubr.f32.vlgmr.msra.gmra.mxu1 %v30819_v18  ;;  %27202 = vmatprep.subr.mxu1 %v28689_v24 }
 0x824   : > { %27156 = vmatmul.mubr.f32.vlgmr.msra.gmra.mxu0 %v30837_v53  ;;  %27203 = vmatpush3.msra.mxu1 %v30739_v42  ;;  %v30923_v42 = vand.u32 4294901760, %v12229_v20 }
 0x825   : > { %27170 = vmatpush3.msra.mxu0 %v30751_v19  ;;  %27204 = vmatprep.subr.mxu1 %v28689_v24 }
 0x826   : > { %27171 = vmatprep.subr.mxu0 %v28689_v24  ;;  %27205 = vmatpush3.msra.mxu1 %v30741_v34  ;;  %v12227_v34 = vld [vmem:[%s33041_s14 + $0x48] sm:$0xff] }
 0x827   : > { %27172 = vmatpush3.msra.mxu0 %v30754_v23  ;;  %27206 = vmatprep.subr.mxu1 %v28689_v24  ;;  %v30944_v19 = vand.u32 4294901760, %v12227_v34 }
 0x828   : > { %27173 = vmatprep.subr.mxu0 %v28689_v24  ;;  %27207 = vmatpush3.msra.mxu1 %v30743_v47  ;;  %v30932_v47 = vand.u32 4294901760, %v12228_v29 }
 0x829   : > { %27174 = vmatpush3.msra.mxu0 %v30757_v27  ;;  %27208 = vmatprep.subr.mxu1 %v28689_v24  ;;  %v30954_v27 = vand.u32 4294901760, %v12226_v36 }
 0x82a   : > { %27175 = vmatprep.subr.mxu0 %v28689_v24  ;;  %27177 = vmatprep.mubr.msk.f32.mxu0 %vm28690_vm1, %v28689_v24  ;;  %v30952_v23 = vsub.f32 %v12228_v29, %v30932_v47 }
 0x82b   : > { %27176 = vmatpush3.msra.mxu0 %v30761_v30  ;;  %27209 = vmatpush3.msra.mxu1 %v30748_v49  ;;  %v30942_v49 = vsub.f32 %v12229_v20, %v30923_v42  ;;  %v14302_v20 = vand.u32 4294901760, %v31174_v13 }
 0x82c   : > { %27210 = vmatprep.mubr.msk.f32.mxu1 %vm28690_vm1, %v28689_v24  ;;  %27178 = vmatmul.mubr.f32.vlgmr.msra.gmra.mxu0 %v30806_v60 }
 0x82d   : > { %27191 = vmatprep.subr.mxu0 %v28689_v24  ;;  %27211 = vmatmul.mubr.f32.vlgmr.msra.gmra.mxu1 %v30800_v3  ;;  %v13313_v30 = vand.u32 4294901760, %v30942_v49 }
 0x82e   : > { %27224 = vmatprep.subr.mxu1 %v28689_v24  ;;  %27192 = vmatpush3.msra.mxu0 %v12343_v21  ;;  %v30963_v21 = vsub.f32 %v12227_v34, %v30944_v19  ;;  %v14303_v34 = vsub.f32 %v31174_v13, %v14302_v20 }
 0x82f   : > { %27225 = vmatpush3.msra.mxu1 %v12830_v17  ;;  %27193 = vmatprep.subr.mxu0 %v28689_v24 }
 0x830   : > { %27226 = vmatprep.subr.mxu1 %v28689_v24  ;;  %27194 = vmatpush3.msra.mxu0 %v12350_v32  ;;  %v13320_v32 = vand.u32 4294901760, %v30952_v23  ;;  %v13327_v41 = vand.u32 4294901760, %v30963_v21 }
 0x831   : > { %27227 = vmatpush3.msra.mxu1 %v12837_v22  ;;  %27195 = vmatprep.subr.mxu0 %v28689_v24 }
 0x832   : > { %27228 = vmatprep.subr.mxu1 %v28689_v24  ;;  %27196 = vmatpush3.msra.mxu0 %v12357_v15  ;;  %v30971_v15 = vsub.f32 %v12226_v36, %v30954_v27  ;;  %v13321_v50 = vsub.f32 %v30952_v23, %v13320_v32  ;;  %v13328_v46 = vsub.f32 %v30963_v21, %v13327_v41 }
 0x833   : > { %27229 = vmatpush3.msra.mxu1 %v12844_v26  ;;  %27197 = vmatprep.subr.mxu0 %v28689_v24 }
 0x834   : > { %27230 = vmatprep.subr.mxu1 %v28689_v24  ;;  %27198 = vmatpush3.msra.mxu0 %v12364_v33  ;;  %v13314_v33 = vsub.f32 %v30942_v49, %v13313_v30  ;;  %v13334_v38 = vand.u32 4294901760, %v30971_v15  ;;  %v13322_v48 = vand.u32 4294901760, %v13321_v50  ;;  %v13329_v7 = vand.u32 4294901760, %v13328_v46 }
 0x835   : > { %27199 = vmatprep.mubr.msk.f32.mxu0 %vm28690_vm1, %v28689_v24  ;;  %27231 = vmatpush3.msra.mxu1 %v12851_v28  ;;  %v797_v28 = vld [vmem:[%s789_s5] sm:$0xff]  ;;  %s32930_s5 = scalar_lea.sflag [#allocation5], %s24671_s4 }
 0x836   : > { %27232 = vmatprep.mubr.msk.f32.mxu1 %vm28690_vm1, %v28689_v24  ;;  %27200 = vmatmul.mubr.f32.vlgmr.msra.gmra.mxu0 %v30800_v3  ;;  %v13315_v61 = vand.u32 4294901760, %v13314_v33  ;;  %v13335_v54 = vsub.f32 %v30971_v15, %v13334_v38 }
 0x837   : > { %27213 = vmatprep.subr.mxu0 %v28689_v24  ;;  %27233 = vmatmul.mubr.f32.vlgmr.msra.gmra.mxu1 %v30800_v3 }
 0x838   : > { %27246 = vmatprep.subr.mxu1 %v28689_v24  ;;  %27214 = vmatpush3.msra.mxu0 %v30809_v4  ;;  %v13336_v55 = vand.u32 4294901760, %v13335_v54 }
 0x839   : > { %27247 = vmatpush3.msra.mxu1 %v30809_v4  ;;  %27215 = vmatprep.subr.mxu0 %v28689_v24 }
 0x83a   : > { %27248 = vmatprep.subr.mxu1 %v28689_v24  ;;  %27216 = vmatpush3.msra.mxu0 %v30821_v5 }
 0x83b   : > { %27249 = vmatpush3.msra.mxu1 %v30821_v5  ;;  %27217 = vmatprep.subr.mxu0 %v28689_v24 }
 0x83c   : > { %27250 = vmatprep.subr.mxu1 %v28689_v24  ;;  %27218 = vmatpush3.msra.mxu0 %v30833_v58 }
 0x83d   : > { %27251 = vmatpush3.msra.mxu1 %v30833_v58  ;;  %27219 = vmatprep.subr.mxu0 %v28689_v24 }
 0x83e   : > { %27252 = vmatprep.subr.mxu1 %v28689_v24  ;;  %27220 = vmatpush3.msra.mxu0 %v30842_v12 }
 0x83f   : > { %27221 = vmatprep.mubr.msk.f32.mxu0 %vm28690_vm1, %v28689_v24  ;;  %27253 = vmatpush3.msra.mxu1 %v30842_v12 }
 0x840   : > { %27254 = vmatprep.mubr.msk.f32.mxu1 %vm28690_vm1, %v28689_v24  ;;  %27222 = vmatmul.mubr.f32.vlgmr.msra.gmra.mxu0 %v30837_v53 }
 0x841   : > { %27235 = vmatprep.subr.mxu0 %v28689_v24  ;;  %27255 = vmatmul.mubr.f32.vlgmr.msra.gmra.mxu1 %v30819_v18 }
 0x842   : > { %27268 = vmatprep.subr.mxu1 %v28689_v24  ;;  %27236 = vmatpush3.msra.mxu0 %v30831_v9  ;;  %v13806_v9 = vsub.f32 %v31066_v51, %v13805_v43 }
 0x843   : > { %27269 = vmatpush3.msra.mxu1 %v30809_v4  ;;  %27237 = vmatprep.subr.mxu0 %v28689_v24  ;;  %v31077_v4 = vsub.f32 %v12231_v37, %v31058_v44 }
 0x844   : > { %27270 = vmatprep.subr.mxu1 %v28689_v24  ;;  %27238 = vmatpush3.msra.mxu0 %v30840_v11  ;;  %v13800_v11 = vand.u32 4294901760, %v13799_v52 }
 0x845   : > { %27271 = vmatpush3.msra.mxu1 %v30821_v5  ;;  %27239 = vmatprep.subr.mxu0 %v28689_v24  ;;  %v31085_v5 = vsub.f32 %v12230_v40, %v31068_v56  ;;  %v13812_v8 = vand.u32 4294901760, %v31077_v4 }
 0x846   : > { %27272 = vmatprep.subr.mxu1 %v28689_v24  ;;  %27240 = vmatpush3.msra.mxu0 %v30849_v59 }
 0x847   : > { %27273 = vmatpush3.msra.mxu1 %v30833_v58  ;;  %27241 = vmatprep.subr.mxu0 %v28689_v24  ;;  %v13819_v58 = vand.u32 4294901760, %v31085_v5 }
 0x848   : > { %27274 = vmatprep.subr.mxu1 %v28689_v24  ;;  %27242 = vmatpush3.msra.mxu0 %v30857_v0 }
 0x849   : > { %27243 = vmatprep.mubr.msk.f32.mxu0 %vm28690_vm1, %v28689_v24  ;;  %27275 = vmatpush3.msra.mxu1 %v30842_v12  ;;  %v13813_v12 = vsub.f32 %v31077_v4, %v13812_v8  ;;  %v13820_v59 = vsub.f32 %v31085_v5, %v13819_v58 }
 0x84a   : > { %27276 = vmatprep.mubr.msk.f32.mxu1 %vm28690_vm1, %v28689_v24  ;;  %27244 = vmatmul.mubr.f32.vlgmr.msra.gmra.mxu0 %v30806_v60 }
 0x84b   : > { %27257 = vmatprep.subr.mxu0 %v28689_v24  ;;  %27277 = vmatmul.mubr.f32.vlgmr.msra.gmra.mxu1 %v30800_v3  ;;  %v13821_v0 = vand.u32 4294901760, %v13820_v59 }
 0x84c   : > { %27290 = vmatprep.subr.mxu1 %v28689_v24  ;;  %27258 = vmatpush3.msra.mxu0 %v12828_v57  ;;  %v13807_v57 = vand.u32 4294901760, %v13806_v9 }
 0x84d   : > { %27291 = vmatpush3.msra.mxu1 %v13315_v61  ;;  %27259 = vmatprep.subr.mxu0 %v28689_v24  ;;  %v14183_v61 = vld [vmem:[%s33042_s15 + $0x30] sm:$0xff] }
 0x84e   : > { %27292 = vmatprep.subr.mxu1 %v28689_v24  ;;  %27260 = vmatpush3.msra.mxu0 %v12835_v1  ;;  %v13814_v1 = vand.u32 4294901760, %v13813_v12  ;;  %v31303_v54 = vand.u32 4294901760, %v14183_v61 }
 0x84f   : > { %27293 = vmatpush3.msra.mxu1 %v13322_v48  ;;  %27261 = vmatprep.subr.mxu0 %v28689_v24  ;;  %v14182_v48 = vld [vmem:[%s33042_s15 + $0x28] sm:$0xff] }
 0x850   : > { %27294 = vmatprep.subr.mxu1 %v28689_v24  ;;  %27262 = vmatpush3.msra.mxu0 %v12842_v10  ;;  %v14179_v10 = vld [vmem:[%s33042_s15 + $0x10] sm:$0xff]  ;;  %v31315_v63 = vand.u32 4294901760, %v14182_v48  ;;  %v31323_v2 = vsub.f32 %v14183_v61, %v31303_v54 }
 0x851   : > { %27295 = vmatpush3.msra.mxu1 %v13329_v7  ;;  %27263 = vmatprep.subr.mxu0 %v28689_v24  ;;  %v31162_v17 = vand.u32 4294901760, %v14179_v10  ;;  %v14181_v7 = vld [vmem:[%s33042_s15 + $0x20] sm:$0xff] }
 0x852   : > { %27296 = vmatprep.subr.mxu1 %v28689_v24  ;;  %27264 = vmatpush3.msra.mxu0 %v12849_v16  ;;  %v14178_v16 = vld [vmem:[%s33042_s15 + $0x8] sm:$0xff]  ;;  %v14794_v40 = vand.u32 4294901760, %v31323_v2 }
 0x853   : > { %27265 = vmatprep.mubr.msk.f32.mxu0 %vm28690_vm1, %v28689_v24  ;;  %27297 = vmatpush3.msra.mxu1 %v13336_v55  ;;  %v31176_v22 = vand.u32 4294901760, %v14178_v16  ;;  %v31188_v26 = vsub.f32 %v14179_v10, %v31162_v17 }
 0x854   : > { %27298 = vmatprep.mubr.msk.f32.mxu1 %vm28690_vm1, %v28689_v24  ;;  %27266 = vmatmul.mubr.f32.vlgmr.msra.gmra.mxu0 %v30800_v3 }
 0x855   : > { %27279 = vmatprep.subr.mxu0 %v28689_v24  ;;  %27299 = vmatmul.mubr.f32.vlgmr.msra.gmra.mxu1 %v30800_v3  ;;  %v31196_v29 = vsub.f32 %v14178_v16, %v31176_v22 }
 0x856   : > { %27312 = vmatprep.subr.mxu1 %v28689_v24  ;;  %27280 = vmatpush3.msra.mxu0 %v30923_v42 }
 0x857   : > { %27313 = vmatpush3.msra.mxu1 %v30923_v42  ;;  %27281 = vmatprep.subr.mxu0 %v28689_v24 }
 0x858   : > { %27314 = vmatprep.subr.mxu1 %v28689_v24  ;;  %27282 = vmatpush3.msra.mxu0 %v30932_v47 }
 0x859   : > { %27315 = vmatpush3.msra.mxu1 %v30932_v47  ;;  %27283 = vmatprep.subr.mxu0 %v28689_v24 }
 0x85a   : > { %27316 = vmatprep.subr.mxu1 %v28689_v24  ;;  %27284 = vmatpush3.msra.mxu0 %v30944_v19 }
 0x85b   : > { %27317 = vmatpush3.msra.mxu1 %v30944_v19  ;;  %27285 = vmatprep.subr.mxu0 %v28689_v24 }
 0x85c   : > { %27318 = vmatprep.subr.mxu1 %v28689_v24  ;;  %27286 = vmatpush3.msra.mxu0 %v30954_v27 }
 0x85d   : > { %27287 = vmatprep.mubr.msk.f32.mxu0 %vm28690_vm1, %v28689_v24  ;;  %27319 = vmatpush3.msra.mxu1 %v30954_v27 }
 0x85e   : > { %27320 = vmatprep.mubr.msk.f32.mxu1 %vm28690_vm1, %v28689_v24  ;;  %27288 = vmatmul.mubr.f32.vlgmr.msra.gmra.mxu0 %v30837_v53 }
 0x85f   : > { %27301 = vmatprep.subr.mxu0 %v28689_v24  ;;  %27321 = vmatmul.mubr.f32.vlgmr.msra.gmra.mxu1 %v30819_v18 }
 0x860   : > { %27334 = vmatprep.subr.mxu1 %v28689_v24  ;;  %27302 = vmatpush3.msra.mxu0 %v30942_v49 }
 0x861   : > { %27335 = vmatpush3.msra.mxu1 %v30923_v42  ;;  %27303 = vmatprep.subr.mxu0 %v28689_v24  ;;  %v31198_v42 = vand.u32 4294901760, %v14177_v25 }
 0x862   : > { %27336 = vmatprep.subr.mxu1 %v28689_v24  ;;  %27304 = vmatpush3.msra.mxu0 %v30952_v23  ;;  %v14304_v23 = vand.u32 4294901760, %v14303_v34 }
 0x863   : > { %27337 = vmatpush3.msra.mxu1 %v30932_v47  ;;  %27305 = vmatprep.subr.mxu0 %v28689_v24  ;;  %v14316_v47 = vand.u32 4294901760, %v31196_v29  ;;  %v31215_v36 = vsub.f32 %v14177_v25, %v31198_v42 }
 0x864   : > { %27338 = vmatprep.subr.mxu1 %v28689_v24  ;;  %27306 = vmatpush3.msra.mxu0 %v30963_v21 }
 0x865   : > { %27339 = vmatpush3.msra.mxu1 %v30944_v19  ;;  %27307 = vmatprep.subr.mxu0 %v28689_v24 }
 0x866   : > { %27340 = vmatprep.subr.mxu1 %v28689_v24  ;;  %27308 = vmatpush3.msra.mxu0 %v30971_v15 }
 0x867   : > { %27309 = vmatprep.mubr.msk.f32.mxu0 %vm28690_vm1, %v28689_v24  ;;  %27341 = vmatpush3.msra.mxu1 %v30954_v27  ;;  %v14317_v27 = vsub.f32 %v31196_v29, %v14316_v47 }
 0x868   : > { %27342 = vmatprep.mubr.msk.f32.mxu1 %vm28690_vm1, %v28689_v24  ;;  %27310 = vmatmul.mubr.f32.vlgmr.msra.gmra.mxu0 %v30806_v60 }
 0x869   : > { %27323 = vmatprep.subr.mxu0 %v28689_v24  ;;  %27343 = vmatmul.mubr.f32.vlgmr.msra.gmra.mxu1 %v30800_v3 }
 0x86a   : > { %27356 = vmatprep.subr.mxu1 %v28689_v24  ;;  %27324 = vmatpush3.msra.mxu0 %v13313_v30  ;;  %v14323_v30 = vand.u32 4294901760, %v31215_v36 }
 0x86b   : > { %27357 = vmatpush3.msra.mxu1 %v13800_v11  ;;  %27325 = vmatprep.subr.mxu0 %v28689_v24  ;;  %v14187_v11 = vld [vmem:[%s33042_s15 + $0x50] sm:$0xff] }
 0x86c   : > { %27358 = vmatprep.subr.mxu1 %v28689_v24  ;;  %27326 = vmatpush3.msra.mxu0 %v13320_v32  ;;  %v14318_v32 = vand.u32 4294901760, %v14317_v27  ;;  %v14324_v15 = vsub.f32 %v31215_v36, %v14323_v30  ;;  %v31417_v59 = vand.u32 4294901760, %v14187_v11  ;;  %v14190_v27 = vld [vmem:[%s33042_s15 + $0x68] sm:$0xff] }
 0x86d   : > { %27359 = vmatpush3.msra.mxu1 %v13807_v57  ;;  %27327 = vmatprep.subr.mxu0 %v28689_v24  ;;  %v14186_v57 = vld [vmem:[%s33042_s15 + $0x48] sm:$0xff] }
 0x86e   : > { %27360 = vmatprep.subr.mxu1 %v28689_v24  ;;  %27328 = vmatpush3.msra.mxu0 %v13327_v41  ;;  %v14325_v41 = vand.u32 4294901760, %v14324_v15  ;;  %v31429_v6 = vand.u32 4294901760, %v14186_v57  ;;  %v31437_v10 = vsub.f32 %v14187_v11, %v31417_v59  ;;  %v31543_v15 = vand.u32 4294901760, %v14190_v27 }
 0x86f   : > { %27361 = vmatpush3.msra.mxu1 %v13814_v1  ;;  %27329 = vmatprep.subr.mxu0 %v28689_v24  ;;  %v14185_v1 = vld [vmem:[%s33042_s15 + $0x40] sm:$0xff] }
 0x870   : > { %27362 = vmatprep.subr.mxu1 %v28689_v24  ;;  %27330 = vmatpush3.msra.mxu0 %v13334_v38  ;;  %v14184_v38 = vld [vmem:[%s33042_s15 + $0x38] sm:$0xff] }
 0x871   : > { %27331 = vmatprep.mubr.msk.f32.mxu0 %vm28690_vm1, %v28689_v24  ;;  %27363 = vmatpush3.msra.mxu1 %v13821_v0  ;;  %v31294_v46 = vand.u32 4294901760, %v14184_v38 }
 0x872   : > { %27364 = vmatprep.mubr.msk.f32.mxu1 %vm28690_vm1, %v28689_v24  ;;  %27332 = vmatmul.mubr.f32.vlgmr.msra.gmra.mxu0 %v30800_v3 }
 0x873   : > { %27345 = vmatprep.subr.mxu0 %v28689_v24  ;;  %27365 = vmatmul.mubr.f32.vlgmr.msra.gmra.mxu1 %v30800_v3  ;;  %v31313_v55 = vsub.f32 %v14184_v38, %v31294_v46 }
 0x874   : > { %27378 = vmatprep.subr.mxu1 %v28689_v24  ;;  %27346 = vmatpush3.msra.mxu0 %v31037_v35 }
 0x875   : > { %27379 = vmatpush3.msra.mxu1 %v31037_v35  ;;  %27347 = vmatprep.subr.mxu0 %v28689_v24  ;;  %v14787_v37 = vand.u32 4294901760, %v31313_v55 }
 0x876   : > { %27380 = vmatprep.subr.mxu1 %v28689_v24  ;;  %27348 = vmatpush3.msra.mxu0 %v31046_v39 }
 0x877   : > { %27381 = vmatpush3.msra.mxu1 %v31046_v39  ;;  %27349 = vmatprep.subr.mxu0 %v28689_v24 }
 0x878   : > { %27382 = vmatprep.subr.mxu1 %v28689_v24  ;;  %27350 = vmatpush3.msra.mxu0 %v31058_v44 }
 0x879   : > { %27383 = vmatpush3.msra.mxu1 %v31058_v44  ;;  %27351 = vmatprep.subr.mxu0 %v28689_v24 }
 0x87a   : > { %27384 = vmatprep.subr.mxu1 %v28689_v24  ;;  %27352 = vmatpush3.msra.mxu0 %v31068_v56 }
 0x87b   : > { %27353 = vmatprep.mubr.msk.f32.mxu0 %vm28690_vm1, %v28689_v24  ;;  %27385 = vmatpush3.msra.mxu1 %v31068_v56 }
 0x87c   : > { %27386 = vmatprep.mubr.msk.f32.mxu1 %vm28690_vm1, %v28689_v24  ;;  %27354 = vmatmul.mubr.f32.vlgmr.msra.gmra.mxu0 %v30837_v53  ;;  %v14194_v53 = vsel %vm800_vm0, %v797_v28, 0 }
 0x87d   : > { %27367 = vmatprep.subr.mxu0 %v28689_v24  ;;  %27387 = vmatmul.mubr.f32.vlgmr.msra.gmra.mxu1 %v30819_v18  ;;  %v14309_v18 = vand.u32 4294901760, %v31188_v26  ;;  %v31217_v49 = vand.u32 4294901760, %v14194_v53 }
 0x87e   : > { %27400 = vmatprep.subr.mxu1 %v28689_v24  ;;  %27368 = vmatpush3.msra.mxu0 %v31056_v45 }
 0x87f   : > { %27401 = vmatpush3.msra.mxu1 %v31037_v35  ;;  %27369 = vmatprep.subr.mxu0 %v28689_v24  ;;  %v14310_v19 = vsub.f32 %v31188_v26, %v14309_v18  ;;  %v31237_v21 = vsub.f32 %v14194_v53, %v31217_v49  ;;  %v31325_v35 = vand.u32 4294901760, %v14181_v7 }
 0x880   : > { %27402 = vmatprep.subr.mxu1 %v28689_v24  ;;  %27370 = vmatpush3.msra.mxu0 %v31066_v51 }
 0x881   : > { %27403 = vmatpush3.msra.mxu1 %v31046_v39  ;;  %27371 = vmatprep.subr.mxu0 %v28689_v24  ;;  %v31253_v33 = vand.u32 4294901760, %v31237_v21  ;;  %v31334_v39 = vsub.f32 %v14182_v48, %v31315_v63  ;;  %v31343_v45 = vsub.f32 %v14181_v7, %v31325_v35 }
 0x882   : > { %27404 = vmatprep.subr.mxu1 %v28689_v24  ;;  %27372 = vmatpush3.msra.mxu0 %v31077_v4 }
 0x883   : > { %27405 = vmatpush3.msra.mxu1 %v31058_v44  ;;  %27373 = vmatprep.subr.mxu0 %v28689_v24  ;;  %v14268_v50 = vsub.f32 %v31237_v21, %v31253_v33  ;;  %v14788_v44 = vsub.f32 %v31313_v55, %v14787_v37  ;;  %v14801_v51 = vand.u32 4294901760, %v31334_v39 }
 0x884   : > { %27406 = vmatprep.subr.mxu1 %v28689_v24  ;;  %27374 = vmatpush3.msra.mxu0 %v31085_v5 }
 0x885   : > { %27375 = vmatprep.mubr.msk.f32.mxu0 %vm28690_vm1, %v28689_v24  ;;  %27407 = vmatpush3.msra.mxu1 %v31068_v56  ;;  %v14795_v56 = vsub.f32 %v31323_v2, %v14794_v40  ;;  %v14789_v4 = vand.u32 4294901760, %v14788_v44 }
 0x886   : > { %27408 = vmatprep.mubr.msk.f32.mxu1 %vm28690_vm1, %v28689_v24  ;;  %27376 = vmatmul.mubr.f32.vlgmr.msra.gmra.mxu0 %v30806_v60  ;;  %v14311_v60 = vand.u32 4294901760, %v14310_v19  ;;  %v14191_v19 = vld [vmem:[%s33042_s15 + $0x70] sm:$0xff] }
 0x887   : > { %27389 = vmatprep.subr.mxu0 %v28689_v24  ;;  %27409 = vmatmul.mubr.f32.vlgmr.msra.gmra.mxu1 %v30800_v3  ;;  %v14796_v5 = vand.u32 4294901760, %v14795_v56 }
 0x888   : > { %27390 = vmatpush3.msra.mxu0 %v13798_v31  ;;  %27397 = vmatprep.mubr.msk.f32.mxu0 %vm28690_vm1, %v28689_v24  ;;  %v14808_v31 = vand.u32 4294901760, %v31343_v45 }
 0x889   : > { %27391 = vmatprep.subr.mxu0 %v28689_v24  ;;  %27422 = vmatprep.subr.mxu1 %v28689_v24 }
 0x88a   : > { %27392 = vmatpush3.msra.mxu0 %v13805_v43  ;;  %27423 = vmatpush3.msra.mxu1 %v14304_v23  ;;  %v14802_v43 = vsub.f32 %v31334_v39, %v14801_v51  ;;  %v14809_v52 = vsub.f32 %v31343_v45, %v14808_v31 }
 0x88b   : > { %27393 = vmatprep.subr.mxu0 %v28689_v24  ;;  %27424 = vmatprep.subr.mxu1 %v28689_v24 }
 0x88c   : > { %27394 = vmatpush3.msra.mxu0 %v13812_v8  ;;  %27425 = vmatpush3.msra.mxu1 %v14311_v60  ;;  %v14803_v8 = vand.u32 4294901760, %v14802_v43  ;;  %v14810_v9 = vand.u32 4294901760, %v14809_v52  ;;  %v14189_v60 = vld [vmem:[%s33042_s15 + $0x60] sm:$0xff] }
 0x88d   : > { %27395 = vmatprep.subr.mxu0 %v28689_v24  ;;  %27426 = vmatprep.subr.mxu1 %v28689_v24 }
 0x88e   : > { %27396 = vmatpush3.msra.mxu0 %v13819_v58  ;;  %27427 = vmatpush3.msra.mxu1 %v14318_v32  ;;  %v14188_v58 = vld [vmem:[%s33042_s15 + $0x58] sm:$0xff] }
 0x88f   : > { %27398 = vmatmul.mubr.f32.vlgmr.msra.gmra.mxu0 %v30800_v3  ;;  %27411 = vmatprep.subr.mxu0 %v28689_v24  ;;  %v31274_v3 = vand.u32 4294901760, %v14268_v50  ;;  %v31408_v12 = vand.u32 4294901760, %v14188_v58  ;;  %v31553_v50 = vand.u32 4294901760, %v14189_v60 }
 0x890   : > { %27412 = vmatpush3.msra.mxu0 %v31153_v14  ;;  %27428 = vmatprep.subr.mxu1 %v28689_v24 }
 0x891   : > { %27413 = vmatprep.subr.mxu0 %v28689_v24  ;;  %27419 = vmatprep.mubr.msk.f32.mxu0 %vm28690_vm1, %v28689_v24  ;;  %v31427_v0 = vsub.f32 %v14188_v58, %v31408_v12  ;;  %v31571_v7 = vsub.f32 %v14189_v60, %v31553_v50 }
 0x892   : > { %27414 = vmatpush3.msra.mxu0 %v31162_v17  ;;  %27429 = vmatpush3.msra.mxu1 %v14325_v41 }
 0x893   : > { %27415 = vmatprep.subr.mxu0 %v28689_v24  ;;  %27430 = vmatprep.mubr.msk.f32.mxu1 %vm28690_vm1, %v28689_v24  ;;  %v15272_v16 = vand.u32 4294901760, %v31427_v0 }
 0x894   : > { %27416 = vmatpush3.msra.mxu0 %v31176_v22  ;;  %27444 = vmatprep.subr.mxu1 %v28689_v24 }
 0x895   : > { %27417 = vmatprep.subr.mxu0 %v28689_v24  ;;  %27431 = vmatmul.mubr.f32.vlgmr.msra.gmra.mxu1 %v31217_v49  ;;  %v15273_v25 = vsub.f32 %v31427_v0, %v15272_v16 }
 0x896   : > { %27418 = vmatpush3.msra.mxu0 %v31198_v42  ;;  %27445 = vmatpush3.msra.mxu1 %v31153_v14 }
 0x897   : > { %27420 = vmatmul.mubr.f32.vlgmr.msra.gmra.mxu0 %v31274_v3  ;;  %27433 = vmatprep.subr.mxu0 %v28689_v24 }
 0x898   : > { %27434 = vmatpush3.msra.mxu0 %v31174_v13  ;;  %27446 = vmatprep.subr.mxu1 %v28689_v24  ;;  %v15279_v13 = vand.u32 4294901760, %v31437_v10 }
 0x899   : > { %27435 = vmatprep.subr.mxu0 %v28689_v24  ;;  %27447 = vmatpush3.msra.mxu1 %v31162_v17 }
 0x89a   : > { %27436 = vmatpush3.msra.mxu0 %v31188_v26  ;;  %27448 = vmatprep.subr.mxu1 %v28689_v24  ;;  %v15280_v28 = vsub.f32 %v31437_v10, %v15279_v13 }
 0x89b   : > { %27437 = vmatprep.subr.mxu0 %v28689_v24  ;;  %27449 = vmatpush3.msra.mxu1 %v31176_v22 }
 0x89c   : > { %27438 = vmatpush3.msra.mxu0 %v31196_v29  ;;  %27450 = vmatprep.subr.mxu1 %v28689_v24  ;;  %v15274_v29 = vand.u32 4294901760, %v15273_v25  ;;  %v15281_v53 = vand.u32 4294901760, %v15280_v28 }
 0x89d   : > { %27439 = vmatprep.subr.mxu0 %v28689_v24  ;;  %27441 = vmatprep.mubr.msk.f32.mxu0 %vm28690_vm1, %v28689_v24 }
 0x89e   : > { %27440 = vmatpush3.msra.mxu0 %v31215_v36  ;;  %27451 = vmatpush3.msra.mxu1 %v31198_v42  ;;  %v14192_v36 = vld [vmem:[%s33042_s15 + $0x78] sm:$0xff] }
 0x89f   : > { %27442 = vmatmul.mubr.f32.vlgmr.msra.gmra.mxu0 %v31237_v21  ;;  %27452 = vmatprep.mubr.msk.f32.mxu1 %vm28690_vm1, %v28689_v24  ;;  %v31522_v23 = vand.u32 4294901760, %v14192_v36 }
 0x8a0   : > { %27455 = vmatprep.subr.mxu0 %v28689_v24  ;;  %27466 = vmatprep.subr.mxu1 %v28689_v24 }
 0x8a1   : > { %27453 = vmatmul.mubr.f32.vlgmr.msra.gmra.mxu1 %v31253_v33  ;;  %27456 = vmatpush3.msra.mxu0 %v14302_v20  ;;  %v31541_v32 = vsub.f32 %v14192_v36, %v31522_v23 }
 0x8a2   : > { %27467 = vmatpush3.msra.mxu1 %v31153_v14  ;;  %27457 = vmatprep.subr.mxu0 %v28689_v24  ;;  %v31439_v14 = vand.u32 4294901760, %v14185_v1 }
 0x8a3   : > { %27468 = vmatprep.subr.mxu1 %v28689_v24  ;;  %27458 = vmatpush3.msra.mxu0 %v14309_v18  ;;  %v15757_v61 = vand.u32 4294901760, %v31541_v32 }
 0x8a4   : > { %27469 = vmatpush3.msra.mxu1 %v31162_v17  ;;  %27459 = vmatprep.subr.mxu0 %v28689_v24  ;;  %v31448_v17 = vsub.f32 %v14186_v57, %v31429_v6  ;;  %v16139_v57 = vld [vmem:[%s33043_s16 + $0x18] sm:$0xff] }
 0x8a5   : > { %27470 = vmatprep.subr.mxu1 %v28689_v24  ;;  %27460 = vmatpush3.msra.mxu0 %v14316_v47 }
 0x8a6   : > { %27471 = vmatpush3.msra.mxu1 %v31176_v22  ;;  %27461 = vmatprep.subr.mxu0 %v28689_v24  ;;  %v31457_v22 = vsub.f32 %v14185_v1, %v31439_v14  ;;  %v15286_v26 = vand.u32 4294901760, %v31448_v17  ;;  %v31638_v1 = vand.u32 4294901760, %v16139_v57 }
 0x8a7   : > { %27472 = vmatprep.subr.mxu1 %v28689_v24  ;;  %27462 = vmatpush3.msra.mxu0 %v14323_v30  ;;  %v31531_v30 = vand.u32 4294901760, %v14191_v19 }
 0x8a8   : > { %27463 = vmatprep.mubr.msk.f32.mxu0 %vm28690_vm1, %v28689_v24  ;;  %27473 = vmatpush3.msra.mxu1 %v31198_v42  ;;  %v15293_v20 = vand.u32 4294901760, %v31457_v22  ;;  %v15287_v42 = vsub.f32 %v31448_v17, %v15286_v26 }
 0x8a9   : > { %27464 = vmatmul.mubr.f32.vlgmr.msra.gmra.mxu0 %v31217_v49  ;;  %27474 = vmatprep.mubr.msk.f32.mxu1 %vm28690_vm1, %v28689_v24  ;;  %v31551_v41 = vsub.f32 %v14191_v19, %v31531_v30 }
 0x8aa   : > { %27477 = vmatprep.subr.mxu0 %v28689_v24  ;;  %27488 = vmatprep.subr.mxu1 %v28689_v24  ;;  %v15294_v18 = vsub.f32 %v31457_v22, %v15293_v20  ;;  %v15288_v34 = vand.u32 4294901760, %v15287_v42 }
 0x8ab   : > { %27475 = vmatmul.mubr.f32.vlgmr.msra.gmra.mxu1 %v31217_v49  ;;  %27478 = vmatpush3.msra.mxu0 %v31294_v46 }
 0x8ac   : > { %27489 = vmatpush3.msra.mxu1 %v14789_v4  ;;  %27479 = vmatprep.subr.mxu0 %v28689_v24  ;;  %v15295_v47 = vand.u32 4294901760, %v15294_v18 }
 0x8ad   : > { %27490 = vmatprep.subr.mxu1 %v28689_v24  ;;  %27480 = vmatpush3.msra.mxu0 %v31303_v54 }
 0x8ae   : > { %27491 = vmatpush3.msra.mxu1 %v14796_v5  ;;  %27481 = vmatprep.subr.mxu0 %v28689_v24 }
 0x8af   : > { %27492 = vmatprep.subr.mxu1 %v28689_v24  ;;  %27482 = vmatpush3.msra.mxu0 %v31315_v63 }
 0x8b0   : > { %27493 = vmatpush3.msra.mxu1 %v14803_v8  ;;  %27483 = vmatprep.subr.mxu0 %v28689_v24 }
 0x8b1   : > { %27494 = vmatprep.subr.mxu1 %v28689_v24  ;;  %27484 = vmatpush3.msra.mxu0 %v31325_v35 }
 0x8b2   : > { %27485 = vmatprep.mubr.msk.f32.mxu0 %vm28690_vm1, %v28689_v24  ;;  %27495 = vmatpush3.msra.mxu1 %v14810_v9 }
 0x8b3   : > { %27486 = vmatmul.mubr.f32.vlgmr.msra.gmra.mxu0 %v31274_v3  ;;  %27496 = vmatprep.mubr.msk.f32.mxu1 %vm28690_vm1, %v28689_v24 }
 0x8b4   : > { %27499 = vmatprep.subr.mxu0 %v28689_v24  ;;  %27510 = vmatprep.subr.mxu1 %v28689_v24 }
 0x8b5   : > { %27497 = vmatmul.mubr.f32.vlgmr.msra.gmra.mxu1 %v31217_v49  ;;  %27500 = vmatpush3.msra.mxu0 %v31313_v55  ;;  %v15758_v55 = vsub.f32 %v31541_v32, %v15757_v61 }
 0x8b6   : > { %27511 = vmatpush3.msra.mxu1 %v31294_v46  ;;  %27501 = vmatprep.subr.mxu0 %v28689_v24 }
 0x8b7   : > { %27512 = vmatprep.subr.mxu1 %v28689_v24  ;;  %27502 = vmatpush3.msra.mxu0 %v31323_v2 }
 0x8b8   : > { %27513 = vmatpush3.msra.mxu1 %v31303_v54  ;;  %27503 = vmatprep.subr.mxu0 %v28689_v24 }
 0x8b9   : > { %27514 = vmatprep.subr.mxu1 %v28689_v24  ;;  %27504 = vmatpush3.msra.mxu0 %v31334_v39  ;;  %v15759_v39 = vand.u32 4294901760, %v15758_v55 }
 0x8ba   : > { %27515 = vmatpush3.msra.mxu1 %v31315_v63  ;;  %27505 = vmatprep.subr.mxu0 %v28689_v24 }
 0x8bb   : > { %27516 = vmatprep.subr.mxu1 %v28689_v24  ;;  %27506 = vmatpush3.msra.mxu0 %v31343_v45 }
 0x8bc   : > { %27507 = vmatprep.mubr.msk.f32.mxu0 %vm28690_vm1, %v28689_v24  ;;  %27517 = vmatpush3.msra.mxu1 %v31325_v35 }
 0x8bd   : > { %27508 = vmatmul.mubr.f32.vlgmr.msra.gmra.mxu0 %v31237_v21  ;;  %27518 = vmatprep.mubr.msk.f32.mxu1 %vm28690_vm1, %v28689_v24 }
 0x8be   : > { %27521 = vmatprep.subr.mxu0 %v28689_v24  ;;  %27532 = vmatprep.subr.mxu1 %v28689_v24 }
 0x8bf   : > { %27519 = vmatmul.mubr.f32.vlgmr.msra.gmra.mxu1 %v31253_v33  ;;  %27522 = vmatpush3.msra.mxu0 %v14787_v37 }
 0x8c0   : > { %27533 = vmatpush3.msra.mxu1 %v31294_v46  ;;  %27523 = vmatprep.subr.mxu0 %v28689_v24  ;;  %v31562_v46 = vsub.f32 %v14190_v27, %v31543_v15 }
 0x8c1   : > { %27534 = vmatprep.subr.mxu1 %v28689_v24  ;;  %27524 = vmatpush3.msra.mxu0 %v14794_v40 }
 0x8c2   : > { %27535 = vmatpush3.msra.mxu1 %v31303_v54  ;;  %27525 = vmatprep.subr.mxu0 %v28689_v24  ;;  %v15764_v54 = vand.u32 4294901760, %v31551_v41 }
 0x8c3   : > { %27536 = vmatprep.subr.mxu1 %v28689_v24  ;;  %27526 = vmatpush3.msra.mxu0 %v14801_v51 }
 0x8c4   : > { %27537 = vmatpush3.msra.mxu1 %v31315_v63  ;;  %27527 = vmatprep.subr.mxu0 %v28689_v24  ;;  %v15771_v63 = vand.u32 4294901760, %v31562_v46  ;;  %v15765_v2 = vsub.f32 %v31551_v41, %v15764_v54 }
 0x8c5   : > { %27538 = vmatprep.subr.mxu1 %v28689_v24  ;;  %27528 = vmatpush3.msra.mxu0 %v14808_v31 }
 0x8c6   : > { %27529 = vmatprep.mubr.msk.f32.mxu0 %vm28690_vm1, %v28689_v24  ;;  %27539 = vmatpush3.msra.mxu1 %v31325_v35  ;;  %v15778_v35 = vand.u32 4294901760, %v31571_v7  ;;  %v15772_v40 = vsub.f32 %v31562_v46, %v15771_v63  ;;  %v15766_v56 = vand.u32 4294901760, %v15765_v2 }
 0x8c7   : > { %27530 = vmatmul.mubr.f32.vlgmr.msra.gmra.mxu0 %v31217_v49  ;;  %27540 = vmatprep.mubr.msk.f32.mxu1 %vm28690_vm1, %v28689_v24 }
 0x8c8   : > { %27543 = vmatprep.subr.mxu0 %v28689_v24  ;;  %27554 = vmatprep.subr.mxu1 %v28689_v24  ;;  %v15779_v31 = vsub.f32 %v31571_v7, %v15778_v35  ;;  %v15773_v43 = vand.u32 4294901760, %v15772_v40 }
 0x8c9   : > { %27541 = vmatmul.mubr.f32.vlgmr.msra.gmra.mxu1 %v31217_v49  ;;  %27544 = vmatpush3.msra.mxu0 %v31408_v12 }
 0x8ca   : > { %27555 = vmatpush3.msra.mxu1 %v15274_v29  ;;  %27545 = vmatprep.subr.mxu0 %v28689_v24  ;;  %v15780_v5 = vand.u32 4294901760, %v15779_v31 }
 0x8cb   : > { %27556 = vmatprep.subr.mxu1 %v28689_v24  ;;  %27546 = vmatpush3.msra.mxu0 %v31417_v59 }
 0x8cc   : > { %27557 = vmatpush3.msra.mxu1 %v15281_v53  ;;  %27547 = vmatprep.subr.mxu0 %v28689_v24 }
 0x8cd   : > { %27558 = vmatprep.subr.mxu1 %v28689_v24  ;;  %27548 = vmatpush3.msra.mxu0 %v31429_v6 }
 0x8ce   : > { %27559 = vmatpush3.msra.mxu1 %v15288_v34  ;;  %27549 = vmatprep.subr.mxu0 %v28689_v24 }
 0x8cf   : > { %27560 = vmatprep.subr.mxu1 %v28689_v24  ;;  %27550 = vmatpush3.msra.mxu0 %v31439_v14 }
 0x8d0   : > { %27551 = vmatprep.mubr.msk.f32.mxu0 %vm28690_vm1, %v28689_v24  ;;  %27561 = vmatpush3.msra.mxu1 %v15295_v47 }
 0x8d1   : > { %27552 = vmatmul.mubr.f32.vlgmr.msra.gmra.mxu0 %v31274_v3  ;;  %27562 = vmatprep.mubr.msk.f32.mxu1 %vm28690_vm1, %v28689_v24 }
 0x8d2   : > { %27565 = vmatprep.subr.mxu0 %v28689_v24  ;;  %27576 = vmatprep.subr.mxu1 %v28689_v24 }
 0x8d3   : > { %27563 = vmatmul.mubr.f32.vlgmr.msra.gmra.mxu1 %v31217_v49  ;;  %27566 = vmatpush3.msra.mxu0 %v31427_v0  ;;  %v16137_v0 = vld [vmem:[%s33043_s16 + $0x8] sm:$0xff] }
 0x8d4   : > { %27577 = vmatpush3.msra.mxu1 %v31408_v12  ;;  %27567 = vmatprep.subr.mxu0 %v28689_v24 }
 0x8d5   : > { %27578 = vmatprep.subr.mxu1 %v28689_v24  ;;  %27568 = vmatpush3.msra.mxu0 %v31437_v10 }
 0x8d6   : > { %27579 = vmatpush3.msra.mxu1 %v31417_v59  ;;  %27569 = vmatprep.subr.mxu0 %v28689_v24 }
 0x8d7   : > { %27580 = vmatprep.subr.mxu1 %v28689_v24  ;;  %27570 = vmatpush3.msra.mxu0 %v31448_v17  ;;  %v31654_v17 = vsub.f32 %v16139_v57, %v31638_v1 }
 0x8d8   : > { %27581 = vmatpush3.msra.mxu1 %v31429_v6  ;;  %27571 = vmatprep.subr.mxu0 %v28689_v24 }
 0x8d9   : > { %27582 = vmatprep.subr.mxu1 %v28689_v24  ;;  %27572 = vmatpush3.msra.mxu0 %v31457_v22  ;;  %v16136_v22 = vld [vmem:[%s33043_s16] sm:$0xff]  ;;  %v16258_v53 = vand.u32 4294901760, %v31654_v17 }
 0x8da   : > { %27573 = vmatprep.mubr.msk.f32.mxu0 %vm28690_vm1, %v28689_v24  ;;  %27583 = vmatpush3.msra.mxu1 %v31439_v14  ;;  %v31674_v29 = vand.u32 4294901760, %v16136_v22 }
 0x8db   : > { %27574 = vmatmul.mubr.f32.vlgmr.msra.gmra.mxu0 %v31237_v21  ;;  %27584 = vmatprep.mubr.msk.f32.mxu1 %vm28690_vm1, %v28689_v24  ;;  %v12403_v38 = vpop.f32.mrf.mxu1  ;;  %v16259_v47 = vsub.f32 %v31654_v17, %v16258_v53 }
 0x8dc   : > { %27587 = vmatprep.subr.mxu0 %v28689_v24  ;;  %27598 = vmatprep.subr.mxu1 %v28689_v24  ;;  %v31692_v34 = vsub.f32 %v16136_v22, %v31674_v29 }
 0x8dd   : > { %27585 = vmatmul.mubr.f32.vlgmr.msra.gmra.mxu1 %v31253_v33  ;;  %27588 = vmatpush3.msra.mxu0 %v15272_v16  ;;  %v27168_v48 = vpop.f32.mrf.mxu1 }
 0x8de   : > { %27599 = vmatpush3.msra.mxu1 %v31408_v12  ;;  %27589 = vmatprep.subr.mxu0 %v28689_v24 }
 0x8df   : > { %27600 = vmatprep.subr.mxu1 %v28689_v24  ;;  %27590 = vmatpush3.msra.mxu0 %v15279_v13  ;;  %v31656_v13 = vand.u32 4294901760, %v16137_v0 }
 0x8e0   : > { %27601 = vmatpush3.msra.mxu1 %v31417_v59  ;;  %27591 = vmatprep.subr.mxu0 %v28689_v24  ;;  %v16138_v59 = vld [vmem:[%s33043_s16 + $0x10] sm:$0xff] }
 0x8e1   : > { %27602 = vmatprep.subr.mxu1 %v28689_v24  ;;  %27592 = vmatpush3.msra.mxu0 %v15286_v26  ;;  %v31680_v42 = vsub.f32 %v16137_v0, %v31656_v13 }
 0x8e2   : > { %27603 = vmatpush3.msra.mxu1 %v31429_v6  ;;  %27593 = vmatprep.subr.mxu0 %v28689_v24  ;;  %v31647_v6 = vand.u32 4294901760, %v16138_v59 }
 0x8e3   : > { %27604 = vmatprep.subr.mxu1 %v28689_v24  ;;  %27594 = vmatpush3.msra.mxu0 %v15293_v20  ;;  %v12560_v37 = vpop.f32.mrf.mxu1  ;;  %v16272_v36 = vand.u32 4294901760, %v31680_v42 }
 0x8e4   : > { %27595 = vmatprep.mubr.msk.f32.mxu0 %vm28690_vm1, %v28689_v24  ;;  %27605 = vmatpush3.msra.mxu1 %v31439_v14  ;;  %v12312_v45 = vpop.f32.mrf.mxu0  ;;  %v31670_v20 = vsub.f32 %v16138_v59, %v31647_v6 }
 0x8e5   : > { %27596 = vmatmul.mubr.f32.vlgmr.msra.gmra.mxu0 %v31217_v49  ;;  %27606 = vmatprep.mubr.msk.f32.mxu1 %vm28690_vm1, %v28689_v24  ;;  %v12404_v44 = vadd.f32 %v12403_v38, %v12312_v45  ;;  %v27190_v51 = vpop.f32.mrf.mxu1  ;;  %v16273_v38 = vsub.f32 %v31680_v42, %v16272_v36 }
 0x8e6   : > { %27609 = vmatprep.subr.mxu0 %v28689_v24  ;;  %27620 = vmatprep.subr.mxu1 %v28689_v24  ;;  %v27157_v4 = vpop.f32.mrf.mxu0  ;;  %v16265_v18 = vand.u32 4294901760, %v31670_v20 }
 0x8e7   : > { %27607 = vmatmul.mubr.f32.vlgmr.msra.gmra.mxu1 %v31217_v49  ;;  %27610 = vmatpush3.msra.mxu0 %v31522_v23 }
 0x8e8   : > { %27621 = vmatpush3.msra.mxu1 %v15759_v39  ;;  %27611 = vmatprep.subr.mxu0 %v28689_v24  ;;  %v16142_v39 = vld [vmem:[%s33043_s16 + $0x30] sm:$0xff] }
 0x8e9   : > { %27622 = vmatprep.subr.mxu1 %v28689_v24  ;;  %27612 = vmatpush3.msra.mxu0 %v31531_v30  ;;  %v31771_v4 = vand.u32 4294901760, %v16142_v39 }
 0x8ea   : > { %27623 = vmatpush3.msra.mxu1 %v15766_v56  ;;  %27613 = vmatprep.subr.mxu0 %v28689_v24  ;;  %v16141_v56 = vld [vmem:[%s33043_s16 + $0x28] sm:$0xff] }
 0x8eb   : > { %27624 = vmatprep.subr.mxu1 %v28689_v24  ;;  %27614 = vmatpush3.msra.mxu0 %v31543_v15 }
 0x8ec   : > { %27625 = vmatpush3.msra.mxu1 %v15773_v43  ;;  %27615 = vmatprep.subr.mxu0 %v28689_v24  ;;  %v12483_v52 = vpop.f32.mrf.mxu0 }
 0x8ed   : > { %27626 = vmatprep.subr.mxu1 %v28689_v24  ;;  %27616 = vmatpush3.msra.mxu0 %v31553_v50  ;;  %v12484_v8 = vadd.f32 %v12483_v52, %v12404_v44  ;;  %v12718_v9 = vpop.f32.mrf.mxu1  ;;  %v16140_v52 = vld [vmem:[%s33043_s16 + $0x20] sm:$0xff] }
 0x8ee   : > { %27617 = vmatprep.mubr.msk.f32.mxu0 %vm28690_vm1, %v28689_v24  ;;  %27627 = vmatpush3.msra.mxu1 %v15780_v5  ;;  %v27179_v58 = vpop.f32.mrf.mxu0 }
 0x8ef   : > { %27618 = vmatmul.mubr.f32.vlgmr.msra.gmra.mxu0 %v31274_v3  ;;  %27628 = vmatprep.mubr.msk.f32.mxu1 %vm28690_vm1, %v28689_v24  ;;  %v27212_v11 = vpop.f32.mrf.mxu1  ;;  %v12561_v12 = vadd.f32 %v12560_v37, %v12484_v8  ;;  %v16143_v37 = vld [vmem:[%s33043_s16 + $0x38] sm:$0xff]  ;;  %v31794_v58 = vsub.f32 %v16142_v39, %v31771_v4 }
 0x8f0   : > { %27631 = vmatprep.subr.mxu0 %v28689_v24  ;;  %27642 = vmatprep.subr.mxu1 %v28689_v24  ;;  %v31761_v45 = vand.u32 4294901760, %v16143_v37  ;;  %v31796_v11 = vand.u32 4294901760, %v16140_v52 }
 0x8f1   : > { %27629 = vmatmul.mubr.f32.vlgmr.msra.gmra.mxu1 %v31217_v49  ;;  %27632 = vmatpush3.msra.mxu0 %v31541_v32  ;;  %v16279_v32 = vand.u32 4294901760, %v31692_v34 }
 0x8f2   : > { %27643 = vmatpush3.msra.mxu1 %v31522_v23  ;;  %27633 = vmatprep.subr.mxu0 %v28689_v24  ;;  %v31784_v8 = vsub.f32 %v16143_v37, %v31761_v45  ;;  %v31814_v0 = vsub.f32 %v16140_v52, %v31796_v11 }
 0x8f3   : > { %27644 = vmatprep.subr.mxu1 %v28689_v24  ;;  %27634 = vmatpush3.msra.mxu0 %v31551_v41  ;;  %v16260_v41 = vand.u32 4294901760, %v16259_v47 }
 0x8f4   : > { %27645 = vmatpush3.msra.mxu1 %v31531_v30  ;;  %27635 = vmatprep.subr.mxu0 %v28689_v24  ;;  %v16743_v57 = vand.u32 4294901760, %v31784_v8 }
 0x8f5   : > { %27646 = vmatprep.subr.mxu1 %v28689_v24  ;;  %27636 = vmatpush3.msra.mxu0 %v31562_v46  ;;  %v16274_v46 = vand.u32 4294901760, %v16273_v38 }
 0x8f6   : > { %27647 = vmatpush3.msra.mxu1 %v31543_v15  ;;  %27637 = vmatprep.subr.mxu0 %v28689_v24  ;;  %v12643_v10 = vpop.f32.mrf.mxu0 }
 0x8f7   : > { %27648 = vmatprep.subr.mxu1 %v28689_v24  ;;  %27638 = vmatpush3.msra.mxu0 %v31571_v7  ;;  %v12644_v14 = vadd.f32 %v12643_v10, %v12561_v12  ;;  %v12888_v16 = vpop.f32.mrf.mxu1  ;;  %v16750_v10 = vand.u32 4294901760, %v31794_v58 }
 0x8f8   : > { %27639 = vmatprep.mubr.msk.f32.mxu0 %vm28690_vm1, %v28689_v24  ;;  %27649 = vmatpush3.msra.mxu1 %v31553_v50  ;;  %v27201_v25 = vpop.f32.mrf.mxu0 }
 0x8f9   : > { %27640 = vmatmul.mubr.f32.vlgmr.msra.gmra.mxu0 %v31237_v21  ;;  %27650 = vmatprep.mubr.msk.f32.mxu1 %vm28690_vm1, %v28689_v24  ;;  %v31667_v26 = vadd.f32 %v12718_v9, %v12644_v14  ;;  %v27234_v28 = vpop.f32.mrf.mxu1  ;;  %v31786_v9 = vand.u32 4294901760, %v16141_v56 }
 0x8fa   : > { %27653 = vmatprep.subr.mxu0 %v28689_v24  ;;  %27664 = vmatprep.subr.mxu1 %v28689_v24  ;;  %v16751_v28 = vsub.f32 %v31794_v58, %v16750_v10 }
 0x8fb   : > { %27651 = vmatmul.mubr.f32.vlgmr.msra.gmra.mxu1 %v31253_v33  ;;  %27654 = vmatpush3.msra.mxu0 %v15757_v61  ;;  %v16280_v61 = vsub.f32 %v31692_v34, %v16279_v32  ;;  %v31806_v12 = vsub.f32 %v16141_v56, %v31786_v9 }
 0x8fc   : > { %27665 = vmatpush3.msra.mxu1 %v31522_v23  ;;  %27655 = vmatprep.subr.mxu0 %v28689_v24 }
 0x8fd   : > { %27666 = vmatprep.subr.mxu1 %v28689_v24  ;;  %27656 = vmatpush3.msra.mxu0 %v15764_v54  ;;  %v16281_v54 = vand.u32 4294901760, %v16280_v61  ;;  %v16757_v22 = vand.u32 4294901760, %v31806_v12 }
 0x8fe   : > { %27667 = vmatpush3.msra.mxu1 %v31531_v30  ;;  %27657 = vmatprep.subr.mxu0 %v28689_v24  ;;  %v16266_v30 = vsub.f32 %v31670_v20, %v16265_v18 }
 0x8ff   : > { %27668 = vmatprep.subr.mxu1 %v28689_v24  ;;  %27658 = vmatpush3.msra.mxu0 %v15771_v63 }
 0x900   : > { %27669 = vmatpush3.msra.mxu1 %v31543_v15  ;;  %27659 = vmatprep.subr.mxu0 %v28689_v24  ;;  %v12797_v19 = vpop.f32.mrf.mxu0 }
 0x901   : > { %27670 = vmatprep.subr.mxu1 %v28689_v24  ;;  %27660 = vmatpush3.msra.mxu0 %v15778_v35  ;;  %v12889_v23 = vadd.f32 %v12888_v16, %v12797_v19  ;;  %v13045_v27 = vpop.f32.mrf.mxu1 }
 0x902   : > { %27661 = vmatprep.mubr.msk.f32.mxu0 %vm28690_vm1, %v28689_v24  ;;  %27671 = vmatpush3.msra.mxu1 %v31553_v50  ;;  %v27223_v60 = vpop.f32.mrf.mxu0  ;;  %v16267_v50 = vand.u32 4294901760, %v16266_v30  ;;  %v16147_v30 = vld [vmem:[%s33043_s16 + $0x58] sm:$0xff] }
 0x903   : > { %27672 = vmatprep.mubr.msk.f32.mxu1 %vm28690_vm1, %v28689_v24  ;;  %27662 = vmatmul.mubr.f32.vlgmr.msra.gmra.mxu0 %v31217_v49  ;;  %v27256_v15 = vpop.f32.mrf.mxu1  ;;  %v16146_v60 = vld [vmem:[%s33043_s16 + $0x50] sm:$0xff] }
 0x904   : > { %27673 = vmatmul.mubr.f32.vlgmr.msra.gmra.mxu1 %v31217_v49  ;;  %27675 = vmatprep.subr.mxu0 %v28689_v24  ;;  %v31877_v15 = vand.u32 4294901760, %v16147_v30 }
 0x905   : > { %27676 = vmatpush3.msra.mxu0 %v31638_v1  ;;  %27683 = vmatprep.mubr.msk.f32.mxu0 %vm28690_vm1, %v28689_v24 }
 0x906   : > { %27677 = vmatprep.subr.mxu0 %v28689_v24  ;;  %27686 = vmatprep.subr.mxu1 %v28689_v24 }
 0x907   : > { %27678 = vmatpush3.msra.mxu0 %v31647_v6  ;;  %27687 = vmatpush3.msra.mxu1 %v16260_v41 }
 0x908   : > { %27679 = vmatprep.subr.mxu0 %v28689_v24  ;;  %27688 = vmatprep.subr.mxu1 %v28689_v24 }
 0x909   : > { %27680 = vmatpush3.msra.mxu0 %v31656_v13  ;;  %27689 = vmatpush3.msra.mxu1 %v16267_v50  ;;  %v16145_v50 = vld [vmem:[%s33043_s16 + $0x48] sm:$0xff] }
 0x90a   : > { %27681 = vmatprep.subr.mxu0 %v28689_v24  ;;  %v12968_v48 = vpop.f32.mrf.mxu0  ;;  %27690 = vmatprep.subr.mxu1 %v28689_v24 }
 0x90b   : > { %27682 = vmatpush3.msra.mxu0 %v31674_v29  ;;  %v12969_v7 = vadd.f32 %v12968_v48, %v12889_v23  ;;  %v13203_v55 = vpop.f32.mrf.mxu1  ;;  %27691 = vmatpush3.msra.mxu1 %v16274_v46  ;;  %v31887_v46 = vand.u32 4294901760, %v16146_v60 }
 0x90c   : > { %27697 = vmatprep.subr.mxu0 %v28689_v24  ;;  %27684 = vmatmul.mubr.f32.vlgmr.msra.gmra.mxu0 %v31274_v3  ;;  %v27245_v63 = vpop.f32.mrf.mxu0 }
 0x90d   : > { %27698 = vmatpush3.msra.mxu0 %v31654_v17  ;;  %v27278_v2 = vpop.f32.mrf.mxu1  ;;  %27692 = vmatprep.subr.mxu1 %v28689_v24  ;;  %v13046_v35 = vadd.f32 %v13045_v27, %v12969_v7  ;;  %v16144_v7 = vld [vmem:[%s33043_s16 + $0x40] sm:$0xff]  ;;  %v31902_v63 = vand.u32 4294901760, %v16145_v50 }
 0x90e   : > { %27699 = vmatprep.subr.mxu0 %v28689_v24  ;;  %27693 = vmatpush3.msra.mxu1 %v16281_v54  ;;  %v31910_v2 = vsub.f32 %v16146_v60, %v31887_v46 }
 0x90f   : > { %27700 = vmatpush3.msra.mxu0 %v31670_v20  ;;  %27694 = vmatprep.mubr.msk.f32.mxu1 %vm28690_vm1, %v28689_v24  ;;  %v31922_v37 = vsub.f32 %v16145_v50, %v31902_v63 }
 0x910   : > { %27701 = vmatprep.subr.mxu0 %v28689_v24  ;;  %27705 = vmatprep.mubr.msk.f32.mxu0 %vm28690_vm1, %v28689_v24 }
 0x911   : > { %27702 = vmatpush3.msra.mxu0 %v31680_v42  ;;  %27708 = vmatprep.subr.mxu1 %v28689_v24  ;;  %v16758_v42 = vsub.f32 %v31806_v12, %v16757_v22  ;;  %v17242_v52 = vand.u32 4294901760, %v31922_v37 }
 0x912   : > { %27703 = vmatprep.subr.mxu0 %v28689_v24  ;;  %27695 = vmatmul.mubr.f32.vlgmr.msra.gmra.mxu1 %v31217_v49 }
 0x913   : > { %27704 = vmatpush3.msra.mxu0 %v31692_v34  ;;  %27709 = vmatpush3.msra.mxu1 %v31638_v1 }
 0x914   : > { %27719 = vmatprep.subr.mxu0 %v28689_v24  ;;  %v13128_v40 = vpop.f32.mrf.mxu0  ;;  %27706 = vmatmul.mubr.f32.vlgmr.msra.gmra.mxu0 %v31237_v21 }
 0x915   : > { %v13129_v44 = vadd.f32 %v13128_v40, %v13046_v35  ;;  %v13373_v51 = vpop.f32.mrf.mxu1  ;;  %27720 = vmatpush3.msra.mxu0 %v16258_v53  ;;  %27710 = vmatprep.subr.mxu1 %v28689_v24  ;;  %v31912_v35 = vand.u32 4294901760, %v16144_v7 }
 0x916   : > { %27721 = vmatprep.subr.mxu0 %v28689_v24  ;;  %v27267_v31 = vpop.f32.mrf.mxu0  ;;  %27711 = vmatpush3.msra.mxu1 %v31647_v6 }
 0x917   : > { %v31773_v43 = vadd.f32 %v13203_v55, %v13129_v44  ;;  %v27300_v5 = vpop.f32.mrf.mxu1  ;;  %27722 = vmatpush3.msra.mxu0 %v16265_v18  ;;  %27712 = vmatprep.subr.mxu1 %v28689_v24  ;;  %v16759_v18 = vand.u32 4294901760, %v16758_v42  ;;  %v31900_v55 = vsub.f32 %v16147_v30, %v31877_v15  ;;  %v31930_v44 = vsub.f32 %v16144_v7, %v31912_v35 }
 0x918   : > { %27723 = vmatprep.subr.mxu0 %v28689_v24  ;;  %27713 = vmatpush3.msra.mxu1 %v31656_v13 }
 0x919   : > { %27724 = vmatpush3.msra.mxu0 %v16272_v36  ;;  %27714 = vmatprep.subr.mxu1 %v28689_v24  ;;  %v17228_v39 = vand.u32 4294901760, %v31900_v55 }
 0x91a   : > { %27725 = vmatprep.subr.mxu0 %v28689_v24  ;;  %27715 = vmatpush3.msra.mxu1 %v31674_v29 }
 0x91b   : > { %27726 = vmatpush3.msra.mxu0 %v16279_v32  ;;  %27716 = vmatprep.mubr.msk.f32.mxu1 %vm28690_vm1, %v28689_v24 }
 0x91c   : > { %27727 = vmatprep.mubr.msk.f32.mxu0 %vm28690_vm1, %v28689_v24  ;;  %27730 = vmatprep.subr.mxu1 %v28689_v24 }
 0x91d   : > { %27741 = vmatprep.subr.mxu0 %v28689_v24  ;;  %27717 = vmatmul.mubr.f32.vlgmr.msra.gmra.mxu1 %v31253_v33 }
 0x91e   : > { %v13282_v59 = vpop.f32.mrf.mxu0  ;;  %27728 = vmatmul.mubr.f32.vlgmr.msra.gmra.mxu0 %v31217_v49  ;;  %27731 = vmatpush3.msra.mxu1 %v31638_v1  ;;  %v16744_v1 = vsub.f32 %v31784_v8, %v16743_v57 }
 0x91f   : > { %v13374_v14 = vadd.f32 %v13373_v51, %v13282_v59  ;;  %v13530_v16 = vpop.f32.mrf.mxu1  ;;  %27742 = vmatpush3.msra.mxu0 %v31761_v45  ;;  %27732 = vmatprep.subr.mxu1 %v28689_v24  ;;  %v17235_v51 = vand.u32 4294901760, %v31910_v2 }
 0x920   : > { %27743 = vmatprep.subr.mxu0 %v28689_v24  ;;  %v27289_v17 = vpop.f32.mrf.mxu0  ;;  %27733 = vmatpush3.msra.mxu1 %v31647_v6  ;;  %v16764_v6 = vand.u32 4294901760, %v31814_v0  ;;  %v16745_v20 = vand.u32 4294901760, %v16744_v1 }
 0x921   : > { %v27322_v25 = vpop.f32.mrf.mxu1  ;;  %27744 = vmatpush3.msra.mxu0 %v31771_v4  ;;  %27734 = vmatprep.subr.mxu1 %v28689_v24 }
 0x922   : > { %27745 = vmatprep.subr.mxu0 %v28689_v24  ;;  %27735 = vmatpush3.msra.mxu1 %v31656_v13  ;;  %v16752_v13 = vand.u32 4294901760, %v16751_v28  ;;  %v16151_v25 = vld [vmem:[%s33043_s16 + $0x78] sm:$0xff] }
 0x923   : > { %27746 = vmatpush3.msra.mxu0 %v31786_v9  ;;  %27736 = vmatprep.subr.mxu1 %v28689_v24  ;;  %v31993_v42 = vand.u32 4294901760, %v16151_v25 }
 0x924   : > { %27747 = vmatprep.subr.mxu0 %v28689_v24  ;;  %27737 = vmatpush3.msra.mxu1 %v31674_v29  ;;  %v16765_v29 = vsub.f32 %v31814_v0, %v16764_v6 }
 0x925   : > { %27748 = vmatpush3.msra.mxu0 %v31796_v11  ;;  %27738 = vmatprep.mubr.msk.f32.mxu1 %vm28690_vm1, %v28689_v24 }
 0x926   : > { %27749 = vmatprep.mubr.msk.f32.mxu0 %vm28690_vm1, %v28689_v24  ;;  %27752 = vmatprep.subr.mxu1 %v28689_v24  ;;  %v16766_v19 = vand.u32 4294901760, %v16765_v29  ;;  %v16149_v29 = vld [vmem:[%s33043_s16 + $0x68] sm:$0xff] }
 0x927   : > { %27763 = vmatprep.subr.mxu0 %v28689_v24  ;;  %27739 = vmatmul.mubr.f32.vlgmr.msra.gmra.mxu1 %v31217_v49 }
 0x928   : > { %v13453_v53 = vpop.f32.mrf.mxu0  ;;  %27750 = vmatmul.mubr.f32.vlgmr.msra.gmra.mxu0 %v31274_v3  ;;  %27753 = vmatpush3.msra.mxu1 %v16745_v20 }
 0x929   : > { %v13454_v34 = vadd.f32 %v13453_v53, %v13374_v14  ;;  %v13688_v47 = vpop.f32.mrf.mxu1  ;;  %27764 = vmatpush3.msra.mxu0 %v31784_v8  ;;  %27754 = vmatprep.subr.mxu1 %v28689_v24 }
 0x92a   : > { %27765 = vmatprep.subr.mxu0 %v28689_v24  ;;  %v27311_v36 = vpop.f32.mrf.mxu0  ;;  %27755 = vmatpush3.msra.mxu1 %v16752_v13 }
 0x92b   : > { %v27344_v23 = vpop.f32.mrf.mxu1  ;;  %27766 = vmatpush3.msra.mxu0 %v31794_v58  ;;  %27756 = vmatprep.subr.mxu1 %v28689_v24  ;;  %v13531_v27 = vadd.f32 %v13530_v16, %v13454_v34  ;;  %v17236_v58 = vsub.f32 %v31910_v2, %v17235_v51  ;;  %v16148_v34 = vld [vmem:[%s33043_s16 + $0x60] sm:$0xff]  ;;  %v32018_v36 = vand.u32 4294901760, %v16149_v29 }
 0x92c   : > { %27767 = vmatprep.subr.mxu0 %v28689_v24  ;;  %27757 = vmatpush3.msra.mxu1 %v16759_v18 }
 0x92d   : > { %27768 = vmatpush3.msra.mxu0 %v31806_v12  ;;  %27758 = vmatprep.subr.mxu1 %v28689_v24 }
 0x92e   : > { %27769 = vmatprep.subr.mxu0 %v28689_v24  ;;  %27759 = vmatpush3.msra.mxu1 %v16766_v19 }
 0x92f   : > { %27770 = vmatpush3.msra.mxu0 %v31814_v0  ;;  %27760 = vmatprep.mubr.msk.f32.mxu1 %vm28690_vm1, %v28689_v24 }
 0x930   : > { %27771 = vmatprep.mubr.msk.f32.mxu0 %vm28690_vm1, %v28689_v24  ;;  %27774 = vmatprep.subr.mxu1 %v28689_v24 }
 0x931   : > { %27785 = vmatprep.subr.mxu0 %v28689_v24  ;;  %27761 = vmatmul.mubr.f32.vlgmr.msra.gmra.mxu1 %v31217_v49 }
 0x932   : > { %v13613_v32 = vpop.f32.mrf.mxu0  ;;  %27772 = vmatmul.mubr.f32.vlgmr.msra.gmra.mxu0 %v31237_v21  ;;  %27775 = vmatpush3.msra.mxu1 %v31761_v45 }
 0x933   : > { %v13614_v41 = vadd.f32 %v13613_v32, %v13531_v27  ;;  %v13858_v38 = vpop.f32.mrf.mxu1  ;;  %27786 = vmatpush3.msra.mxu0 %v16743_v57  ;;  %27776 = vmatprep.subr.mxu1 %v28689_v24  ;;  %v17243_v57 = vsub.f32 %v31922_v37, %v17242_v52  ;;  %v32028_v27 = vand.u32 4294901760, %v16148_v34  ;;  %v32038_v32 = vsub.f32 %v16149_v29, %v32018_v36 }
 0x934   : > { %27787 = vmatprep.subr.mxu0 %v28689_v24  ;;  %v27333_v61 = vpop.f32.mrf.mxu0  ;;  %27777 = vmatpush3.msra.mxu1 %v31771_v4 }
 0x935   : > { %v31889_v48 = vadd.f32 %v13688_v47, %v13614_v41  ;;  %v27366_v54 = vpop.f32.mrf.mxu1  ;;  %27788 = vmatpush3.msra.mxu0 %v16750_v10  ;;  %27778 = vmatprep.subr.mxu1 %v28689_v24  ;;  %v17244_v0 = vand.u32 4294901760, %v17243_v57  ;;  %v32016_v47 = vsub.f32 %v16151_v25, %v31993_v42  ;;  %v32046_v50 = vsub.f32 %v16148_v34, %v32028_v27 }
 0x936   : > { %27789 = vmatprep.subr.mxu0 %v28689_v24  ;;  %27779 = vmatpush3.msra.mxu1 %v31786_v9  ;;  %v17727_v7 = vand.u32 4294901760, %v32038_v32 }
 0x937   : > { %27790 = vmatpush3.msra.mxu0 %v16757_v22  ;;  %27780 = vmatprep.subr.mxu1 %v28689_v24  ;;  %v17713_v41 = vand.u32 4294901760, %v32016_v47 }
 0x938   : > { %27791 = vmatprep.subr.mxu0 %v28689_v24  ;;  %27781 = vmatpush3.msra.mxu1 %v31796_v11 }
 0x939   : > { %27792 = vmatpush3.msra.mxu0 %v16764_v6  ;;  %27782 = vmatprep.mubr.msk.f32.mxu1 %vm28690_vm1, %v28689_v24  ;;  %v16150_v6 = vld [vmem:[%s33043_s16 + $0x70] sm:$0xff]  ;;  %v17714_v54 = vsub.f32 %v32016_v47, %v17713_v41 }
 0x93a   : > { %27793 = vmatprep.mubr.msk.f32.mxu0 %vm28690_vm1, %v28689_v24  ;;  %27796 = vmatprep.subr.mxu1 %v28689_v24  ;;  %v32005_v18 = vand.u32 4294901760, %v16150_v6 }
 0x93b   : > { %27807 = vmatprep.subr.mxu0 %v28689_v24  ;;  %27783 = vmatmul.mubr.f32.vlgmr.msra.gmra.mxu1 %v31253_v33 }
 0x93c   : > { %v13767_v40 = vpop.f32.mrf.mxu0  ;;  %27794 = vmatmul.mubr.f32.vlgmr.msra.gmra.mxu0 %v31217_v49  ;;  %27797 = vmatpush3.msra.mxu1 %v31761_v45  ;;  %v17229_v45 = vsub.f32 %v31900_v55, %v17228_v39  ;;  %v32026_v23 = vsub.f32 %v16150_v6, %v32005_v18 }
 0x93d   : > { %v13859_v56 = vadd.f32 %v13858_v38, %v13767_v40  ;;  %v14015_v31 = vpop.f32.mrf.mxu1  ;;  %27808 = vmatpush3.msra.mxu0 %v31877_v15  ;;  %27798 = vmatprep.subr.mxu1 %v28689_v24 }
 0x93e   : > { %27809 = vmatprep.subr.mxu0 %v28689_v24  ;;  %v27355_v5 = vpop.f32.mrf.mxu0  ;;  %27799 = vmatpush3.msra.mxu1 %v31771_v4  ;;  %v17249_v4 = vand.u32 4294901760, %v31930_v44  ;;  %v17230_v12 = vand.u32 4294901760, %v17229_v45  ;;  %v17720_v61 = vand.u32 4294901760, %v32026_v23 }
 0x93f   : > { %v27388_v8 = vpop.f32.mrf.mxu1  ;;  %27810 = vmatpush3.msra.mxu0 %v31887_v46  ;;  %27800 = vmatprep.subr.mxu1 %v28689_v24  ;;  %v18093_v5 = vsel %vm6702_vm2, %v31667_v26, 0 }
 0x940   : > { %27811 = vmatprep.subr.mxu0 %v28689_v24  ;;  %27801 = vmatpush3.msra.mxu1 %v31786_v9  ;;  %v17237_v9 = vand.u32 4294901760, %v17236_v58 }
 0x941   : > { %27812 = vmatpush3.msra.mxu0 %v31902_v63  ;;  %27802 = vmatprep.subr.mxu1 %v28689_v24 }
 0x942   : > { %27813 = vmatprep.subr.mxu0 %v28689_v24  ;;  %27803 = vmatpush3.msra.mxu1 %v31796_v11  ;;  %v17250_v11 = vsub.f32 %v31930_v44, %v17249_v4 }
 0x943   : > { %27814 = vmatpush3.msra.mxu0 %v31912_v35  ;;  %27804 = vmatprep.mubr.msk.f32.mxu1 %vm28690_vm1, %v28689_v24 }
 0x944   : > { %27815 = vmatprep.mubr.msk.f32.mxu0 %vm28690_vm1, %v28689_v24  ;;  %27818 = vmatprep.subr.mxu1 %v28689_v24  ;;  %v17251_v17 = vand.u32 4294901760, %v17250_v11 }
 0x945   : > { %27829 = vmatprep.subr.mxu0 %v28689_v24  ;;  %27805 = vmatmul.mubr.f32.vlgmr.msra.gmra.mxu1 %v31217_v49 }
 0x946   : > { %v13938_v59 = vpop.f32.mrf.mxu0  ;;  %27816 = vmatmul.mubr.f32.vlgmr.msra.gmra.mxu0 %v31274_v3  ;;  %27819 = vmatpush3.msra.mxu1 %v17230_v12 }
 0x947   : > { %v13939_v10 = vadd.f32 %v13938_v59, %v13859_v56  ;;  %v14173_v14 = vpop.f32.mrf.mxu1  ;;  %27830 = vmatpush3.msra.mxu0 %v31900_v55  ;;  %27820 = vmatprep.subr.mxu1 %v28689_v24 }
 0x948   : > { %27831 = vmatprep.subr.mxu0 %v28689_v24  ;;  %v27377_v16 = vpop.f32.mrf.mxu0  ;;  %27821 = vmatpush3.msra.mxu1 %v17237_v9 }
 0x949   : > { %v27410_v1 = vpop.f32.mrf.mxu1  ;;  %27832 = vmatpush3.msra.mxu0 %v31910_v2  ;;  %27822 = vmatprep.subr.mxu1 %v28689_v24  ;;  %v14016_v22 = vadd.f32 %v14015_v31, %v13939_v10  ;;  %v17715_v2 = vand.u32 4294901760, %v17714_v54 }
 0x94a   : > { %27833 = vmatprep.subr.mxu0 %v28689_v24  ;;  %27823 = vmatpush3.msra.mxu1 %v17244_v0 }
 0x94b   : > { %27834 = vmatpush3.msra.mxu0 %v31922_v37  ;;  %27824 = vmatprep.subr.mxu1 %v28689_v24 }
 0x94c   : > { %27835 = vmatprep.subr.mxu0 %v28689_v24  ;;  %27825 = vmatpush3.msra.mxu1 %v17251_v17 }
 0x94d   : > { %27836 = vmatpush3.msra.mxu0 %v31930_v44  ;;  %27826 = vmatprep.mubr.msk.f32.mxu1 %vm28690_vm1, %v28689_v24 }
 0x94e   : > { %27837 = vmatprep.mubr.msk.f32.mxu0 %vm28690_vm1, %v28689_v24  ;;  %27840 = vmatprep.subr.mxu1 %v28689_v24 }
 0x94f   : > { %27851 = vmatprep.subr.mxu0 %v28689_v24  ;;  %v14098_v28 = vpop.f32.mrf.mxu0  ;;  %27827 = vmatmul.mubr.f32.vlgmr.msra.gmra.mxu1 %v31217_v49 }
 0x950   : > { %v14099_v20 = vadd.f32 %v14098_v28, %v14016_v22  ;;  %27838 = vmatmul.mubr.f32.vlgmr.msra.gmra.mxu0 %v31237_v21  ;;  %27841 = vmatpush3.msra.mxu1 %v31877_v15 }
 0x951   : > { %27852 = vmatpush3.msra.mxu0 %v17228_v39  ;;  %27842 = vmatprep.subr.mxu1 %v28689_v24  ;;  %v27399_v13 = vpop.f32.mrf.mxu0 }
 0x952   : > { %v32001_v53 = vadd.f32 %v14173_v14, %v14099_v20  ;;  %27853 = vmatprep.subr.mxu0 %v28689_v24  ;;  %27843 = vmatpush3.msra.mxu1 %v31887_v46 }
 0x953   : > { %27854 = vmatpush3.msra.mxu0 %v17235_v51  ;;  %27844 = vmatprep.subr.mxu1 %v28689_v24 }
 0x954   : > { %27855 = vmatprep.subr.mxu0 %v28689_v24  ;;  %27845 = vmatpush3.msra.mxu1 %v31902_v63 }
 0x955   : > { %27856 = vmatpush3.msra.mxu0 %v17242_v52  ;;  %27846 = vmatprep.subr.mxu1 %v28689_v24  ;;  %v14362_v19 = vpop.f32.mrf.mxu1 }
 0x956   : > { %27857 = vmatprep.subr.mxu0 %v28689_v24  ;;  %27847 = vmatpush3.msra.mxu1 %v31912_v35 }
 0x957   : > { %27858 = vmatpush3.msra.mxu0 %v17249_v4  ;;  %27848 = vmatprep.mubr.msk.f32.mxu1 %vm28690_vm1, %v28689_v24  ;;  %v14271_v30 = vpop.f32.mrf.mxu0  ;;  %v27432_v60 = vpop.f32.mrf.mxu1 }
 0x958   : > { %27859 = vmatprep.mubr.msk.f32.mxu0 %vm28690_vm1, %v28689_v24  ;;  %27862 = vmatprep.subr.mxu1 %v28689_v24  ;;  %v14363_v40 = vadd.f32 %v14362_v19, %v14271_v30 }
 0x959   : > { %27873 = vmatprep.subr.mxu0 %v28689_v24  ;;  %27849 = vmatmul.mubr.f32.vlgmr.msra.gmra.mxu1 %v31253_v33  ;;  %v27421_v38 = vpop.f32.mrf.mxu0 }
 0x95a   : > { %27860 = vmatmul.mubr.f32.vlgmr.msra.gmra.mxu0 %v31217_v49  ;;  %27863 = vmatpush3.msra.mxu1 %v31877_v15  ;;  %v17721_v15 = vsub.f32 %v32026_v23, %v17720_v61 }
 0x95b   : > { %27874 = vmatpush3.msra.mxu0 %v31993_v42  ;;  %27864 = vmatprep.subr.mxu1 %v28689_v24 }
 0x95c   : > { %27875 = vmatprep.subr.mxu0 %v28689_v24  ;;  %27865 = vmatpush3.msra.mxu1 %v31887_v46  ;;  %v17734_v46 = vand.u32 4294901760, %v32046_v50  ;;  %v17722_v44 = vand.u32 4294901760, %v17721_v15 }
 0x95d   : > { %27876 = vmatpush3.msra.mxu0 %v32005_v18  ;;  %27866 = vmatprep.subr.mxu1 %v28689_v24 }
 0x95e   : > { %27877 = vmatprep.subr.mxu0 %v28689_v24  ;;  %27867 = vmatpush3.msra.mxu1 %v31902_v63  ;;  %v17728_v63 = vsub.f32 %v32038_v32, %v17727_v7 }
 0x95f   : > { %27878 = vmatpush3.msra.mxu0 %v32018_v36  ;;  %27868 = vmatprep.subr.mxu1 %v28689_v24  ;;  %v14442_v55 = vpop.f32.mrf.mxu0 }
 0x960   : > { %27879 = vmatprep.subr.mxu0 %v28689_v24  ;;  %27869 = vmatpush3.msra.mxu1 %v31912_v35  ;;  %v17735_v35 = vsub.f32 %v32046_v50, %v17734_v46  ;;  %v14443_v56 = vadd.f32 %v14442_v55, %v14363_v40  ;;  %v17729_v31 = vand.u32 4294901760, %v17728_v63 }
 0x961   : > { %27880 = vmatpush3.msra.mxu0 %v32028_v27  ;;  %27870 = vmatprep.mubr.msk.f32.mxu1 %vm28690_vm1, %v28689_v24  ;;  %v14519_v37 = vpop.f32.mrf.mxu1  ;;  %v27443_v39 = vpop.f32.mrf.mxu0 }
 0x962   : > { %27881 = vmatprep.mubr.msk.f32.mxu0 %vm28690_vm1, %v28689_v24  ;;  %27884 = vmatprep.subr.mxu1 %v28689_v24  ;;  %v17736_v45 = vand.u32 4294901760, %v17735_v35  ;;  %v14520_v52 = vadd.f32 %v14519_v37, %v14443_v56  ;;  %v18997_v39 = vsel %vm6702_vm2, %v31889_v48, 0 }
 0x963   : > { %27895 = vmatprep.subr.mxu0 %v28689_v24  ;;  %27871 = vmatmul.mubr.f32.vlgmr.msra.gmra.mxu1 %v31217_v49  ;;  %v27454_v51 = vpop.f32.mrf.mxu1 }
 0x964   : > { %27882 = vmatmul.mubr.f32.vlgmr.msra.gmra.mxu0 %v31274_v3  ;;  %27885 = vmatpush3.msra.mxu1 %v17715_v2  ;;  %v32092_v3 = vand.u32 4294901760, %v18093_v5  ;;  %v19068_v51 = vand.u32 4294901760, %v18997_v39 }
 0x965   : > { %27896 = vmatpush3.msra.mxu0 %v32016_v47  ;;  %27886 = vmatprep.subr.mxu1 %v28689_v24 }
 0x966   : > { %27897 = vmatprep.subr.mxu0 %v28689_v24  ;;  %27887 = vmatpush3.msra.mxu1 %v17722_v44  ;;  %v32104_v57 = vsub.f32 %v18093_v5, %v32092_v3  ;;  %v19069_v5 = vsub.f32 %v18997_v39, %v19068_v51 }
 0x967   : > { %27898 = vmatpush3.msra.mxu0 %v32026_v23  ;;  %27888 = vmatprep.subr.mxu1 %v28689_v24 }
 0x968   : > { %27899 = vmatprep.subr.mxu0 %v28689_v24  ;;  %27889 = vmatpush3.msra.mxu1 %v17729_v31  ;;  %v18166_v0 = vand.u32 4294901760, %v32104_v57 }
 0x969   : > { %27900 = vmatpush3.msra.mxu0 %v32038_v32  ;;  %27890 = vmatprep.subr.mxu1 %v28689_v24  ;;  %v14602_v8 = vpop.f32.mrf.mxu0 }
 0x96a   : > { %27901 = vmatprep.subr.mxu0 %v28689_v24  ;;  %27891 = vmatpush3.msra.mxu1 %v17736_v45  ;;  %v14603_v26 = vadd.f32 %v14602_v8, %v14520_v52  ;;  %v18167_v14 = vsub.f32 %v32104_v57, %v18166_v0 }
 0x96b   : > { %27902 = vmatpush3.msra.mxu0 %v32046_v50  ;;  %27892 = vmatprep.mubr.msk.f32.mxu1 %vm28690_vm1, %v28689_v24  ;;  %v14677_v58 = vpop.f32.mrf.mxu1  ;;  %v27465_v4 = vpop.f32.mrf.mxu0 }
 0x96c   : > { %27903 = vmatprep.mubr.msk.f32.mxu0 %vm28690_vm1, %v28689_v24  ;;  %27906 = vmatprep.subr.mxu1 %v28689_v24  ;;  %v14678_v12 = vadd.f32 %v14677_v58, %v14603_v26  ;;  %v18168_v25 = vand.u32 4294901760, %v18167_v14 }
 0x96d   : > { %27917 = vmatprep.subr.mxu0 %v28689_v24  ;;  %27893 = vmatmul.mubr.f32.vlgmr.msra.gmra.mxu1 %v31217_v49  ;;  %v27476_v9 = vpop.f32.mrf.mxu1 }
 0x96e   : > { %27904 = vmatmul.mubr.f32.vlgmr.msra.gmra.mxu0 %v31237_v21  ;;  %27907 = vmatpush3.msra.mxu1 %v31993_v42  ;;  %v18096_v11 = vsel %vm6702_vm2, %v14678_v12, 0 }
 0x96f   : > { %27918 = vmatpush3.msra.mxu0 %v17713_v41  ;;  %v32113_v59 = vand.u32 4294901760, %v18096_v11  ;;  %27908 = vmatprep.subr.mxu1 %v28689_v24 }
 0x970   : > { %27919 = vmatprep.subr.mxu0 %v28689_v24  ;;  %27909 = vmatpush3.msra.mxu1 %v32005_v18 }
 0x971   : > { %v18206_v10 = vsub.f32 %v18096_v11, %v32113_v59  ;;  %27920 = vmatpush3.msra.mxu0 %v17720_v61  ;;  %27910 = vmatprep.subr.mxu1 %v28689_v24 }
 0x972   : > { %27921 = vmatprep.subr.mxu0 %v28689_v24  ;;  %27911 = vmatpush3.msra.mxu1 %v32018_v36 }
 0x973   : > { %27922 = vmatpush3.msra.mxu0 %v17727_v7  ;;  %27912 = vmatprep.subr.mxu1 %v28689_v24  ;;  %v14756_v21 = vpop.f32.mrf.mxu0  ;;  %v18207_v16 = vand.u32 4294901760, %v18206_v10 }
 0x974   : > { %27923 = vmatprep.subr.mxu0 %v28689_v24  ;;  %27913 = vmatpush3.msra.mxu1 %v32028_v27 }
 0x975   : > { %27924 = vmatpush3.msra.mxu0 %v17734_v46  ;;  %27925 = vmatprep.mubr.msk.f32.mxu0 %vm28690_vm1, %v28689_v24  ;;  %v14847_v17 = vpop.f32.mrf.mxu1  ;;  %v27487_v1 = vpop.f32.mrf.mxu0  ;;  %v18208_v28 = vsub.f32 %v18206_v10, %v18207_v16 }
 0x976   : > { %27914 = vmatprep.mubr.msk.f32.mxu1 %vm28690_vm1, %v28689_v24  ;;  %27926 = vmatmul.mubr.f32.vlgmr.msra.gmra.mxu0 %v31217_v49 }
 0x977   : > { %27928 = vmatprep.subr.mxu1 %v28689_v24  ;;  %27939 = vmatprep.subr.mxu0 %v28689_v24  ;;  %v27498_v22 = vpop.f32.mrf.mxu1  ;;  %v18209_v20 = vand.u32 4294901760, %v18208_v28 }
 0x978   : > { %27915 = vmatmul.mubr.f32.vlgmr.msra.gmra.mxu1 %v31253_v33  ;;  %27940 = vmatpush3.xpose.msra.mxu0 %v32113_v59  ;;  %v18545_v33 = vsel %vm6702_vm2, %v31773_v43, 0  ;;  %v14848_v43 = vadd.f32 %v14847_v17, %v14756_v21 }
 0x979   : > { %27929 = vmatpush3.msra.mxu1 %v31993_v42  ;;  %27941 = vmatprep.mubr.msk.f32.mxu0 %vm28690_vm1, %v28689_v24  ;;  %v32161_v29 = vand.u32 4294901760, %v18545_v33 }
 0x97a   : > { %27930 = vmatprep.subr.mxu1 %v28689_v24  ;;  %27949 = vmatprep.subr.mxu0 %v28689_v24 }
 0x97b   : > { %27931 = vmatpush3.msra.mxu1 %v32005_v18  ;;  %27942 = vmatmul.mubr.f32.vlgmr.msra.gmra.mxu0 %v18168_v25  ;;  %v18617_v47 = vsub.f32 %v18545_v33, %v32161_v29  ;;  %v19449_v25 = vsel %vm6702_vm2, %v32001_v53, 0 }
 0x97c   : > { %27932 = vmatprep.subr.mxu1 %v28689_v24  ;;  %27950 = vmatpush3.xpose.msra.mxu0 %v18206_v10 }
 0x97d   : > { %27933 = vmatpush3.msra.mxu1 %v32018_v36  ;;  %27936 = vmatprep.mubr.msk.f32.mxu1 %vm28690_vm1, %v28689_v24  ;;  %v14927_v6 = vpop.f32.mrf.mxu0  ;;  %v18618_v19 = vand.u32 4294901760, %v18617_v47 }
 0x97e   : > { %27934 = vmatprep.subr.mxu1 %v28689_v24  ;;  %27951 = vmatprep.mubr.msk.f32.mxu0 %vm28690_vm1, %v28689_v24  ;;  %v14928_v34 = vadd.f32 %v14927_v6, %v14848_v43 }
 0x97f   : > { %27935 = vmatpush3.msra.mxu1 %v32028_v27  ;;  %27952 = vmatmul.mubr.f32.vlgmr.msra.gmra.mxu0 %v32104_v57  ;;  %v15004_v42 = vpop.f32.mrf.mxu1  ;;  %v27509_v13 = vpop.f32.mrf.mxu0  ;;  %v18619_v41 = vsub.f32 %v18617_v47, %v18618_v19 }
 0x980   : > { %27937 = vmatmul.mubr.f32.vlgmr.msra.gmra.mxu1 %v31217_v49  ;;  %27944 = vmatprep.subr.mxu1 %v28689_v24  ;;  %v15005_v49 = vadd.f32 %v15004_v42, %v14928_v34 }
 0x981   : > { %27959 = vmatprep.subr.mxu0 %v28689_v24  ;;  %27945 = vmatpush3.xpose.msra.mxu1 %v18209_v20  ;;  %v27520_v18 = vpop.f32.mrf.mxu1  ;;  %v18620_v54 = vand.u32 4294901760, %v18619_v41  ;;  %v19520_v20 = vand.u32 4294901760, %v19449_v25 }
 0x982   : > { %27960 = vmatpush3.xpose.msra.mxu0 %v18207_v16  ;;  %27946 = vmatprep.mubr.msk.f32.mxu1 %vm28690_vm1, %v28689_v24 }
 0x983   : > { %27961 = vmatprep.mubr.msk.f32.mxu0 %vm28690_vm1, %v28689_v24  ;;  %27954 = vmatprep.subr.mxu1 %v28689_v24 }
 0x984   : > { %27947 = vmatmul.mubr.f32.vlgmr.msra.gmra.mxu1 %v32092_v3  ;;  %27969 = vmatprep.subr.mxu0 %v28689_v24 }
 0x985   : > { %27962 = vmatmul.mubr.f32.vlgmr.msra.gmra.mxu0 %v32092_v3  ;;  %27955 = vmatpush3.xpose.msra.mxu1 %v32113_v59 }
 0x986   : > { %27956 = vmatprep.mubr.msk.f32.mxu1 %vm28690_vm1, %v28689_v24  ;;  %27964 = vmatprep.subr.mxu1 %v28689_v24 }
 0x987   : > { %v15087_v36 = vpop.f32.mrf.mxu0  ;;  %27971 = vmatprep.mubr.msk.f32.mxu0 %vm28690_vm1, %v28689_v24 }
 0x988   : > { %27957 = vmatmul.mubr.f32.vlgmr.msra.gmra.mxu1 %v18166_v0  ;;  %v15088_v23 = vadd.f32 %v15087_v36, %v15005_v49 }
 0x989   : > { %27965 = vmatpush3.xpose.msra.mxu1 %v32113_v59  ;;  %v15162_v27 = vpop.f32.mrf.mxu1  ;;  %v27531_v30 = vpop.f32.mrf.mxu0  ;;  %27966 = vmatprep.mubr.msk.f32.mxu1 %vm28690_vm1, %v28689_v24 }
 0x98a   : > { %v15163_v60 = vadd.f32 %v15162_v27, %v15088_v23  ;;  %27974 = vmatprep.subr.mxu1 %v28689_v24 }
 0x98b   : > { %v27542_v32 = vpop.f32.mrf.mxu1 }
 0x98c   : > { %v18548_v38 = vsel %vm6702_vm2, %v15163_v60, 0  ;;  %27967 = vmatmul.mubr.f32.vlgmr.msra.gmra.mxu1 %v32092_v3  ;;  %v19070_v3 = vand.u32 4294901760, %v19069_v5 }
 0x98d   : > { %v18581_v50 = vand.u32 4294901760, %v18548_v38  ;;  %27976 = vmatprep.mubr.msk.f32.mxu1 %vm28690_vm1, %v28689_v24 }
 0x98e   : > { %v19071_v57 = vsub.f32 %v19069_v5, %v19070_v3 }
 0x98f   : > { %v18658_v61 = vsub.f32 %v18548_v38, %v18581_v50  ;;  %27970 = vmatpush3.xpose.msra.mxu0 %v18581_v50 }
 0x990   : > { %27979 = vmatprep.subr.mxu0 %v28689_v24  ;;  %v19072_v0 = vand.u32 4294901760, %v19071_v57 }
 0x991   : > { %v18659_v7 = vand.u32 4294901760, %v18658_v61  ;;  %v15241_v15 = vpop.f32.mrf.mxu0 }
 0x992   : > { %27972 = vmatmul.mubr.f32.vlgmr.msra.gmra.mxu0 %v18620_v54 }
 0x993   : > { %v15332_v46 = vpop.f32.mrf.mxu1  ;;  %v27553_v55 = vpop.f32.mrf.mxu0  ;;  %27980 = vmatpush3.xpose.msra.mxu0 %v18658_v61  ;;  %27981 = vmatprep.mubr.msk.f32.mxu0 %vm28690_vm1, %v28689_v24  ;;  %v18660_v2 = vsub.f32 %v18658_v61, %v18659_v7 }
 0x994   : > { %27989 = vmatprep.subr.mxu0 %v28689_v24  ;;  %v15333_v56 = vadd.f32 %v15332_v46, %v15241_v15 }
 0x995   : > { %v27564_v63 = vpop.f32.mrf.mxu1  ;;  %v18661_v37 = vand.u32 4294901760, %v18660_v2 }
 0x996   : > { %27982 = vmatmul.mubr.f32.vlgmr.msra.gmra.mxu0 %v18617_v47 }
 0x997   : > { %27975 = vmatpush3.xpose.msra.mxu1 %v18661_v37  ;;  %27990 = vmatpush3.xpose.msra.mxu0 %v18659_v7 }
 0x998   : > { %27991 = vmatprep.mubr.msk.f32.mxu0 %vm28690_vm1, %v28689_v24  ;;  %27984 = vmatprep.subr.mxu1 %v28689_v24 }
 0x999   : > { %27999 = vmatprep.subr.mxu0 %v28689_v24 }
 0x99a   : > { %27977 = vmatmul.mubr.f32.vlgmr.msra.gmra.mxu1 %v32161_v29  ;;  %27992 = vmatmul.mubr.f32.vlgmr.msra.gmra.mxu0 %v32161_v29 }
 0x99b   : > { %v15412_v40 = vpop.f32.mrf.mxu0  ;;  %27985 = vmatpush3.xpose.msra.mxu1 %v18581_v50  ;;  %27986 = vmatprep.mubr.msk.f32.mxu1 %vm28690_vm1, %v28689_v24 }
 0x99c   : > { %27994 = vmatprep.subr.mxu1 %v28689_v24  ;;  %28001 = vmatprep.mubr.msk.f32.mxu0 %vm28690_vm1, %v28689_v24  ;;  %v15413_v48 = vadd.f32 %v15412_v40, %v15333_v56 }
 0x99d   : > { %v15489_v44 = vpop.f32.mrf.mxu1  ;;  %v27575_v35 = vpop.f32.mrf.mxu0 }
 0x99e   : > { %27987 = vmatmul.mubr.f32.vlgmr.msra.gmra.mxu1 %v18618_v19  ;;  %v15490_v45 = vadd.f32 %v15489_v44, %v15413_v48 }
 0x99f   : > { %v27586_v31 = vpop.f32.mrf.mxu1  ;;  %27995 = vmatpush3.xpose.msra.mxu1 %v18581_v50  ;;  %27996 = vmatprep.mubr.msk.f32.mxu1 %vm28690_vm1, %v28689_v24 }
 0x9a0   : > { %28004 = vmatprep.subr.mxu1 %v28689_v24 }
 0x9a2   : > { %27997 = vmatmul.mubr.f32.vlgmr.msra.gmra.mxu1 %v32161_v29  ;;  %v19521_v29 = vsub.f32 %v19449_v25, %v19520_v20 }
 0x9a3   : > { %28006 = vmatprep.mubr.msk.f32.mxu1 %vm28690_vm1, %v28689_v24 }
 0x9a4   : > { %v19522_v34 = vand.u32 4294901760, %v19521_v29 }
 0x9a5   : > { %v15572_v52 = vpop.f32.mrf.mxu0 }
 0x9a6   : > { %v15573_v8 = vadd.f32 %v15572_v52, %v15490_v45  ;;  %v19523_v27 = vsub.f32 %v19521_v29, %v19522_v34 }
 0x9a7   : > { %v15647_v26 = vpop.f32.mrf.mxu1  ;;  %v27597_v58 = vpop.f32.mrf.mxu0 }
 0x9a8   : > { %v15648_v4 = vadd.f32 %v15647_v26, %v15573_v8  ;;  %v19524_v41 = vand.u32 4294901760, %v19523_v27 }
 0x9a9   : > { %v27608_v12 = vpop.f32.mrf.mxu1 }
 0x9aa   : > { %v19000_v9 = vsel %vm6702_vm2, %v15648_v4, 0 }
 0x9ab   : > { %v19033_v11 = vand.u32 4294901760, %v19000_v9 }
 0x9ad   : > { %v19110_v59 = vsub.f32 %v19000_v9, %v19033_v11  ;;  %28000 = vmatpush3.xpose.msra.mxu0 %v19033_v11 }
 0x9ae   : > { %28009 = vmatprep.subr.mxu0 %v28689_v24 }
 0x9af   : > { %v19111_v10 = vand.u32 4294901760, %v19110_v59  ;;  %v15726_v21 = vpop.f32.mrf.mxu0 }
 0x9b0   : > { %28002 = vmatmul.mubr.f32.vlgmr.msra.gmra.mxu0 %v19072_v0 }
 0x9b1   : > { %v15817_v14 = vpop.f32.mrf.mxu1  ;;  %v27619_v16 = vpop.f32.mrf.mxu0  ;;  %28010 = vmatpush3.xpose.msra.mxu0 %v19110_v59  ;;  %28011 = vmatprep.mubr.msk.f32.mxu0 %vm28690_vm1, %v28689_v24  ;;  %v19112_v17 = vsub.f32 %v19110_v59, %v19111_v10 }
 0x9b2   : > { %28019 = vmatprep.subr.mxu0 %v28689_v24  ;;  %v15818_v42 = vadd.f32 %v15817_v14, %v15726_v21 }
 0x9b3   : > { %v27630_v1 = vpop.f32.mrf.mxu1  ;;  %v19113_v22 = vand.u32 4294901760, %v19112_v17 }
 0x9b4   : > { %28012 = vmatmul.mubr.f32.vlgmr.msra.gmra.mxu0 %v19069_v5 }
 0x9b5   : > { %28005 = vmatpush3.xpose.msra.mxu1 %v19113_v22  ;;  %28020 = vmatpush3.xpose.msra.mxu0 %v19111_v10 }
 0x9b6   : > { %28021 = vmatprep.mubr.msk.f32.mxu0 %vm28690_vm1, %v28689_v24  ;;  %28014 = vmatprep.subr.mxu1 %v28689_v24 }
 0x9b7   : > { %28029 = vmatprep.subr.mxu0 %v28689_v24 }
 0x9b8   : > { %28007 = vmatmul.mubr.f32.vlgmr.msra.gmra.mxu1 %v19068_v51  ;;  %28022 = vmatmul.mubr.f32.vlgmr.msra.gmra.mxu0 %v19068_v51 }
 0x9b9   : > { %v15897_v28 = vpop.f32.mrf.mxu0  ;;  %28015 = vmatpush3.xpose.msra.mxu1 %v19033_v11  ;;  %28016 = vmatprep.mubr.msk.f32.mxu1 %vm28690_vm1, %v28689_v24 }
 0x9ba   : > { %28024 = vmatprep.subr.mxu1 %v28689_v24  ;;  %28031 = vmatprep.mubr.msk.f32.mxu0 %vm28690_vm1, %v28689_v24  ;;  %v15898_v53 = vadd.f32 %v15897_v28, %v15818_v42 }
 0x9bb   : > { %v15974_v33 = vpop.f32.mrf.mxu1  ;;  %v27641_v6 = vpop.f32.mrf.mxu0 }
 0x9bc   : > { %28017 = vmatmul.mubr.f32.vlgmr.msra.gmra.mxu1 %v19070_v3  ;;  %v15975_v43 = vadd.f32 %v15974_v33, %v15898_v53 }
 0x9bd   : > { %v27652_v13 = vpop.f32.mrf.mxu1  ;;  %28025 = vmatpush3.xpose.msra.mxu1 %v19033_v11  ;;  %28026 = vmatprep.mubr.msk.f32.mxu1 %vm28690_vm1, %v28689_v24 }
 0x9be   : > { %28034 = vmatprep.subr.mxu1 %v28689_v24 }
 0x9c0   : > { %28027 = vmatmul.mubr.f32.vlgmr.msra.gmra.mxu1 %v19068_v51 }
 0x9c1   : > { %28036 = vmatprep.mubr.msk.f32.mxu1 %vm28690_vm1, %v28689_v24 }
 0x9c3   : > { %v16057_v18 = vpop.f32.mrf.mxu0 }
 0x9c4   : > { %v16058_v47 = vadd.f32 %v16057_v18, %v15975_v43  ;;  %v16132_v49 = vpop.f32.mrf.mxu1 }
 0x9c5   : > { %v27663_v36 = vpop.f32.mrf.mxu0 }
 0x9c6   : > { %v16133_v19 = vadd.f32 %v16132_v49, %v16058_v47  ;;  %v27674_v23 = vpop.f32.mrf.mxu1 }
 0x9c8   : > { %v19452_v30 = vsel %vm6702_vm2, %v16133_v19, 0 }
 0x9c9   : > { %v19485_v60 = vand.u32 4294901760, %v19452_v30 }
 0x9cb   : > { %v19562_v32 = vsub.f32 %v19452_v30, %v19485_v60  ;;  %28030 = vmatpush3.xpose.msra.mxu0 %v19485_v60 }
 0x9cc   : > { %28039 = vmatprep.subr.mxu0 %v28689_v24  ;;  %v16227_v38 = vpop.f32.mrf.mxu0 }
 0x9cd   : > { %v19563_v50 = vand.u32 4294901760, %v19562_v32 }
 0x9ce   : > { %28032 = vmatmul.mubr.f32.vlgmr.msra.gmra.mxu0 %v19524_v41  ;;  %v27685_v61 = vpop.f32.mrf.mxu0 }
 0x9cf   : > { %28040 = vmatpush3.xpose.msra.mxu0 %v19562_v32  ;;  %28041 = vmatprep.mubr.msk.f32.mxu0 %vm28690_vm1, %v28689_v24  ;;  %v19564_v54 = vsub.f32 %v19562_v32, %v19563_v50 }
 0x9d0   : > { %28049 = vmatprep.subr.mxu0 %v28689_v24 }
 0x9d1   : > { %v19565_v7 = vand.u32 4294901760, %v19564_v54 }
 0x9d2   : > { %28042 = vmatmul.mubr.f32.vlgmr.msra.gmra.mxu0 %v19521_v29  ;;  %v16318_v15 = vpop.f32.mrf.mxu1 }
 0x9d3   : > { %28035 = vmatpush3.xpose.msra.mxu1 %v19565_v7  ;;  %28050 = vmatpush3.xpose.msra.mxu0 %v19563_v50  ;;  %v16319_v63 = vadd.f32 %v16318_v15, %v16227_v38 }
 0x9d4   : > { %28051 = vmatprep.mubr.msk.f32.mxu0 %vm28690_vm1, %v28689_v24  ;;  %28044 = vmatprep.subr.mxu1 %v28689_v24  ;;  %v27696_v46 = vpop.f32.mrf.mxu1  ;;  %v16398_v55 = vpop.f32.mrf.mxu0 }
 0x9d5   : > { %28059 = vmatprep.subr.mxu0 %v28689_v24  ;;  %v16399_v37 = vadd.f32 %v16398_v55, %v16319_v63 }
 0x9d6   : > { %28037 = vmatmul.mubr.f32.vlgmr.msra.gmra.mxu1 %v19520_v20  ;;  %28052 = vmatmul.mubr.f32.vlgmr.msra.gmra.mxu0 %v19520_v20  ;;  %v27707_v2 = vpop.f32.mrf.mxu0 }
 0x9d7   : > { %28045 = vmatpush3.xpose.msra.mxu1 %v19485_v60  ;;  %28046 = vmatprep.mubr.msk.f32.mxu1 %vm28690_vm1, %v28689_v24 }
 0x9d8   : > { %28054 = vmatprep.subr.mxu1 %v28689_v24  ;;  %28061 = vmatprep.mubr.msk.f32.mxu0 %vm28690_vm1, %v28689_v24 }
 0x9da   : > { %28047 = vmatmul.mubr.f32.vlgmr.msra.gmra.mxu1 %v19522_v34 }
 0x9db   : > { %28055 = vmatpush3.xpose.msra.mxu1 %v19485_v60  ;;  %28056 = vmatprep.mubr.msk.f32.mxu1 %vm28690_vm1, %v28689_v24 }
 0x9dc   : > { %28064 = vmatprep.subr.mxu1 %v28689_v24 }
 0x9dd   : > { %v16475_v39 = vpop.f32.mrf.mxu1 }
 0x9de   : > { %28057 = vmatmul.mubr.f32.vlgmr.msra.gmra.mxu1 %v19520_v20  ;;  %v16558_v40 = vpop.f32.mrf.mxu0  ;;  %v16476_v35 = vadd.f32 %v16475_v39, %v16399_v37 }
 0x9df   : > { %v27718_v44 = vpop.f32.mrf.mxu1  ;;  %28066 = vmatprep.mubr.msk.f32.mxu1 %vm28690_vm1, %v28689_v24 }
 0x9e0   : > { %v27729_v51 = vpop.f32.mrf.mxu0  ;;  %v16559_v56 = vadd.f32 %v16558_v40, %v16476_v35 }
 0x9e7   : > { %v16633_v31 = vpop.f32.mrf.mxu1 }
 0x9e8   : > { %v16634_v48 = vadd.f32 %v16633_v31, %v16559_v56  ;;  %v16712_v5 = vpop.f32.mrf.mxu0 }
 0x9e9   : > { %v27740_v45 = vpop.f32.mrf.mxu1 }
 0x9ea   : > { %v32254_v52 = vand.u32 4294901760, %v16634_v48  ;;  %v27751_v3 = vpop.f32.mrf.mxu0 }
 0x9ec   : > { %v32257_v8 = vsub.f32 %v16634_v48, %v32254_v52  ;;  %28060 = vmatpush3.msra.mxu0 %v32254_v52 }
 0x9ed   : > { %28069 = vmatprep.subr.mxu0 %v28689_v24 }
 0x9ee   : > { %v20086_v26 = vand.u32 4294901760, %v32257_v8 }
 0x9f0   : > { %v20087_v58 = vsub.f32 %v32257_v8, %v20086_v26 }
 0x9f1   : > { %v16803_v4 = vpop.f32.mrf.mxu1 }
 0x9f2   : > { %v16883_v12 = vpop.f32.mrf.mxu0  ;;  %v20088_v57 = vand.u32 4294901760, %v20087_v58  ;;  %v16804_v9 = vadd.f32 %v16803_v4, %v16712_v5 }
 0x9f3   : > { %v27762_v11 = vpop.f32.mrf.mxu1 }
 0x9f4   : > { %28065 = vmatpush3.msra.mxu1 %v20088_v57  ;;  %v27773_v59 = vpop.f32.mrf.mxu0  ;;  %v16884_v0 = vadd.f32 %v16883_v12, %v16804_v9 }
 0x9f5   : > { %28074 = vmatprep.subr.mxu1 %v28689_v24 }
 0x9fb   : > { %v16960_v10 = vpop.f32.mrf.mxu1 }
 0x9fc   : > { %v17043_v21 = vpop.f32.mrf.mxu0  ;;  %v16961_v14 = vadd.f32 %v16960_v10, %v16884_v0 }
 0x9fd   : > { %v27784_v16 = vpop.f32.mrf.mxu1 }
 0x9fe   : > { %v27795_v17 = vpop.f32.mrf.mxu0  ;;  %v17044_v1 = vadd.f32 %v17043_v21, %v16961_v14  ;;  %v32276_v21 = vld [vmem:[%s795_s10] ss:$0 sm:$0xff]  ;;  %s33096_s10 = sld [smem:[#allocation23_spill]] }
 0xa05   : > { %v17118_v22 = vpop.f32.mrf.mxu1 }
 0xa06   : > { %v17197_v25 = vpop.f32.mrf.mxu0  ;;  %v32266_v28 = vadd.f32 %v17118_v22, %v17044_v1 }
 0xa07   : > { %v27806_v33 = vpop.f32.mrf.mxu1 }
 0xa08   : > { %v27817_v6 = vpop.f32.mrf.mxu0 }
 0xa0f   : > { %v17288_v20 = vpop.f32.mrf.mxu1 }
 0xa10   : > { %v17368_v42 = vpop.f32.mrf.mxu0  ;;  %v17289_v13 = vadd.f32 %v17288_v20, %v17197_v25 }
 0xa11   : > { %v27828_v53 = vpop.f32.mrf.mxu1 }
 0xa12   : > { %v27839_v29 = vpop.f32.mrf.mxu0  ;;  %v17369_v43 = vadd.f32 %v17368_v42, %v17289_v13 }
 0xa19   : > { %v17445_v18 = vpop.f32.mrf.mxu1 }
 0xa1a   : > { %v17528_v34 = vpop.f32.mrf.mxu0  ;;  %v17446_v47 = vadd.f32 %v17445_v18, %v17369_v43 }
 0xa1b   : > { %v27850_v49 = vpop.f32.mrf.mxu1 }
 0xa1c   : > { %v27861_v36 = vpop.f32.mrf.mxu0  ;;  %v17529_v19 = vadd.f32 %v17528_v34, %v17446_v47 }
 0xa23   : > { %v17603_v23 = vpop.f32.mrf.mxu1 }
 0xa24   : > { %v17682_v27 = vpop.f32.mrf.mxu0  ;;  %v32268_v30 = vadd.f32 %v17603_v23, %v17529_v19 }
 0xa25   : > { %v27872_v60 = vpop.f32.mrf.mxu1 }
 0xa26   : > { %v27883_v32 = vpop.f32.mrf.mxu0 }
 0xa2d   : > { %v17773_v41 = vpop.f32.mrf.mxu1 }
 0xa2e   : > { %v17853_v38 = vpop.f32.mrf.mxu0  ;;  %v17774_v50 = vadd.f32 %v17773_v41, %v17682_v27 }
 0xa2f   : > { %v27894_v61 = vpop.f32.mrf.mxu1 }
 0xa30   : > { %v27905_v54 = vpop.f32.mrf.mxu0  ;;  %v17854_v7 = vadd.f32 %v17853_v38, %v17774_v50 }
 0xa36   : > { %v18013_v15 = vpop.f32.mrf.mxu0 }
 0xa38   : > { %v27927_v46 = vpop.f32.mrf.mxu0  ;;  %v17930_v55 = vpop.f32.mrf.mxu1 }
 0xa39   : > { %v17931_v2 = vadd.f32 %v17930_v55, %v17854_v7 }
 0xa3a   : > { %v27916_v63 = vpop.f32.mrf.mxu1 }
 0xa3b   : > { %v18170_v37 = vpop.f32.mrf.mxu0  ;;  %v18014_v39 = vadd.f32 %v18013_v15, %v17931_v2 }
 0xa3d   : > { %v27943_v40 = vpop.f32.mrf.mxu0 }
 0xa3f   : > { %v18320_v44 = vpop.f32.mrf.mxu0 }
 0xa40   : > { %v18088_v35 = vpop.f32.mrf.mxu1 }
 0xa41   : > { %v32270_v51 = vadd.f32 %v18088_v35, %v18014_v39  ;;  %v27953_v56 = vpop.f32.mrf.mxu0 }
 0xa42   : > { %v27938_v31 = vpop.f32.mrf.mxu1 }
 0xa44   : > { %v18246_v48 = vpop.f32.mrf.mxu1 }
 0xa45   : > { %v18247_v5 = vadd.f32 %v18246_v48, %v18170_v37  ;;  %v18468_v45 = vpop.f32.mrf.mxu0 }
 0xa46   : > { %v27948_v3 = vpop.f32.mrf.mxu1 }
 0xa47   : > { %v27963_v58 = vpop.f32.mrf.mxu0  ;;  %v18321_v4 = vadd.f32 %v18320_v44, %v18247_v5 }
 0xa48   : > { %v18394_v12 = vpop.f32.mrf.mxu1 }
 0xa49   : > { %v18395_v57 = vadd.f32 %v18394_v12, %v18321_v4 }
 0xa4a   : > { %v27958_v9 = vpop.f32.mrf.mxu1 }
 0xa4b   : > { %v18469_v11 = vadd.f32 %v18468_v45, %v18395_v57 }
 0xa4c   : > { %v18540_v59 = vpop.f32.mrf.mxu1 }
 0xa4d   : > { %v18541_v0 = vadd.f32 %v18540_v59, %v18469_v11 }
 0xa4e   : > { %v27968_v10 = vpop.f32.mrf.mxu1 }
 0xa4f   : > { %v19900_v14 = vmul.f32 0.35355338, %v18541_v0 }
 0xa51   : > { %v32279_v16 = vadd.f32 %v32276_v21, %v19900_v14 }
 0xa52   : > { %v18622_v17 = vpop.f32.mrf.mxu0 }
 0xa53   : > { %v19914_v1 = vsel %vm6702_vm2, %v32279_v16, -inf }
 0xa54   : > { %19915 = vmax.xlane.f32.xlu0 %v19914_v1  ;;  %v27973_v22 = vpop.f32.mrf.mxu0 }
 0xa56   : > { %v18772_v25 = vpop.f32.mrf.mxu0 }
 0xa58   : > { %v27983_v33 = vpop.f32.mrf.mxu0 }
 0xa5a   : > { %v18698_v6 = vpop.f32.mrf.mxu1  ;;  %v18920_v20 = vpop.f32.mrf.mxu0 }
 0xa5b   : > { %v18699_v42 = vadd.f32 %v18698_v6, %v18622_v17 }
 0xa5c   : > { %v27978_v13 = vpop.f32.mrf.mxu1  ;;  %v27993_v53 = vpop.f32.mrf.mxu0 }
 0xa5d   : > { %v18773_v29 = vadd.f32 %v18772_v25, %v18699_v42 }
 0xa5e   : > { %v18846_v43 = vpop.f32.mrf.mxu1 }
 0xa5f   : > { %v18847_v18 = vadd.f32 %v18846_v43, %v18773_v29 }
 0xa60   : > { %v27988_v34 = vpop.f32.mrf.mxu1 }
 0xa61   : > { %v18921_v47 = vadd.f32 %v18920_v20, %v18847_v18 }
 0xa62   : > { %v18992_v49 = vpop.f32.mrf.mxu1 }
 0xa63   : > { %v18993_v36 = vadd.f32 %v18992_v49, %v18921_v47 }
 0xa64   : > { %v27998_v19 = vpop.f32.mrf.mxu1 }
 0xa65   : > { %v19901_v23 = vmul.f32 0.35355338, %v18993_v36 }
 0xa67   : > { %v19911_v27 = vadd.f32 %v32276_v21, %v19901_v23 }
 0xa69   : > { %v19917_v60 = vsel %vm6702_vm2, %v19911_v27, -inf }
 0xa6a   : > { %19918 = vmax.xlane.f32.xlu1 %v19917_v60 }
 0xa70   : > { %v19074_v32 = vpop.f32.mrf.mxu0 }
 0xa72   : > { %v28003_v41 = vpop.f32.mrf.mxu0 }
 0xa74   : > { %v19224_v38 = vpop.f32.mrf.mxu0 }
 0xa76   : > { %v28013_v50 = vpop.f32.mrf.mxu0 }
 0xa78   : > { %v19150_v61 = vpop.f32.mrf.mxu1  ;;  %v19372_v54 = vpop.f32.mrf.mxu0 }
 0xa79   : > { %v19151_v7 = vadd.f32 %v19150_v61, %v19074_v32 }
 0xa7a   : > { %v28008_v15 = vpop.f32.mrf.mxu1  ;;  %v28023_v46 = vpop.f32.mrf.mxu0 }
 0xa7b   : > { %v19225_v55 = vadd.f32 %v19224_v38, %v19151_v7  ;;  %v32304_v15 = vand.u32 4294901760, %v32266_v28 }
 0xa7c   : > { %v19298_v2 = vpop.f32.mrf.mxu1 }
 0xa7d   : > { %v19299_v63 = vadd.f32 %v19298_v2, %v19225_v55  ;;  %v32308_v2 = vsub.f32 %v32266_v28, %v32304_v15 }
 0xa7e   : > { %v28018_v37 = vpop.f32.mrf.mxu1 }
 0xa7f   : > { %v19373_v39 = vadd.f32 %v19372_v54, %v19299_v63 }
 0xa80   : > { %v19444_v40 = vpop.f32.mrf.mxu1 }
 0xa81   : > { %v19445_v44 = vadd.f32 %v19444_v40, %v19373_v39 }
 0xa82   : > { %v28028_v35 = vpop.f32.mrf.mxu1 }
 0xa83   : > { %v19902_v56 = vmul.f32 0.35355338, %v19445_v44  ;;  %v20535_v44 = vand.u32 4294901760, %v32308_v2 }
 0xa85   : > { %v19912_v31 = vadd.f32 %v32276_v21, %v19902_v56  ;;  %v20536_v56 = vsub.f32 %v32308_v2, %v20535_v44 }
 0xa87   : > { %v19920_v48 = vsel %vm6702_vm2, %v19912_v31, -inf }
 0xa88   : > { %19921 = vmax.xlane.f32.xlu0 %v19920_v48 }
 0xa8e   : > { %v19526_v5 = vpop.f32.mrf.mxu0 }
 0xa90   : > { %v28033_v45 = vpop.f32.mrf.mxu0 }
 0xa92   : > { %v19676_v3 = vpop.f32.mrf.mxu0 }
 0xa94   : > { %v28043_v58 = vpop.f32.mrf.mxu0 }
 0xa96   : > { %v19602_v4 = vpop.f32.mrf.mxu1  ;;  %v19824_v12 = vpop.f32.mrf.mxu0 }
 0xa97   : > { %v19603_v57 = vadd.f32 %v19602_v4, %v19526_v5  ;;  %v20537_v5 = vand.u32 4294901760, %v20536_v56 }
 0xa98   : > { %v28038_v9 = vpop.f32.mrf.mxu1  ;;  %v28053_v11 = vpop.f32.mrf.mxu0 }
 0xa99   : > { %v19677_v59 = vadd.f32 %v19676_v3, %v19603_v57 }
 0xa9a   : > { %v19750_v0 = vpop.f32.mrf.mxu1 }
 0xa9b   : > { %v19751_v10 = vadd.f32 %v19750_v0, %v19677_v59 }
 0xa9c   : > { %v28048_v14 = vpop.f32.mrf.mxu1 }
 0xa9d   : > { %v19825_v17 = vadd.f32 %v19824_v12, %v19751_v10 }
 0xa9e   : > { %v19896_v1 = vpop.f32.mrf.mxu1 }
 0xa9f   : > { %v19897_v22 = vadd.f32 %v19896_v1, %v19825_v17 }
 0xaa0   : > { %v28058_v25 = vpop.f32.mrf.mxu1 }
 0xaa1   : > { %v19903_v33 = vmul.f32 0.35355338, %v19897_v22  ;;  %v21355_v25 = vand.u32 4294901760, %v32270_v51 }
 0xaa3   : > { %v19913_v6 = vadd.f32 %v32276_v21, %v19903_v33 }
 0xaa5   : > { %v19923_v20 = vsel %vm6702_vm2, %v19913_v6, -inf }
 0xaa6   : > { %19924 = vmax.xlane.f32.xlu1 %v19923_v20  ;;  %v32386_v20 = vsub.f32 %v32270_v51, %v21355_v25 }
 0xadd   : > { %v19916_v42 = vpop.xlane.xlu0 %19915 }
 0xade   : > { %v19926_v13 = vsub.f32 %v32279_v16, %v19916_v42 }
 0xae0   : > { %v19930_v53 = vmul.f32 1.442695, %v19926_v13 }
 0xae2   : > { %28552 = vpow2.f32 %v19930_v53 }
 0xaef   : > { %v28553_v29 = vpop.eup %28552 }
 0xaf0   : > { %v19938_v43 = vsel %vm6702_vm2, %v28553_v29, 0.0 }
 0xaf1   : > { %19939 = vadd.xlane.f32.xlu0 %v19938_v43 }
 0xaf3   : > { %v19919_v18 = vpop.xlane.xlu1 %19918 }
 0xaf4   : > { %v19927_v34 = vsub.f32 %v19911_v27, %v19919_v18 }
 0xaf6   : > { %v19932_v47 = vmul.f32 1.442695, %v19927_v34 }
 0xaf8   : > { %28554 = vpow2.f32 %v19932_v47 }
 0xb05   : > { %v32291_v49 = vpop.eup %28554 }
 0xb06   : > { %v19941_v21 = vsel %vm6702_vm2, %v32291_v49, 0.0 }
 0xb07   : > { %19942 = vadd.xlane.f32.xlu1 %v19941_v21 }
 0xb11   : > { %v19922_v36 = vpop.xlane.xlu0 %19921 }
 0xb12   : > { %v19928_v19 = vsub.f32 %v19912_v31, %v19922_v36 }
 0xb14   : > { %v19934_v23 = vmul.f32 1.442695, %v19928_v19 }
 0xb16   : > { %28556 = vpow2.f32 %v19934_v23 }
 0xb23   : > { %v32295_v16 = vpop.eup %28556 }
 0xb24   : > { %v19944_v60 = vsel %vm6702_vm2, %v32295_v16, 0.0 }
 0xb25   : > { %19945 = vadd.xlane.f32.xlu0 %v19944_v60 }
 0xb2f   : > { %v19925_v32 = vpop.xlane.xlu1 %19924 }
 0xb30   : > { %v19929_v27 = vsub.f32 %v19913_v6, %v19925_v32 }
 0xb32   : > { %v19936_v41 = vmul.f32 1.442695, %v19929_v27 }
 0xb34   : > { %28558 = vpow2.f32 %v19936_v41 }
 0xb41   : > { %v32299_v38 = vpop.eup %28558 }
 0xb42   : > { %v19947_v50 = vsel %vm6702_vm2, %v32299_v38, 0.0 }
 0xb43   : > { %19948 = vadd.xlane.f32.xlu1 %v19947_v50 }
 0xb7a   : > { %v19940_v61 = vpop.xlane.xlu0 %19939 }
 0xb7b   : > { %28560 = vrcp.f32 %v19940_v61 }
 0xb88   : > { %v28561_v54 = vpop.eup %28560 }
 0xb89   : > { %v19954_v7 = vmul.f32 %v28561_v54, %v19940_v61 }
 0xb8b   : > { %v19958_v46 = vsub.f32 2.0, %v19954_v7 }
 0xb8d   : > { %v19962_v55 = vmul.f32 %v28561_v54, %v19958_v46 }
 0xb8f   : > { %v19966_v63 = vmul.f32 %v28553_v29, %v19962_v55  ;;  %v21433_v29 = vand.u32 4294901760, %v32386_v20 }
 0xb90   : > { %v19943_v37 = vpop.xlane.xlu1 %19942 }
 0xb91   : > { %19970 = vst.msk [vmem:[%s32312_s30] sm:$0xff] %vm6702_vm2, %v19966_v63  ;;  %v19975_v39 = vsel %vm6702_vm2, %v19966_v63, 0  ;;  %28562 = vrcp.f32 %v19943_v37  ;;  %v21434_v18 = vsub.f32 %v32386_v20, %v21433_v29 }
 0xb92   : > { %v20043_v40 = vand.u32 4294901760, %v19975_v39 }
 0xb93   : > { %v21435_v21 = vand.u32 4294901760, %v21434_v18 }
 0xb94   : > { %v20044_v35 = vsub.f32 %v19975_v39, %v20043_v40  ;;  %28067 = vmatmul.mubr.f32.vlgmr.msra.gmra.mxu1 %v20043_v40 }
 0xb95   : > { %28075 = vmatpush3.msra.mxu1 %v32254_v52  ;;  %28076 = vmatprep.mubr.msk.f32.mxu1 %vm28690_vm1, %v28689_v24 }
 0xb96   : > { %28084 = vmatprep.subr.mxu1 %v28689_v24  ;;  %v20045_v28 = vand.u32 4294901760, %v20044_v35 }
 0xb98   : > { %28077 = vmatmul.mubr.f32.vlgmr.msra.gmra.mxu1 %v20045_v28  ;;  %v20046_v31 = vsub.f32 %v20044_v35, %v20045_v28 }
 0xb99   : > { %28085 = vmatpush3.msra.mxu1 %v32254_v52  ;;  %28086 = vmatprep.mubr.msk.f32.mxu1 %vm28690_vm1, %v28689_v24  ;;  %v32337_v52 = vand.u32 4294901760, %v32268_v30 }
 0xb9a   : > { %28094 = vmatprep.subr.mxu1 %v28689_v24  ;;  %v20047_v48 = vand.u32 4294901760, %v20046_v31 }
 0xb9b   : > { %v32346_v12 = vsub.f32 %v32268_v30, %v32337_v52 }
 0xb9c   : > { %28062 = vmatmul.mubr.f32.vlgmr.msra.gmra.mxu0 %v20047_v48  ;;  %28087 = vmatmul.mubr.f32.vlgmr.msra.gmra.mxu1 %v20043_v40  ;;  %v21771_v48 = vld [vmem:[%s33044_s17 + $0x8] sm:$0xff] }
 0xb9d   : > { %28070 = vmatpush3.msra.mxu0 %v32257_v8  ;;  %28095 = vmatpush3.msra.mxu1 %v20537_v5  ;;  %v20984_v9 = vand.u32 4294901760, %v32346_v12 }
 0xb9e   : > { %v28563_v45 = vpop.eup %28562  ;;  %28071 = vmatprep.mubr.msk.f32.mxu0 %vm28690_vm1, %v28689_v24  ;;  %28079 = vmatprep.subr.mxu0 %v28689_v24 }
 0xb9f   : > { %v19955_v3 = vmul.f32 %v28563_v45, %v19943_v37  ;;  %28096 = vmatprep.mubr.msk.f32.mxu1 %vm28690_vm1, %v28689_v24  ;;  %28104 = vmatprep.subr.mxu1 %v28689_v24  ;;  %v20985_v59 = vsub.f32 %v32346_v12, %v20984_v9 }
 0xba0   : > { %28072 = vmatmul.mubr.f32.vlgmr.msra.gmra.mxu0 %v20044_v35 }
 0xba1   : > { %v19959_v58 = vsub.f32 2.0, %v19955_v3  ;;  %28080 = vmatpush3.msra.mxu0 %v20086_v26  ;;  %28081 = vmatprep.mubr.msk.f32.mxu0 %vm28690_vm1, %v28689_v24  ;;  %v20986_v17 = vand.u32 4294901760, %v20985_v59 }
 0xba2   : > { %28089 = vmatprep.subr.mxu0 %v28689_v24 }
 0xba3   : > { %v19963_v4 = vmul.f32 %v28563_v45, %v19959_v58 }
 0xba4   : > { %28082 = vmatmul.mubr.f32.vlgmr.msra.gmra.mxu0 %v20043_v40 }
 0xba5   : > { %v19967_v57 = vmul.f32 %v32291_v49, %v19963_v4  ;;  %28090 = vmatpush3.msra.mxu0 %v32304_v15  ;;  %28091 = vmatprep.mubr.msk.f32.mxu0 %vm28690_vm1, %v28689_v24 }
 0xba6   : > { %28099 = vmatprep.subr.mxu0 %v28689_v24 }
 0xba7   : > { %19971 = vst.msk [vmem:[%s32312_s30 + $0x8] sm:$0xff] %vm6702_vm2, %v19967_v57  ;;  %v20424_v8 = vsel %vm6702_vm2, %v19967_v57, 0 }
 0xba8   : > { %v20492_v26 = vand.u32 4294901760, %v20424_v8 }
 0xbaa   : > { %v20493_v11 = vsub.f32 %v20424_v8, %v20492_v26  ;;  %28097 = vmatmul.mubr.f32.vlgmr.msra.gmra.mxu1 %v20492_v26 }
 0xbab   : > { %28105 = vmatpush3.msra.mxu1 %v32304_v15  ;;  %28106 = vmatprep.mubr.msk.f32.mxu1 %vm28690_vm1, %v28689_v24 }
 0xbac   : > { %28114 = vmatprep.subr.mxu1 %v28689_v24  ;;  %v20494_v30 = vand.u32 4294901760, %v20493_v11 }
 0xbae   : > { %v19946_v0 = vpop.xlane.xlu0 %19945  ;;  %28107 = vmatmul.mubr.f32.vlgmr.msra.gmra.mxu1 %v20494_v30  ;;  %v20495_v10 = vsub.f32 %v20493_v11, %v20494_v30 }
 0xbaf   : > { %28564 = vrcp.f32 %v19946_v0  ;;  %28115 = vmatpush3.msra.mxu1 %v32304_v15  ;;  %28116 = vmatprep.mubr.msk.f32.mxu1 %vm28690_vm1, %v28689_v24 }
 0xbb0   : > { %28124 = vmatprep.subr.mxu1 %v28689_v24  ;;  %v20496_v14 = vand.u32 4294901760, %v20495_v10 }
 0xbb2   : > { %28092 = vmatmul.mubr.f32.vlgmr.msra.gmra.mxu0 %v20496_v14  ;;  %28117 = vmatmul.mubr.f32.vlgmr.msra.gmra.mxu1 %v20492_v26 }
 0xbb3   : > { %28100 = vmatpush3.msra.mxu0 %v32308_v2  ;;  %28125 = vmatpush3.msra.mxu1 %v20986_v17 }
 0xbb4   : > { %28101 = vmatprep.mubr.msk.f32.mxu0 %vm28690_vm1, %v28689_v24  ;;  %28109 = vmatprep.subr.mxu0 %v28689_v24 }
 0xbb5   : > { %28126 = vmatprep.mubr.msk.f32.mxu1 %vm28690_vm1, %v28689_v24  ;;  %28134 = vmatprep.subr.mxu1 %v28689_v24 }
 0xbb6   : > { %28102 = vmatmul.mubr.f32.vlgmr.msra.gmra.mxu0 %v20493_v11 }
 0xbb7   : > { %28110 = vmatpush3.msra.mxu0 %v20535_v44  ;;  %28111 = vmatprep.mubr.msk.f32.mxu0 %vm28690_vm1, %v28689_v24 }
 0xbb8   : > { %28119 = vmatprep.subr.mxu0 %v28689_v24 }
 0xbba   : > { %28112 = vmatmul.mubr.f32.vlgmr.msra.gmra.mxu0 %v20492_v26 }
 0xbbb   : > { %28120 = vmatpush3.msra.mxu0 %v32337_v52  ;;  %28121 = vmatprep.mubr.msk.f32.mxu0 %vm28690_vm1, %v28689_v24 }
 0xbbc   : > { %v28565_v1 = vpop.eup %28564  ;;  %28129 = vmatprep.subr.mxu0 %v28689_v24 }
 0xbbd   : > { %v19956_v22 = vmul.f32 %v28565_v1, %v19946_v0 }
 0xbbf   : > { %v19960_v33 = vsub.f32 2.0, %v19956_v22 }
 0xbc1   : > { %v19964_v6 = vmul.f32 %v28565_v1, %v19960_v33 }
 0xbc3   : > { %v19968_v42 = vmul.f32 %v32295_v16, %v19964_v6 }
 0xbc5   : > { %19972 = vst.msk [vmem:[%s32312_s30 + $0x10] sm:$0xff] %vm6702_vm2, %v19968_v42  ;;  %v20873_v13 = vsel %vm6702_vm2, %v19968_v42, 0 }
 0xbc6   : > { %v20941_v53 = vand.u32 4294901760, %v20873_v13 }
 0xbc8   : > { %v20942_v43 = vsub.f32 %v20873_v13, %v20941_v53  ;;  %28127 = vmatmul.mubr.f32.vlgmr.msra.gmra.mxu1 %v20941_v53 }
 0xbc9   : > { %28135 = vmatpush3.msra.mxu1 %v32337_v52  ;;  %28136 = vmatprep.mubr.msk.f32.mxu1 %vm28690_vm1, %v28689_v24 }
 0xbca   : > { %28144 = vmatprep.subr.mxu1 %v28689_v24  ;;  %v20943_v51 = vand.u32 4294901760, %v20942_v43 }
 0xbcc   : > { %v19949_v34 = vpop.xlane.xlu1 %19948  ;;  %28137 = vmatmul.mubr.f32.vlgmr.msra.gmra.mxu1 %v20943_v51  ;;  %v20944_v47 = vsub.f32 %v20942_v43, %v20943_v51 }
 0xbcd   : > { %28566 = vrcp.f32 %v19949_v34  ;;  %28145 = vmatpush3.msra.mxu1 %v32337_v52  ;;  %28146 = vmatprep.mubr.msk.f32.mxu1 %vm28690_vm1, %v28689_v24  ;;  %v32456_v52 = vand.u32 4294901760, %v21771_v48 }
 0xbce   : > { %28154 = vmatprep.subr.mxu1 %v28689_v24  ;;  %v20945_v49 = vand.u32 4294901760, %v20944_v47 }
 0xbcf   : > { %v32459_v8 = vsub.f32 %v21771_v48, %v32456_v52 }
 0xbd0   : > { %28122 = vmatmul.mubr.f32.vlgmr.msra.gmra.mxu0 %v20945_v49  ;;  %28147 = vmatmul.mubr.f32.vlgmr.msra.gmra.mxu1 %v20941_v53 }
 0xbd1   : > { %28130 = vmatpush3.msra.mxu0 %v32346_v12  ;;  %28155 = vmatpush3.msra.mxu1 %v21435_v21  ;;  %v22335_v59 = vand.u32 4294901760, %v32459_v8 }
 0xbd2   : > { %28131 = vmatprep.mubr.msk.f32.mxu0 %vm28690_vm1, %v28689_v24  ;;  %28139 = vmatprep.subr.mxu0 %v28689_v24 }
 0xbd3   : > { %28156 = vmatprep.mubr.msk.f32.mxu1 %vm28690_vm1, %v28689_v24  ;;  %28164 = vmatprep.subr.mxu1 %v28689_v24  ;;  %v22336_v1 = vsub.f32 %v32459_v8, %v22335_v59 }
 0xbd4   : > { %28132 = vmatmul.mubr.f32.vlgmr.msra.gmra.mxu0 %v20942_v43  ;;  %v21772_v43 = vld [vmem:[%s33044_s17 + $0x10] sm:$0xff] }
 0xbd5   : > { %28140 = vmatpush3.msra.mxu0 %v20984_v9  ;;  %28141 = vmatprep.mubr.msk.f32.mxu0 %vm28690_vm1, %v28689_v24  ;;  %v22337_v42 = vand.u32 4294901760, %v22336_v1  ;;  %v32482_v47 = vand.u32 4294901760, %v21772_v43 }
 0xbd6   : > { %28149 = vmatprep.subr.mxu0 %v28689_v24 }
 0xbd8   : > { %28142 = vmatmul.mubr.f32.vlgmr.msra.gmra.mxu0 %v20941_v53 }
 0xbd9   : > { %28150 = vmatpush3.msra.mxu0 %v21355_v25  ;;  %28151 = vmatprep.mubr.msk.f32.mxu0 %vm28690_vm1, %v28689_v24 }
 0xbda   : > { %v28567_v36 = vpop.eup %28566  ;;  %28159 = vmatprep.subr.mxu0 %v28689_v24 }
 0xbdb   : > { %v19957_v19 = vmul.f32 %v28567_v36, %v19949_v34 }
 0xbdd   : > { %v19961_v23 = vsub.f32 2.0, %v19957_v19 }
 0xbdf   : > { %v19965_v16 = vmul.f32 %v28567_v36, %v19961_v23  ;;  %v32490_v23 = vsub.f32 %v21772_v43, %v32482_v47 }
 0xbe1   : > { %v19969_v60 = vmul.f32 %v32299_v38, %v19965_v16  ;;  %v21770_v38 = vld [vmem:[%s33044_s17] sm:$0xff] }
 0xbe2   : > { %v21808_v7 = vand.u32 4294901760, %v21770_v38 }
 0xbe3   : > { %19973 = vst.msk [vmem:[%s32312_s30 + $0x18] sm:$0xff] %vm6702_vm2, %v19969_v60  ;;  %v21322_v32 = vsel %vm6702_vm2, %v19969_v60, 0 }
 0xbe4   : > { %v21390_v27 = vand.u32 4294901760, %v21322_v32  ;;  %v32432_v15 = vsub.f32 %v21770_v38, %v21808_v7 }
 0xbe6   : > { %v21391_v41 = vsub.f32 %v21322_v32, %v21390_v27  ;;  %28157 = vmatmul.mubr.f32.vlgmr.msra.gmra.mxu1 %v21390_v27  ;;  %v21886_v46 = vand.u32 4294901760, %v32432_v15 }
 0xbe7   : > { %28165 = vmatpush3.msra.mxu1 %v21355_v25  ;;  %28166 = vmatprep.mubr.msk.f32.mxu1 %vm28690_vm1, %v28689_v24 }
 0xbe8   : > { %28174 = vmatprep.subr.mxu1 %v28689_v24  ;;  %v21392_v50 = vand.u32 4294901760, %v21391_v41  ;;  %v21887_v55 = vsub.f32 %v32432_v15, %v21886_v46 }
 0xbea   : > { %28167 = vmatmul.mubr.f32.vlgmr.msra.gmra.mxu1 %v21392_v50  ;;  %v21393_v61 = vsub.f32 %v21391_v41, %v21392_v50  ;;  %v21888_v2 = vand.u32 4294901760, %v21887_v55 }
 0xbeb   : > { %28175 = vmatpush3.msra.mxu1 %v21355_v25  ;;  %28176 = vmatprep.mubr.msk.f32.mxu1 %vm28690_vm1, %v28689_v24 }
 0xbec   : > { %v21394_v54 = vand.u32 4294901760, %v21393_v61  ;;  %28184 = vmatprep.subr.mxu1 %v28689_v24 }
 0xbee   : > { %28152 = vmatmul.mubr.f32.vlgmr.msra.gmra.mxu0 %v21394_v54  ;;  %28177 = vmatmul.mubr.f32.vlgmr.msra.gmra.mxu1 %v21390_v27 }
 0xbef   : > { %28160 = vmatpush3.msra.mxu0 %v32386_v20  ;;  %28161 = vmatprep.mubr.msk.f32.mxu0 %vm28690_vm1, %v28689_v24 }
 0xbf0   : > { %28169 = vmatprep.subr.mxu0 %v28689_v24  ;;  %28186 = vmatprep.mubr.msk.f32.mxu1 %vm28690_vm1, %v28689_v24 }
 0xbf1   : > { %28185 = vmatpush3.msra.mxu1 %v21888_v2 }
 0xbf2   : > { %28162 = vmatmul.mubr.f32.vlgmr.msra.gmra.mxu0 %v21391_v41  ;;  %28194 = vmatprep.subr.mxu1 %v28689_v24 }
 0xbf3   : > { %28170 = vmatpush3.msra.mxu0 %v21433_v29  ;;  %28171 = vmatprep.mubr.msk.f32.mxu0 %vm28690_vm1, %v28689_v24 }
 0xbf4   : > { %28179 = vmatprep.subr.mxu0 %v28689_v24 }
 0xbf6   : > { %28172 = vmatmul.mubr.f32.vlgmr.msra.gmra.mxu0 %v21390_v27  ;;  %v22784_v27 = vand.u32 4294901760, %v32490_v23 }
 0xbf7   : > { %28180 = vmatpush3.msra.mxu0 %v21808_v7  ;;  %28181 = vmatprep.mubr.msk.f32.mxu0 %vm28690_vm1, %v28689_v24 }
 0xbf8   : > { %28189 = vmatprep.subr.mxu0 %v28689_v24  ;;  %v22785_v61 = vsub.f32 %v32490_v23, %v22784_v27 }
 0xc54   : > { %v20125_v63 = vpop.f32.mrf.mxu1 }
 0xc56   : > { %v28068_v37 = vpop.f32.mrf.mxu1 }
 0xc58   : > { %v20273_v39 = vpop.f32.mrf.mxu1 }
 0xc5a   : > { %v28078_v40 = vpop.f32.mrf.mxu1 }
 0xc5c   : > { %v20049_v44 = vpop.f32.mrf.mxu0  ;;  %v20419_v35 = vpop.f32.mrf.mxu1 }
 0xc5d   : > { %v20126_v31 = vadd.f32 %v20125_v63, %v20049_v44 }
 0xc5e   : > { %v28063_v28 = vpop.f32.mrf.mxu0  ;;  %v28088_v56 = vpop.f32.mrf.mxu1 }
 0xc60   : > { %v20199_v5 = vpop.f32.mrf.mxu0 }
 0xc61   : > { %v20200_v45 = vadd.f32 %v20199_v5, %v20126_v31 }
 0xc62   : > { %v28073_v3 = vpop.f32.mrf.mxu0 }
 0xc63   : > { %v20274_v58 = vadd.f32 %v20273_v39, %v20200_v45 }
 0xc64   : > { %v20347_v4 = vpop.f32.mrf.mxu0 }
 0xc65   : > { %v20348_v12 = vadd.f32 %v20347_v4, %v20274_v58 }
 0xc66   : > { %v28083_v57 = vpop.f32.mrf.mxu0 }
 0xc67   : > { %v20420_v26 = vadd.f32 %v20419_v35, %v20348_v12  ;;  %v21773_v35 = vld [vmem:[%s33044_s17 + $0x18] sm:$0xff] }
 0xc68   : > { %v32528_v48 = vand.u32 4294901760, %v21773_v35 }
 0xc69   : > { %v21775_v9 = vsel %vm6702_vm2, %v20420_v26, 0 }
 0xc6a   : > { %v21843_v11 = vand.u32 4294901760, %v21775_v9  ;;  %v20574_v30 = vpop.f32.mrf.mxu1  ;;  %v32531_v58 = vsub.f32 %v21773_v35, %v32528_v48 }
 0xc6c   : > { %v21844_v0 = vsub.f32 %v21775_v9, %v21843_v11  ;;  %28187 = vmatmul.mubr.f32.vlgmr.msra.gmra.mxu1 %v21843_v11  ;;  %v28098_v10 = vpop.f32.mrf.mxu1 }
 0xc6d   : > { %28195 = vmatpush3.msra.mxu1 %v21808_v7  ;;  %28196 = vmatprep.mubr.msk.f32.mxu1 %vm28690_vm1, %v28689_v24 }
 0xc6e   : > { %v21845_v14 = vand.u32 4294901760, %v21844_v0  ;;  %v20722_v17 = vpop.f32.mrf.mxu1  ;;  %28204 = vmatprep.subr.mxu1 %v28689_v24 }
 0xc70   : > { %v21846_v22 = vsub.f32 %v21844_v0, %v21845_v14  ;;  %28197 = vmatmul.mubr.f32.vlgmr.msra.gmra.mxu1 %v21845_v14  ;;  %v28108_v25 = vpop.f32.mrf.mxu1 }
 0xc71   : > { %28205 = vmatpush3.msra.mxu1 %v21808_v7  ;;  %28206 = vmatprep.mubr.msk.f32.mxu1 %vm28690_vm1, %v28689_v24 }
 0xc72   : > { %v21847_v33 = vand.u32 4294901760, %v21846_v22  ;;  %v20498_v6 = vpop.f32.mrf.mxu0  ;;  %v20868_v20 = vpop.f32.mrf.mxu1  ;;  %28214 = vmatprep.subr.mxu1 %v28689_v24 }
 0xc73   : > { %v20575_v29 = vadd.f32 %v20574_v30, %v20498_v6 }
 0xc74   : > { %28182 = vmatmul.mubr.f32.vlgmr.msra.gmra.mxu0 %v21847_v33  ;;  %28207 = vmatmul.mubr.f32.vlgmr.msra.gmra.mxu1 %v21843_v11  ;;  %v28093_v13 = vpop.f32.mrf.mxu0  ;;  %v28118_v53 = vpop.f32.mrf.mxu1 }
 0xc75   : > { %28190 = vmatpush3.msra.mxu0 %v32432_v15  ;;  %28191 = vmatprep.mubr.msk.f32.mxu0 %vm28690_vm1, %v28689_v24  ;;  %v22786_v15 = vand.u32 4294901760, %v22785_v61 }
 0xc76   : > { %v20648_v51 = vpop.f32.mrf.mxu0  ;;  %28199 = vmatprep.subr.mxu0 %v28689_v24  ;;  %28215 = vmatpush3.msra.mxu1 %v22337_v42 }
 0xc77   : > { %v20649_v18 = vadd.f32 %v20648_v51, %v20575_v29  ;;  %28216 = vmatprep.mubr.msk.f32.mxu1 %vm28690_vm1, %v28689_v24  ;;  %28224 = vmatprep.subr.mxu1 %v28689_v24 }
 0xc78   : > { %28192 = vmatmul.mubr.f32.vlgmr.msra.gmra.mxu0 %v21844_v0  ;;  %v28103_v34 = vpop.f32.mrf.mxu0 }
 0xc79   : > { %28200 = vmatpush3.msra.mxu0 %v21886_v46  ;;  %28201 = vmatprep.mubr.msk.f32.mxu0 %vm28690_vm1, %v28689_v24  ;;  %v20723_v49 = vadd.f32 %v20722_v17, %v20649_v18 }
 0xc7a   : > { %v20796_v21 = vpop.f32.mrf.mxu0  ;;  %28209 = vmatprep.subr.mxu0 %v28689_v24 }
 0xc7b   : > { %v20797_v36 = vadd.f32 %v20796_v21, %v20723_v49 }
 0xc7c   : > { %28202 = vmatmul.mubr.f32.vlgmr.msra.gmra.mxu0 %v21843_v11  ;;  %v28113_v19 = vpop.f32.mrf.mxu0 }
 0xc7d   : > { %v20869_v16 = vadd.f32 %v20868_v20, %v20797_v36  ;;  %28210 = vmatpush3.msra.mxu0 %v32456_v52  ;;  %28211 = vmatprep.mubr.msk.f32.mxu0 %vm28690_vm1, %v28689_v24 }
 0xc7e   : > { %28219 = vmatprep.subr.mxu0 %v28689_v24 }
 0xc7f   : > { %v22224_v60 = vsel %vm6702_vm2, %v20869_v16, 0 }
 0xc80   : > { %v22292_v32 = vand.u32 4294901760, %v22224_v60 }
 0xc82   : > { %v22293_v41 = vsub.f32 %v22224_v60, %v22292_v32  ;;  %28217 = vmatmul.mubr.f32.vlgmr.msra.gmra.mxu1 %v22292_v32 }
 0xc83   : > { %28225 = vmatpush3.msra.mxu1 %v32456_v52  ;;  %28226 = vmatprep.mubr.msk.f32.mxu1 %vm28690_vm1, %v28689_v24 }
 0xc84   : > { %v22294_v50 = vand.u32 4294901760, %v22293_v41  ;;  %28234 = vmatprep.subr.mxu1 %v28689_v24 }
 0xc86   : > { %v22295_v38 = vsub.f32 %v22293_v41, %v22294_v50  ;;  %28227 = vmatmul.mubr.f32.vlgmr.msra.gmra.mxu1 %v22294_v50 }
 0xc87   : > { %28235 = vmatpush3.msra.mxu1 %v32456_v52  ;;  %28236 = vmatprep.mubr.msk.f32.mxu1 %vm28690_vm1, %v28689_v24 }
 0xc88   : > { %v22296_v54 = vand.u32 4294901760, %v22295_v38  ;;  %v21023_v7 = vpop.f32.mrf.mxu1  ;;  %28244 = vmatprep.subr.mxu1 %v28689_v24 }
 0xc8a   : > { %v28128_v46 = vpop.f32.mrf.mxu1  ;;  %28212 = vmatmul.mubr.f32.vlgmr.msra.gmra.mxu0 %v22296_v54  ;;  %28237 = vmatmul.mubr.f32.vlgmr.msra.gmra.mxu1 %v22292_v32 }
 0xc8b   : > { %28220 = vmatpush3.msra.mxu0 %v32459_v8  ;;  %28221 = vmatprep.mubr.msk.f32.mxu0 %vm28690_vm1, %v28689_v24  ;;  %v23233_v8 = vand.u32 4294901760, %v32531_v58 }
 0xc8c   : > { %v21171_v55 = vpop.f32.mrf.mxu1  ;;  %28229 = vmatprep.subr.mxu0 %v28689_v24  ;;  %28245 = vmatpush3.msra.mxu1 %v22786_v15 }
 0xc8d   : > { %28246 = vmatprep.mubr.msk.f32.mxu1 %vm28690_vm1, %v28689_v24  ;;  %28254 = vmatprep.subr.mxu1 %v28689_v24  ;;  %v23234_v11 = vsub.f32 %v32531_v58, %v23233_v8 }
 0xc8e   : > { %v28138_v2 = vpop.f32.mrf.mxu1  ;;  %28222 = vmatmul.mubr.f32.vlgmr.msra.gmra.mxu0 %v22293_v41 }
 0xc8f   : > { %28230 = vmatpush3.msra.mxu0 %v22335_v59  ;;  %28231 = vmatprep.mubr.msk.f32.mxu0 %vm28690_vm1, %v28689_v24  ;;  %v23235_v10 = vand.u32 4294901760, %v23234_v11 }
 0xc90   : > { %v20947_v63 = vpop.f32.mrf.mxu0  ;;  %v21317_v37 = vpop.f32.mrf.mxu1  ;;  %28239 = vmatprep.subr.mxu0 %v28689_v24 }
 0xc91   : > { %v21024_v44 = vadd.f32 %v21023_v7, %v20947_v63 }
 0xc92   : > { %v28123_v39 = vpop.f32.mrf.mxu0  ;;  %v28148_v40 = vpop.f32.mrf.mxu1  ;;  %28232 = vmatmul.mubr.f32.vlgmr.msra.gmra.mxu0 %v22292_v32 }
 0xc93   : > { %28240 = vmatpush3.msra.mxu0 %v32482_v47  ;;  %28241 = vmatprep.mubr.msk.f32.mxu0 %vm28690_vm1, %v28689_v24 }
 0xc94   : > { %v21097_v28 = vpop.f32.mrf.mxu0  ;;  %28249 = vmatprep.subr.mxu0 %v28689_v24 }
 0xc95   : > { %v21098_v56 = vadd.f32 %v21097_v28, %v21024_v44 }
 0xc96   : > { %v28133_v31 = vpop.f32.mrf.mxu0 }
 0xc97   : > { %v21172_v5 = vadd.f32 %v21171_v55, %v21098_v56 }
 0xc98   : > { %v21245_v45 = vpop.f32.mrf.mxu0 }
 0xc99   : > { %v21246_v3 = vadd.f32 %v21245_v45, %v21172_v5 }
 0xc9a   : > { %v28143_v52 = vpop.f32.mrf.mxu0 }
 0xc9b   : > { %v21318_v4 = vadd.f32 %v21317_v37, %v21246_v3 }
 0xc9d   : > { %v22673_v12 = vsel %vm6702_vm2, %v21318_v4, 0 }
 0xc9e   : > { %v22741_v57 = vand.u32 4294901760, %v22673_v12 }
 0xca0   : > { %v22742_v26 = vsub.f32 %v22673_v12, %v22741_v57  ;;  %28247 = vmatmul.mubr.f32.vlgmr.msra.gmra.mxu1 %v22741_v57 }
 0xca1   : > { %28255 = vmatpush3.msra.mxu1 %v32482_v47  ;;  %28256 = vmatprep.mubr.msk.f32.mxu1 %vm28690_vm1, %v28689_v24 }
 0xca2   : > { %v22743_v9 = vand.u32 4294901760, %v22742_v26  ;;  %28264 = vmatprep.subr.mxu1 %v28689_v24 }
 0xca4   : > { %v22744_v30 = vsub.f32 %v22742_v26, %v22743_v9  ;;  %28257 = vmatmul.mubr.f32.vlgmr.msra.gmra.mxu1 %v22743_v9 }
 0xca5   : > { %28265 = vmatpush3.msra.mxu1 %v32482_v47  ;;  %28266 = vmatprep.mubr.msk.f32.mxu1 %vm28690_vm1, %v28689_v24 }
 0xca6   : > { %v22745_v59 = vand.u32 4294901760, %v22744_v30  ;;  %v21472_v0 = vpop.f32.mrf.mxu1  ;;  %28274 = vmatprep.subr.mxu1 %v28689_v24 }
 0xca8   : > { %v28158_v14 = vpop.f32.mrf.mxu1  ;;  %28242 = vmatmul.mubr.f32.vlgmr.msra.gmra.mxu0 %v22745_v59  ;;  %28267 = vmatmul.mubr.f32.vlgmr.msra.gmra.mxu1 %v22741_v57 }
 0xca9   : > { %28250 = vmatpush3.msra.mxu0 %v32490_v23  ;;  %28251 = vmatprep.mubr.msk.f32.mxu0 %vm28690_vm1, %v28689_v24 }
 0xcaa   : > { %v21620_v17 = vpop.f32.mrf.mxu1  ;;  %28259 = vmatprep.subr.mxu0 %v28689_v24  ;;  %28275 = vmatpush3.msra.mxu1 %v23235_v10 }
 0xcab   : > { %28276 = vmatprep.mubr.msk.f32.mxu1 %vm28690_vm1, %v28689_v24  ;;  %28284 = vmatprep.subr.mxu1 %v28689_v24 }
 0xcac   : > { %v28168_v1 = vpop.f32.mrf.mxu1  ;;  %28252 = vmatmul.mubr.f32.vlgmr.msra.gmra.mxu0 %v22742_v26 }
 0xcad   : > { %28260 = vmatpush3.msra.mxu0 %v22784_v27  ;;  %28261 = vmatprep.mubr.msk.f32.mxu0 %vm28690_vm1, %v28689_v24 }
 0xcae   : > { %v21396_v22 = vpop.f32.mrf.mxu0  ;;  %v21766_v25 = vpop.f32.mrf.mxu1  ;;  %28269 = vmatprep.subr.mxu0 %v28689_v24 }
 0xcaf   : > { %v21473_v20 = vadd.f32 %v21472_v0, %v21396_v22 }
 0xcb0   : > { %v28153_v33 = vpop.f32.mrf.mxu0  ;;  %v28178_v6 = vpop.f32.mrf.mxu1  ;;  %28262 = vmatmul.mubr.f32.vlgmr.msra.gmra.mxu0 %v22741_v57 }
 0xcb1   : > { %28270 = vmatpush3.msra.mxu0 %v32528_v48  ;;  %28271 = vmatprep.mubr.msk.f32.mxu0 %vm28690_vm1, %v28689_v24 }
 0xcb2   : > { %v21546_v42 = vpop.f32.mrf.mxu0  ;;  %28279 = vmatprep.subr.mxu0 %v28689_v24 }
 0xcb3   : > { %v21547_v13 = vadd.f32 %v21546_v42, %v21473_v20 }
 0xcb4   : > { %v28163_v53 = vpop.f32.mrf.mxu0 }
 0xcb5   : > { %v21621_v29 = vadd.f32 %v21620_v17, %v21547_v13 }
 0xcb6   : > { %v21694_v43 = vpop.f32.mrf.mxu0 }
 0xcb7   : > { %v21695_v51 = vadd.f32 %v21694_v43, %v21621_v29 }
 0xcb8   : > { %v28173_v18 = vpop.f32.mrf.mxu0 }
 0xcb9   : > { %v21767_v34 = vadd.f32 %v21766_v25, %v21695_v51 }
 0xcbb   : > { %v23122_v47 = vsel %vm6702_vm2, %v21767_v34, 0 }
 0xcbc   : > { %v23190_v49 = vand.u32 4294901760, %v23122_v47 }
 0xcbe   : > { %v23191_v21 = vsub.f32 %v23122_v47, %v23190_v49  ;;  %28277 = vmatmul.mubr.f32.vlgmr.msra.gmra.mxu1 %v23190_v49 }
 0xcbf   : > { %28285 = vmatpush3.msra.mxu1 %v32528_v48  ;;  %28286 = vmatprep.mubr.msk.f32.mxu1 %vm28690_vm1, %v28689_v24 }
 0xcc0   : > { %v23192_v36 = vand.u32 4294901760, %v23191_v21  ;;  %28294 = vmatprep.subr.mxu1 %v28689_v24 }
 0xcc2   : > { %v23193_v19 = vsub.f32 %v23191_v21, %v23192_v36  ;;  %28287 = vmatmul.mubr.f32.vlgmr.msra.gmra.mxu1 %v23192_v36 }
 0xcc3   : > { %28295 = vmatpush3.msra.mxu1 %v32528_v48  ;;  %28296 = vmatprep.mubr.msk.f32.mxu1 %vm28690_vm1, %v28689_v24 }
 0xcc4   : > { %v23194_v23 = vand.u32 4294901760, %v23193_v19  ;;  %28310 = vmatprep.subr.mxu1 %v28689_v24 }
 0xcc6   : > { %28272 = vmatmul.mubr.f32.vlgmr.msra.gmra.mxu0 %v23194_v23  ;;  %28297 = vmatmul.mubr.f32.vlgmr.msra.gmra.mxu1 %v23190_v49 }
 0xcc7   : > { %28280 = vmatpush3.msra.mxu0 %v32531_v58  ;;  %28281 = vmatprep.mubr.msk.f32.mxu0 %vm28690_vm1, %v28689_v24 }
 0xcc8   : > { %28289 = vmatprep.subr.mxu0 %v28689_v24  ;;  %28318 = vmatprep.mubr.msk.f32.mxu1 %vm28690_vm1, %v28689_v24 }
 0xcca   : > { %28282 = vmatmul.mubr.f32.vlgmr.msra.gmra.mxu0 %v23191_v21 }
 0xccb   : > { %28290 = vmatpush3.msra.mxu0 %v23233_v8  ;;  %28291 = vmatprep.mubr.msk.f32.mxu0 %vm28690_vm1, %v28689_v24 }
 0xccc   : > { %28299 = vmatprep.subr.mxu0 %v28689_v24 }
 0xcce   : > { %28292 = vmatmul.mubr.f32.vlgmr.msra.gmra.mxu0 %v23190_v49 }
 0xccf   : > { %28307 = vmatprep.mubr.msk.f32.mxu0 %vm28690_vm1, %v28689_v24 }
 0xd2c   : > { %v21925_v16 = vpop.f32.mrf.mxu1 }
 0xd2e   : > { %v28188_v60 = vpop.f32.mrf.mxu1 }
 0xd30   : > { %v22073_v32 = vpop.f32.mrf.mxu1 }
 0xd32   : > { %v28198_v27 = vpop.f32.mrf.mxu1 }
 0xd34   : > { %v21849_v41 = vpop.f32.mrf.mxu0  ;;  %v22219_v50 = vpop.f32.mrf.mxu1 }
 0xd35   : > { %v21926_v61 = vadd.f32 %v21925_v16, %v21849_v41 }
 0xd36   : > { %v28183_v38 = vpop.f32.mrf.mxu0  ;;  %v28208_v54 = vpop.f32.mrf.mxu1 }
 0xd38   : > { %v21999_v7 = vpop.f32.mrf.mxu0 }
 0xd39   : > { %v22000_v15 = vadd.f32 %v21999_v7, %v21926_v61 }
 0xd3a   : > { %v28193_v46 = vpop.f32.mrf.mxu0 }
 0xd3b   : > { %v22074_v55 = vadd.f32 %v22073_v32, %v22000_v15 }
 0xd3c   : > { %v22147_v2 = vpop.f32.mrf.mxu0 }
 0xd3d   : > { %v22148_v63 = vadd.f32 %v22147_v2, %v22074_v55 }
 0xd3e   : > { %v28203_v37 = vpop.f32.mrf.mxu0 }
 0xd3f   : > { %v22220_v39 = vadd.f32 %v22219_v50, %v22148_v63 }
 0xd41   : > { %v23570_v9 = vsel %vm800_vm0, %v22220_v39, 0.0 }
 0xd42   : > { %v22374_v40 = vpop.f32.mrf.mxu1 }
 0xd44   : > { %v28218_v44 = vpop.f32.mrf.mxu1 }
 0xd46   : > { %v22522_v35 = vpop.f32.mrf.mxu1 }
 0xd48   : > { %v28228_v28 = vpop.f32.mrf.mxu1 }
 0xd49   : > { %v23610_v28 = vld [vmem:[%s33045_s18 + $0x18] sm:$0xff] }
 0xd4a   : > { %v22298_v56 = vpop.f32.mrf.mxu0  ;;  %v22668_v31 = vpop.f32.mrf.mxu1 }
 0xd4b   : > { %v22375_v45 = vadd.f32 %v22374_v40, %v22298_v56  ;;  %v32598_v56 = vand.u32 4294901760, %v23610_v28 }
 0xd4c   : > { %v28213_v48 = vpop.f32.mrf.mxu0  ;;  %v28238_v5 = vpop.f32.mrf.mxu1 }
 0xd4d   : > { %28300 = vmatpush3.msra.mxu0 %v32598_v56  ;;  %v23608_v5 = vld [vmem:[%s33045_s18 + $0x8] sm:$0xff] }
 0xd4e   : > { %v22448_v3 = vpop.f32.mrf.mxu0  ;;  %28301 = vmatprep.subr.mxu0 %v28689_v24 }
 0xd4f   : > { %v22449_v52 = vadd.f32 %v22448_v3, %v22375_v45 }
 0xd50   : > { %v28223_v58 = vpop.f32.mrf.mxu0 }
 0xd51   : > { %v22523_v4 = vadd.f32 %v22522_v35, %v22449_v52  ;;  %v32617_v52 = vand.u32 4294901760, %v23608_v5  ;;  %v23607_v58 = vld [vmem:[%s33045_s18] sm:$0xff] }
 0xd52   : > { %v22596_v12 = vpop.f32.mrf.mxu0 }
 0xd53   : > { %v22597_v57 = vadd.f32 %v22596_v12, %v22523_v4 }
 0xd54   : > { %v28233_v8 = vpop.f32.mrf.mxu0 }
 0xd55   : > { %v22669_v26 = vadd.f32 %v22668_v31, %v22597_v57  ;;  %v32604_v31 = vsub.f32 %v23610_v28, %v32598_v56  ;;  %v32629_v57 = vsub.f32 %v23608_v5, %v32617_v52  ;;  %v32631_v8 = vand.u32 4294901760, %v23607_v58 }
 0xd57   : > { %v23571_v11 = vsel %vm800_vm0, %v22669_v26, 0.0  ;;  %v23727_v45 = vand.u32 4294901760, %v32604_v31 }
 0xd58   : > { %v23572_v30 = vadd.f32 %v23571_v11, %v23570_v9  ;;  %v23741_v11 = vand.u32 4294901760, %v32629_v57 }
 0xd59   : > { %v23728_v4 = vsub.f32 %v32604_v31, %v23727_v45 }
 0xd5b   : > { %v23729_v26 = vand.u32 4294901760, %v23728_v4 }
 0xd5d   : > { %28311 = vmatpush3.msra.mxu1 %v23729_v26 }
 0xd5e   : > { %28312 = vmatprep.subr.mxu1 %v28689_v24 }
 0xd60   : > { %v22823_v59 = vpop.f32.mrf.mxu1 }
 0xd62   : > { %v28248_v0 = vpop.f32.mrf.mxu1 }
 0xd63   : > { %v23742_v0 = vsub.f32 %v32629_v57, %v23741_v11 }
 0xd64   : > { %v22971_v10 = vpop.f32.mrf.mxu1 }
 0xd66   : > { %v28258_v14 = vpop.f32.mrf.mxu1 }
 0xd67   : > { %v23743_v14 = vand.u32 4294901760, %v23742_v0 }
 0xd68   : > { %v22747_v17 = vpop.f32.mrf.mxu0  ;;  %v23117_v1 = vpop.f32.mrf.mxu1 }
 0xd69   : > { %v22824_v13 = vadd.f32 %v22823_v59, %v22747_v17 }
 0xd6a   : > { %v28243_v22 = vpop.f32.mrf.mxu0  ;;  %v28268_v25 = vpop.f32.mrf.mxu1 }
 0xd6c   : > { %v22897_v33 = vpop.f32.mrf.mxu0 }
 0xd6d   : > { %v22898_v29 = vadd.f32 %v22897_v33, %v22824_v13  ;;  %v24888_v13 = vld [vmem:[%s33097_s9] ss:$0 sm:$0xff] }
 0xd6e   : > { %v28253_v6 = vpop.f32.mrf.mxu0 }
 0xd6f   : > { %v22972_v18 = vadd.f32 %v22971_v10, %v22898_v29 }
 0xd70   : > { %v23045_v20 = vpop.f32.mrf.mxu0 }
 0xd71   : > { %v23046_v21 = vadd.f32 %v23045_v20, %v22972_v18  ;;  %v24887_v20 = vld [vmem:[%s33096_s10] ss:$0 sm:$0xff]  ;;  %s28691_s10 = smov [#allocation4]  }
 0xd72   : > { %v28263_v42 = vpop.f32.mrf.mxu0  ;;  %s28575_s8 = sshll.u32 %s28691_s10, 4  ;;  %s28576_s8 = int_to_ptr.vmem [resolvable:$false] %s28575_s8 }
 0xd73   : > { %v23118_v60 = vadd.f32 %v23117_v1, %v23046_v21  ;;  %v24114_v21 = vld [vmem:[%s33047_s20 + $0x38] sm:$0xff]  ;;  %s28577_s9 = scalar_lea.vmem %s28576_s8, 1024  ;;  %p28578_p0 = scmp.lt.s32.totalorder %s32928_s25, %s28576_s8 }
 0xd74   : > { %p28579_p1 = scmp.lt.s32.totalorder %s28577_s9, %s28571_s28 }
 0xd75   : > { %v23573_v61 = vsel %vm800_vm0, %v23118_v60, 0.0  ;;  %v24112_v60 = vld [vmem:[%s33047_s20 + $0x28] sm:$0xff] }
 0xd76   : > { %v23574_v15 = vadd.f32 %v23573_v61, %v23572_v30  ;;  %v32640_v30 = vsub.f32 %v23607_v58, %v32631_v8  ;;  %v24107_v58 = vld [vmem:[%s33047_s20] sm:$0xff]  ;;  %p28580_p2 = por %p28579_p1, %p28578_p0 }
 0xd78   : > { %v23748_v10 = vand.u32 4294901760, %v32640_v30  ;;  %p28581_p3 = pnand %p28580_p2, %p28574_p13 }
 0xd7a   : > { %v23749_v17 = vsub.f32 %v32640_v30, %v23748_v10 }
 0xd7c   : > { %v23750_v1 = vand.u32 4294901760, %v23749_v17 }
 0xd7e   : > { %v23272_v53 = vpop.f32.mrf.mxu1 }
 0xd80   : > { %v28278_v43 = vpop.f32.mrf.mxu1 }
 0xd82   : > { %v23420_v51 = vpop.f32.mrf.mxu1 }
 0xd84   : > { %v28288_v34 = vpop.f32.mrf.mxu1 }
 0xd86   : > { %v23196_v47 = vpop.f32.mrf.mxu0  ;;  %v23566_v49 = vpop.f32.mrf.mxu1 }
 0xd87   : > { %v23273_v23 = vadd.f32 %v23272_v53, %v23196_v47 }
 0xd88   : > { %v28273_v36 = vpop.f32.mrf.mxu0  ;;  %v28298_v19 = vpop.f32.mrf.mxu1 }
 0xd89   : > { %v32713_v36 = vand.u32 4294901760, %v24114_v21  ;;  %v24113_v19 = vld [vmem:[%s33047_s20 + $0x30] sm:$0xff] }
 0xd8a   : > { %v23346_v16 = vpop.f32.mrf.mxu0 }
 0xd8b   : > { %v23347_v32 = vadd.f32 %v23346_v16, %v23273_v23  ;;  %v32719_v23 = vsub.f32 %v24114_v21, %v32713_v36  ;;  %v32721_v16 = vand.u32 4294901760, %v24113_v19 }
 0xd8c   : > { %v28283_v27 = vpop.f32.mrf.mxu0 }
 0xd8d   : > { %v23421_v41 = vadd.f32 %v23420_v51, %v23347_v32  ;;  %v24221_v32 = vand.u32 4294901760, %v32719_v23  ;;  %v32730_v27 = vsub.f32 %v24113_v19, %v32721_v16 }
 0xd8e   : > { %v23494_v50 = vpop.f32.mrf.mxu0 }
 0xd8f   : > { %v23495_v38 = vadd.f32 %v23494_v50, %v23421_v41  ;;  %v32732_v41 = vand.u32 4294901760, %v24112_v60  ;;  %v24111_v50 = vld [vmem:[%s33047_s20 + $0x20] sm:$0xff]  ;;  %v24222_v61 = vsub.f32 %v32719_v23, %v24221_v32 }
 0xd90   : > { %v28293_v54 = vpop.f32.mrf.mxu0 }
 0xd91   : > { %v23567_v7 = vadd.f32 %v23566_v49, %v23495_v38  ;;  %v24228_v38 = vand.u32 4294901760, %v32730_v27  ;;  %v32744_v54 = vsub.f32 %v24112_v60, %v32732_v41 }
 0xd93   : > { %v23575_v46 = vsel %vm800_vm0, %v23567_v7, 0.0  ;;  %v32746_v7 = vand.u32 4294901760, %v24111_v50 }
 0xd94   : > { %v23576_v55 = vadd.f32 %v23575_v46, %v23574_v15  ;;  %v24110_v15 = vld [vmem:[%s33047_s20 + $0x18] sm:$0xff]  ;;  %v24223_v46 = vand.u32 4294901760, %v24222_v61 }
 0xd96   : > { %v32589_v2 = vadd.f32 %v23576_v55, %v30724_v62  ;;  %v23609_v62 = vld [vmem:[%s33045_s18 + $0x10] sm:$0xff]  ;;  %v24229_v55 = vsub.f32 %v32730_v27, %v24228_v38 }
 0xd97   : > { %v32606_v48 = vand.u32 4294901760, %v23609_v62 }
 0xd98   : > { %v23578_v63 = vsel %vm800_vm0, %v32589_v2, 0.0 }
 0xd99   : > { %23579 = vadd.xlane.f32.xlu0 %v23578_v63  ;;  %v32615_v3 = vsub.f32 %v23609_v62, %v32606_v48  ;;  %28302 = vmatpush3.msra.mxu0 %v32606_v48  ;;  %v24235_v63 = vand.u32 4294901760, %v32744_v54 }
 0xd9a   : > { %28303 = vmatprep.subr.mxu0 %v28689_v24 }
 0xd9b   : > { %v23734_v12 = vand.u32 4294901760, %v32615_v3  ;;  %28304 = vmatpush3.msra.mxu0 %v32617_v52 }
 0xd9c   : > { %28305 = vmatprep.subr.mxu0 %v28689_v24 }
 0xd9d   : > { %v23735_v9 = vsub.f32 %v32615_v3, %v23734_v12  ;;  %28306 = vmatpush3.msra.mxu0 %v32631_v8 }
 0xd9e   : > { %28321 = vmatprep.subr.mxu0 %v28689_v24 }
 0xd9f   : > { %v23736_v59 = vand.u32 4294901760, %v23735_v9 }
 0xda1   : > { %28313 = vmatpush3.msra.mxu1 %v23736_v59 }
 0xda2   : > { %28314 = vmatprep.subr.mxu1 %v28689_v24 }
 0xda3   : > { %28315 = vmatpush3.msra.mxu1 %v23743_v14 }
 0xda4   : > { %28316 = vmatprep.subr.mxu1 %v28689_v24 }
 0xda5   : > { %28317 = vmatpush3.msra.mxu1 %v23750_v1 }
 0xda6   : > { %28332 = vmatprep.subr.mxu1 %v28689_v24 }
 0xe22   : > { %v23580_v37 = vpop.xlane.xlu0 %23579 }
 0xe23   : > { %v23581_v39 = vmul.f32 0.03125, %v23580_v37  ;;  %v32758_v37 = vsub.f32 %v24111_v50, %v32746_v7 }
 0xe25   : > { %v23582_v40 = vsub.f32 %v32589_v2, %v23581_v39  ;;  %v32761_v39 = vand.u32 4294901760, %v24110_v15  ;;  %v24242_v28 = vand.u32 4294901760, %v32758_v37 }
 0xe27   : > { %v23583_v44 = vmul.f32 %v23582_v40, %v23582_v40  ;;  %v32775_v62 = vsub.f32 %v24110_v15, %v32761_v39  ;;  %v24243_v5 = vsub.f32 %v32758_v37, %v24242_v28 }
 0xe29   : > { %v23584_v35 = vsel %vm800_vm0, %v23583_v44, 0.0  ;;  %v24230_v44 = vand.u32 4294901760, %v24229_v55  ;;  %v24244_v4 = vand.u32 4294901760, %v24243_v5 }
 0xe2a   : > { %23585 = vadd.xlane.f32.xlu1 %v23584_v35  ;;  %v24236_v35 = vsub.f32 %v32744_v54, %v24235_v63 }
 0xeb3   : > { %v23586_v22 = vpop.xlane.xlu1 %23585 }
 0xeb4   : > { %v23587_v25 = vmul.f32 0.03125, %v23586_v22 }
 0xeb6   : > { %v23588_v33 = vadd.f32 1e-05, %v23587_v25 }
 0xeb8   : > { %28568 = vrsqrt.f32 %v23588_v33 }
 0xec5   : > { %v28569_v6 = vpop.eup %28568 }
 0xec6   : > { %v23590_v42 = vmul.f32 %v28569_v6, %v23582_v40  ;;  %v24109_v40 = vld [vmem:[%s33047_s20 + $0x10] sm:$0xff] }
 0xec8   : > { %v23598_v53 = vmul.f32 %v24887_v20, %v23590_v42 }
 0xeca   : > { %v23606_v29 = vadd.f32 %v24888_v13, %v23598_v53  ;;  %v24889_v53 = vld [vmem:[%s33046_s19] ss:$0 sm:$0xff] }
 0xecc   : > { %v23619_v43 = vsel %vm800_vm0, %v23606_v29, 0 }
 0xecd   : > { %v23690_v51 = vand.u32 4294901760, %v23619_v43 }
 0xecf   : > { %v23691_v18 = vsub.f32 %v23619_v43, %v23690_v51  ;;  %28319 = vmatmul.mubr.f32.vlgmr.msra.gmra.mxu1 %v23690_v51 }
 0xed0   : > { %28333 = vmatpush3.msra.mxu1 %v32598_v56  ;;  %28340 = vmatprep.mubr.msk.f32.mxu1 %vm28690_vm1, %v28689_v24 }
 0xed1   : > { %28334 = vmatprep.subr.mxu1 %v28689_v24  ;;  %v23692_v34 = vand.u32 4294901760, %v23691_v18 }
 0xed2   : > { %28335 = vmatpush3.msra.mxu1 %v32606_v48 }
 0xed3   : > { %28336 = vmatprep.subr.mxu1 %v28689_v24  ;;  %v23693_v47 = vsub.f32 %v23691_v18, %v23692_v34 }
 0xed4   : > { %28337 = vmatpush3.msra.mxu1 %v32617_v52 }
 0xed5   : > { %28338 = vmatprep.subr.mxu1 %v28689_v24  ;;  %v23694_v49 = vand.u32 4294901760, %v23693_v47 }
 0xed6   : > { %28339 = vmatpush3.msra.mxu1 %v32631_v8 }
 0xed7   : > { %28341 = vmatmul.mubr.f32.vlgmr.msra.gmra.mxu1 %v23692_v34  ;;  %28354 = vmatprep.subr.mxu1 %v28689_v24 }
 0xed8   : > { %28308 = vmatmul.mubr.f32.vlgmr.msra.gmra.mxu0 %v23694_v49  ;;  %28355 = vmatpush3.msra.mxu1 %v32598_v56  ;;  %v32771_v56 = vand.u32 4294901760, %v24109_v40 }
 0xed9   : > { %28322 = vmatpush3.msra.mxu0 %v32604_v31  ;;  %28356 = vmatprep.subr.mxu1 %v28689_v24  ;;  %v24108_v31 = vld [vmem:[%s33047_s20 + $0x8] sm:$0xff] }
 0xeda   : > { %28323 = vmatprep.subr.mxu0 %v28689_v24  ;;  %28357 = vmatpush3.msra.mxu1 %v32606_v48  ;;  %v24237_v48 = vand.u32 4294901760, %v24236_v35 }
 0xedb   : > { %28324 = vmatpush3.msra.mxu0 %v32615_v3  ;;  %28358 = vmatprep.subr.mxu1 %v28689_v24  ;;  %v32787_v3 = vand.u32 4294901760, %v24108_v31 }
 0xedc   : > { %28325 = vmatprep.subr.mxu0 %v28689_v24  ;;  %28359 = vmatpush3.msra.mxu1 %v32617_v52  ;;  %v24249_v52 = vand.u32 4294901760, %v32775_v62 }
 0xedd   : > { %28326 = vmatpush3.msra.mxu0 %v32629_v57  ;;  %28360 = vmatprep.subr.mxu1 %v28689_v24  ;;  %v32798_v57 = vsub.f32 %v24108_v31, %v32787_v3 }
 0xede   : > { %28327 = vmatprep.subr.mxu0 %v28689_v24  ;;  %28329 = vmatprep.mubr.msk.f32.mxu0 %vm28690_vm1, %v28689_v24  ;;  %v24250_v26 = vsub.f32 %v32775_v62, %v24249_v52 }
 0xedf   : > { %28328 = vmatpush3.msra.mxu0 %v32640_v30  ;;  %28361 = vmatpush3.msra.mxu1 %v32631_v8  ;;  %v32800_v8 = vand.u32 4294901760, %v24107_v58 }
 0xee0   : > { %28362 = vmatprep.mubr.msk.f32.mxu1 %vm28690_vm1, %v28689_v24  ;;  %28330 = vmatmul.mubr.f32.vlgmr.msra.gmra.mxu0 %v23691_v18  ;;  %v24251_v59 = vand.u32 4294901760, %v24250_v26 }
 0xee1   : > { %28343 = vmatprep.subr.mxu0 %v28689_v24  ;;  %28363 = vmatmul.mubr.f32.vlgmr.msra.gmra.mxu1 %v23690_v51  ;;  %v32813_v30 = vsub.f32 %v24107_v58, %v32800_v8 }
 0xee2   : > { %28344 = vmatpush3.msra.mxu0 %v23727_v45  ;;  %28351 = vmatprep.mubr.msk.f32.mxu0 %vm28690_vm1, %v28689_v24  ;;  %v32785_v45 = vsub.f32 %v24109_v40, %v32771_v56 }
 0xee3   : > { %28345 = vmatprep.subr.mxu0 %v28689_v24  ;;  %28384 = vmatprep.subr.mxu1 %v28689_v24  ;;  %v24270_v14 = vand.u32 4294901760, %v32813_v30 }
 0xee4   : > { %28346 = vmatpush3.msra.mxu0 %v23734_v12  ;;  %28400 = vmatprep.mubr.msk.f32.mxu1 %vm28690_vm1, %v28689_v24  ;;  %v24256_v12 = vand.u32 4294901760, %v32785_v45 }
 0xee5   : > { %28347 = vmatprep.subr.mxu0 %v28689_v24  ;;  %28385 = vmatpush3.msra.mxu1 %v24223_v46  ;;  %v24271_v1 = vsub.f32 %v32813_v30, %v24270_v14 }
 0xee6   : > { %28348 = vmatpush3.msra.mxu0 %v23741_v11  ;;  %28386 = vmatprep.subr.mxu1 %v28689_v24  ;;  %v24257_v9 = vsub.f32 %v32785_v45, %v24256_v12  ;;  %v24263_v11 = vand.u32 4294901760, %v32798_v57 }
 0xee7   : > { %28349 = vmatprep.subr.mxu0 %v28689_v24  ;;  %28387 = vmatpush3.msra.mxu1 %v24230_v44  ;;  %v24272_v22 = vand.u32 4294901760, %v24271_v1 }
 0xee8   : > { %28350 = vmatpush3.msra.mxu0 %v23748_v10  ;;  %28388 = vmatprep.subr.mxu1 %v28689_v24  ;;  %v24258_v0 = vand.u32 4294901760, %v24257_v9  ;;  %v24264_v10 = vsub.f32 %v32798_v57, %v24263_v11 }
 0xee9   : > { %28352 = vmatmul.mubr.f32.vlgmr.msra.gmra.mxu0 %v23690_v51  ;;  %28365 = vmatprep.subr.mxu0 %v28689_v24 }
 0xeea   : > { %28381 = vmatprep.mubr.msk.f32.mxu0 %vm28690_vm1, %v28689_v24  ;;  %28366 = vmatpush3.msra.mxu0 %v32713_v36  ;;  %v24265_v17 = vand.u32 4294901760, %v24264_v10 }
 0xeeb   : > { %28367 = vmatprep.subr.mxu0 %v28689_v24  ;;  %28389 = vmatpush3.msra.mxu1 %v24237_v48 }
 0xeec   : > { %28368 = vmatpush3.msra.mxu0 %v32721_v16  ;;  %28390 = vmatprep.subr.mxu1 %v28689_v24 }
 0xeed   : > { %28369 = vmatprep.subr.mxu0 %v28689_v24  ;;  %28391 = vmatpush3.msra.mxu1 %v24244_v4 }
 0xeee   : > { %28370 = vmatpush3.msra.mxu0 %v32732_v41  ;;  %28392 = vmatprep.subr.mxu1 %v28689_v24 }
 0xeef   : > { %28371 = vmatprep.subr.mxu0 %v28689_v24  ;;  %28393 = vmatpush3.msra.mxu1 %v24251_v59 }
 0xef0   : > { %28372 = vmatpush3.msra.mxu0 %v32746_v7  ;;  %28394 = vmatprep.subr.mxu1 %v28689_v24 }
 0xef1   : > { %28373 = vmatprep.subr.mxu0 %v28689_v24  ;;  %28395 = vmatpush3.msra.mxu1 %v24258_v0 }
 0xef2   : > { %28374 = vmatpush3.msra.mxu0 %v32761_v39  ;;  %28396 = vmatprep.subr.mxu1 %v28689_v24 }
 0xef3   : > { %28375 = vmatprep.subr.mxu0 %v28689_v24  ;;  %28397 = vmatpush3.msra.mxu1 %v24265_v17 }
 0xef4   : > { %28376 = vmatpush3.msra.mxu0 %v32771_v56  ;;  %28398 = vmatprep.subr.mxu1 %v28689_v24 }
 0xef5   : > { %28377 = vmatprep.subr.mxu0 %v28689_v24  ;;  %28399 = vmatpush3.msra.mxu1 %v24272_v22 }
 0xef6   : > { %28378 = vmatpush3.msra.mxu0 %v32787_v3  ;;  %28422 = vmatprep.subr.mxu1 %v28689_v24 }
 0xef7   : > { %28379 = vmatprep.subr.mxu0 %v28689_v24 }
 0xef8   : > { %28380 = vmatpush3.msra.mxu0 %v32800_v8 }
 0xef9   : > { %28403 = vmatprep.subr.mxu0 %v28689_v24 }
 0xf8f   : > { %v23787_v25 = vpop.f32.mrf.mxu1 }
 0xf91   : > { %v28320_v33 = vpop.f32.mrf.mxu1 }
 0xf97   : > { %v23944_v6 = vpop.f32.mrf.mxu1 }
 0xf98   : > { %v23696_v20 = vpop.f32.mrf.mxu0 }
 0xf99   : > { %v28342_v42 = vpop.f32.mrf.mxu1  ;;  %v23697_v29 = vadd.f32 %v24889_v53, %v23696_v20 }
 0xf9a   : > { %v28309_v13 = vpop.f32.mrf.mxu0 }
 0xf9b   : > { %v23788_v18 = vadd.f32 %v23787_v25, %v23697_v29 }
 0xfa0   : > { %v23867_v43 = vpop.f32.mrf.mxu0 }
 0xfa1   : > { %v24102_v51 = vpop.f32.mrf.mxu1  ;;  %v23868_v49 = vadd.f32 %v23867_v43, %v23788_v18 }
 0xfa2   : > { %v28331_v34 = vpop.f32.mrf.mxu0 }
 0xfa3   : > { %v28364_v47 = vpop.f32.mrf.mxu1  ;;  %v23945_v21 = vadd.f32 %v23944_v6, %v23868_v49 }
 0xfa9   : > { %v24027_v19 = vpop.f32.mrf.mxu0 }
 0xfaa   : > { %v24028_v60 = vadd.f32 %v24027_v19, %v23945_v21 }
 0xfab   : > { %v28353_v50 = vpop.f32.mrf.mxu0 }
 0xfac   : > { %v24103_v61 = vadd.f32 %v24102_v51, %v24028_v60 }
 0xfae   : > { %v24106_v15 = vmax.f32 %v24103_v61, 0.0 }
 0xfb0   : > { %v24117_v46 = vsel %vm24115_vm3, %v24106_v15, 0 }
 0xfb1   : > { %v32833_v55 = vand.u32 4294901760, %v24117_v46 }
 0xfb3   : > { %v24193_v40 = vsub.f32 %v24117_v46, %v32833_v55  ;;  %28401 = vmatmul.mubr.f32.vlgmr.msra.gmra.mxu1 %v32833_v55 }
 0xfb4   : > { %28423 = vmatpush3.msra.mxu1 %v32713_v36  ;;  %28438 = vmatprep.mubr.msk.f32.mxu1 %vm28690_vm1, %v28689_v24 }
 0xfb5   : > { %v24194_v44 = vand.u32 4294901760, %v24193_v40  ;;  %28424 = vmatprep.subr.mxu1 %v28689_v24 }
 0xfb6   : > { %28425 = vmatpush3.msra.mxu1 %v32721_v16 }
 0xfb7   : > { %v24195_v35 = vsub.f32 %v24193_v40, %v24194_v44  ;;  %28426 = vmatprep.subr.mxu1 %v28689_v24 }
 0xfb8   : > { %28427 = vmatpush3.msra.mxu1 %v32732_v41 }
 0xfb9   : > { %v24196_v31 = vand.u32 4294901760, %v24195_v35  ;;  %28428 = vmatprep.subr.mxu1 %v28689_v24 }
 0xfba   : > { %28429 = vmatpush3.msra.mxu1 %v32746_v7 }
 0xfbb   : > { %28430 = vmatprep.subr.mxu1 %v28689_v24  ;;  %28382 = vmatmul.mubr.f32.vlgmr.msra.gmra.mxu0 %v24196_v31 }
 0xfbc   : > { %28404 = vmatpush3.msra.mxu0 %v32719_v23  ;;  %28431 = vmatpush3.msra.mxu1 %v32761_v39 }
 0xfbd   : > { %28405 = vmatprep.subr.mxu0 %v28689_v24  ;;  %28432 = vmatprep.subr.mxu1 %v28689_v24 }
 0xfbe   : > { %28406 = vmatpush3.msra.mxu0 %v32730_v27  ;;  %28433 = vmatpush3.msra.mxu1 %v32771_v56 }
 0xfbf   : > { %28407 = vmatprep.subr.mxu0 %v28689_v24  ;;  %28434 = vmatprep.subr.mxu1 %v28689_v24 }
 0xfc0   : > { %28408 = vmatpush3.msra.mxu0 %v32744_v54  ;;  %28435 = vmatpush3.msra.mxu1 %v32787_v3 }
 0xfc1   : > { %28409 = vmatprep.subr.mxu0 %v28689_v24  ;;  %28436 = vmatprep.subr.mxu1 %v28689_v24 }
 0xfc2   : > { %28410 = vmatpush3.msra.mxu0 %v32758_v37  ;;  %28437 = vmatpush3.msra.mxu1 %v32800_v8 }
 0xfc3   : > { %28411 = vmatprep.subr.mxu0 %v28689_v24  ;;  %28439 = vmatmul.mubr.f32.vlgmr.msra.gmra.mxu1 %v24194_v44 }
 0xfc4   : > { %28460 = vmatprep.subr.mxu1 %v28689_v24  ;;  %28412 = vmatpush3.msra.mxu0 %v32775_v62 }
 0xfc5   : > { %28461 = vmatpush3.msra.mxu1 %v32713_v36  ;;  %28413 = vmatprep.subr.mxu0 %v28689_v24 }
 0xfc6   : > { %28462 = vmatprep.subr.mxu1 %v28689_v24  ;;  %28414 = vmatpush3.msra.mxu0 %v32785_v45 }
 0xfc7   : > { %28463 = vmatpush3.msra.mxu1 %v32721_v16  ;;  %28415 = vmatprep.subr.mxu0 %v28689_v24 }
 0xfc8   : > { %28464 = vmatprep.subr.mxu1 %v28689_v24  ;;  %28416 = vmatpush3.msra.mxu0 %v32798_v57 }
 0xfc9   : > { %28465 = vmatpush3.msra.mxu1 %v32732_v41  ;;  %28417 = vmatprep.subr.mxu0 %v28689_v24 }
 0xfca   : > { %28466 = vmatprep.subr.mxu1 %v28689_v24  ;;  %28418 = vmatpush3.msra.mxu0 %v32813_v30 }
 0xfcb   : > { %28419 = vmatprep.mubr.msk.f32.mxu0 %vm28690_vm1, %v28689_v24  ;;  %28467 = vmatpush3.msra.mxu1 %v32746_v7 }
 0xfcc   : > { %28420 = vmatmul.mubr.f32.vlgmr.msra.gmra.mxu0 %v24193_v40  ;;  %28441 = vmatprep.subr.mxu0 %v28689_v24 }
 0xfcd   : > { %28468 = vmatprep.subr.mxu1 %v28689_v24  ;;  %28442 = vmatpush3.msra.mxu0 %v24221_v32 }
 0xfce   : > { %28469 = vmatpush3.msra.mxu1 %v32761_v39  ;;  %28443 = vmatprep.subr.mxu0 %v28689_v24 }
 0xfcf   : > { %28470 = vmatprep.subr.mxu1 %v28689_v24  ;;  %28444 = vmatpush3.msra.mxu0 %v24228_v38 }
 0xfd0   : > { %28471 = vmatpush3.msra.mxu1 %v32771_v56  ;;  %28445 = vmatprep.subr.mxu0 %v28689_v24 }
 0xfd1   : > { %28472 = vmatprep.subr.mxu1 %v28689_v24  ;;  %28446 = vmatpush3.msra.mxu0 %v24235_v63 }
 0xfd2   : > { %28473 = vmatpush3.msra.mxu1 %v32787_v3  ;;  %28447 = vmatprep.subr.mxu0 %v28689_v24 }
 0xfd3   : > { %28474 = vmatprep.subr.mxu1 %v28689_v24  ;;  %28448 = vmatpush3.msra.mxu0 %v24242_v28 }
 0xfd4   : > { %28475 = vmatpush3.msra.mxu1 %v32800_v8  ;;  %28476 = vmatprep.mubr.msk.f32.mxu1 %vm28690_vm1, %v28689_v24 }
 0xfd5   : > { %28449 = vmatprep.subr.mxu0 %v28689_v24  ;;  %28477 = vmatmul.mubr.f32.vlgmr.msra.gmra.mxu1 %v32833_v55 }
 0xfd6   : > { %28450 = vmatpush3.msra.mxu0 %v24249_v52  ;;  %28457 = vmatprep.mubr.msk.f32.mxu0 %vm28690_vm1, %v28689_v24 }
 0xfd7   : > { %28451 = vmatprep.subr.mxu0 %v28689_v24 }
 0xfd8   : > { %28452 = vmatpush3.msra.mxu0 %v24256_v12 }
 0xfd9   : > { %28453 = vmatprep.subr.mxu0 %v28689_v24 }
 0xfda   : > { %28454 = vmatpush3.msra.mxu0 %v24263_v11 }
 0xfdb   : > { %28455 = vmatprep.subr.mxu0 %v28689_v24 }
 0xfdc   : > { %28456 = vmatpush3.msra.mxu0 %v24270_v14 }
 0xfdd   : > { %28458 = vmatmul.mubr.f32.vlgmr.msra.gmra.mxu0 %v32833_v55 }
 0xfde   : > { %28584 = shalt.err (!%p28581_p3)
}
 0xfdf   : > { %s28585_s29 = scalar_lea.hbm %s32925_s7, 512  ;;  %s28589_s0 = scalar_lea.hbm %s33050_s23, 1024 }
 0xfe0   : > { %p28586_p4 = scmp.ne.s32.totalorder %s32925_s7, %s28585_s29  ;;  %p28590_p9 = scmp.lt.s32.totalorder %s32925_s7, %s33050_s23 }
 0xfe1   : > { %p28591_p10 = scmp.lt.s32.totalorder %s28589_s0, %s28585_s29 }
 0xfe2   : > { %p28587_p7 = pnand %p28586_p4, %p28861_p5 }
 0xfe3   : > { %p28592_p11 = por %p28591_p10, %p28590_p9 }
 0xfe4   : > { %p28588_p8 = pneg %p28587_p7 }
 0xfe6   : > { %p28593_p12 = pnand %p28592_p11, %p28588_p8 }
 0xfe8   : > { %28596 = shalt.err (!%p28593_p12)
}
 0xfe9   : > { %s33063_s9 = smov 128   ;;  %s28693_s8 = smov 8  }
 0xfea   : > { %28480 = dma.vmem_to_hbm [thread:$0]  (%p28861_p5), %s32928_s25, 512, %s32925_s7, %s32930_s5, %s33063_s9, %s33063_s9, %s28693_s8  }
 0xfeb   : > { %s33098_s2 = sshll.u32 %s32312_s30, 4  ;;  %s33099_s28 = sshll.u32 %s28842_s6, 9  ;;  %s32958_s2 = int_to_ptr.vmem [resolvable:$true] %s33098_s2 }
 0xfec   : > { %s24718_s1 = scalar_lea.hbm %s33051_s24, %s33099_s28  ;;  %s28597_s0 = scalar_lea.vmem %s32958_s2, 512 }
 0xfed   : > { %p28598_p13 = scmp.ne.s32.totalorder %s32958_s2, %s28597_s0  ;;  %s28694_s10 = smov [#allocation6]  }
 0xfee   : > { %s28601_s11 = sshll.u32 %s28694_s10, 4  ;;  %s28602_s11 = int_to_ptr.vmem [resolvable:$false] %s28601_s11 }
 0xfef   : > { %p28599_p0 = pnand %p28598_p13, %p28861_p5  ;;  %s28603_s7 = scalar_lea.vmem %s28602_s11, 1024 }
 0xff0   : > { %p28604_p2 = scmp.lt.s32.totalorder %s32958_s2, %s28602_s11  ;;  %p28605_p3 = scmp.lt.s32.totalorder %s28603_s7, %s28597_s0 }
 0xff1   : > { %p28600_p1 = pneg %p28599_p0 }
 0xff2   : > { %p28606_p4 = por %p28605_p3, %p28604_p2 }
 0xff4   : > { %p28607_p7 = pnand %p28606_p4, %p28600_p1 }
 0xff6   : > { %28610 = shalt.err (!%p28607_p7)
}
 0xff7   : > { %s28611_s30 = scalar_lea.hbm %s24718_s1, 512  ;;  %s28615_s29 = scalar_lea.hbm %s33051_s24, 1024 }
 0xff8   : > { %p28612_p8 = scmp.ne.s32.totalorder %s24718_s1, %s28611_s30  ;;  %p28616_p11 = scmp.lt.s32.totalorder %s24718_s1, %s33051_s24 }
 0xff9   : > { %p28617_p12 = scmp.lt.s32.totalorder %s28615_s29, %s28611_s30 }
 0xffa   : > { %p28613_p9 = pnand %p28612_p8, %p28861_p5 }
 0xffb   : > { %p28618_p13 = por %p28617_p12, %p28616_p11 }
 0xffc   : > { %p28614_p10 = pneg %p28613_p9 }
 0xffe   : > { %p28619_p0 = pnand %p28618_p13, %p28614_p10 }
0x1000   : > { %28622 = shalt.err (!%p28619_p0)
}
0x1001   : > { %s33100_s11 = smov 128   ;;  %s24876_s9 = sshll.u32 %s30439_s27, 3  ;;  %v24890_v5 = vld [vmem:[%s33048_s21] ss:$0 sm:$0xff] }
0x1002   : > { %28481 = dma.vmem_to_hbm [thread:$0]  (%p28861_p5), %s32958_s2, 512, %s24718_s1, %s32930_s5, %s33100_s11, %s33100_s11, %s28693_s8  }
0x1003   : > { %s24894_s2 = sshll.u32 %s28842_s6, 7  ;;  %s767_s1 = scalar_lea.vmem [#allocation2], %s24876_s9 }
0x1004   : > { %s24690_s0 = sshll.u32 %s767_s1, 4  ;;  %s24688_s30 = scalar_lea.hbm %s33049_s22, %s24894_s2  ;;  %s24691_s0 = int_to_ptr.vmem [resolvable:$true] %s24690_s0 }
0x1005   : > { %s24667_s25 = scalar_lea.sflag [#allocation3], %s30439_s27  ;;  %s28623_s28 = scalar_lea.vmem %s24691_s0, 128 }
0x1006   : > { %p28624_p1 = scmp.ne.s32.totalorder %s24691_s0, %s28623_s28  ;;  %s28695_s29 = smov [#allocation2]  }
0x1007   : > { %s28627_s6 = sshll.u32 %s28695_s29, 4  ;;  %s28628_s6 = int_to_ptr.vmem [resolvable:$false] %s28627_s6 }
0x1008   : > { %p28625_p2 = pnand %p28624_p1, %p28861_p5  ;;  %s28629_s4 = scalar_lea.vmem %s28628_s6, 256 }
0x1009   : > { %p28630_p4 = scmp.lt.s32.totalorder %s24691_s0, %s28628_s6  ;;  %p28631_p7 = scmp.lt.s32.totalorder %s28629_s4, %s28623_s28 }
0x100a   : > { %p28626_p3 = pneg %p28625_p2 }
0x100b   : > { %p28632_p8 = por %p28631_p7, %p28630_p4 }
0x100d   : > { %p28633_p9 = pnand %p28632_p8, %p28626_p3 }
0x1073   : > { %v24309_v24 = vpop.f32.mrf.mxu1 }
0x1075   : > { %v28402_v36 = vpop.f32.mrf.mxu1 }
0x107b   : > { %v24198_v23 = vpop.f32.mrf.mxu0 }
0x107c   : > { %v24310_v7 = vadd.f32 %v24309_v24, %v24198_v23 }
0x107d   : > { %v28383_v16 = vpop.f32.mrf.mxu0 }
0x1083   : > { %v24478_v32 = vpop.f32.mrf.mxu1 }
0x1085   : > { %v28440_v27 = vpop.f32.mrf.mxu1 }
0x108c   : > { %v24397_v41 = vpop.f32.mrf.mxu0 }
0x108d   : > { %v24398_v37 = vadd.f32 %v24397_v41, %v24310_v7 }
0x108e   : > { %v28421_v38 = vpop.f32.mrf.mxu0 }
0x108f   : > { %v24479_v39 = vadd.f32 %v24478_v32, %v24398_v37 }
0x1095   : > { %v24652_v54 = vpop.f32.mrf.mxu1 }
0x1097   : > { %v28478_v63 = vpop.f32.mrf.mxu1 }
0x109d   : > { %v24573_v28 = vpop.f32.mrf.mxu0 }
0x109e   : > { %v24574_v56 = vadd.f32 %v24573_v28, %v24479_v39 }
0x109f   : > { %v28459_v62 = vpop.f32.mrf.mxu0 }
0x10a0   : > { %v24653_v48 = vadd.f32 %v24652_v54, %v24574_v56 }
0x10a2   : > { %v24656_v45 = vadd.f32 %v24653_v48, %v32589_v2 }
0x10a4   : > { %v24664_v3 = vadd.f32 %v24890_v5, %v24656_v45 }
0x10a6   : > { %24665 = vst.msk [vmem:[%s767_s1] sm:$0xff] %vm800_vm0, %v24664_v3 }
0x10a7   : > { %28636 = shalt.err (!%p28633_p9)
}
0x10a8   : > { %s28637_s11 = scalar_lea.hbm %s24688_s30, 128  ;;  %s28641_s5 = scalar_lea.hbm %s33049_s22, 256 }
0x10a9   : > { %p28638_p10 = scmp.ne.s32.totalorder %s24688_s30, %s28637_s11  ;;  %p28642_p13 = scmp.lt.s32.totalorder %s24688_s30, %s33049_s22 }
0x10aa   : > { %p28643_p0 = scmp.lt.s32.totalorder %s28641_s5, %s28637_s11 }
0x10ab   : > { %p28639_p11 = pnand %p28638_p10, %p28861_p5 }
0x10ac   : > { %p28644_p1 = por %p28643_p0, %p28642_p13 }
0x10ad   : > { %p28640_p12 = pneg %p28639_p11 }
0x10af   : > { %p28645_p2 = pnand %p28644_p1, %p28640_p12 }
0x10b1   : > { %28648 = shalt.err (!%p28645_p2)
}
0x10b2   : > { %28479 = dma.vmem_to_hbm [thread:$0]  (%p28861_p5), %s24691_s0, 128, %s24688_s30, %s24667_s25  }
0x10b3 PF: > { %s33101_s1 = sld [smem:[#allocation11_spill]] }
0x10b4   : > { %s33102_s10 = sld [smem:[#allocation9_spill]] }
0x10b9   : > { %p28495_p3 = scmp.ge.s32.totalorder %s33101_s1, 2 }
0x10ba   : > { %s24734_s28 = sand.u32 1, %s33102_s10  }
0x10bb   : > { %p28486_p4 = pnand %p28495_p3, %p28865_p6  ;;  %s24735_s29 = scalar_lea.sflag [#allocation3], %s24734_s28 }
0x10bd   : > { %p28487_p7 = pneg %p28486_p4 }
0x10bf   : > { %28666 = dma.done.wait (%p28487_p7), %s24735_s29, 128  }
0x10c0   : > { %28668 = vsyncadd (%p28487_p7), %s24735_s29, 4294967168  ;;  %s33104_s6 = sadd.s32 4294967294, %s33101_s1  }
0x10c1   : > { %s24743_s4 = sand.u32 1, %s33104_s6  }
0x10c2   : > { %s24744_s11 = scalar_lea.sflag [#allocation5], %s24743_s4 }
0x10c3   : > { %28670 = dma.done.wait (%p28487_p7), %s24744_s11, 1024  }
0x10c4   : > { %28672 = vsyncadd (%p28487_p7), %s24744_s11, 4294966272  ;;  %s33105_s28 = sld [smem:[#allocation12_spill]]  ;;  %s33108_s5 = smov %s28679_s26 }
0x10c5   : > { %s33106_s3 = sld [smem:[#allocation10_spill]] }
0x10c6   : > { %s33107_s27 = sld [smem:[#allocation13_spill]] }
0x10ca   : > { %p38_p5 = scmp.ge.s32.totalorder %s33105_s28, 4  }
0x10cb   : > { %s33109_s26 = smov %s33106_s3 }
0x10cc   :  { %40 = sbr.rel (!%p38_p5) target bundleno = 18 (0x12), region = 184 }
0x10d1   :  { %24758 = vsyncpa [#allocation3], 1 }
0x10d2   :  { %24760 = vsyncpa [#allocation3 + $0x1], 1 }
0x10d3   :  { %24761 = vsyncpa [#allocation5], 1 }
0x10d4   :  { %24763 = vsyncpa [#allocation5 + $0x1], 1 }

</bundles_post_ra>
